<compile_context>
chip_gen: v5e
topology: v5e:2x2
jax: 0.10.0
libtpu: 0.0.40
codegen_flags: <defaults>
</compile_context>

<pallas_src>
import functools

import numpy as np
import jax
import jax.numpy as jnp
from jax.experimental import pallas as pl
from jax.experimental.pallas import tpu as pltpu


def _round_up(v, m):
    return (v + m - 1) // m * m


# ----------------------------------------------------------------------------
# Kernel 1: fully fused discriminator forward (per image / grid step)
# ----------------------------------------------------------------------------
def _disc_fused_kernel(p1_ref, w1_ref, b1_ref,
                       s2_ref, w2_ref, b2_ref,
                       s3_ref, w3_ref, b3_ref,
                       s4_ref, w4_ref, b4_ref,
                       fcw_ref, fcb_ref, o_ref, *, slope, head_rows):

    def conv(lhs_bf16, w_ref, b_ref):
        # bf16 MXU matmul, f32 accumulation + f32 epilogue (v5e-safe).
        acc = jnp.dot(lhs_bf16, w_ref[...], preferred_element_type=jnp.float32)
        y = acc + b_ref[...]                         # conv bias + folded BN shift
        return jnp.where(y >= 0.0, y, slope * y)     # LeakyReLU(0.2), f32

    def gather_patches(s_ref, a_bf16):
        # In-kernel im2col for 3x3 / stride-2 / pad-1: 0/1 selection matmuls pick the
        # source spatial row per tap (zero rows where the tap hits padding).  Exact in
        # bf16 (each output element is a single copied bf16 value or 0).
        blocks = [
            jnp.dot(s_ref[t], a_bf16,
                    preferred_element_type=jnp.float32).astype(jnp.bfloat16)
            for t in range(s_ref.shape[0])
        ]
        return jnp.concatenate(blocks, axis=-1)       # (M_out, 9*Cin), K >= 256

    # ---- layer 1: patches pre-formed in the wrapper, K lane-dense (128) ----
    a = conv(p1_ref[0], w1_ref, b1_ref).astype(jnp.bfloat16)            # (64, 128)
    # ---- layers 2..3 ----
    a = conv(gather_patches(s2_ref, a), w2_ref, b2_ref).astype(jnp.bfloat16)  # (16, 128)
    a = conv(gather_patches(s3_ref, a), w3_ref, b3_ref).astype(jnp.bfloat16)  # (8, 256)
    # ---- layer 4: keep f32 for the head ----
    y = conv(gather_patches(s4_ref, a), w4_ref, b4_ref)                 # (8, 512) f32

    # ---- head: AdaptiveAvgPool2d(1) + Linear(512, 1) + Sigmoid ----
    y = y[:head_rows, :]                                                # valid spatial rows
    # Linear(512, 1) on the VPU (multiply + lane reduce); pooling commutes with the
    # linear layer, so average the per-row logits.
    row_logits = jnp.sum(y * fcw_ref[...], axis=-1, keepdims=True)      # (head_rows, 1)
    logit = jnp.mean(row_logits, axis=0, keepdims=True) + fcb_ref[...]  # (1, 1)
    o_ref[0] = jax.nn.sigmoid(logit)


def discriminator_forward(x_nchw, params, *, slope=0.2):
    conv_params, sel_mats, head_params = params
    (w1, b1), (w2, b2), (w3, b3), (w4, b4) = conv_params
    s2, s3, s4 = sel_mats
    fc_w, fc_b = head_params

    # NCHW (PyTorch) -> NHWC; bf16 MXU operands.
    x = jnp.transpose(x_nchw, (0, 2, 3, 1)).astype(jnp.bfloat16)
    p1, (n, _, _) = _im2col_stride2(x, k_pad=w1.shape[0])     # (N, 64, 128) bf16
    assert p1.shape[1] == s2.shape[2]

    # valid spatial rows of the last conv layer (1 for a 16x16 input)
    hh, ww = x_nchw.shape[2], x_nchw.shape[3]
    for _ in range(len(conv_params)):
        hh, ww = (hh - 1) // 2 + 1, (ww - 1) // 2 + 1
    head_rows = hh * ww

    operands = (p1, w1, b1, s2, w2, b2, s3, w3, b3, s4, w4, b4, fc_w, fc_b)

    # cost estimate (advisory)
    flops = 2 * p1.shape[1] * w1.shape[0] * w1.shape[1]
    for s, (wm, _) in zip((s2, s3, s4), conv_params[1:]):
        t, mo, mi = s.shape
        cin = wm.shape[0] // t
        flops += 2 * t * mo * mi * cin                 # selection (gather) matmuls
        flops += 2 * mo * wm.shape[0] * wm.shape[1]    # main conv matmul
    flops *= n
    in_bytes = sum(int(a.size) * a.dtype.itemsize for a in operands)
    cost = pl.CostEstimate(flops=int(flops), transcendentals=2 * n,
                           bytes_accessed=int(in_bytes) + n * 4)

    # VMEM limit sized from the real working set (~3.2 MiB constants, double-buffered
    # by the pipeline) + headroom -- well under every generation's scoped budget.
    vmem_limit = int(2 * in_bytes + (6 << 20))

    out = pl.pallas_call(
        functools.partial(_disc_fused_kernel, slope=slope, head_rows=head_rows),
        out_shape=jax.ShapeDtypeStruct((n, 1, 1), jnp.float32),
        grid=(n,),
        in_specs=[
            pl.BlockSpec((1,) + p1.shape[1:], lambda i: (i, 0, 0)),   # per-image patches
            pl.BlockSpec(w1.shape, lambda i: (0, 0)),                 # resident weights
            pl.BlockSpec(b1.shape, lambda i: (0, 0)),
            pl.BlockSpec(s2.shape, lambda i: (0, 0, 0)),
            pl.BlockSpec(w2.shape, lambda i: (0, 0)),
            pl.BlockSpec(b2.shape, lambda i: (0, 0)),
            pl.BlockSpec(s3.shape, lambda i: (0, 0, 0)),
            pl.BlockSpec(w3.shape, lambda i: (0, 0)),
            pl.BlockSpec(b3.shape, lambda i: (0, 0)),
            pl.BlockSpec(s4.shape, lambda i: (0, 0, 0)),
            pl.BlockSpec(w4.shape, lambda i: (0, 0)),
            pl.BlockSpec(b4.shape, lambda i: (0, 0)),
            pl.BlockSpec(fc_w.shape, lambda i: (0, 0)),
            pl.BlockSpec(fc_b.shape, lambda i: (0, 0)),
        ],
        out_specs=pl.BlockSpec((1, 1, 1), lambda i: (i, 0, 0)),
        compiler_params=pltpu.CompilerParams(
            dimension_semantics=("parallel",),        # one image per TC on v7x
            vmem_limit_bytes=vmem_limit,
        ),
        cost_estimate=cost,
    )(*operands)
    return out.reshape(n, 1)


# ----------------------------------------------------------------------------
# Kernel 2: AdversarialLoss == nn.BCELoss() (mean reduction, log clamped at -100)
# ----------------------------------------------------------------------------
def _bce_mean(p, t):
    log_p = jnp.maximum(jnp.log(p), -100.0)          # PyTorch BCELoss clamps at -100
    log_1mp = jnp.maximum(jnp.log(1.0 - p), -100.0)
    loss = -(t * log_p + (1.0 - t) * log_1mp)
    return jnp.mean(loss, axis=(0, 1), keepdims=True)   # (1, 1)


def _bce_kernel(pred_ref, target_ref, o_ref):
    o_ref[...] = _bce_mean(pred_ref[...].astype(jnp.float32),
                           target_ref[...].astype(jnp.float32))


def adversarial_loss(pred, target):
    """AdversarialLoss.forward(pred, target) == nn.BCELoss()(pred, target)."""
    r, c = pred.shape
    out = pl.pallas_call(
        _bce_kernel,
        out_shape=jax.ShapeDtypeStruct((1, 1), jnp.float32),
        grid=(1,),
        in_specs=[
            pl.BlockSpec((r, c), lambda i: (0, 0)),
            pl.BlockSpec((r, c), lambda i: (0, 0)),
        ],
        out_specs=pl.BlockSpec((1, 1), lambda i: (0, 0)),
    )(pred, target)
    return out[0, 0]


def _bce_pair_kernel(pred_ref, treal_ref, tfake_ref, o_ref):
    p = pred_ref[...].astype(jnp.float32)
    lr = _bce_mean(p, treal_ref[...].astype(jnp.float32))
    lf = _bce_mean(p, tfake_ref[...].astype(jnp.float32))
    o_ref[...] = jnp.concatenate([lr, lf], axis=-1)


def adversarial_loss_pair(pred, target_real, target_fake):
    """Both GAN losses (real + fake targets) in a single dispatch."""
    r, c = pred.shape
    out = pl.pallas_call(
        _bce_pair_kernel,
        out_shape=jax.ShapeDtypeStruct((1, 2), jnp.float32),
        grid=(1,),
        in_specs=[
            pl.BlockSpec((r, c), lambda i: (0, 0)),
            pl.BlockSpec((r, c), lambda i: (0, 0)),
            pl.BlockSpec((r, c), lambda i: (0, 0)),
        ],
        out_specs=pl.BlockSpec((1, 2), lambda i: (0, 0)),
    )(pred, target_real, target_fake)
    return out[0, 0], out[0, 1]


def _bce_reference(pred, target):
    log_p = jnp.maximum(jnp.log(pred), -100.0)
    log_1mp = jnp.maximum(jnp.log(1.0 - pred), -100.0)
    return jnp.mean(-(target * log_p + (1.0 - target) * log_1mp))


# ----------------------------------------------------------------------------
# Glue: layer-1 im2col, parameter / selection-matrix construction (plain JAX / numpy)
# ----------------------------------------------------------------------------
def _im2col_stride2(x_nhwc, k_pad):
    n, h, w, c = x_nhwc.shape
    ho, wo = (h - 1) // 2 + 1, (w - 1) // 2 + 1
    xp = jnp.pad(x_nhwc, ((0, 0), (1, 1), (1, 1), (0, 0)))
    cols = [xp[:, kh:kh + 2 * ho:2, kw:kw + 2 * wo:2, :]
            for kh in range(3) for kw in range(3)]
    p = jnp.concatenate(cols, axis=-1).reshape(n, ho * wo, 9 * c)
    if k_pad > 9 * c:
        p = jnp.pad(p, ((0, 0), (0, 0), (0, k_pad - 9 * c)))
    return p, (n, ho, wo)


def _build_selection(h_in, w_in, m_out_pad, m_in_pad):
    # S[t, m_out, m_in] = 1 where tap t of output position m_out reads input row m_in
    # (3x3 kernel, stride 2, pad 1); zero where the tap lands in the padding halo.
    h_out, w_out = (h_in - 1) // 2 + 1, (w_in - 1) // 2 + 1
    s = np.zeros((9, m_out_pad, m_in_pad), np.float32)
    for kh in range(3):
        for kw in range(3):
            t = kh * 3 + kw
            for ho in range(h_out):
                for wo in range(w_out):
                    r, c = 2 * ho + kh - 1, 2 * wo + kw - 1
                    if 0 <= r < h_in and 0 <= c < w_in:
                        s[t, ho * w_out + wo, r * w_in + c] = 1.0
    return jnp.asarray(s, jnp.bfloat16)


def init_params(key, in_channels=3, h=16, w=16):
    eps = 1e-5
    cin_list = [in_channels, 64, 128, 256]
    cout_list = [64, 128, 256, 512]
    cin_pad = [in_channels, 128, 128, 256]    # layer-1 Cout padded -> layer-2 Cin padded
    cout_pad = [128, 128, 256, 512]           # lane-dense channels everywhere

    spatial = [(h, w)]
    for _ in range(4):
        hi, wi = spatial[-1]
        spatial.append(((hi - 1) // 2 + 1, (wi - 1) // 2 + 1))
    m_nat = [sh * sw for sh, sw in spatial]                 # [256, 64, 16, 4, 1]
    m_pad = [max(8, _round_up(m, 8)) for m in m_nat]        # [256, 64, 16, 8, 8]

    conv_params = []
    for li in range(4):
        cin, cout = cin_list[li], cout_list[li]
        key, k1, k2, k3, k4, k5, k6 = jax.random.split(key, 7)
        w_oihw = 0.02 * jax.random.normal(k1, (cout, cin, 3, 3), jnp.float32)
        b = 0.02 * jax.random.normal(k2, (cout,), jnp.float32)
        if li == 0:
            scale = jnp.ones((cout,), jnp.float32)
            shift = b
        else:
            gamma = 1.0 + 0.1 * jax.random.normal(k3, (cout,), jnp.float32)
            beta = 0.1 * jax.random.normal(k4, (cout,), jnp.float32)
            rmean = 0.1 * jax.random.normal(k5, (cout,), jnp.float32)
            rvar = 1.0 + 0.1 * jnp.abs(jax.random.normal(k6, (cout,), jnp.float32))
            s = gamma / jnp.sqrt(rvar + eps)
            scale = s
            shift = (b - rmean) * s + beta
        # OIHW -> (kh, kw, cin, cout); fold BN scale into the weights.
        w_hwio = jnp.transpose(w_oihw, (2, 3, 1, 0)) * scale[None, None, None, :]
        ci_p = cin_pad[li]
        if ci_p != cin:
            w_hwio = jnp.pad(w_hwio, ((0, 0), (0, 0), (0, ci_p - cin), (0, 0)))
        w_mat = w_hwio.reshape(9 * ci_p, cout)
        if li == 0:                            # lane-dense contraction dim: 27 -> 128
            w_mat = jnp.pad(w_mat, ((0, 128 - w_mat.shape[0]), (0, 0)))
        co_p = cout_pad[li]
        if co_p != cout:
            # Padded output channels get zero weights AND zero shift so LeakyReLU(0)=0
            # feeds exact zeros into the (also zeroed) padded Cin rows of the next layer.
            w_mat = jnp.pad(w_mat, ((0, 0), (0, co_p - cout)))
            shift = jnp.pad(shift, (0, co_p - cout))
        conv_params.append((w_mat.astype(jnp.bfloat16),
                            shift.reshape(1, co_p).astype(jnp.float32)))

    # 0/1 patch-gather matrices for layers 2..4 (in-kernel im2col).
    sel_mats = tuple(
        _build_selection(spatial[li][0], spatial[li][1], m_pad[li + 1], m_pad[li])
        for li in range(1, 4))

    key, k1, k2 = jax.random.split(key, 3)
    fc_w = 0.02 * jax.random.normal(k1, (512, 1), jnp.float32)
    fc_b = 0.02 * jax.random.normal(k2, (1, 1), jnp.float32)
    head_params = (fc_w.reshape(1, 512), fc_b)            # row-vector form for the VPU head
    return conv_params, sel_mats, head_params


def reference_forward(x_nchw, params, *, slope=0.2):
    """Pure-JAX (XLA) reference with the same bf16/f32 numerics and padded params."""
    conv_params, _, head_params = params
    x = jnp.transpose(x_nchw, (0, 2, 3, 1)).astype(jnp.bfloat16)
    n_layers = len(conv_params)
    y = None
    for li, (w_mat, shift) in enumerate(conv_params):
        p, (n, ho, wo) = _im2col_stride2(x, k_pad=w_mat.shape[0])
        y = jnp.einsum("nmk,kc->nmc", p, w_mat,
                       preferred_element_type=jnp.float32) + shift
        y = jnp.where(y >= 0.0, y, slope * y)
        if li + 1 < n_layers:
            x = y.astype(jnp.bfloat16).reshape(n, ho, wo, -1)
    fc_w, fc_b = head_params
    row_logits = jnp.sum(y * fc_w, axis=-1, keepdims=True)     # (n, s4, 1)
    logits = jnp.mean(row_logits, axis=1) + fc_b                # (n, 1)
    return jax.nn.sigmoid(logits)


# ----------------------------------------------------------------------------
if __name__ == "__main__":
    key = jax.random.PRNGKey(0)
    key, pkey, xkey = jax.random.split(key, 3)
    params = init_params(pkey, in_channels=3, h=16, w=16)

    # Small input consistent with the GAN: NCHW, 3 channels, 16x16 spatial.
    x = jax.random.normal(xkey, (2, 3, 16, 16), jnp.float32)

    fwd = jax.jit(lambda xx: discriminator_forward(xx, params))
    pred = jax.block_until_ready(fwd(x))
    assert pred.shape == (2, 1)
    assert bool(jnp.all(jnp.isfinite(pred)))
    assert bool(jnp.all((pred >= 0.0) & (pred <= 1.0)))

    # Fused Pallas discriminator vs. independent plain-JAX reference (same numerics).
    pred_ref = jax.block_until_ready(reference_forward(x, params))
    assert float(jnp.max(jnp.abs(pred - pred_ref))) < 5e-3

    # AdversarialLoss (the spec module): BCE of the discriminator output vs. labels.
    target_real = jnp.ones((2, 1), jnp.float32)
    target_fake = jnp.zeros((2, 1), jnp.float32)

    # Single-dispatch real+fake path used in GAN training.
    loss_real, loss_fake = jax.block_until_ready(
        adversarial_loss_pair(pred, target_real, target_fake))
    assert abs(float(loss_real) - float(_bce_reference(pred, target_real))) < 1e-5
    assert abs(float(loss_fake) - float(_bce_reference(pred, target_fake))) < 1e-5
    assert float(loss_real) >= 0.0 and float(loss_fake) >= 0.0

    # Standalone spec kernel agrees with the fused-pair kernel.
    loss_single = jax.block_until_ready(adversarial_loss(pred, target_real))
    assert abs(float(loss_single) - float(loss_real)) < 1e-6

    # Edge case exercising the BCELoss log clamp (log(0) -> -100).
    pred_edge = jnp.array([[0.0], [1.0], [0.25], [0.9]], jnp.float32)
    target_edge = jnp.array([[0.0], [1.0], [1.0], [0.0]], jnp.float32)
    loss_edge = jax.block_until_ready(adversarial_loss(pred_edge, target_edge))
    assert abs(float(loss_edge) - float(_bce_reference(pred_edge, target_edge))) < 1e-4

    print("KERNEL_OK")
</pallas_src>

<mosaic_0001>
module attributes {stable_mosaic.version = 11 : i64} {
  func.func @_disc_fused_kernel(%arg0: i32, %arg1: memref<1x64x128xbf16, #tpu.memory_space<vmem>>, %arg2: memref<128x128xbf16, #tpu.memory_space<vmem>>, %arg3: memref<1x128xf32, #tpu.memory_space<vmem>>, %arg4: memref<9x16x64xbf16, #tpu.memory_space<vmem>>, %arg5: memref<1152x128xbf16, #tpu.memory_space<vmem>>, %arg6: memref<1x128xf32, #tpu.memory_space<vmem>>, %arg7: memref<9x8x16xbf16, #tpu.memory_space<vmem>>, %arg8: memref<1152x256xbf16, #tpu.memory_space<vmem>>, %arg9: memref<1x256xf32, #tpu.memory_space<vmem>>, %arg10: memref<9x8x8xbf16, #tpu.memory_space<vmem>>, %arg11: memref<2304x512xbf16, #tpu.memory_space<vmem>>, %arg12: memref<1x512xf32, #tpu.memory_space<vmem>>, %arg13: memref<1x512xf32, #tpu.memory_space<vmem>>, %arg14: memref<1x1xf32, #tpu.memory_space<vmem>>, %arg15: memref<1x1x1xf32, #tpu.memory_space<vmem>>) attributes {dimension_semantics = [#tpu.dimension_semantics<parallel>], iteration_bounds = array<i64: 2>, scalar_prefetch = 0 : i64, scratch_operands = 0 : i64, tpu.core_type = #tpu.core_type<tc>, window_params = [{transform_indices = @transform_0, window_bounds = array<i64: 1, 64, 128>}, {pipeline_mode = #tpu.pipeline_mode<synchronous>, transform_indices = @transform_1, window_bounds = array<i64: 128, 128>}, {pipeline_mode = #tpu.pipeline_mode<synchronous>, transform_indices = @transform_2, window_bounds = array<i64: 1, 128>}, {pipeline_mode = #tpu.pipeline_mode<synchronous>, transform_indices = @transform_3, window_bounds = array<i64: 9, 16, 64>}, {pipeline_mode = #tpu.pipeline_mode<synchronous>, transform_indices = @transform_4, window_bounds = array<i64: 1152, 128>}, {pipeline_mode = #tpu.pipeline_mode<synchronous>, transform_indices = @transform_5, window_bounds = array<i64: 1, 128>}, {pipeline_mode = #tpu.pipeline_mode<synchronous>, transform_indices = @transform_6, window_bounds = array<i64: 9, 8, 16>}, {pipeline_mode = #tpu.pipeline_mode<synchronous>, transform_indices = @transform_7, window_bounds = array<i64: 1152, 256>}, {pipeline_mode = #tpu.pipeline_mode<synchronous>, transform_indices = @transform_8, window_bounds = array<i64: 1, 256>}, {pipeline_mode = #tpu.pipeline_mode<synchronous>, transform_indices = @transform_9, window_bounds = array<i64: 9, 8, 8>}, {pipeline_mode = #tpu.pipeline_mode<synchronous>, transform_indices = @transform_10, window_bounds = array<i64: 2304, 512>}, {pipeline_mode = #tpu.pipeline_mode<synchronous>, transform_indices = @transform_11, window_bounds = array<i64: 1, 512>}, {pipeline_mode = #tpu.pipeline_mode<synchronous>, transform_indices = @transform_12, window_bounds = array<i64: 1, 512>}, {pipeline_mode = #tpu.pipeline_mode<synchronous>, transform_indices = @transform_13, window_bounds = array<i64: 1, 1>}, {transform_indices = @transform_14, window_bounds = array<i64: 1, 1, 1>}]} {
    %c0 = arith.constant 0 : index
    %c0_0 = arith.constant 0 : index
    %c0_1 = arith.constant 0 : index
    %0 = vector.load %arg1[%c0, %c0_0, %c0_1] : memref<1x64x128xbf16, #tpu.memory_space<vmem>>, vector<1x64x128xbf16>
    %1 = vector.shape_cast %0 : vector<1x64x128xbf16> to vector<64x128xbf16>
    %c0_2 = arith.constant 0 : index
    %c0_3 = arith.constant 0 : index
    %2 = vector.load %arg2[%c0_2, %c0_3] : memref<128x128xbf16, #tpu.memory_space<vmem>>, vector<128x128xbf16>
    %cst = arith.constant dense<0.000000e+00> : vector<64x128xf32>
    %3 = tpu.matmul %1, %2, %cst {dimension_numbers = #tpu.dot_dimension_numbers<[1], [0], [0], [1], [0, 0, 1, 1], [], []>} : vector<64x128xbf16>, vector<128x128xbf16>, vector<64x128xf32> -> vector<64x128xf32>
    %c0_4 = arith.constant 0 : index
    %c0_5 = arith.constant 0 : index
    %4 = vector.load %arg3[%c0_4, %c0_5] : memref<1x128xf32, #tpu.memory_space<vmem>>, vector<1x128xf32>
    %5 = vector.broadcast %4 : vector<1x128xf32> to vector<64x128xf32>
    %6 = arith.addf %3, %5 : vector<64x128xf32>
    %cst_6 = arith.constant 0.000000e+00 : f32
    %7 = vector.broadcast %cst_6 : f32 to vector<64x128xf32>
    %8 = arith.cmpf oge, %6, %7 : vector<64x128xf32>
    %cst_7 = arith.constant 2.000000e-01 : f32
    %9 = vector.broadcast %cst_7 : f32 to vector<64x128xf32>
    %10 = arith.mulf %9, %6 : vector<64x128xf32>
    %11 = arith.select %8, %6, %10 : vector<64x128xi1>, vector<64x128xf32>
    %12 = arith.truncf %11 : vector<64x128xf32> to vector<64x128xbf16>
    %c0_8 = arith.constant 0 : index
    %c0_9 = arith.constant 0 : index
    %c0_10 = arith.constant 0 : index
    %13 = vector.load %arg4[%c0_8, %c0_9, %c0_10] : memref<9x16x64xbf16, #tpu.memory_space<vmem>>, vector<1x16x64xbf16>
    %14 = vector.shape_cast %13 : vector<1x16x64xbf16> to vector<16x64xbf16>
    %cst_11 = arith.constant dense<0.000000e+00> : vector<16x128xf32>
    %15 = tpu.matmul %14, %12, %cst_11 {dimension_numbers = #tpu.dot_dimension_numbers<[1], [0], [0], [1], [0, 0, 1, 1], [], []>} : vector<16x64xbf16>, vector<64x128xbf16>, vector<16x128xf32> -> vector<16x128xf32>
    %16 = arith.truncf %15 : vector<16x128xf32> to vector<16x128xbf16>
    %c1 = arith.constant 1 : index
    %c0_12 = arith.constant 0 : index
    %c0_13 = arith.constant 0 : index
    %17 = vector.load %arg4[%c1, %c0_12, %c0_13] : memref<9x16x64xbf16, #tpu.memory_space<vmem>>, vector<1x16x64xbf16>
    %18 = vector.shape_cast %17 : vector<1x16x64xbf16> to vector<16x64xbf16>
    %cst_14 = arith.constant dense<0.000000e+00> : vector<16x128xf32>
    %19 = tpu.matmul %18, %12, %cst_14 {dimension_numbers = #tpu.dot_dimension_numbers<[1], [0], [0], [1], [0, 0, 1, 1], [], []>} : vector<16x64xbf16>, vector<64x128xbf16>, vector<16x128xf32> -> vector<16x128xf32>
    %20 = arith.truncf %19 : vector<16x128xf32> to vector<16x128xbf16>
    %c2 = arith.constant 2 : index
    %c0_15 = arith.constant 0 : index
    %c0_16 = arith.constant 0 : index
    %21 = vector.load %arg4[%c2, %c0_15, %c0_16] : memref<9x16x64xbf16, #tpu.memory_space<vmem>>, vector<1x16x64xbf16>
    %22 = vector.shape_cast %21 : vector<1x16x64xbf16> to vector<16x64xbf16>
    %cst_17 = arith.constant dense<0.000000e+00> : vector<16x128xf32>
    %23 = tpu.matmul %22, %12, %cst_17 {dimension_numbers = #tpu.dot_dimension_numbers<[1], [0], [0], [1], [0, 0, 1, 1], [], []>} : vector<16x64xbf16>, vector<64x128xbf16>, vector<16x128xf32> -> vector<16x128xf32>
    %24 = arith.truncf %23 : vector<16x128xf32> to vector<16x128xbf16>
    %c3 = arith.constant 3 : index
    %c0_18 = arith.constant 0 : index
    %c0_19 = arith.constant 0 : index
    %25 = vector.load %arg4[%c3, %c0_18, %c0_19] : memref<9x16x64xbf16, #tpu.memory_space<vmem>>, vector<1x16x64xbf16>
    %26 = vector.shape_cast %25 : vector<1x16x64xbf16> to vector<16x64xbf16>
    %cst_20 = arith.constant dense<0.000000e+00> : vector<16x128xf32>
    %27 = tpu.matmul %26, %12, %cst_20 {dimension_numbers = #tpu.dot_dimension_numbers<[1], [0], [0], [1], [0, 0, 1, 1], [], []>} : vector<16x64xbf16>, vector<64x128xbf16>, vector<16x128xf32> -> vector<16x128xf32>
    %28 = arith.truncf %27 : vector<16x128xf32> to vector<16x128xbf16>
    %c4 = arith.constant 4 : index
    %c0_21 = arith.constant 0 : index
    %c0_22 = arith.constant 0 : index
    %29 = vector.load %arg4[%c4, %c0_21, %c0_22] : memref<9x16x64xbf16, #tpu.memory_space<vmem>>, vector<1x16x64xbf16>
    %30 = vector.shape_cast %29 : vector<1x16x64xbf16> to vector<16x64xbf16>
    %cst_23 = arith.constant dense<0.000000e+00> : vector<16x128xf32>
    %31 = tpu.matmul %30, %12, %cst_23 {dimension_numbers = #tpu.dot_dimension_numbers<[1], [0], [0], [1], [0, 0, 1, 1], [], []>} : vector<16x64xbf16>, vector<64x128xbf16>, vector<16x128xf32> -> vector<16x128xf32>
    %32 = arith.truncf %31 : vector<16x128xf32> to vector<16x128xbf16>
    %c5 = arith.constant 5 : index
    %c0_24 = arith.constant 0 : index
    %c0_25 = arith.constant 0 : index
    %33 = vector.load %arg4[%c5, %c0_24, %c0_25] : memref<9x16x64xbf16, #tpu.memory_space<vmem>>, vector<1x16x64xbf16>
    %34 = vector.shape_cast %33 : vector<1x16x64xbf16> to vector<16x64xbf16>
    %cst_26 = arith.constant dense<0.000000e+00> : vector<16x128xf32>
    %35 = tpu.matmul %34, %12, %cst_26 {dimension_numbers = #tpu.dot_dimension_numbers<[1], [0], [0], [1], [0, 0, 1, 1], [], []>} : vector<16x64xbf16>, vector<64x128xbf16>, vector<16x128xf32> -> vector<16x128xf32>
    %36 = arith.truncf %35 : vector<16x128xf32> to vector<16x128xbf16>
    %c6 = arith.constant 6 : index
    %c0_27 = arith.constant 0 : index
    %c0_28 = arith.constant 0 : index
    %37 = vector.load %arg4[%c6, %c0_27, %c0_28] : memref<9x16x64xbf16, #tpu.memory_space<vmem>>, vector<1x16x64xbf16>
    %38 = vector.shape_cast %37 : vector<1x16x64xbf16> to vector<16x64xbf16>
    %cst_29 = arith.constant dense<0.000000e+00> : vector<16x128xf32>
    %39 = tpu.matmul %38, %12, %cst_29 {dimension_numbers = #tpu.dot_dimension_numbers<[1], [0], [0], [1], [0, 0, 1, 1], [], []>} : vector<16x64xbf16>, vector<64x128xbf16>, vector<16x128xf32> -> vector<16x128xf32>
    %40 = arith.truncf %39 : vector<16x128xf32> to vector<16x128xbf16>
    %c7 = arith.constant 7 : index
    %c0_30 = arith.constant 0 : index
    %c0_31 = arith.constant 0 : index
    %41 = vector.load %arg4[%c7, %c0_30, %c0_31] : memref<9x16x64xbf16, #tpu.memory_space<vmem>>, vector<1x16x64xbf16>
    %42 = vector.shape_cast %41 : vector<1x16x64xbf16> to vector<16x64xbf16>
    %cst_32 = arith.constant dense<0.000000e+00> : vector<16x128xf32>
    %43 = tpu.matmul %42, %12, %cst_32 {dimension_numbers = #tpu.dot_dimension_numbers<[1], [0], [0], [1], [0, 0, 1, 1], [], []>} : vector<16x64xbf16>, vector<64x128xbf16>, vector<16x128xf32> -> vector<16x128xf32>
    %44 = arith.truncf %43 : vector<16x128xf32> to vector<16x128xbf16>
    %c8 = arith.constant 8 : index
    %c0_33 = arith.constant 0 : index
    %c0_34 = arith.constant 0 : index
    %45 = vector.load %arg4[%c8, %c0_33, %c0_34] : memref<9x16x64xbf16, #tpu.memory_space<vmem>>, vector<1x16x64xbf16>
    %46 = vector.shape_cast %45 : vector<1x16x64xbf16> to vector<16x64xbf16>
    %cst_35 = arith.constant dense<0.000000e+00> : vector<16x128xf32>
    %47 = tpu.matmul %46, %12, %cst_35 {dimension_numbers = #tpu.dot_dimension_numbers<[1], [0], [0], [1], [0, 0, 1, 1], [], []>} : vector<16x64xbf16>, vector<64x128xbf16>, vector<16x128xf32> -> vector<16x128xf32>
    %48 = arith.truncf %47 : vector<16x128xf32> to vector<16x128xbf16>
    %49 = tpu.concatenate %16, %20, %24, %28, %32, %36, %40, %44, %48 in 1 : vector<16x128xbf16>, vector<16x128xbf16>, vector<16x128xbf16>, vector<16x128xbf16>, vector<16x128xbf16>, vector<16x128xbf16>, vector<16x128xbf16>, vector<16x128xbf16>, vector<16x128xbf16> -> vector<16x1152xbf16>
    %c0_36 = arith.constant 0 : index
    %c0_37 = arith.constant 0 : index
    %50 = vector.load %arg5[%c0_36, %c0_37] : memref<1152x128xbf16, #tpu.memory_space<vmem>>, vector<1152x128xbf16>
    %cst_38 = arith.constant dense<0.000000e+00> : vector<16x128xf32>
    %51 = tpu.matmul %49, %50, %cst_38 {dimension_numbers = #tpu.dot_dimension_numbers<[1], [0], [0], [1], [0, 0, 1, 1], [], []>} : vector<16x1152xbf16>, vector<1152x128xbf16>, vector<16x128xf32> -> vector<16x128xf32>
    %c0_39 = arith.constant 0 : index
    %c0_40 = arith.constant 0 : index
    %52 = vector.load %arg6[%c0_39, %c0_40] : memref<1x128xf32, #tpu.memory_space<vmem>>, vector<1x128xf32>
    %53 = vector.broadcast %52 : vector<1x128xf32> to vector<16x128xf32>
    %54 = arith.addf %51, %53 : vector<16x128xf32>
    %cst_41 = arith.constant 0.000000e+00 : f32
    %55 = vector.broadcast %cst_41 : f32 to vector<16x128xf32>
    %56 = arith.cmpf oge, %54, %55 : vector<16x128xf32>
    %cst_42 = arith.constant 2.000000e-01 : f32
    %57 = vector.broadcast %cst_42 : f32 to vector<16x128xf32>
    %58 = arith.mulf %57, %54 : vector<16x128xf32>
    %59 = arith.select %56, %54, %58 : vector<16x128xi1>, vector<16x128xf32>
    %60 = arith.truncf %59 : vector<16x128xf32> to vector<16x128xbf16>
    %c0_43 = arith.constant 0 : index
    %c0_44 = arith.constant 0 : index
    %c0_45 = arith.constant 0 : index
    %61 = vector.load %arg7[%c0_43, %c0_44, %c0_45] : memref<9x8x16xbf16, #tpu.memory_space<vmem>>, vector<1x8x16xbf16>
    %62 = vector.shape_cast %61 : vector<1x8x16xbf16> to vector<8x16xbf16>
    %cst_46 = arith.constant dense<0.000000e+00> : vector<8x128xf32>
    %63 = tpu.matmul %62, %60, %cst_46 {dimension_numbers = #tpu.dot_dimension_numbers<[1], [0], [0], [1], [0, 0, 1, 1], [], []>} : vector<8x16xbf16>, vector<16x128xbf16>, vector<8x128xf32> -> vector<8x128xf32>
    %64 = arith.truncf %63 : vector<8x128xf32> to vector<8x128xbf16>
    %c1_47 = arith.constant 1 : index
    %c0_48 = arith.constant 0 : index
    %c0_49 = arith.constant 0 : index
    %65 = vector.load %arg7[%c1_47, %c0_48, %c0_49] : memref<9x8x16xbf16, #tpu.memory_space<vmem>>, vector<1x8x16xbf16>
    %66 = vector.shape_cast %65 : vector<1x8x16xbf16> to vector<8x16xbf16>
    %cst_50 = arith.constant dense<0.000000e+00> : vector<8x128xf32>
    %67 = tpu.matmul %66, %60, %cst_50 {dimension_numbers = #tpu.dot_dimension_numbers<[1], [0], [0], [1], [0, 0, 1, 1], [], []>} : vector<8x16xbf16>, vector<16x128xbf16>, vector<8x128xf32> -> vector<8x128xf32>
    %68 = arith.truncf %67 : vector<8x128xf32> to vector<8x128xbf16>
    %c2_51 = arith.constant 2 : index
    %c0_52 = arith.constant 0 : index
    %c0_53 = arith.constant 0 : index
    %69 = vector.load %arg7[%c2_51, %c0_52, %c0_53] : memref<9x8x16xbf16, #tpu.memory_space<vmem>>, vector<1x8x16xbf16>
    %70 = vector.shape_cast %69 : vector<1x8x16xbf16> to vector<8x16xbf16>
    %cst_54 = arith.constant dense<0.000000e+00> : vector<8x128xf32>
    %71 = tpu.matmul %70, %60, %cst_54 {dimension_numbers = #tpu.dot_dimension_numbers<[1], [0], [0], [1], [0, 0, 1, 1], [], []>} : vector<8x16xbf16>, vector<16x128xbf16>, vector<8x128xf32> -> vector<8x128xf32>
    %72 = arith.truncf %71 : vector<8x128xf32> to vector<8x128xbf16>
    %c3_55 = arith.constant 3 : index
    %c0_56 = arith.constant 0 : index
    %c0_57 = arith.constant 0 : index
    %73 = vector.load %arg7[%c3_55, %c0_56, %c0_57] : memref<9x8x16xbf16, #tpu.memory_space<vmem>>, vector<1x8x16xbf16>
    %74 = vector.shape_cast %73 : vector<1x8x16xbf16> to vector<8x16xbf16>
    %cst_58 = arith.constant dense<0.000000e+00> : vector<8x128xf32>
    %75 = tpu.matmul %74, %60, %cst_58 {dimension_numbers = #tpu.dot_dimension_numbers<[1], [0], [0], [1], [0, 0, 1, 1], [], []>} : vector<8x16xbf16>, vector<16x128xbf16>, vector<8x128xf32> -> vector<8x128xf32>
    %76 = arith.truncf %75 : vector<8x128xf32> to vector<8x128xbf16>
    %c4_59 = arith.constant 4 : index
    %c0_60 = arith.constant 0 : index
    %c0_61 = arith.constant 0 : index
    %77 = vector.load %arg7[%c4_59, %c0_60, %c0_61] : memref<9x8x16xbf16, #tpu.memory_space<vmem>>, vector<1x8x16xbf16>
    %78 = vector.shape_cast %77 : vector<1x8x16xbf16> to vector<8x16xbf16>
    %cst_62 = arith.constant dense<0.000000e+00> : vector<8x128xf32>
    %79 = tpu.matmul %78, %60, %cst_62 {dimension_numbers = #tpu.dot_dimension_numbers<[1], [0], [0], [1], [0, 0, 1, 1], [], []>} : vector<8x16xbf16>, vector<16x128xbf16>, vector<8x128xf32> -> vector<8x128xf32>
    %80 = arith.truncf %79 : vector<8x128xf32> to vector<8x128xbf16>
    %c5_63 = arith.constant 5 : index
    %c0_64 = arith.constant 0 : index
    %c0_65 = arith.constant 0 : index
    %81 = vector.load %arg7[%c5_63, %c0_64, %c0_65] : memref<9x8x16xbf16, #tpu.memory_space<vmem>>, vector<1x8x16xbf16>
    %82 = vector.shape_cast %81 : vector<1x8x16xbf16> to vector<8x16xbf16>
    %cst_66 = arith.constant dense<0.000000e+00> : vector<8x128xf32>
    %83 = tpu.matmul %82, %60, %cst_66 {dimension_numbers = #tpu.dot_dimension_numbers<[1], [0], [0], [1], [0, 0, 1, 1], [], []>} : vector<8x16xbf16>, vector<16x128xbf16>, vector<8x128xf32> -> vector<8x128xf32>
    %84 = arith.truncf %83 : vector<8x128xf32> to vector<8x128xbf16>
    %c6_67 = arith.constant 6 : index
    %c0_68 = arith.constant 0 : index
    %c0_69 = arith.constant 0 : index
    %85 = vector.load %arg7[%c6_67, %c0_68, %c0_69] : memref<9x8x16xbf16, #tpu.memory_space<vmem>>, vector<1x8x16xbf16>
    %86 = vector.shape_cast %85 : vector<1x8x16xbf16> to vector<8x16xbf16>
    %cst_70 = arith.constant dense<0.000000e+00> : vector<8x128xf32>
    %87 = tpu.matmul %86, %60, %cst_70 {dimension_numbers = #tpu.dot_dimension_numbers<[1], [0], [0], [1], [0, 0, 1, 1], [], []>} : vector<8x16xbf16>, vector<16x128xbf16>, vector<8x128xf32> -> vector<8x128xf32>
    %88 = arith.truncf %87 : vector<8x128xf32> to vector<8x128xbf16>
    %c7_71 = arith.constant 7 : index
    %c0_72 = arith.constant 0 : index
    %c0_73 = arith.constant 0 : index
    %89 = vector.load %arg7[%c7_71, %c0_72, %c0_73] : memref<9x8x16xbf16, #tpu.memory_space<vmem>>, vector<1x8x16xbf16>
    %90 = vector.shape_cast %89 : vector<1x8x16xbf16> to vector<8x16xbf16>
    %cst_74 = arith.constant dense<0.000000e+00> : vector<8x128xf32>
    %91 = tpu.matmul %90, %60, %cst_74 {dimension_numbers = #tpu.dot_dimension_numbers<[1], [0], [0], [1], [0, 0, 1, 1], [], []>} : vector<8x16xbf16>, vector<16x128xbf16>, vector<8x128xf32> -> vector<8x128xf32>
    %92 = arith.truncf %91 : vector<8x128xf32> to vector<8x128xbf16>
    %c8_75 = arith.constant 8 : index
    %c0_76 = arith.constant 0 : index
    %c0_77 = arith.constant 0 : index
    %93 = vector.load %arg7[%c8_75, %c0_76, %c0_77] : memref<9x8x16xbf16, #tpu.memory_space<vmem>>, vector<1x8x16xbf16>
    %94 = vector.shape_cast %93 : vector<1x8x16xbf16> to vector<8x16xbf16>
    %cst_78 = arith.constant dense<0.000000e+00> : vector<8x128xf32>
    %95 = tpu.matmul %94, %60, %cst_78 {dimension_numbers = #tpu.dot_dimension_numbers<[1], [0], [0], [1], [0, 0, 1, 1], [], []>} : vector<8x16xbf16>, vector<16x128xbf16>, vector<8x128xf32> -> vector<8x128xf32>
    %96 = arith.truncf %95 : vector<8x128xf32> to vector<8x128xbf16>
    %97 = tpu.concatenate %64, %68, %72, %76, %80, %84, %88, %92, %96 in 1 : vector<8x128xbf16>, vector<8x128xbf16>, vector<8x128xbf16>, vector<8x128xbf16>, vector<8x128xbf16>, vector<8x128xbf16>, vector<8x128xbf16>, vector<8x128xbf16>, vector<8x128xbf16> -> vector<8x1152xbf16>
    %c0_79 = arith.constant 0 : index
    %c0_80 = arith.constant 0 : index
    %98 = vector.load %arg8[%c0_79, %c0_80] : memref<1152x256xbf16, #tpu.memory_space<vmem>>, vector<1152x256xbf16>
    %cst_81 = arith.constant dense<0.000000e+00> : vector<8x256xf32>
    %99 = tpu.matmul %97, %98, %cst_81 {dimension_numbers = #tpu.dot_dimension_numbers<[1], [0], [0], [1], [0, 0, 1, 1], [], []>} : vector<8x1152xbf16>, vector<1152x256xbf16>, vector<8x256xf32> -> vector<8x256xf32>
    %c0_82 = arith.constant 0 : index
    %c0_83 = arith.constant 0 : index
    %100 = vector.load %arg9[%c0_82, %c0_83] : memref<1x256xf32, #tpu.memory_space<vmem>>, vector<1x256xf32>
    %101 = vector.broadcast %100 : vector<1x256xf32> to vector<8x256xf32>
    %102 = arith.addf %99, %101 : vector<8x256xf32>
    %cst_84 = arith.constant 0.000000e+00 : f32
    %103 = vector.broadcast %cst_84 : f32 to vector<8x256xf32>
    %104 = arith.cmpf oge, %102, %103 : vector<8x256xf32>
    %cst_85 = arith.constant 2.000000e-01 : f32
    %105 = vector.broadcast %cst_85 : f32 to vector<8x256xf32>
    %106 = arith.mulf %105, %102 : vector<8x256xf32>
    %107 = arith.select %104, %102, %106 : vector<8x256xi1>, vector<8x256xf32>
    %108 = arith.truncf %107 : vector<8x256xf32> to vector<8x256xbf16>
    %c0_86 = arith.constant 0 : index
    %c0_87 = arith.constant 0 : index
    %c0_88 = arith.constant 0 : index
    %109 = vector.load %arg10[%c0_86, %c0_87, %c0_88] : memref<9x8x8xbf16, #tpu.memory_space<vmem>>, vector<1x8x8xbf16>
    %110 = vector.shape_cast %109 : vector<1x8x8xbf16> to vector<8x8xbf16>
    %cst_89 = arith.constant dense<0.000000e+00> : vector<8x256xf32>
    %111 = tpu.matmul %110, %108, %cst_89 {dimension_numbers = #tpu.dot_dimension_numbers<[1], [0], [0], [1], [0, 0, 1, 1], [], []>} : vector<8x8xbf16>, vector<8x256xbf16>, vector<8x256xf32> -> vector<8x256xf32>
    %112 = arith.truncf %111 : vector<8x256xf32> to vector<8x256xbf16>
    %c1_90 = arith.constant 1 : index
    %c0_91 = arith.constant 0 : index
    %c0_92 = arith.constant 0 : index
    %113 = vector.load %arg10[%c1_90, %c0_91, %c0_92] : memref<9x8x8xbf16, #tpu.memory_space<vmem>>, vector<1x8x8xbf16>
    %114 = vector.shape_cast %113 : vector<1x8x8xbf16> to vector<8x8xbf16>
    %cst_93 = arith.constant dense<0.000000e+00> : vector<8x256xf32>
    %115 = tpu.matmul %114, %108, %cst_93 {dimension_numbers = #tpu.dot_dimension_numbers<[1], [0], [0], [1], [0, 0, 1, 1], [], []>} : vector<8x8xbf16>, vector<8x256xbf16>, vector<8x256xf32> -> vector<8x256xf32>
    %116 = arith.truncf %115 : vector<8x256xf32> to vector<8x256xbf16>
    %c2_94 = arith.constant 2 : index
    %c0_95 = arith.constant 0 : index
    %c0_96 = arith.constant 0 : index
    %117 = vector.load %arg10[%c2_94, %c0_95, %c0_96] : memref<9x8x8xbf16, #tpu.memory_space<vmem>>, vector<1x8x8xbf16>
    %118 = vector.shape_cast %117 : vector<1x8x8xbf16> to vector<8x8xbf16>
    %cst_97 = arith.constant dense<0.000000e+00> : vector<8x256xf32>
    %119 = tpu.matmul %118, %108, %cst_97 {dimension_numbers = #tpu.dot_dimension_numbers<[1], [0], [0], [1], [0, 0, 1, 1], [], []>} : vector<8x8xbf16>, vector<8x256xbf16>, vector<8x256xf32> -> vector<8x256xf32>
    %120 = arith.truncf %119 : vector<8x256xf32> to vector<8x256xbf16>
    %c3_98 = arith.constant 3 : index
    %c0_99 = arith.constant 0 : index
    %c0_100 = arith.constant 0 : index
    %121 = vector.load %arg10[%c3_98, %c0_99, %c0_100] : memref<9x8x8xbf16, #tpu.memory_space<vmem>>, vector<1x8x8xbf16>
    %122 = vector.shape_cast %121 : vector<1x8x8xbf16> to vector<8x8xbf16>
    %cst_101 = arith.constant dense<0.000000e+00> : vector<8x256xf32>
    %123 = tpu.matmul %122, %108, %cst_101 {dimension_numbers = #tpu.dot_dimension_numbers<[1], [0], [0], [1], [0, 0, 1, 1], [], []>} : vector<8x8xbf16>, vector<8x256xbf16>, vector<8x256xf32> -> vector<8x256xf32>
    %124 = arith.truncf %123 : vector<8x256xf32> to vector<8x256xbf16>
    %c4_102 = arith.constant 4 : index
    %c0_103 = arith.constant 0 : index
    %c0_104 = arith.constant 0 : index
    %125 = vector.load %arg10[%c4_102, %c0_103, %c0_104] : memref<9x8x8xbf16, #tpu.memory_space<vmem>>, vector<1x8x8xbf16>
    %126 = vector.shape_cast %125 : vector<1x8x8xbf16> to vector<8x8xbf16>
    %cst_105 = arith.constant dense<0.000000e+00> : vector<8x256xf32>
    %127 = tpu.matmul %126, %108, %cst_105 {dimension_numbers = #tpu.dot_dimension_numbers<[1], [0], [0], [1], [0, 0, 1, 1], [], []>} : vector<8x8xbf16>, vector<8x256xbf16>, vector<8x256xf32> -> vector<8x256xf32>
    %128 = arith.truncf %127 : vector<8x256xf32> to vector<8x256xbf16>
    %c5_106 = arith.constant 5 : index
    %c0_107 = arith.constant 0 : index
    %c0_108 = arith.constant 0 : index
    %129 = vector.load %arg10[%c5_106, %c0_107, %c0_108] : memref<9x8x8xbf16, #tpu.memory_space<vmem>>, vector<1x8x8xbf16>
    %130 = vector.shape_cast %129 : vector<1x8x8xbf16> to vector<8x8xbf16>
    %cst_109 = arith.constant dense<0.000000e+00> : vector<8x256xf32>
    %131 = tpu.matmul %130, %108, %cst_109 {dimension_numbers = #tpu.dot_dimension_numbers<[1], [0], [0], [1], [0, 0, 1, 1], [], []>} : vector<8x8xbf16>, vector<8x256xbf16>, vector<8x256xf32> -> vector<8x256xf32>
    %132 = arith.truncf %131 : vector<8x256xf32> to vector<8x256xbf16>
    %c6_110 = arith.constant 6 : index
    %c0_111 = arith.constant 0 : index
    %c0_112 = arith.constant 0 : index
    %133 = vector.load %arg10[%c6_110, %c0_111, %c0_112] : memref<9x8x8xbf16, #tpu.memory_space<vmem>>, vector<1x8x8xbf16>
    %134 = vector.shape_cast %133 : vector<1x8x8xbf16> to vector<8x8xbf16>
    %cst_113 = arith.constant dense<0.000000e+00> : vector<8x256xf32>
    %135 = tpu.matmul %134, %108, %cst_113 {dimension_numbers = #tpu.dot_dimension_numbers<[1], [0], [0], [1], [0, 0, 1, 1], [], []>} : vector<8x8xbf16>, vector<8x256xbf16>, vector<8x256xf32> -> vector<8x256xf32>
    %136 = arith.truncf %135 : vector<8x256xf32> to vector<8x256xbf16>
    %c7_114 = arith.constant 7 : index
    %c0_115 = arith.constant 0 : index
    %c0_116 = arith.constant 0 : index
    %137 = vector.load %arg10[%c7_114, %c0_115, %c0_116] : memref<9x8x8xbf16, #tpu.memory_space<vmem>>, vector<1x8x8xbf16>
    %138 = vector.shape_cast %137 : vector<1x8x8xbf16> to vector<8x8xbf16>
    %cst_117 = arith.constant dense<0.000000e+00> : vector<8x256xf32>
    %139 = tpu.matmul %138, %108, %cst_117 {dimension_numbers = #tpu.dot_dimension_numbers<[1], [0], [0], [1], [0, 0, 1, 1], [], []>} : vector<8x8xbf16>, vector<8x256xbf16>, vector<8x256xf32> -> vector<8x256xf32>
    %140 = arith.truncf %139 : vector<8x256xf32> to vector<8x256xbf16>
    %c8_118 = arith.constant 8 : index
    %c0_119 = arith.constant 0 : index
    %c0_120 = arith.constant 0 : index
    %141 = vector.load %arg10[%c8_118, %c0_119, %c0_120] : memref<9x8x8xbf16, #tpu.memory_space<vmem>>, vector<1x8x8xbf16>
    %142 = vector.shape_cast %141 : vector<1x8x8xbf16> to vector<8x8xbf16>
    %cst_121 = arith.constant dense<0.000000e+00> : vector<8x256xf32>
    %143 = tpu.matmul %142, %108, %cst_121 {dimension_numbers = #tpu.dot_dimension_numbers<[1], [0], [0], [1], [0, 0, 1, 1], [], []>} : vector<8x8xbf16>, vector<8x256xbf16>, vector<8x256xf32> -> vector<8x256xf32>
    %144 = arith.truncf %143 : vector<8x256xf32> to vector<8x256xbf16>
    %145 = tpu.concatenate %112, %116, %120, %124, %128, %132, %136, %140, %144 in 1 : vector<8x256xbf16>, vector<8x256xbf16>, vector<8x256xbf16>, vector<8x256xbf16>, vector<8x256xbf16>, vector<8x256xbf16>, vector<8x256xbf16>, vector<8x256xbf16>, vector<8x256xbf16> -> vector<8x2304xbf16>
    %c0_122 = arith.constant 0 : index
    %c0_123 = arith.constant 0 : index
    %146 = vector.load %arg11[%c0_122, %c0_123] : memref<2304x512xbf16, #tpu.memory_space<vmem>>, vector<2304x512xbf16>
    %cst_124 = arith.constant dense<0.000000e+00> : vector<8x512xf32>
    %147 = tpu.matmul %145, %146, %cst_124 {dimension_numbers = #tpu.dot_dimension_numbers<[1], [0], [0], [1], [0, 0, 1, 1], [], []>} : vector<8x2304xbf16>, vector<2304x512xbf16>, vector<8x512xf32> -> vector<8x512xf32>
    %c0_125 = arith.constant 0 : index
    %c0_126 = arith.constant 0 : index
    %148 = vector.load %arg12[%c0_125, %c0_126] : memref<1x512xf32, #tpu.memory_space<vmem>>, vector<1x512xf32>
    %149 = vector.broadcast %148 : vector<1x512xf32> to vector<8x512xf32>
    %150 = arith.addf %147, %149 : vector<8x512xf32>
    %cst_127 = arith.constant 0.000000e+00 : f32
    %151 = vector.broadcast %cst_127 : f32 to vector<8x512xf32>
    %152 = arith.cmpf oge, %150, %151 : vector<8x512xf32>
    %cst_128 = arith.constant 2.000000e-01 : f32
    %153 = vector.broadcast %cst_128 : f32 to vector<8x512xf32>
    %154 = arith.mulf %153, %150 : vector<8x512xf32>
    %155 = arith.select %152, %150, %154 : vector<8x512xi1>, vector<8x512xf32>
    %156 = vector.extract_strided_slice %155 {offsets = [0, 0], sizes = [1, 512], strides = [1, 1]} : vector<8x512xf32> to vector<1x512xf32>
    %c0_129 = arith.constant 0 : index
    %c0_130 = arith.constant 0 : index
    %157 = vector.load %arg13[%c0_129, %c0_130] : memref<1x512xf32, #tpu.memory_space<vmem>>, vector<1x512xf32>
    %158 = arith.mulf %156, %157 : vector<1x512xf32>
    %cst_131 = arith.constant dense<0.000000e+00> : vector<1xf32>
    %159 = vector.multi_reduction <add>, %158, %cst_131 [1] : vector<1x512xf32> to vector<1xf32>
    %160 = vector.shape_cast %159 : vector<1xf32> to vector<1x1xf32>
    %cst_132 = arith.constant dense<0.000000e+00> : vector<1xf32>
    %161 = vector.multi_reduction <add>, %160, %cst_132 [0] : vector<1x1xf32> to vector<1xf32>
    %162 = vector.shape_cast %161 : vector<1xf32> to vector<1x1xf32>
    %cst_133 = arith.constant 1.000000e+00 : f32
    %163 = vector.broadcast %cst_133 : f32 to vector<1x1xf32>
    %164 = arith.divf %162, %163 : vector<1x1xf32>
    %c0_134 = arith.constant 0 : index
    %c0_135 = arith.constant 0 : index
    %165 = vector.load %arg14[%c0_134, %c0_135] : memref<1x1xf32, #tpu.memory_space<vmem>>, vector<1x1xf32>
    %166 = arith.addf %164, %165 : vector<1x1xf32>
    %167 = arith.negf %166 : vector<1x1xf32>
    %168 = math.exp %167 : vector<1x1xf32>
    %cst_136 = arith.constant 1.000000e+00 : f32
    %169 = vector.broadcast %cst_136 : f32 to vector<1x1xf32>
    %170 = arith.addf %169, %168 : vector<1x1xf32>
    %171 = arith.divf %169, %170 : vector<1x1xf32>
    %c0_137 = arith.constant 0 : index
    %c0_138 = arith.constant 0 : index
    %c0_139 = arith.constant 0 : index
    %172 = vector.load %arg15[%c0_137, %c0_138, %c0_139] : memref<1x1x1xf32, #tpu.memory_space<vmem>>, vector<1x1x1xf32>
    %173 = vector.shape_cast %172 : vector<1x1x1xf32> to vector<1x1xf32>
    %174 = vector.shape_cast %171 : vector<1x1xf32> to vector<1x1x1xf32>
    tpu.vector_store %arg15[%c0_137, %c0_138, %c0_139], %174 {strides = array<i32>} : memref<1x1x1xf32, #tpu.memory_space<vmem>>, vector<1x1x1xf32>,
    return
  }
  func.func @transform_0(%arg0: i32) -> (i32, i32, i32) {
    %c0_i32 = arith.constant 0 : i32
    %c0_i32_0 = arith.constant 0 : i32
    %c0_i32_1 = arith.constant 0 : i32
    return %arg0, %c0_i32, %c0_i32_0 : i32, i32, i32
  }
  func.func @transform_1(%arg0: i32) -> (i32, i32) {
    %c0_i32 = arith.constant 0 : i32
    %c0_i32_0 = arith.constant 0 : i32
    %c0_i32_1 = arith.constant 0 : i32
    return %c0_i32, %c0_i32_0 : i32, i32
  }
  func.func @transform_2(%arg0: i32) -> (i32, i32) {
    %c0_i32 = arith.constant 0 : i32
    %c0_i32_0 = arith.constant 0 : i32
    %c0_i32_1 = arith.constant 0 : i32
    return %c0_i32, %c0_i32_0 : i32, i32
  }
  func.func @transform_3(%arg0: i32) -> (i32, i32, i32) {
    %c0_i32 = arith.constant 0 : i32
    %c0_i32_0 = arith.constant 0 : i32
    %c0_i32_1 = arith.constant 0 : i32
    %c0_i32_2 = arith.constant 0 : i32
    return %c0_i32, %c0_i32_0, %c0_i32_1 : i32, i32, i32
  }
  func.func @transform_4(%arg0: i32) -> (i32, i32) {
    %c0_i32 = arith.constant 0 : i32
    %c0_i32_0 = arith.constant 0 : i32
    %c0_i32_1 = arith.constant 0 : i32
    return %c0_i32, %c0_i32_0 : i32, i32
  }
  func.func @transform_5(%arg0: i32) -> (i32, i32) {
    %c0_i32 = arith.constant 0 : i32
    %c0_i32_0 = arith.constant 0 : i32
    %c0_i32_1 = arith.constant 0 : i32
    return %c0_i32, %c0_i32_0 : i32, i32
  }
  func.func @transform_6(%arg0: i32) -> (i32, i32, i32) {
    %c0_i32 = arith.constant 0 : i32
    %c0_i32_0 = arith.constant 0 : i32
    %c0_i32_1 = arith.constant 0 : i32
    %c0_i32_2 = arith.constant 0 : i32
    return %c0_i32, %c0_i32_0, %c0_i32_1 : i32, i32, i32
  }
  func.func @transform_7(%arg0: i32) -> (i32, i32) {
    %c0_i32 = arith.constant 0 : i32
    %c0_i32_0 = arith.constant 0 : i32
    %c0_i32_1 = arith.constant 0 : i32
    return %c0_i32, %c0_i32_0 : i32, i32
  }
  func.func @transform_8(%arg0: i32) -> (i32, i32) {
    %c0_i32 = arith.constant 0 : i32
    %c0_i32_0 = arith.constant 0 : i32
    %c0_i32_1 = arith.constant 0 : i32
    return %c0_i32, %c0_i32_0 : i32, i32
  }
  func.func @transform_9(%arg0: i32) -> (i32, i32, i32) {
    %c0_i32 = arith.constant 0 : i32
    %c0_i32_0 = arith.constant 0 : i32
    %c0_i32_1 = arith.constant 0 : i32
    %c0_i32_2 = arith.constant 0 : i32
    return %c0_i32, %c0_i32_0, %c0_i32_1 : i32, i32, i32
  }
  func.func @transform_10(%arg0: i32) -> (i32, i32) {
    %c0_i32 = arith.constant 0 : i32
    %c0_i32_0 = arith.constant 0 : i32
    %c0_i32_1 = arith.constant 0 : i32
    return %c0_i32, %c0_i32_0 : i32, i32
  }
  func.func @transform_11(%arg0: i32) -> (i32, i32) {
    %c0_i32 = arith.constant 0 : i32
    %c0_i32_0 = arith.constant 0 : i32
    %c0_i32_1 = arith.constant 0 : i32
    return %c0_i32, %c0_i32_0 : i32, i32
  }
  func.func @transform_12(%arg0: i32) -> (i32, i32) {
    %c0_i32 = arith.constant 0 : i32
    %c0_i32_0 = arith.constant 0 : i32
    %c0_i32_1 = arith.constant 0 : i32
    return %c0_i32, %c0_i32_0 : i32, i32
  }
  func.func @transform_13(%arg0: i32) -> (i32, i32) {
    %c0_i32 = arith.constant 0 : i32
    %c0_i32_0 = arith.constant 0 : i32
    %c0_i32_1 = arith.constant 0 : i32
    return %c0_i32, %c0_i32_0 : i32, i32
  }
  func.func @transform_14(%arg0: i32) -> (i32, i32, i32) {
    %c0_i32 = arith.constant 0 : i32
    %c0_i32_0 = arith.constant 0 : i32
    %c0_i32_1 = arith.constant 0 : i32
    return %arg0, %c0_i32, %c0_i32_0 : i32, i32, i32
  }
}

</mosaic_0001>

<bundles_post_ra>
// kernel: _lambda_.1
= control target key start
LH: loop header
LB: loop body
LE: loop exit
PB: predicated region body
PF: predicated region fallthrough
CT: control target
= control target key end

     0   :  { %s13288_s0 = inlined_call_operand.vmem [shape: bf16[2,64,128], index: 0, kind: input, shape index: {}]   ;;  %s13289_s1 = inlined_call_operand.hbm [shape: bf16[128,128], index: 1, kind: input, shape index: {}]   ;;  %s13290_s2 = inlined_call_operand.hbm [shape: f32[1,128], index: 2, kind: input, shape index: {}]   ;;  %s13291_s3 = inlined_call_operand.hbm [shape: bf16[9,16,64], index: 3, kind: input, shape index: {}]   ;;  %s13292_s4 = inlined_call_operand.hbm [shape: bf16[1152,128], index: 4, kind: input, shape index: {}]   ;;  %s13293_s5 = inlined_call_operand.hbm [shape: f32[1,128], index: 5, kind: input, shape index: {}]   ;;  %s13294_s6 = inlined_call_operand.hbm [shape: bf16[9,8,16], index: 6, kind: input, shape index: {}]   ;;  %s13295_s7 = inlined_call_operand.hbm [shape: bf16[1152,256], index: 7, kind: input, shape index: {}]   ;;  %s13296_s8 = inlined_call_operand.hbm [shape: f32[1,256], index: 8, kind: input, shape index: {}]   ;;  %s13297_s9 = inlined_call_operand.hbm [shape: bf16[9,8,8], index: 9, kind: input, shape index: {}]   ;;  %s13298_s10 = inlined_call_operand.hbm [shape: bf16[2304,512], index: 10, kind: input, shape index: {}]   ;;  %s13299_s11 = inlined_call_operand.hbm [shape: f32[1,512], index: 11, kind: input, shape index: {}]   ;;  %s13300_s12 = inlined_call_operand.hbm [shape: f32[1,512], index: 12, kind: input, shape index: {}]   ;;  %s13301_s13 = inlined_call_operand.<no memory space> [shape: f32[1,1], index: 13, kind: input, shape index: {}]   ;;  %s13302_s14 = inlined_call_operand.vmem [shape: f32[2,1,1], index: 14, kind: output, shape index: {}]  }
   0x1   :  { %13307 = sst [smem:[#allocation29_spill]] %s13289_s1  ;;  %v19_v0 = vstv %s13301_s13 }
   0x2   :  { %13308 = sst [smem:[#allocation30_spill]] %s13290_s2  ;;  %20 = vst [vmem:[#allocation2] sm:$0x1] %v19_v0 }
   0x3   :  { %13309 = sst [smem:[#allocation31_spill]] %s13291_s3 }
   0x4   :  { %21 = vsyncpa [#allocation4], 0 }
   0x5   :  { %22 = vsyncpa [#allocation6], 0 }
   0x6   :  { %23 = vsyncpa [#allocation9], 0 }
   0x7   :  { %24 = vsyncpa [#allocation12], 0 }
   0x8   :  { %25 = vsyncpa [#allocation15], 0 }
   0x9   :  { %26 = vsyncpa [#allocation18], 0 }
   0xa   :  { %27 = vsyncpa [#allocation21], 0  ;;  %s12863_s15 = smov 0  }
   0xb LB: > { %s13310_s2 = sld [smem:[#allocation30_spill]]  ;;  %s12872_s18 = sadd.s32 4294967295, %s12765_s15   ;;  %s12765_s15 = sphi %s12863_s15, %s33_s15  }
   0xc   : > { %p8092_p0 = scmp.ge.s32.totalorder %s12765_s15, 1  ;;  %p363_p1 = scmp.lt.s32.totalorder %s12765_s15, 3 }
   0xd   : > { %p12311_p2 = scmp.eq.s32.totalorder %s12872_s18, 0  ;;  %s12767_s20 = smov [#allocation5]  }
   0xe   : > { %p12877_p3 = pnand %p8092_p0, %p363_p1  ;;  %s391_s21 = sshll.u32 %s12767_s20, 4  ;;  %s392_s21 = int_to_ptr.vmem [resolvable:$true] %s391_s21 }
   0xf   : > { %s414_s24 = sshll.u32 %s13292_s4, 4  ;;  %s12768_s26 = smov [#allocation8]   ;;  %s415_s24 = int_to_ptr.hbm [resolvable:$true] %s414_s24 }
  0x10   : > { %p12274_p4 = pneg %p12877_p3  ;;  %s416_s27 = sshll.u32 %s12768_s26, 4  ;;  %s417_s27 = int_to_ptr.vmem [resolvable:$true] %s416_s27 }
  0x11   : > { %s389_s13 = sshll.u32 %s13310_s2, 4  ;;  %s440_s30 = sshll.u32 %s13294_s6, 4  ;;  %s390_s13 = int_to_ptr.hbm [resolvable:$true] %s389_s13  ;;  %s441_s30 = int_to_ptr.hbm [resolvable:$true] %s440_s30 }
  0x12   : > { %p12888_p5 = pnand %p12311_p2, %p12274_p4  ;;  %s13303_s16 = smov 64  }
  0x13   : > { %s13305_s17 = smov 4   ;;  %s12771_s20 = smov [#allocation11]  }
  0x14   : > { %12280 = dma.hbm_to_vmem [thread:$0]  (!%p12888_p5), %s390_s13, 16, %s392_s21, [#allocation6]  }
  0x15   : > { %12286 = dma.hbm_to_vmem [thread:$0]  (!%p12888_p5), %s415_s24, 9216, %s417_s27, [#allocation9], %s13303_s16, %s13303_s16, %s13305_s17  }
  0x16   : > { %s442_s22 = sshll.u32 %s12771_s20, 4  ;;  %s469_s28 = sshll.u32 %s13296_s8, 4  ;;  %s443_s22 = int_to_ptr.vmem [resolvable:$true] %s442_s22  ;;  %s470_s28 = int_to_ptr.hbm [resolvable:$true] %s469_s28 }
  0x17   : > { %12292 = dma.hbm_to_vmem [thread:$0]  (!%p12888_p5), %s441_s30, 576, %s443_s22, [#allocation12], %s13303_s16, %s13303_s16, %s13305_s17  }
  0x18   : > { %s494_s29 = sshll.u32 %s13298_s10, 4  ;;  %s12772_s24 = smov [#allocation14]   ;;  %s495_s29 = int_to_ptr.hbm [resolvable:$true] %s494_s29 }
  0x19   : > { %s471_s27 = sshll.u32 %s12772_s24, 4  ;;  %s12773_s20 = smov [#allocation17]   ;;  %s472_s27 = int_to_ptr.vmem [resolvable:$true] %s471_s27 }
  0x1a   : > { %12298 = dma.hbm_to_vmem [thread:$0]  (!%p12888_p5), %s470_s28, 32, %s472_s27, [#allocation15]  }
  0x1b   : > { %s496_s23 = sshll.u32 %s12773_s20, 4  ;;  %s12774_s26 = smov 256   ;;  %s497_s23 = int_to_ptr.vmem [resolvable:$true] %s496_s23 }
  0x1c   : > { %s12775_s2 = smov 16   ;;  %s13313_s1 = sld [smem:[#allocation29_spill]] }
  0x1d   : > { %12304 = dma.hbm_to_vmem [thread:$0]  (!%p12888_p5), %s495_s29, 73728, %s497_s23, [#allocation18], %s12774_s26, %s12774_s26, %s12775_s2  }
  0x1e   : > { %s12776_s21 = smov [#allocation3]   ;;  %s13314_s3 = sld [smem:[#allocation31_spill]] }
  0x1f   : > { %s376_s24 = sshll.u32 %s12776_s21, 4  ;;  %s13315_s27 = smov 4   ;;  %s377_s24 = int_to_ptr.vmem [resolvable:$true] %s376_s24 }
  0x20   : > { %s13316_s20 = smov 64   ;;  %s12777_s2 = smov [#allocation7]  }
  0x21   : > { %s402_s29 = sshll.u32 %s12777_s2, 4  ;;  %s429_s30 = sshll.u32 %s13293_s5, 4  ;;  %s403_s29 = int_to_ptr.vmem [resolvable:$true] %s402_s29  ;;  %s430_s30 = int_to_ptr.hbm [resolvable:$true] %s429_s30 }
  0x22   : > { %s374_s13 = sshll.u32 %s13313_s1, 4  ;;  %s454_s22 = sshll.u32 %s13295_s7, 4  ;;  %s375_s13 = int_to_ptr.hbm [resolvable:$true] %s374_s13  ;;  %s455_s22 = int_to_ptr.hbm [resolvable:$true] %s454_s22 }
  0x23   : > { %12277 = dma.hbm_to_vmem [thread:$0]  (!%p12888_p5), %s375_s13, 1024, %s377_s24, [#allocation4], %s13316_s20, %s13316_s20, %s13315_s27  }
  0x24   : > { %s400_s28 = sshll.u32 %s13314_s3, 4  ;;  %s12778_s13 = smov [#allocation10]   ;;  %s401_s28 = int_to_ptr.hbm [resolvable:$true] %s400_s28 }
  0x25   : > { %12283 = dma.hbm_to_vmem [thread:$0]  (!%p12888_p5), %s401_s28, 1152, %s403_s29, [#allocation6], %s13316_s20, %s13316_s20, %s13315_s27  }
  0x26   : > { %s431_s21 = sshll.u32 %s12778_s13, 4  ;;  %s12779_s24 = smov [#allocation13]   ;;  %s432_s21 = int_to_ptr.vmem [resolvable:$true] %s431_s21 }
  0x27   : > { %12289 = dma.hbm_to_vmem [thread:$0]  (!%p12888_p5), %s430_s30, 16, %s432_s21, [#allocation9]  }
  0x28   : > { %s456_s2 = sshll.u32 %s12779_s24, 4  ;;  %s12780_s23 = smov 128   ;;  %s457_s2 = int_to_ptr.vmem [resolvable:$true] %s456_s2 }
  0x29   : > { %s12781_s26 = smov 8   ;;  %s480_s16 = sshll.u32 %s13297_s9, 4  ;;  %s481_s16 = int_to_ptr.hbm [resolvable:$true] %s480_s16 }
  0x2a   : > { %12295 = dma.hbm_to_vmem [thread:$0]  (!%p12888_p5), %s455_s22, 18432, %s457_s2, [#allocation12], %s12780_s23, %s12780_s23, %s12781_s26  }
  0x2b   : > { %s12782_s17 = smov [#allocation16]   ;;  %s509_s30 = sshll.u32 %s13299_s11, 4  ;;  %s510_s30 = int_to_ptr.hbm [resolvable:$true] %s509_s30 }
  0x2c   : > { %s482_s13 = sshll.u32 %s12782_s17, 4  ;;  %s12783_s22 = smov [#allocation19]   ;;  %s483_s13 = int_to_ptr.vmem [resolvable:$true] %s482_s13 }
  0x2d   : > { %12301 = dma.hbm_to_vmem [thread:$0]  (!%p12888_p5), %s481_s16, 576, %s483_s13, [#allocation15], %s13316_s20, %s13316_s20, %s13315_s27  }
  0x2e   : > { %s511_s21 = sshll.u32 %s12783_s22, 4  ;;  %s521_s23 = sshll.u32 %s13300_s12, 4  ;;  %s512_s21 = int_to_ptr.vmem [resolvable:$true] %s511_s21  ;;  %s522_s23 = int_to_ptr.hbm [resolvable:$true] %s521_s23 }
  0x2f   : > { %12307 = dma.hbm_to_vmem [thread:$0]  (!%p12888_p5), %s510_s30, 64, %s512_s21, [#allocation18]  }
  0x30   : > { %s12784_s26 = smov [#allocation20]   ;;  %547 = sbr.rel (%p12877_p3) target bundleno = 1949 (0x79d), region = 76 }
  0x31   : > { %s523_s28 = sshll.u32 %s12784_s26, 4  ;;  %s524_s28 = int_to_ptr.vmem [resolvable:$true] %s523_s28 }
  0x32   : > { %12310 = dma.hbm_to_vmem [thread:$0]  (!%p12888_p5), %s522_s23, 64, %s524_s28, [#allocation21]  }
  0x35   : > { %12736 = dma.done.wait (%p12311_p2), [#allocation4], 1024  }
  0x36   : > { %12738 = vsyncadd (%p12311_p2), [#allocation4], 4294966272 }
  0x37   : > { %12740 = dma.done.wait (%p12311_p2), [#allocation6], 1168  }
  0x38   : > { %12742 = vsyncadd (%p12311_p2), [#allocation6], 4294966128 }
  0x39   : > { %12744 = dma.done.wait (%p12311_p2), [#allocation9], 9232  }
  0x3a   : > { %12746 = vsyncadd (%p12311_p2), [#allocation9], 4294958064 }
  0x3b   : > { %12748 = dma.done.wait (%p12311_p2), [#allocation12], 19008  }
  0x3c   : > { %12750 = vsyncadd (%p12311_p2), [#allocation12], 4294948288 }
  0x3d   : > { %12752 = dma.done.wait (%p12311_p2), [#allocation15], 608  }
  0x3e   : > { %12754 = vsyncadd (%p12311_p2), [#allocation15], 4294966688 }
  0x3f   : > { %12756 = dma.done.wait (%p12311_p2), [#allocation18], 73792  }
  0x40   : > { %12758 = vsyncadd (%p12311_p2), [#allocation18], 4294893504 }
  0x41   : > { %12760 = dma.done.wait (%p12311_p2), [#allocation21], 64  }
  0x42   : > { %12762 = vsyncadd (%p12311_p2), [#allocation21], 4294967232  ;;  %v11424_v1 = vld [vmem:[#allocation3 + $0x38] sm:$0xff]  ;;  %v11423_v2 = vld [vmem:[#allocation3 + $0x30] sm:$0xff]  ;;  %p647_p6 = scmp.lt.s32.totalorder %s12872_s18, 1  ;;  %vm820_vm8 = vcmask 523264  }
  0x43   : > { %756 = vmatpush.bf16.msra.mxu0 %v11424_v1  ;;  %v11422_v3 = vld [vmem:[#allocation3 + $0x28] sm:$0xff]  ;;  %v11421_v4 = vld [vmem:[#allocation3 + $0x20] sm:$0xff]  ;;  %v11420_v5 = vld [vmem:[#allocation3 + $0x18] sm:$0xff]  ;;  %vm1824_vm11 = vcmask 130048   ;;  %vm3111_vm13 = vcmask 1043456   ;;  %vm3107_vm14 = vcmask 64512  }
  0x44   : > { %v11419_v6 = vld [vmem:[#allocation3 + $0x10] sm:$0xff]  ;;  %s13318_s18 = smov (!%p647_p6, %s12872_s18), 1  ;;  %v11418_v7 = vld [vmem:[#allocation3 + $0x8] sm:$0xff]  ;;  %v11417_v8 = vld [vmem:[#allocation3] sm:$0xff] }
  0x45   : > { %s11412_s1 = sshll.u32 %s13318_s18, 5  ;;  %v12361_v20 = vld [vmem:[#allocation5] ss:$0 sm:$0xff]  ;;  %v11425_v50 = vld [vmem:[#allocation7] sm:$0xff]  ;;  %v11426_v51 = vld [vmem:[#allocation7 + $0x8] sm:$0xff]  ;;  %s654_s29 = scalar_lea.vmem %s13302_s14, %s13318_s18 }
  0x46   : > { %s651_s25 = scalar_lea.vmem %s13288_s0, %s11412_s1  ;;  %v11427_v52 = vld [vmem:[#allocation7 + $0x10] sm:$0xff]  ;;  %v11428_v53 = vld [vmem:[#allocation7 + $0x18] sm:$0xff]  ;;  %v11429_v54 = vld [vmem:[#allocation7 + $0x20] sm:$0xff] }
  0x47   : > { %757 = vmatpush.bf16.msra.mxu0 %v11423_v2  ;;  %v11413_v9 = vld [vmem:[%s651_s25] sm:$0xff]  ;;  %v11414_v10 = vld [vmem:[%s651_s25 + $0x8] sm:$0xff]  ;;  %v11415_v11 = vld [vmem:[%s651_s25 + $0x10] sm:$0xff] }
  0x48   : > { %v11416_v12 = vld [vmem:[%s651_s25 + $0x18] sm:$0xff]  ;;  %v11430_v55 = vld [vmem:[#allocation7 + $0x28] sm:$0xff]  ;;  %v11441_v56 = vld [vmem:[#allocation8 + $0x38] sm:$0xff] }
  0x49   : > { %v11449_v57 = vld [vmem:[#allocation8 + $0x78] sm:$0xff]  ;;  %v11440_v60 = vld [vmem:[#allocation8 + $0x30] sm:$0xff]  ;;  %v11431_v0 = vld [vmem:[#allocation7 + $0x30] sm:$0xff] }
  0x4a   : > { %v11457_v58 = vld [vmem:[#allocation8 + $0xb8] sm:$0xff]  ;;  %v11448_v61 = vld [vmem:[#allocation8 + $0x70] sm:$0xff] }
  0x4b   : > { %758 = vmatpush.bf16.msra.mxu0 %v11422_v3  ;;  %v11465_v59 = vld [vmem:[#allocation8 + $0xf8] sm:$0xff]  ;;  %v11456_v62 = vld [vmem:[#allocation8 + $0xb0] sm:$0xff]  ;;  %v11439_v3 = vld [vmem:[#allocation8 + $0x28] sm:$0xff] }
  0x4c   : > { %v11464_v63 = vld [vmem:[#allocation8 + $0xf0] sm:$0xff]  ;;  %v11433_v2 = vld [vmem:[#allocation7 + $0x40] sm:$0xff] }
  0x4d   : > { %v11432_v1 = vld [vmem:[#allocation7 + $0x38] sm:$0xff] }
  0x4f   : > { %759 = vmatpush.bf16.msra.mxu0 %v11421_v4  ;;  %v11447_v4 = vld [vmem:[#allocation8 + $0x68] sm:$0xff] }
  0x53   : > { %760 = vmatpush.bf16.msra.mxu0 %v11420_v5  ;;  %v11455_v5 = vld [vmem:[#allocation8 + $0xa8] sm:$0xff] }
  0x57   : > { %761 = vmatpush.bf16.msra.mxu0 %v11419_v6  ;;  %v11438_v6 = vld [vmem:[#allocation8 + $0x20] sm:$0xff] }
  0x5b   : > { %762 = vmatpush.bf16.msra.mxu0 %v11418_v7  ;;  %v11446_v7 = vld [vmem:[#allocation8 + $0x60] sm:$0xff] }
  0x5f   : > { %763 = vmatpush.bf16.msra.mxu0 %v11417_v8  ;;  %v11454_v8 = vld [vmem:[#allocation8 + $0xa0] sm:$0xff] }
  0x62   : > { %764 = vmatmul.bf16.vlgmr.msra.gmra.mxu0 %v11413_v9  ;;  %v11437_v9 = vld [vmem:[#allocation8 + $0x18] sm:$0xff] }
  0x63   : > { %1732 = vmatpush.bf16.msrb.mxu0 %v11465_v59  ;;  %v11483_v59 = vld [vmem:[#allocation8 + $0x188] sm:$0xff] }
  0x67   : > { %1733 = vmatpush.bf16.msrb.mxu0 %v11464_v63 }
  0x72   : > { %769 = vmatmul.bf16.gmra.mxu0 %v11414_v10  ;;  %v11445_v10 = vld [vmem:[#allocation8 + $0x58] sm:$0xff] }
  0x82   : > { %774 = vmatmul.bf16.gmra.mxu0 %v11415_v11  ;;  %v11436_v11 = vld [vmem:[#allocation8 + $0x10] sm:$0xff] }
  0x92   : > { %779 = vmatmul.bf16.gmra.mxu0 %v11416_v12  ;;  %v11444_v12 = vld [vmem:[#allocation8 + $0x50] sm:$0xff] }
  0xdf   : > { %v765_v13 = vpop.f32.mrf.mxu0 }
  0xe0   : > { %v766_v38 = vadd.f32 %v12361_v20, %v765_v13  ;;  %v11435_v13 = vld [vmem:[#allocation8 + $0x8] sm:$0xff] }
  0xe2   : > { %v793_v44 = vmul.f32 0.2, %v766_v38  ;;  %vm785_vm7 = vcmp.ge.f32.partialorder %v766_v38, 0.0 }
  0xe4   : > { %v801_v48 = vsel %vm785_vm7, %v766_v38, %v793_v44  ;;  %v11488_v38 = vld [vmem:[#allocation8 + $0x1b0] sm:$0xff] }
  0xe5   : > { %v11476_v44 = vld [vmem:[#allocation8 + $0x150] sm:$0xff] }
  0xe7   : > { %v767_v14 = vpop.f32.mrf.mxu0 }
  0xe8   : > { %v768_v35 = vadd.f32 %v12361_v20, %v767_v14  ;;  %v11434_v14 = vld [vmem:[#allocation8] sm:$0xff] }
  0xea   : > { %v794_v42 = vmul.f32 0.2, %v768_v35  ;;  %vm786_vm6 = vcmp.ge.f32.partialorder %v768_v35, 0.0 }
  0xec   : > { %v802_v47 = vsel %vm786_vm6, %v768_v35, %v794_v42  ;;  %v11459_v35 = vld [vmem:[#allocation8 + $0xc8] sm:$0xff]  ;;  %v11497_v42 = vld [vmem:[#allocation8 + $0x1f8] sm:$0xff] }
  0xed   : > { %v809_v49 = vpack.c.bf16 %v802_v47, %v801_v48  ;;  %v11475_v47 = vld [vmem:[#allocation8 + $0x148] sm:$0xff] }
  0xee   : > { %v11495_v48 = vld [vmem:[#allocation8 + $0x1e8] sm:$0xff] }
  0xef   : > { %v770_v15 = vpop.f32.mrf.mxu0 }
  0xf0   : > { %v771_v30 = vadd.f32 %v12361_v20, %v770_v15  ;;  %v11473_v15 = vld [vmem:[#allocation8 + $0x138] sm:$0xff] }
  0xf2   : > { %v795_v39 = vmul.f32 0.2, %v771_v30  ;;  %vm787_vm5 = vcmp.ge.f32.partialorder %v771_v30, 0.0 }
  0xf4   : > { %v803_v45 = vsel %vm787_vm5, %v771_v30, %v795_v39  ;;  %v11460_v30 = vld [vmem:[#allocation8 + $0xd0] sm:$0xff]  ;;  %v11458_v39 = vld [vmem:[#allocation8 + $0xc0] sm:$0xff] }
  0xf7   : > { %v772_v16 = vpop.f32.mrf.mxu0 }
  0xf8   : > { %v773_v27 = vadd.f32 %v12361_v20, %v772_v16  ;;  %v11472_v16 = vld [vmem:[#allocation8 + $0x130] sm:$0xff] }
  0xfa   : > { %v796_v36 = vmul.f32 0.2, %v773_v27  ;;  %vm788_vm4 = vcmp.ge.f32.partialorder %v773_v27, 0.0 }
  0xfc   : > { %v804_v43 = vsel %vm788_vm4, %v773_v27, %v796_v36  ;;  %v11469_v27 = vld [vmem:[#allocation8 + $0x118] sm:$0xff]  ;;  %v11467_v36 = vld [vmem:[#allocation8 + $0x108] sm:$0xff] }
  0xfd   : > { %v810_v46 = vpack.c.bf16 %v804_v43, %v803_v45  ;;  %v11487_v43 = vld [vmem:[#allocation8 + $0x1a8] sm:$0xff]  ;;  %v11496_v45 = vld [vmem:[#allocation8 + $0x1f0] sm:$0xff] }
  0xff   : > { %v775_v17 = vpop.f32.mrf.mxu0 }
 0x100   : > { %v776_v24 = vadd.f32 %v12361_v20, %v775_v17  ;;  %v11443_v17 = vld [vmem:[#allocation8 + $0x48] sm:$0xff] }
 0x102   : > { %v797_v31 = vmul.f32 0.2, %v776_v24  ;;  %vm789_vm3 = vcmp.ge.f32.partialorder %v776_v24, 0.0 }
 0x104   : > { %v805_v40 = vsel %vm789_vm3, %v776_v24, %v797_v31  ;;  %v11481_v24 = vld [vmem:[#allocation8 + $0x178] sm:$0xff]  ;;  %v11468_v31 = vld [vmem:[#allocation8 + $0x110] sm:$0xff] }
 0x107   : > { %v777_v18 = vpop.f32.mrf.mxu0 }
 0x108   : > { %v778_v22 = vadd.f32 %v12361_v20, %v777_v18  ;;  %v11463_v18 = vld [vmem:[#allocation8 + $0xe8] sm:$0xff] }
 0x109   : > { %1734 = vmatpush.bf16.msrb.mxu0 %v11463_v18 }
 0x10a   : > { %v798_v28 = vmul.f32 0.2, %v778_v22  ;;  %vm790_vm2 = vcmp.ge.f32.partialorder %v778_v22, 0.0 }
 0x10c   : > { %v806_v37 = vsel %vm790_vm2, %v778_v22, %v798_v28  ;;  %v11462_v22 = vld [vmem:[#allocation8 + $0xe0] sm:$0xff]  ;;  %v11480_v28 = vld [vmem:[#allocation8 + $0x170] sm:$0xff]  ;;  %vm7892_vm2 = vcmask 1040384  }
 0x10d   : > { %v811_v41 = vpack.c.bf16 %v806_v37, %v805_v40  ;;  %1735 = vmatpush.bf16.msrb.mxu0 %v11462_v22  ;;  %v11478_v37 = vld [vmem:[#allocation8 + $0x160] sm:$0xff] }
 0x10e   : > { %v11466_v40 = vld [vmem:[#allocation8 + $0x100] sm:$0xff] }
 0x10f   : > { %v780_v19 = vpop.f32.mrf.mxu0 }
 0x110   : > { %v781_v21 = vadd.f32 %v12361_v20, %v780_v19  ;;  %v11471_v19 = vld [vmem:[#allocation8 + $0x128] sm:$0xff] }
 0x112   : > { %v799_v25 = vmul.f32 0.2, %v781_v21  ;;  %vm791_vm0 = vcmp.ge.f32.partialorder %v781_v21, 0.0 }
 0x114   : > { %v807_v32 = vsel %vm791_vm0, %v781_v21, %v799_v25  ;;  %v11442_v21 = vld [vmem:[#allocation8 + $0x40] sm:$0xff]  ;;  %v11452_v25 = vld [vmem:[#allocation8 + $0x90] sm:$0xff] }
 0x117   : > { %v782_v23 = vpop.f32.mrf.mxu0 }
 0x118   : > { %v783_v26 = vadd.f32 %v12361_v20, %v782_v23  ;;  %v11453_v20 = vld [vmem:[#allocation8 + $0x98] sm:$0xff]  ;;  %v11470_v23 = vld [vmem:[#allocation8 + $0x120] sm:$0xff] }
 0x11a   : > { %vm792_vm1 = vcmp.ge.f32.partialorder %v783_v26, 0.0  ;;  %v800_v29 = vmul.f32 0.2, %v783_v26 }
 0x11c   : > { %v808_v33 = vsel %vm792_vm1, %v783_v26, %v800_v29  ;;  %v11461_v26 = vld [vmem:[#allocation8 + $0xd8] sm:$0xff]  ;;  %v11451_v29 = vld [vmem:[#allocation8 + $0x88] sm:$0xff] }
 0x11d   : > { %v812_v34 = vpack.c.bf16 %v808_v33, %v807_v32  ;;  %1736 = vmatpush.bf16.msrb.mxu0 %v11461_v26  ;;  %v11479_v32 = vld [vmem:[#allocation8 + $0x168] sm:$0xff]  ;;  %v11450_v33 = vld [vmem:[#allocation8 + $0x80] sm:$0xff] }
 0x11f   : > { %828 = vmatpush.bf16.msra.mxu1 %v812_v34  ;;  %855 = vmatpush.bf16.msra.mxu2 %v812_v34 }
 0x120   : > { %882 = vmatpush.bf16.msra.mxu3 %v812_v34 }
 0x121   : > { %1737 = vmatpush.bf16.msrb.mxu0 %v11460_v30 }
 0x123   : > { %829 = vmatpush.bf16.msra.mxu1 %v811_v41  ;;  %856 = vmatpush.bf16.msra.mxu2 %v811_v41 }
 0x124   : > { %883 = vmatpush.bf16.msra.mxu3 %v811_v41 }
 0x125   : > { %1738 = vmatpush.bf16.msrb.mxu0 %v11459_v35 }
 0x127   : > { %830 = vmatpush.bf16.msra.mxu1 %v810_v46  ;;  %857 = vmatpush.bf16.msra.mxu2 %v810_v46 }
 0x128   : > { %884 = vmatpush.bf16.msra.mxu3 %v810_v46 }
 0x129   : > { %1739 = vmatpush.bf16.msrb.mxu0 %v11458_v39 }
 0x12b   : > { %831 = vmatpush.bf16.msra.mxu1 %v809_v49  ;;  %858 = vmatpush.bf16.msra.mxu2 %v809_v49 }
 0x12c   : > { %885 = vmatpush.bf16.msra.mxu3 %v809_v49 }
 0x12d   : > { %1788 = vmatpush.bf16.msra.mxu0 %v11497_v42  ;;  %v11499_v42 = vld [vmem:[#allocation8 + $0x208] sm:$0xff] }
 0x12e   : > { %8173 = vmatmul.msk.bf16.vlgmr.msra.gmra.mxu1 %vm820_vm8, %v11425_v50  ;;  %8178 = vmatmul.msk.bf16.vlgmr.msra.gmra.mxu2 %vm820_vm8, %v11426_v51  ;;  %v11485_v50 = vld [vmem:[#allocation8 + $0x198] sm:$0xff]  ;;  %v11474_v51 = vld [vmem:[#allocation8 + $0x140] sm:$0xff] }
 0x12f   : > { %909 = vmatpush.bf16.msrb.mxu1 %v812_v34  ;;  %936 = vmatpush.bf16.msrb.mxu2 %v812_v34 }
 0x130   : > { %963 = vmatpush.bf16.msrb.mxu3 %v812_v34 }
 0x131   : > { %8183 = vmatmul.msk.bf16.vlgmr.msra.gmra.mxu3 %vm820_vm8, %v11427_v52  ;;  %1789 = vmatpush.bf16.msra.mxu0 %v11496_v45  ;;  %v11494_v52 = vld [vmem:[#allocation8 + $0x1e0] sm:$0xff] }
 0x133   : > { %910 = vmatpush.bf16.msrb.mxu1 %v811_v41  ;;  %937 = vmatpush.bf16.msrb.mxu2 %v811_v41 }
 0x134   : > { %964 = vmatpush.bf16.msrb.mxu3 %v811_v41 }
 0x135   : > { %1790 = vmatpush.bf16.msra.mxu0 %v11495_v48  ;;  %v11498_v48 = vld [vmem:[#allocation8 + $0x200] sm:$0xff] }
 0x137   : > { %911 = vmatpush.bf16.msrb.mxu1 %v810_v46  ;;  %938 = vmatpush.bf16.msrb.mxu2 %v810_v46 }
 0x138   : > { %965 = vmatpush.bf16.msrb.mxu3 %v810_v46 }
 0x139   : > { %1791 = vmatpush.bf16.msra.mxu0 %v11494_v52 }
 0x13b   : > { %912 = vmatpush.bf16.msrb.mxu1 %v809_v49  ;;  %939 = vmatpush.bf16.msrb.mxu2 %v809_v49 }
 0x13c   : > { %966 = vmatpush.bf16.msrb.mxu3 %v809_v49 }
 0x13e   : > { %8188 = vmatmul.msk.bf16.vlgmr.msrb.gmra.mxu1 %vm820_vm8, %v11428_v53  ;;  %8193 = vmatmul.msk.bf16.vlgmr.msrb.gmra.mxu2 %vm820_vm8, %v11429_v54  ;;  %v11484_v53 = vld [vmem:[#allocation8 + $0x190] sm:$0xff] }
 0x13f   : > { %990 = vmatpush.bf16.msra.mxu1 %v812_v34  ;;  %1017 = vmatpush.bf16.msra.mxu2 %v812_v34 }
 0x140   : > { %1044 = vmatpush.bf16.msra.mxu3 %v812_v34  ;;  %v11489_v34 = vld [vmem:[#allocation8 + $0x1b8] sm:$0xff] }
 0x141   : > { %8198 = vmatmul.msk.bf16.vlgmr.msrb.gmra.mxu3 %vm820_vm8, %v11430_v55  ;;  %v11493_v55 = vld [vmem:[#allocation8 + $0x1d8] sm:$0xff] }
 0x142   : > { %1792 = vmatpush.bf16.msra.mxu0 %v11493_v55 }
 0x143   : > { %991 = vmatpush.bf16.msra.mxu1 %v811_v41  ;;  %1018 = vmatpush.bf16.msra.mxu2 %v811_v41 }
 0x144   : > { %1045 = vmatpush.bf16.msra.mxu3 %v811_v41  ;;  %v11477_v41 = vld [vmem:[#allocation8 + $0x158] sm:$0xff] }
 0x147   : > { %992 = vmatpush.bf16.msra.mxu1 %v810_v46  ;;  %1019 = vmatpush.bf16.msra.mxu2 %v810_v46 }
 0x148   : > { %1046 = vmatpush.bf16.msra.mxu3 %v810_v46  ;;  %v11486_v46 = vld [vmem:[#allocation8 + $0x1a0] sm:$0xff] }
 0x14b   : > { %993 = vmatpush.bf16.msra.mxu1 %v809_v49  ;;  %1020 = vmatpush.bf16.msra.mxu2 %v809_v49 }
 0x14c   : > { %1047 = vmatpush.bf16.msra.mxu3 %v809_v49 }
 0x14e   : > { %8203 = vmatmul.msk.bf16.vlgmr.msra.gmra.mxu1 %vm820_vm8, %v11431_v0  ;;  %8208 = vmatmul.msk.bf16.vlgmr.msra.gmra.mxu2 %vm820_vm8, %v11432_v1  ;;  %v11505_v0 = vld [vmem:[#allocation8 + $0x238] sm:$0xff]  ;;  %v11482_v1 = vld [vmem:[#allocation8 + $0x180] sm:$0xff] }
 0x14f   : > { %1690 = vmatpush.bf16.msrb.mxu1 %v11441_v56  ;;  %1704 = vmatpush.bf16.msrb.mxu2 %v11449_v57 }
 0x150   : > { %1718 = vmatpush.bf16.msrb.mxu3 %v11457_v58 }
 0x151   : > { %8213 = vmatmul.msk.bf16.vlgmr.msra.gmra.mxu3 %vm820_vm8, %v11433_v2  ;;  %vm7924_vm8 = vcmask 0  }
 0x153   : > { %1691 = vmatpush.bf16.msrb.mxu1 %v11440_v60  ;;  %1705 = vmatpush.bf16.msrb.mxu2 %v11448_v61  ;;  %v11492_v61 = vld [vmem:[#allocation8 + $0x1d0] sm:$0xff] }
 0x154   : > { %1719 = vmatpush.bf16.msrb.mxu3 %v11456_v62  ;;  %1793 = vmatpush.bf16.msra.mxu0 %v11492_v61 }
 0x157   : > { %1692 = vmatpush.bf16.msrb.mxu1 %v11439_v3  ;;  %1706 = vmatpush.bf16.msrb.mxu2 %v11447_v4 }
 0x158   : > { %1720 = vmatpush.bf16.msrb.mxu3 %v11455_v5 }
 0x15b   : > { %1693 = vmatpush.bf16.msrb.mxu1 %v11438_v6  ;;  %1707 = vmatpush.bf16.msrb.mxu2 %v11446_v7  ;;  %v11491_v6 = vld [vmem:[#allocation8 + $0x1c8] sm:$0xff] }
 0x15c   : > { %1721 = vmatpush.bf16.msrb.mxu3 %v11454_v8  ;;  %1794 = vmatpush.bf16.msra.mxu0 %v11491_v6 }
 0x15f   : > { %1694 = vmatpush.bf16.msrb.mxu1 %v11437_v9  ;;  %1708 = vmatpush.bf16.msrb.mxu2 %v11445_v10  ;;  %v11504_v10 = vld [vmem:[#allocation8 + $0x230] sm:$0xff] }
 0x160   : > { %1722 = vmatpush.bf16.msrb.mxu3 %v11453_v20 }
 0x163   : > { %1695 = vmatpush.bf16.msrb.mxu1 %v11436_v11  ;;  %1709 = vmatpush.bf16.msrb.mxu2 %v11444_v12 }
 0x164   : > { %1723 = vmatpush.bf16.msrb.mxu3 %v11452_v25 }
 0x167   : > { %1696 = vmatpush.bf16.msrb.mxu1 %v11435_v13  ;;  %1710 = vmatpush.bf16.msrb.mxu2 %v11443_v17 }
 0x168   : > { %1724 = vmatpush.bf16.msrb.mxu3 %v11451_v29 }
 0x16b   : > { %1697 = vmatpush.bf16.msrb.mxu1 %v11434_v14  ;;  %1711 = vmatpush.bf16.msrb.mxu2 %v11442_v21 }
 0x16c   : > { %1725 = vmatpush.bf16.msrb.mxu3 %v11450_v33 }
 0x16f   : > { %1746 = vmatpush.bf16.msra.mxu1 %v11473_v15  ;;  %1760 = vmatpush.bf16.msra.mxu2 %v11481_v24 }
 0x170   : > { %1774 = vmatpush.bf16.msra.mxu3 %v11489_v34  ;;  %v11500_v34 = vld [vmem:[#allocation8 + $0x210] sm:$0xff] }
 0x173   : > { %1747 = vmatpush.bf16.msra.mxu1 %v11472_v16  ;;  %1761 = vmatpush.bf16.msra.mxu2 %v11480_v28  ;;  %v11490_v16 = vld [vmem:[#allocation8 + $0x1c0] sm:$0xff]  ;;  %v11501_v28 = vld [vmem:[#allocation8 + $0x218] sm:$0xff] }
 0x174   : > { %1775 = vmatpush.bf16.msra.mxu3 %v11488_v38  ;;  %1795 = vmatpush.bf16.msra.mxu0 %v11490_v16 }
 0x177   : > { %1748 = vmatpush.bf16.msra.mxu1 %v11471_v19  ;;  %1762 = vmatpush.bf16.msra.mxu2 %v11479_v32  ;;  %v11503_v19 = vld [vmem:[#allocation8 + $0x228] sm:$0xff] }
 0x178   : > { %1776 = vmatpush.bf16.msra.mxu3 %v11487_v43 }
 0x17b   : > { %1749 = vmatpush.bf16.msra.mxu1 %v11470_v23  ;;  %1763 = vmatpush.bf16.msra.mxu2 %v11478_v37  ;;  %v11502_v23 = vld [vmem:[#allocation8 + $0x220] sm:$0xff] }
 0x17c   : > { %1777 = vmatpush.bf16.msra.mxu3 %v11486_v46 }
 0x17f   : > { %1750 = vmatpush.bf16.msra.mxu1 %v11469_v27  ;;  %1764 = vmatpush.bf16.msra.mxu2 %v11477_v41 }
 0x180   : > { %1778 = vmatpush.bf16.msra.mxu3 %v11485_v50 }
 0x183   : > { %1751 = vmatpush.bf16.msra.mxu1 %v11468_v31  ;;  %1765 = vmatpush.bf16.msra.mxu2 %v11476_v44 }
 0x184   : > { %1779 = vmatpush.bf16.msra.mxu3 %v11484_v53 }
 0x187   : > { %1752 = vmatpush.bf16.msra.mxu1 %v11467_v36  ;;  %1766 = vmatpush.bf16.msra.mxu2 %v11475_v47 }
 0x188   : > { %1780 = vmatpush.bf16.msra.mxu3 %v11483_v59 }
 0x18b   : > { %1753 = vmatpush.bf16.msra.mxu1 %v11466_v40  ;;  %1767 = vmatpush.bf16.msra.mxu2 %v11474_v51 }
 0x18c   : > { %1781 = vmatpush.bf16.msra.mxu3 %v11482_v1 }
 0x1ab   : > { %v833_v49 = vpop.f32.mrf.mxu1 }
 0x1ac   : > { %v838_v56 = vpack.c.bf16 %v833_v49, %v833_v49 }
 0x1ae   : > { %v1058_v62 = vunpack.c.l.b16 %v838_v56 }
 0x1b1   : > { %v860_v54 = vpop.f32.mrf.mxu2 }
 0x1b2   : > { %v865_v2 = vpack.c.bf16 %v860_v54, %v860_v54 }
 0x1b3   : > { %v835_v58 = vpop.f32.mrf.mxu1 }
 0x1b4   : > { %v887_v57 = vpop.f32.mrf.mxu3  ;;  %v839_v60 = vpack.c.bf16 %v835_v58, %v835_v58  ;;  %v1064_v11 = vunpack.c.l.b16 %v865_v2 }
 0x1b5   : > { %v892_v4 = vpack.c.bf16 %v887_v57, %v887_v57 }
 0x1b6   : > { %v1059_v63 = vunpack.c.l.b16 %v839_v60 }
 0x1b7   : > { %v1070_v14 = vunpack.c.l.b16 %v892_v4 }
 0x1b8   : > { %v1060_v3 = vpack.c.b16 %v1059_v63, %v1058_v62 }
 0x1b9   : > { %v862_v5 = vpop.f32.mrf.mxu2 }
 0x1ba   : > { %v866_v7 = vpack.c.bf16 %v862_v5, %v862_v5  ;;  %1698 = vmatmul.bf16.vlgmr.msrb.gmra.mxu1 %v1060_v3  ;;  %v12362_v5 = vld [vmem:[#allocation10] ss:$0 sm:$0xff] }
 0x1bb   : > { %1802 = vmatpush.bf16.msrb.mxu1 %v11505_v0  ;;  %v914_v13 = vpop.f32.mrf.mxu1 }
 0x1bc   : > { %v889_v8 = vpop.f32.mrf.mxu3  ;;  %v1065_v12 = vunpack.c.l.b16 %v866_v7  ;;  %v919_v20 = vpack.c.bf16 %v914_v13, %v914_v13 }
 0x1bd   : > { %v893_v9 = vpack.c.bf16 %v889_v8, %v889_v8 }
 0x1be   : > { %v1066_v17 = vpack.c.b16 %v1065_v12, %v1064_v11  ;;  %v1076_v26 = vunpack.c.l.b16 %v919_v20 }
 0x1bf   : > { %v1071_v15 = vunpack.c.l.b16 %v893_v9  ;;  %1803 = vmatpush.bf16.msrb.mxu1 %v11504_v10 }
 0x1c0   : > { %1712 = vmatmul.bf16.vlgmr.msrb.gmra.mxu2 %v1066_v17 }
 0x1c1   : > { %v1072_v18 = vpack.c.b16 %v1071_v15, %v1070_v14  ;;  %v941_v21 = vpop.f32.mrf.mxu2 }
 0x1c2   : > { %v946_v30 = vpack.c.bf16 %v941_v21, %v941_v21 }
 0x1c3   : > { %1726 = vmatmul.bf16.vlgmr.msrb.gmra.mxu3 %v1072_v18  ;;  %1804 = vmatpush.bf16.msrb.mxu1 %v11503_v19  ;;  %v916_v24 = vpop.f32.mrf.mxu1 }
 0x1c4   : > { %v968_v22 = vpop.f32.mrf.mxu3  ;;  %v920_v25 = vpack.c.bf16 %v916_v24, %v916_v24  ;;  %v1082_v38 = vunpack.c.l.b16 %v946_v30 }
 0x1c5   : > { %v973_v31 = vpack.c.bf16 %v968_v22, %v968_v22 }
 0x1c6   : > { %v1077_v27 = vunpack.c.l.b16 %v920_v25 }
 0x1c7   : > { %1805 = vmatpush.bf16.msrb.mxu1 %v11502_v23  ;;  %v1088_v39 = vunpack.c.l.b16 %v973_v31 }
 0x1c8   : > { %v1078_v29 = vpack.c.b16 %v1077_v27, %v1076_v26 }
 0x1c9   : > { %v943_v32 = vpop.f32.mrf.mxu2 }
 0x1ca   : > { %1740 = vmatmul.bf16.vlgmr.msrb.gmra.mxu0 %v1078_v29  ;;  %v947_v35 = vpack.c.bf16 %v943_v32, %v943_v32 }
 0x1cb   : > { %1806 = vmatpush.bf16.msrb.mxu1 %v11501_v28  ;;  %v995_v37 = vpop.f32.mrf.mxu1 }
 0x1cc   : > { %v970_v33 = vpop.f32.mrf.mxu3  ;;  %v1083_v40 = vunpack.c.l.b16 %v947_v35  ;;  %v1000_v45 = vpack.c.bf16 %v995_v37, %v995_v37 }
 0x1cd   : > { %v974_v36 = vpack.c.bf16 %v970_v33, %v970_v33 }
 0x1ce   : > { %v1084_v43 = vpack.c.b16 %v1083_v40, %v1082_v38  ;;  %v1094_v51 = vunpack.c.l.b16 %v1000_v45  ;;  %v1843_v45 = vld [vmem:[#allocation11 + $0x4] sm:$0xf] }
 0x1cf   : > { %v1089_v41 = vunpack.c.l.b16 %v974_v36  ;;  %1807 = vmatpush.bf16.msrb.mxu1 %v11500_v34 }
 0x1d0   : > { %1754 = vmatmul.bf16.vlgmr.msra.gmra.mxu1 %v1084_v43 }
 0x1d1   : > { %v1090_v44 = vpack.c.b16 %v1089_v41, %v1088_v39  ;;  %v1022_v46 = vpop.f32.mrf.mxu2 }
 0x1d2   : > { %v1027_v54 = vpack.c.bf16 %v1022_v46, %v1022_v46  ;;  %v1862_v46 = vld [vmem:[#allocation11 + $0x8] sm:$0xf] }
 0x1d3   : > { %1768 = vmatmul.bf16.vlgmr.msra.gmra.mxu2 %v1090_v44  ;;  %1808 = vmatpush.bf16.msrb.mxu1 %v11499_v42  ;;  %v997_v49 = vpop.f32.mrf.mxu1  ;;  %v1823_v44 = vld [vmem:[#allocation11] sm:$0xf] }
 0x1d4   : > { %v1049_v47 = vpop.f32.mrf.mxu3  ;;  %v1001_v50 = vpack.c.bf16 %v997_v49, %v997_v49  ;;  %v1100_v60 = vunpack.c.l.b16 %v1027_v54  ;;  %v11521_v49 = vld [vmem:[#allocation13 + $0x74] sm:$0xf0]  ;;  %v8561_v54 = vld [vmem:[#allocation13 + $0x60] sm:$0xf] }
 0x1d5   : > { %v1054_v55 = vpack.c.bf16 %v1049_v47, %v1049_v47  ;;  %v1938_v47 = vld [vmem:[#allocation11 + $0x18] sm:$0xf] }
 0x1d6   : > { %v1095_v52 = vunpack.c.l.b16 %v1001_v50 }
 0x1d7   : > { %1809 = vmatpush.bf16.msrb.mxu1 %v11498_v48  ;;  %v1106_v61 = vunpack.c.l.b16 %v1054_v55  ;;  %v8569_v48 = vld [vmem:[#allocation13 + $0x70] sm:$0xf]  ;;  %v11519_v55 = vld [vmem:[#allocation13 + $0x64] sm:$0xf0] }
 0x1d8   : > { %v1096_v53 = vpack.c.b16 %v1095_v52, %v1094_v51  ;;  %v8570_v50 = vor.u32 %v11521_v49, %v8569_v48  ;;  %v8633_v51 = vld [vmem:[#allocation13 + $0xf0] sm:$0xf]  ;;  %v11537_v52 = vld [vmem:[#allocation13 + $0xf4] sm:$0xf0]  ;;  %v11563_v48 = vld [vmem:[#allocation13 + $0x1c4] sm:$0xf0] }
 0x1d9   : > { %v1024_v56 = vpop.f32.mrf.mxu2 }
 0x1da   : > { %1782 = vmatmul.bf16.vlgmr.msra.gmra.mxu3 %v1096_v53  ;;  %v1028_v58 = vpack.c.bf16 %v1024_v56, %v1024_v56  ;;  %v8634_v53 = vor.u32 %v11537_v52, %v8633_v51  ;;  %v8562_v56 = vor.u32 %v11519_v55, %v8561_v54  ;;  %v11545_v51 = vld [vmem:[#allocation13 + $0x134] sm:$0xf0] }
 0x1db   : > { %v1957_v54 = vld [vmem:[#allocation11 + $0x1c] sm:$0xf] }
 0x1dc   : > { %v1051_v57 = vpop.f32.mrf.mxu3  ;;  %v1101_v62 = vunpack.c.l.b16 %v1028_v58  ;;  %v11535_v58 = vld [vmem:[#allocation13 + $0xe4] sm:$0xf0] }
 0x1dd   : > { %v1055_v59 = vpack.c.bf16 %v1051_v57, %v1051_v57  ;;  %v8625_v57 = vld [vmem:[#allocation13 + $0xe0] sm:$0xf] }
 0x1de   : > { %v1102_v0 = vpack.c.b16 %v1101_v62, %v1100_v60  ;;  %v8553_v60 = vld [vmem:[#allocation13 + $0x50] sm:$0xf] }
 0x1df   : > { %v1107_v63 = vunpack.c.l.b16 %v1055_v59  ;;  %v8626_v59 = vor.u32 %v11535_v58, %v8625_v57  ;;  %v8617_v62 = vld [vmem:[#allocation13 + $0xd0] sm:$0xf]  ;;  %v8577_v57 = vld [vmem:[#allocation13 + $0x80] sm:$0xf]  ;;  %v11523_v58 = vld [vmem:[#allocation13 + $0x84] sm:$0xf0] }
 0x1e0   : > { %1796 = vmatmul.bf16.vlgmr.msra.gmra.mxu0 %v1102_v0 }
 0x1e1   : > { %v1108_v1 = vpack.c.b16 %v1107_v63, %v1106_v61  ;;  %v11517_v61 = vld [vmem:[#allocation13 + $0x54] sm:$0xf0] }
 0x1e2   : > { %v11533_v63 = vld [vmem:[#allocation13 + $0xd4] sm:$0xf0]  ;;  %v8554_v0 = vor.u32 %v11517_v61, %v8553_v60  ;;  %v8825_v60 = vld [vmem:[#allocation13 + $0x270] sm:$0xf] }
 0x1e3   : > { %1810 = vmatmul.bf16.vlgmr.msrb.gmra.mxu1 %v1108_v1  ;;  %v8697_v1 = vld [vmem:[#allocation13 + $0x170] sm:$0xf]  ;;  %v11585_v61 = vld [vmem:[#allocation13 + $0x274] sm:$0xf0] }
 0x237   : > { %v1699_v2 = vpop.f32.mrf.mxu1 }
 0x238   : > { %v1700_v9 = vadd.f32 %v12362_v5, %v1699_v2  ;;  %v11553_v2 = vld [vmem:[#allocation13 + $0x174] sm:$0xf0] }
 0x23f   : > { %v1701_v4 = vpop.f32.mrf.mxu1 }
 0x240   : > { %v1702_v14 = vadd.f32 %v12362_v5, %v1701_v4  ;;  %v8545_v4 = vld [vmem:[#allocation13 + $0x40] sm:$0xf]  ;;  %v11515_v5 = vld [vmem:[#allocation13 + $0x44] sm:$0xf0] }
 0x243   : > { %v1713_v3 = vpop.f32.mrf.mxu2 }
 0x244   : > { %v1714_v11 = vadd.f32 %v1713_v3, %v1700_v9  ;;  %v8618_v3 = vor.u32 %v11533_v63, %v8617_v62  ;;  %v11569_v9 = vld [vmem:[#allocation13 + $0x1f4] sm:$0xf0]  ;;  %v8889_v62 = vld [vmem:[#allocation13 + $0x2f0] sm:$0xf] }
 0x245   : > { %v11601_v63 = vld [vmem:[#allocation13 + $0x2f4] sm:$0xf0] }
 0x246   : > { %v1727_v6 = vpop.f32.mrf.mxu3 }
 0x247   : > { %v1741_v7 = vpop.f32.mrf.mxu0  ;;  %v1728_v12 = vadd.f32 %v1727_v6, %v1714_v11  ;;  %v8609_v6 = vld [vmem:[#allocation13 + $0xc0] sm:$0xf]  ;;  %v1900_v11 = vld [vmem:[#allocation11 + $0x10] sm:$0xf] }
 0x249   : > { %v1742_v18 = vadd.f32 %v1741_v7, %v1728_v12  ;;  %v11531_v7 = vld [vmem:[#allocation13 + $0xc4] sm:$0xf0]  ;;  %v1919_v12 = vld [vmem:[#allocation11 + $0x14] sm:$0xf] }
 0x24b   : > { %v1715_v8 = vpop.f32.mrf.mxu2 }
 0x24c   : > { %v1716_v19 = vadd.f32 %v1715_v8, %v1702_v14  ;;  %v8761_v8 = vld [vmem:[#allocation13 + $0x1f0] sm:$0xf]  ;;  %v8689_v14 = vld [vmem:[#allocation13 + $0x160] sm:$0xf] }
 0x24d   : > { %v1755_v10 = vpop.f32.mrf.mxu1 }
 0x24e   : > { %v1729_v13 = vpop.f32.mrf.mxu3  ;;  %v1756_v20 = vadd.f32 %v1755_v10, %v1742_v18  ;;  %v1881_v10 = vld [vmem:[#allocation11 + $0xc] sm:$0xf]  ;;  %v8537_v18 = vld [vmem:[#allocation13 + $0x30] sm:$0xf] }
 0x24f   : > { %v1743_v15 = vpop.f32.mrf.mxu0  ;;  %v1730_v21 = vadd.f32 %v1729_v13, %v1716_v19  ;;  %v8698_v13 = vor.u32 %v11553_v2, %v8697_v1  ;;  %v11513_v19 = vld [vmem:[#allocation13 + $0x34] sm:$0xf0]  ;;  %v1976_v2 = vld [vmem:[#allocation11 + $0x20] sm:$0xf] }
 0x250   : > { %v11561_v1 = vld [vmem:[#allocation13 + $0x1b4] sm:$0xf0] }
 0x251   : > { %v1744_v27 = vadd.f32 %v1743_v15, %v1730_v21  ;;  %v11551_v15 = vld [vmem:[#allocation13 + $0x164] sm:$0xf0]  ;;  %v8762_v21 = vor.u32 %v11569_v9, %v8761_v8  ;;  %v8826_v8 = vor.u32 %v11585_v61, %v8825_v60  ;;  %v8890_v9 = vor.u32 %v11601_v63, %v8889_v62  ;;  %v11613_v60 = vld [vmem:[#allocation13 + $0x354] sm:$0xf0]  ;;  %v8929_v63 = vld [vmem:[#allocation13 + $0x340] sm:$0xf] }
 0x255   : > { %v1757_v16 = vpop.f32.mrf.mxu1 }
 0x256   : > { %v1769_v17 = vpop.f32.mrf.mxu2  ;;  %v1758_v29 = vadd.f32 %v1757_v16, %v1744_v27  ;;  %v8546_v16 = vor.u32 %v11515_v5, %v8545_v4  ;;  %v11549_v27 = vld [vmem:[#allocation13 + $0x154] sm:$0xf0]  ;;  %v8657_v5 = vld [vmem:[#allocation13 + $0x120] sm:$0xf] }
 0x257   : > { %v1770_v22 = vadd.f32 %v1769_v17, %v1756_v20  ;;  %v8610_v17 = vor.u32 %v11531_v7, %v8609_v6  ;;  %v8601_v20 = vld [vmem:[#allocation13 + $0xb0] sm:$0xf]  ;;  %v11543_v6 = vld [vmem:[#allocation13 + $0x124] sm:$0xf0]  ;;  %v8578_v7 = vor.u32 %v11523_v58, %v8577_v57 }
 0x25d   : > { %v1783_v23 = vpop.f32.mrf.mxu3  ;;  %v1797_v25 = vpop.f32.mrf.mxu0 }
 0x25e   : > { %v1784_v24 = vadd.f32 %v1783_v23, %v1770_v22  ;;  %v1771_v28 = vpop.f32.mrf.mxu2  ;;  %v11529_v22 = vld [vmem:[#allocation13 + $0xb4] sm:$0xf0]  ;;  %v8753_v23 = vld [vmem:[#allocation13 + $0x1e0] sm:$0xf] }
 0x25f   : > { %v1772_v31 = vadd.f32 %v1771_v28, %v1758_v29  ;;  %v8538_v28 = vor.u32 %v11513_v19, %v8537_v18  ;;  %v8602_v29 = vor.u32 %v11529_v22, %v8601_v20  ;;  %v8649_v18 = vld [vmem:[#allocation13 + $0x110] sm:$0xf]  ;;  %v11541_v19 = vld [vmem:[#allocation13 + $0x114] sm:$0xf0] }
 0x260   : > { %v1811_v26 = vpop.f32.mrf.mxu1  ;;  %v1798_v30 = vadd.f32 %v1797_v25, %v1784_v24  ;;  %v11567_v24 = vld [vmem:[#allocation13 + $0x1e4] sm:$0xf0]  ;;  %v8690_v25 = vor.u32 %v11551_v15, %v8689_v14  ;;  %v8721_v15 = vld [vmem:[#allocation13 + $0x1a0] sm:$0xf] }
 0x261   : > { %v11599_v14 = vld [vmem:[#allocation13 + $0x2e4] sm:$0xf0] }
 0x262   : > { %v1812_v33 = vadd.f32 %v1811_v26, %v1798_v30  ;;  %v8681_v26 = vld [vmem:[#allocation13 + $0x150] sm:$0xf]  ;;  %v8529_v30 = vld [vmem:[#allocation13 + $0x20] sm:$0xf] }
 0x264   : > { %v1818_v38 = vmul.f32 0.2, %v1812_v33  ;;  %vm1816_vm9 = vcmp.ge.f32.partialorder %v1812_v33, 0.0 }
 0x265   : > { %v1785_v32 = vpop.f32.mrf.mxu3  ;;  %v1799_v35 = vpop.f32.mrf.mxu0 }
 0x266   : > { %v1786_v34 = vadd.f32 %v1785_v32, %v1772_v31  ;;  %v1820_v41 = vsel %vm1816_vm9, %v1812_v33, %v1818_v38  ;;  %v11511_v31 = vld [vmem:[#allocation13 + $0x24] sm:$0xf0]  ;;  %v8593_v32 = vld [vmem:[#allocation13 + $0xa0] sm:$0xf]  ;;  %v8754_v33 = vor.u32 %v11567_v24, %v8753_v23  ;;  %v8809_v23 = vld [vmem:[#allocation13 + $0x250] sm:$0xf] }
 0x267   : > { %v8673_v38 = vld [vmem:[#allocation13 + $0x140] sm:$0xf]  ;;  %v11581_v24 = vld [vmem:[#allocation13 + $0x254] sm:$0xf0] }
 0x268   : > { %v1800_v36 = vadd.f32 %v1799_v35, %v1786_v34  ;;  %v1813_v37 = vpop.f32.mrf.mxu1  ;;  %v11527_v34 = vld [vmem:[#allocation13 + $0xa4] sm:$0xf0]  ;;  %v8745_v35 = vld [vmem:[#allocation13 + $0x1d0] sm:$0xf] }
 0x26a   : > { %v1814_v39 = vadd.f32 %v1813_v37, %v1800_v36  ;;  %v11565_v36 = vld [vmem:[#allocation13 + $0x1d4] sm:$0xf0]  ;;  %v8682_v37 = vor.u32 %v11549_v27, %v8681_v26  ;;  %v8713_v27 = vld [vmem:[#allocation13 + $0x190] sm:$0xf] }
 0x26b   : > { %v11597_v26 = vld [vmem:[#allocation13 + $0x2d4] sm:$0xf0] }
 0x26c   : > { %vm1817_vm10 = vcmp.ge.f32.partialorder %v1814_v39, 0.0  ;;  %v1819_v40 = vmul.f32 0.2, %v1814_v39 }
 0x26e   : > { %v1821_v42 = vsel %vm1817_vm10, %v1814_v39, %v1819_v40  ;;  %v11547_v39 = vld [vmem:[#allocation13 + $0x144] sm:$0xf0]  ;;  %v8530_v40 = vor.u32 %v11511_v31, %v8529_v30  ;;  %v8641_v30 = vld [vmem:[#allocation13 + $0x100] sm:$0xf] }
 0x26f   : > { %v1822_v43 = vpack.c.bf16 %v1821_v42, %v1820_v41  ;;  %v8594_v41 = vor.u32 %v11527_v34, %v8593_v32  ;;  %v8521_v42 = vld [vmem:[#allocation13 + $0x10] sm:$0xf]  ;;  %v8674_v49 = vor.u32 %v11547_v39, %v8673_v38  ;;  %v11539_v31 = vld [vmem:[#allocation13 + $0x104] sm:$0xf0]  ;;  %v8810_v34 = vor.u32 %v11581_v24, %v8809_v23  ;;  %v8865_v39 = vld [vmem:[#allocation13 + $0x2c0] sm:$0xf] }
 0x270   : > { %v8953_v32 = vld [vmem:[#allocation13 + $0x370] sm:$0xf]  ;;  %v11579_v38 = vld [vmem:[#allocation13 + $0x244] sm:$0xf0]  ;;  %v11573_v24 = vld [vmem:[#allocation13 + $0x214] sm:$0xf0] }
 0x271   : > { %1835 = vmatpush.bf16.msrb.mxu2 %v1822_v43  ;;  %1854 = vmatpush.bf16.msrb.mxu3 %v1822_v43  ;;  %v8777_v23 = vld [vmem:[#allocation13 + $0x210] sm:$0xf] }
 0x272   : > { %1873 = vmatpush.bf16.msrb.mxu0 %v1822_v43  ;;  %1949 = vmatpush.bf16.msra.mxu1 %v1822_v43 }
 0x274   : > { %8502 = vmatmul.msk.bf16.vlgmr.msrb.gmra.mxu2 %vm1824_vm11, %v1823_v44  ;;  %8503 = vmatmul.msk.bf16.vlgmr.msrb.gmra.mxu3 %vm1824_vm11, %v1843_v45  ;;  %v8585_v44 = vld [vmem:[#allocation13 + $0x90] sm:$0xf]  ;;  %v8746_v45 = vor.u32 %v11565_v36, %v8745_v35 }
 0x275   : > { %1892 = vmatpush.bf16.msra.mxu2 %v1822_v43  ;;  %1911 = vmatpush.bf16.msra.mxu3 %v1822_v43 }
 0x276   : > { %1930 = vmatpush.bf16.msra.mxu0 %v1822_v43  ;;  %8508 = vmatmul.msk.bf16.vlgmr.msra.gmra.mxu1 %vm1824_vm11, %v1938_v47  ;;  %v8737_v47 = vld [vmem:[#allocation13 + $0x1c0] sm:$0xf] }
 0x277   : > { %8504 = vmatmul.msk.bf16.vlgmr.msrb.gmra.mxu0 %vm1824_vm11, %v1862_v46  ;;  %2877 = vmatpush.bf16.msrb.mxu1 %v8634_v53  ;;  %v11525_v46 = vld [vmem:[#allocation13 + $0x94] sm:$0xf0]  ;;  %v8513_v53 = vld [vmem:[#allocation13] sm:$0xf] }
 0x278   : > { %v8586_v55 = vor.u32 %v11525_v46, %v8585_v44  ;;  %v9017_v44 = vld [vmem:[#allocation13 + $0x3f0] sm:$0xf] }
 0x279   : > { %1968 = vmatpush.bf16.msrb.mxu2 %v1822_v43  ;;  %1987 = vmatpush.bf16.msrb.mxu3 %v1822_v43  ;;  %v11509_v43 = vld [vmem:[#allocation13 + $0x14] sm:$0xf0] }
 0x27a   : > { %2864 = vmatpush.bf16.msrb.mxu0 %v8570_v50  ;;  %v8665_v50 = vld [vmem:[#allocation13 + $0x130] sm:$0xf]  ;;  %v8522_v52 = vor.u32 %v11509_v43, %v8521_v42  ;;  %v11555_v42 = vld [vmem:[#allocation13 + $0x184] sm:$0xf0]  ;;  %v8642_v43 = vor.u32 %v11539_v31, %v8641_v30 }
 0x27b   : > { %2878 = vmatpush.bf16.msrb.mxu1 %v8626_v59  ;;  %v8738_v59 = vor.u32 %v11563_v48, %v8737_v47  ;;  %v8945_v47 = vld [vmem:[#allocation13 + $0x360] sm:$0xf] }
 0x27e   : > { %2865 = vmatpush.bf16.msrb.mxu0 %v8562_v56  ;;  %v11507_v56 = vld [vmem:[#allocation13 + $0x4] sm:$0xf0] }
 0x27f   : > { %2879 = vmatpush.bf16.msrb.mxu1 %v8618_v3  ;;  %v8666_v3 = vor.u32 %v11545_v51, %v8665_v50  ;;  %v8514_v4 = vor.u32 %v11507_v56, %v8513_v53  ;;  %v11577_v53 = vld [vmem:[#allocation13 + $0x234] sm:$0xf0] }
 0x282   : > { %2866 = vmatpush.bf16.msrb.mxu0 %v8554_v0  ;;  %v8729_v0 = vld [vmem:[#allocation13 + $0x1b0] sm:$0xf] }
 0x283   : > { %2880 = vmatpush.bf16.msrb.mxu1 %v8610_v17  ;;  %v8658_v17 = vor.u32 %v11543_v6, %v8657_v5  ;;  %v8913_v5 = vld [vmem:[#allocation13 + $0x320] sm:$0xf]  ;;  %v11607_v6 = vld [vmem:[#allocation13 + $0x324] sm:$0xf0] }
 0x284   : > { %8505 = vmatmul.msk.bf16.vlgmr.msra.gmra.mxu2 %vm1824_vm11, %v1881_v10  ;;  %8506 = vmatmul.msk.bf16.vlgmr.msra.gmra.mxu3 %vm1824_vm11, %v1900_v11  ;;  %v8730_v10 = vor.u32 %v11561_v1, %v8729_v0  ;;  %v8817_v11 = vld [vmem:[#allocation13 + $0x260] sm:$0xf]  ;;  %v11611_v0 = vld [vmem:[#allocation13 + $0x344] sm:$0xf0] }
 0x285   : > { %2890 = vmatpush.bf16.msra.mxu2 %v8698_v13  ;;  %2903 = vmatpush.bf16.msra.mxu3 %v8762_v21  ;;  %v8881_v13 = vld [vmem:[#allocation13 + $0x2e0] sm:$0xf]  ;;  %v8930_v1 = vor.u32 %v11611_v0, %v8929_v63  ;;  %v11520_v63 = vld [vmem:[#allocation13 + $0x74] sm:$0xf]  ;;  %v8571_v0 = vld [vmem:[#allocation13 + $0x78] sm:$0xf0] }
 0x286   : > { %2867 = vmatpush.bf16.msrb.mxu0 %v8546_v16  ;;  %v11559_v16 = vld [vmem:[#allocation13 + $0x1a4] sm:$0xf0]  ;;  %v8882_v21 = vor.u32 %v11599_v14, %v8881_v13  ;;  %v8849_v13 = vld [vmem:[#allocation13 + $0x2a0] sm:$0xf] }
 0x287   : > { %8507 = vmatmul.msk.bf16.vlgmr.msra.gmra.mxu0 %vm1824_vm11, %v1919_v12  ;;  %2881 = vmatpush.bf16.msrb.mxu1 %v8602_v29  ;;  %v11583_v12 = vld [vmem:[#allocation13 + $0x264] sm:$0xf0]  ;;  %v8722_v22 = vor.u32 %v11559_v16, %v8721_v15  ;;  %v8650_v29 = vor.u32 %v11541_v19, %v8649_v18  ;;  %v9009_v16 = vld [vmem:[#allocation13 + $0x3e0] sm:$0xf] }
 0x288   : > { %v8818_v20 = vor.u32 %v11583_v12, %v8817_v11  ;;  %v8785_v11 = vld [vmem:[#allocation13 + $0x220] sm:$0xf]  ;;  %v11575_v12 = vld [vmem:[#allocation13 + $0x224] sm:$0xf0] }
 0x289   : > { %2891 = vmatpush.bf16.msra.mxu2 %v8690_v25  ;;  %2904 = vmatpush.bf16.msra.mxu3 %v8754_v33  ;;  %v8873_v25 = vld [vmem:[#allocation13 + $0x2d0] sm:$0xf]  ;;  %v11617_v33 = vld [vmem:[#allocation13 + $0x374] sm:$0xf0]  ;;  %v8786_v14 = vor.u32 %v11575_v12, %v8785_v11  ;;  %v11591_v15 = vld [vmem:[#allocation13 + $0x2a4] sm:$0xf0] }
 0x28a   : > { %2868 = vmatpush.bf16.msrb.mxu0 %v8538_v28  ;;  %v11557_v28 = vld [vmem:[#allocation13 + $0x194] sm:$0xf0]  ;;  %v8874_v35 = vor.u32 %v11597_v26, %v8873_v25  ;;  %v8954_v46 = vor.u32 %v11617_v33, %v8953_v32  ;;  %v8850_v18 = vor.u32 %v11591_v15, %v8849_v13  ;;  %v8841_v25 = vld [vmem:[#allocation13 + $0x290] sm:$0xf]  ;;  %v8778_v26 = vor.u32 %v11573_v24, %v8777_v23  ;;  %v8769_v32 = vld [vmem:[#allocation13 + $0x200] sm:$0xf] }
 0x28b   : > { %2882 = vmatpush.bf16.msrb.mxu1 %v8594_v41  ;;  %v8714_v36 = vor.u32 %v11557_v28, %v8713_v27  ;;  %v8705_v41 = vld [vmem:[#allocation13 + $0x180] sm:$0xf]  ;;  %v11589_v27 = vld [vmem:[#allocation13 + $0x294] sm:$0xf0]  ;;  %v9001_v28 = vld [vmem:[#allocation13 + $0x3d0] sm:$0xf] }
 0x28c   : > { %v8706_v51 = vor.u32 %v11555_v42, %v8705_v41  ;;  %v8842_v30 = vor.u32 %v11589_v27, %v8841_v25  ;;  %v11571_v33 = vld [vmem:[#allocation13 + $0x204] sm:$0xf0]  ;;  %v8985_v41 = vld [vmem:[#allocation13 + $0x3b0] sm:$0xf]  ;;  %v11625_v42 = vld [vmem:[#allocation13 + $0x3b4] sm:$0xf0] }
 0x28d   : > { %2892 = vmatpush.bf16.msra.mxu2 %v8682_v37  ;;  %2905 = vmatpush.bf16.msra.mxu3 %v8746_v45  ;;  %v8801_v37 = vld [vmem:[#allocation13 + $0x240] sm:$0xf]  ;;  %v11633_v45 = vld [vmem:[#allocation13 + $0x3f4] sm:$0xf0]  ;;  %v11518_v12 = vld [vmem:[#allocation13 + $0x64] sm:$0xf] }
 0x28e   : > { %2869 = vmatpush.bf16.msrb.mxu0 %v8530_v40  ;;  %v11595_v40 = vld [vmem:[#allocation13 + $0x2c4] sm:$0xf0]  ;;  %v8802_v48 = vor.u32 %v11579_v38, %v8801_v37  ;;  %v9018_v56 = vor.u32 %v11633_v45, %v9017_v44  ;;  %v8993_v37 = vld [vmem:[#allocation13 + $0x3c0] sm:$0xf]  ;;  %v8563_v13 = vld [vmem:[#allocation13 + $0x68] sm:$0xf0] }
 0x28f   : > { %2883 = vmatpush.bf16.msrb.mxu1 %v8586_v55  ;;  %v8866_v50 = vor.u32 %v11595_v40, %v8865_v39  ;;  %v11593_v55 = vld [vmem:[#allocation13 + $0x2b4] sm:$0xf0]  ;;  %v11627_v38 = vld [vmem:[#allocation13 + $0x3c4] sm:$0xf0]  ;;  %v8977_v44 = vld [vmem:[#allocation13 + $0x3a0] sm:$0xf] }
 0x290   : > { %v8994_v40 = vor.u32 %v11627_v38, %v8993_v37  ;;  %v11623_v45 = vld [vmem:[#allocation13 + $0x3a4] sm:$0xf0]  ;;  %v11516_v23 = vld [vmem:[#allocation13 + $0x54] sm:$0xf]  ;;  %v8555_v24 = vld [vmem:[#allocation13 + $0x58] sm:$0xf0] }
 0x291   : > { %2893 = vmatpush.bf16.msra.mxu2 %v8674_v49  ;;  %2906 = vmatpush.bf16.msra.mxu3 %v8738_v59  ;;  %v11615_v49 = vld [vmem:[#allocation13 + $0x364] sm:$0xf0]  ;;  %v8937_v59 = vld [vmem:[#allocation13 + $0x350] sm:$0xf] }
 0x292   : > { %2870 = vmatpush.bf16.msrb.mxu0 %v8522_v52  ;;  %v8793_v52 = vld [vmem:[#allocation13 + $0x230] sm:$0xf]  ;;  %v8946_v57 = vor.u32 %v11615_v49, %v8945_v47  ;;  %v8938_v62 = vor.u32 %v11613_v60, %v8937_v59  ;;  %v8627_v59 = vld [vmem:[#allocation13 + $0xe8] sm:$0xf0] }
 0x293   : > { %2884 = vmatpush.bf16.msrb.mxu1 %v8578_v7  ;;  %v8794_v58 = vor.u32 %v11577_v53, %v8793_v52  ;;  %v8914_v7 = vor.u32 %v11607_v6, %v8913_v5  ;;  %v8969_v47 = vld [vmem:[#allocation13 + $0x390] sm:$0xf]  ;;  %v11536_v53 = vld [vmem:[#allocation13 + $0xf4] sm:$0xf]  ;;  %v8619_v5 = vld [vmem:[#allocation13 + $0xd8] sm:$0xf0] }
 0x294   : > { %8509 = vmatmul.msk.bf16.vlgmr.msrb.gmra.mxu2 %vm1824_vm11, %v1957_v54  ;;  %8510 = vmatmul.msk.bf16.vlgmr.msrb.gmra.mxu3 %vm1824_vm11, %v1976_v2  ;;  %v8857_v54 = vld [vmem:[#allocation13 + $0x2b0] sm:$0xf] }
 0x295   : > { %2894 = vmatpush.bf16.msra.mxu2 %v8666_v3  ;;  %2907 = vmatpush.bf16.msra.mxu3 %v8730_v10  ;;  %v8858_v61 = vor.u32 %v11593_v55, %v8857_v54  ;;  %v8921_v2 = vld [vmem:[#allocation13 + $0x330] sm:$0xf]  ;;  %v11609_v3 = vld [vmem:[#allocation13 + $0x334] sm:$0xf0]  ;;  %v8635_v54 = vld [vmem:[#allocation13 + $0xf8] sm:$0xf0] }
 0x296   : > { %2871 = vmatpush.bf16.msrb.mxu0 %v8514_v4  ;;  %v8922_v4 = vor.u32 %v11609_v3, %v8921_v2  ;;  %v9081_v60 = vld [vmem:[#allocation13 + $0x470] sm:$0xf] }
 0x297   : > { %2929 = vmatpush.bf16.msra.mxu1 %v8890_v9  ;;  %v11605_v9 = vld [vmem:[#allocation13 + $0x314] sm:$0xf0] }
 0x299   : > { %2895 = vmatpush.bf16.msra.mxu2 %v8658_v17  ;;  %2908 = vmatpush.bf16.msra.mxu3 %v8722_v22  ;;  %v11631_v17 = vld [vmem:[#allocation13 + $0x3e4] sm:$0xf0] }
 0x29a   : > { %2916 = vmatpush.bf16.msra.mxu0 %v8826_v8  ;;  %v8905_v8 = vld [vmem:[#allocation13 + $0x310] sm:$0xf]  ;;  %v9010_v19 = vor.u32 %v11631_v17, %v9009_v16  ;;  %v11530_v17 = vld [vmem:[#allocation13 + $0xc4] sm:$0xf] }
 0x29b   : > { %2930 = vmatpush.bf16.msra.mxu1 %v8882_v21  ;;  %v8906_v10 = vor.u32 %v11605_v9, %v8905_v8  ;;  %v11603_v21 = vld [vmem:[#allocation13 + $0x304] sm:$0xf0]  ;;  %v8574_v8 = vor.u32 %v11520_v63, %v8571_v0  ;;  %v9073_v9 = vld [vmem:[#allocation13 + $0x460] sm:$0xf]  ;;  %v8531_v0 = vld [vmem:[#allocation13 + $0x28] sm:$0xf0] }
 0x29d   : > { %2896 = vmatpush.bf16.msra.mxu2 %v8650_v29  ;;  %2909 = vmatpush.bf16.msra.mxu3 %v8714_v36  ;;  %v11629_v29 = vld [vmem:[#allocation13 + $0x3d4] sm:$0xf0]  ;;  %v11587_v36 = vld [vmem:[#allocation13 + $0x284] sm:$0xf0] }
 0x29e   : > { %2917 = vmatpush.bf16.msra.mxu0 %v8818_v20  ;;  %v8897_v20 = vld [vmem:[#allocation13 + $0x300] sm:$0xf]  ;;  %v9002_v31 = vor.u32 %v11629_v29, %v9001_v28  ;;  %v11528_v28 = vld [vmem:[#allocation13 + $0xb4] sm:$0xf]  ;;  %v8603_v29 = vld [vmem:[#allocation13 + $0xb8] sm:$0xf0] }
 0x29f   : > { %2931 = vmatpush.bf16.msra.mxu1 %v8874_v35  ;;  %v8898_v22 = vor.u32 %v11603_v21, %v8897_v20  ;;  %v8770_v35 = vor.u32 %v11571_v33, %v8769_v32  ;;  %v9065_v20 = vld [vmem:[#allocation13 + $0x450] sm:$0xf]  ;;  %v11645_v21 = vld [vmem:[#allocation13 + $0x454] sm:$0xf0]  ;;  %v9057_v32 = vld [vmem:[#allocation13 + $0x440] sm:$0xf]  ;;  %v8606_v37 = vor.u32 %v11528_v28, %v8603_v29 }
 0x2a0   : > { %v9066_v27 = vor.u32 %v11645_v21, %v9065_v20  ;;  %v11643_v33 = vld [vmem:[#allocation13 + $0x444] sm:$0xf0] }
 0x2a1   : > { %2897 = vmatpush.bf16.msra.mxu2 %v8642_v43  ;;  %2910 = vmatpush.bf16.msra.mxu3 %v8706_v51  ;;  %v8986_v43 = vor.u32 %v11625_v42, %v8985_v41  ;;  %v11619_v51 = vld [vmem:[#allocation13 + $0x384] sm:$0xf0]  ;;  %v8595_v41 = vld [vmem:[#allocation13 + $0xa8] sm:$0xf0] }
 0x2a2   : > { %2918 = vmatpush.bf16.msra.mxu0 %v8810_v34  ;;  %v8833_v34 = vld [vmem:[#allocation13 + $0x280] sm:$0xf] }
 0x2a3   : > { %2932 = vmatpush.bf16.msra.mxu1 %v8866_v50  ;;  %v8834_v39 = vor.u32 %v11587_v36, %v8833_v34  ;;  %v8961_v50 = vld [vmem:[#allocation13 + $0x380] sm:$0xf]  ;;  %v8547_v36 = vld [vmem:[#allocation13 + $0x48] sm:$0xf0] }
 0x2a4   : > { %v8962_v52 = vor.u32 %v11619_v51, %v8961_v50 }
 0x2a5   : > { %2942 = vmatpush.bf16.msrb.mxu2 %v8954_v46  ;;  %2955 = vmatpush.bf16.msrb.mxu3 %v9018_v56  ;;  %v8978_v46 = vor.u32 %v11623_v45, %v8977_v44  ;;  %v8638_v56 = vor.u32 %v11536_v53, %v8635_v54  ;;  %v11641_v44 = vld [vmem:[#allocation13 + $0x434] sm:$0xf0]  ;;  %v11512_v45 = vld [vmem:[#allocation13 + $0x34] sm:$0xf]  ;;  %v8587_v54 = vld [vmem:[#allocation13 + $0x98] sm:$0xf0] }
 0x2a6   : > { %2919 = vmatpush.bf16.msra.mxu0 %v8802_v48  ;;  %v11621_v48 = vld [vmem:[#allocation13 + $0x394] sm:$0xf0]  ;;  %v11524_v53 = vld [vmem:[#allocation13 + $0x94] sm:$0xf] }
 0x2a7   : > { %2933 = vmatpush.bf16.msra.mxu1 %v8858_v61  ;;  %v8970_v49 = vor.u32 %v11621_v48, %v8969_v47  ;;  %v11649_v61 = vld [vmem:[#allocation13 + $0x474] sm:$0xf0]  ;;  %v11552_v47 = vld [vmem:[#allocation13 + $0x174] sm:$0xf]  ;;  %v8699_v48 = vld [vmem:[#allocation13 + $0x178] sm:$0xf0] }
 0x2a8   : > { %v9082_v3 = vor.u32 %v11649_v61, %v9081_v60  ;;  %v9041_v60 = vld [vmem:[#allocation13 + $0x420] sm:$0xf]  ;;  %v11639_v61 = vld [vmem:[#allocation13 + $0x424] sm:$0xf0] }
 0x2a9   : > { %2943 = vmatpush.bf16.msrb.mxu2 %v8946_v57  ;;  %2956 = vmatpush.bf16.msrb.mxu3 %v9010_v19  ;;  %v8566_v19 = vor.u32 %v11518_v12, %v8563_v13 }
 0x2aa   : > { %2920 = vmatpush.bf16.msra.mxu0 %v8794_v58  ;;  %v11534_v58 = vld [vmem:[#allocation13 + $0xe4] sm:$0xf] }
 0x2ab   : > { %2934 = vmatpush.bf16.msra.mxu1 %v8850_v18  ;;  %v8611_v18 = vld [vmem:[#allocation13 + $0xc8] sm:$0xf0] }
 0x2ac   : > { %v8614_v25 = vor.u32 %v11530_v17, %v8611_v18  ;;  %v8523_v17 = vld [vmem:[#allocation13 + $0x18] sm:$0xf0]  ;;  %v11548_v18 = vld [vmem:[#allocation13 + $0x154] sm:$0xf] }
 0x2ad   : > { %2944 = vmatpush.bf16.msrb.mxu2 %v8938_v62  ;;  %2957 = vmatpush.bf16.msrb.mxu3 %v9002_v31  ;;  %v8558_v31 = vor.u32 %v11516_v23, %v8555_v24  ;;  %v11598_v24 = vld [vmem:[#allocation13 + $0x2e4] sm:$0xf] }
 0x2ae   : > { %2921 = vmatpush.bf16.msra.mxu0 %v8786_v14 }
 0x2af   : > { %2935 = vmatpush.bf16.msra.mxu1 %v8842_v30 }
 0x2b1   : > { %2945 = vmatpush.bf16.msrb.mxu2 %v8930_v1  ;;  %2958 = vmatpush.bf16.msrb.mxu3 %v8994_v40  ;;  %v8630_v1 = vor.u32 %v11534_v58, %v8627_v59  ;;  %v11526_v40 = vld [vmem:[#allocation13 + $0xa4] sm:$0xf]  ;;  %v8702_v58 = vor.u32 %v11552_v47, %v8699_v48  ;;  %v11544_v48 = vld [vmem:[#allocation13 + $0x134] sm:$0xf] }
 0x2b2   : > { %2922 = vmatpush.bf16.msra.mxu0 %v8778_v26 }
 0x2b3   : > { %2936 = vmatpush.bf16.msra.mxu1 %v8834_v39  ;;  %v9058_v39 = vor.u32 %v11643_v33, %v9057_v32  ;;  %v8515_v32 = vld [vmem:[#allocation13 + $0x8] sm:$0xf0]  ;;  %v11546_v33 = vld [vmem:[#allocation13 + $0x144] sm:$0xf] }
 0x2b5   : > { %2946 = vmatpush.bf16.msrb.mxu2 %v8922_v4  ;;  %2959 = vmatpush.bf16.msrb.mxu3 %v8986_v43  ;;  %v11532_v4 = vld [vmem:[#allocation13 + $0xd4] sm:$0xf]  ;;  %v9049_v43 = vld [vmem:[#allocation13 + $0x430] sm:$0xf] }
 0x2b6   : > { %2923 = vmatpush.bf16.msra.mxu0 %v8770_v35  ;;  %v8622_v14 = vor.u32 %v11532_v4, %v8619_v5  ;;  %v11514_v35 = vld [vmem:[#allocation13 + $0x44] sm:$0xf] }
 0x2b7   : > { %v8550_v42 = vor.u32 %v11514_v35, %v8547_v36  ;;  %v11522_v4 = vld [vmem:[#allocation13 + $0x84] sm:$0xf]  ;;  %v8675_v35 = vld [vmem:[#allocation13 + $0x148] sm:$0xf0]  ;;  %v11568_v36 = vld [vmem:[#allocation13 + $0x1f4] sm:$0xf] }
 0x2b9   : > { %2947 = vmatpush.bf16.msrb.mxu2 %v8914_v7  ;;  %2960 = vmatpush.bf16.msrb.mxu3 %v8978_v46  ;;  %v8539_v46 = vld [vmem:[#allocation13 + $0x38] sm:$0xf0] }
 0x2bd   : > { %2948 = vmatpush.bf16.msrb.mxu2 %v8906_v10  ;;  %2961 = vmatpush.bf16.msrb.mxu3 %v8970_v49  ;;  %v11647_v10 = vld [vmem:[#allocation13 + $0x464] sm:$0xf0]  ;;  %v8598_v49 = vor.u32 %v11526_v40, %v8595_v41 }
 0x2be   : > { %v9074_v16 = vor.u32 %v11647_v10, %v9073_v9  ;;  %v11600_v9 = vld [vmem:[#allocation13 + $0x2f4] sm:$0xf]  ;;  %v8891_v10 = vld [vmem:[#allocation13 + $0x2f8] sm:$0xf0] }
 0x2c1   : > { %2949 = vmatpush.bf16.msrb.mxu2 %v8898_v22  ;;  %2962 = vmatpush.bf16.msrb.mxu3 %v8962_v52  ;;  %v9050_v52 = vor.u32 %v11641_v44, %v9049_v43  ;;  %v8678_v43 = vor.u32 %v11546_v33, %v8675_v35  ;;  %v11596_v44 = vld [vmem:[#allocation13 + $0x2d4] sm:$0xf]  ;;  %v8731_v33 = vld [vmem:[#allocation13 + $0x1b8] sm:$0xf0] }
 0x2c2   : > { %v11576_v35 = vld [vmem:[#allocation13 + $0x234] sm:$0xf] }
 0x2f3   : > { %v1951_v62 = vpop.f32.mrf.mxu1 }
 0x2f4   : > { %v1875_v55 = vpop.f32.mrf.mxu0  ;;  %v13026_v34 = vpack.c.bf16 %v1951_v62, %v1951_v62  ;;  %v11510_v62 = vld [vmem:[#allocation13 + $0x24] sm:$0xf] }
 0x2f5   : > { %v13017_v57 = vpack.c.bf16 %v1875_v55, %v1875_v55  ;;  %v8534_v12 = vor.u32 %v11510_v62, %v8531_v0  ;;  %v8867_v62 = vld [vmem:[#allocation13 + $0x2c8] sm:$0xf0] }
 0x2f7   : > { %2898 = vmatmul.bf16.vlgmr.msra.gmra.mxu2 %v13017_v57  ;;  %v1837_v2 = vpop.f32.mrf.mxu2  ;;  %v1856_v7 = vpop.f32.mrf.mxu3 }
 0x2f8   : > { %2994 = vmatpush.bf16.msra.mxu2 %v8638_v56  ;;  %v13020_v6 = vpack.c.bf16 %v1837_v2, %v1837_v2  ;;  %v13022_v11 = vpack.c.bf16 %v1856_v7, %v1856_v7  ;;  %v8542_v56 = vor.u32 %v11512_v45, %v8539_v46  ;;  %v8691_v2 = vld [vmem:[#allocation13 + $0x168] sm:$0xf0]  ;;  %v9042_v7 = vor.u32 %v11639_v61, %v9041_v60  ;;  %v8875_v45 = vld [vmem:[#allocation13 + $0x2d8] sm:$0xf0]  ;;  %v11594_v61 = vld [vmem:[#allocation13 + $0x2c4] sm:$0xf] }
 0x2fa   : > { %2872 = vmatmul.bf16.vlgmr.msrb.gmra.mxu0 %v13020_v6  ;;  %2885 = vmatmul.bf16.vlgmr.msrb.gmra.mxu1 %v13022_v11 }
 0x2fb   : > { %2968 = vmatpush.bf16.msrb.mxu0 %v9082_v3  ;;  %2981 = vmatpush.bf16.msrb.mxu1 %v8574_v8  ;;  %v1953_v22 = vpop.f32.mrf.mxu1  ;;  %v8590_v3 = vor.u32 %v11524_v53, %v8587_v54  ;;  %v8579_v8 = vld [vmem:[#allocation13 + $0x88] sm:$0xf0]  ;;  %v11582_v53 = vld [vmem:[#allocation13 + $0x264] sm:$0xf] }
 0x2fc   : > { %2995 = vmatpush.bf16.msra.mxu2 %v8630_v1  ;;  %v1877_v15 = vpop.f32.mrf.mxu0  ;;  %v11550_v1 = vld [vmem:[#allocation13 + $0x164] sm:$0xf]  ;;  %v8582_v20 = vor.u32 %v11522_v4, %v8579_v8  ;;  %v8894_v22 = vor.u32 %v11600_v9, %v8891_v10  ;;  %v8819_v54 = vld [vmem:[#allocation13 + $0x268] sm:$0xf0]  ;;  %v11564_v4 = vld [vmem:[#allocation13 + $0x1d4] sm:$0xf]  ;;  %v8870_v10 = vor.u32 %v11594_v61, %v8867_v62 }
 0x2fd   : > { %v8694_v13 = vor.u32 %v11550_v1, %v8691_v2  ;;  %v11637_v15 = vld [vmem:[#allocation13 + $0x414] sm:$0xf0]  ;;  %v8822_v1 = vor.u32 %v11582_v53, %v8819_v54  ;;  %v11542_v2 = vld [vmem:[#allocation13 + $0x124] sm:$0xf]  ;;  %v11580_v8 = vld [vmem:[#allocation13 + $0x254] sm:$0xf] }
 0x2fe   : > { %v8811_v9 = vld [vmem:[#allocation13 + $0x258] sm:$0xf0]  ;;  %v8947_v53 = vld [vmem:[#allocation13 + $0x368] sm:$0xf0]  ;;  %v11586_v54 = vld [vmem:[#allocation13 + $0x284] sm:$0xf] }
 0x2ff   : > { %2969 = vmatpush.bf16.msrb.mxu0 %v9074_v16  ;;  %v1839_v26 = vpop.f32.mrf.mxu2  ;;  %2982 = vmatpush.bf16.msrb.mxu1 %v8566_v19  ;;  %v1858_v30 = vpop.f32.mrf.mxu3  ;;  %v11508_v16 = vld [vmem:[#allocation13 + $0x14] sm:$0xf]  ;;  %v8683_v19 = vld [vmem:[#allocation13 + $0x158] sm:$0xf0] }
 0x300   : > { %2996 = vmatpush.bf16.msra.mxu2 %v8622_v14  ;;  %v9033_v14 = vld [vmem:[#allocation13 + $0x410] sm:$0xf]  ;;  %v9025_v26 = vld [vmem:[#allocation13 + $0x400] sm:$0xf]  ;;  %v8686_v28 = vor.u32 %v11548_v18, %v8683_v19  ;;  %v11635_v30 = vld [vmem:[#allocation13 + $0x404] sm:$0xf0] }
 0x301   : > { %v9034_v23 = vor.u32 %v11637_v15, %v9033_v14  ;;  %v9026_v41 = vor.u32 %v11635_v30, %v9025_v26  ;;  %v8859_v14 = vld [vmem:[#allocation13 + $0x2b8] sm:$0xf0]  ;;  %v11562_v19 = vld [vmem:[#allocation13 + $0x1c4] sm:$0xf]  ;;  %v8851_v26 = vld [vmem:[#allocation13 + $0x2a8] sm:$0xf0] }
 0x302   : > { %v8651_v18 = vld [vmem:[#allocation13 + $0x118] sm:$0xf0]  ;;  %v11538_v30 = vld [vmem:[#allocation13 + $0x104] sm:$0xf]  ;;  %v11556_v61 = vld [vmem:[#allocation13 + $0x194] sm:$0xf] }
 0x303   : > { %2970 = vmatpush.bf16.msrb.mxu0 %v9066_v27  ;;  %2983 = vmatpush.bf16.msrb.mxu1 %v8558_v31  ;;  %v8526_v27 = vor.u32 %v11508_v16, %v8523_v17  ;;  %v11506_v31 = vld [vmem:[#allocation13 + $0x4] sm:$0xf]  ;;  %v8814_v16 = vor.u32 %v11580_v8, %v8811_v9  ;;  %v11540_v17 = vld [vmem:[#allocation13 + $0x114] sm:$0xf] }
 0x304   : > { %2997 = vmatpush.bf16.msra.mxu2 %v8614_v25  ;;  %v1932_v38 = vpop.f32.mrf.mxu0  ;;  %v8883_v25 = vld [vmem:[#allocation13 + $0x2e8] sm:$0xf0]  ;;  %v11554_v9 = vld [vmem:[#allocation13 + $0x184] sm:$0xf] }
 0x305   : > { %v13029_v51 = vpack.c.bf16 %v1932_v38, %v1932_v38  ;;  %v11584_v38 = vld [vmem:[#allocation13 + $0x274] sm:$0xf]  ;;  %v8886_v40 = vor.u32 %v11598_v24, %v8883_v25  ;;  %v8654_v24 = vor.u32 %v11540_v17, %v8651_v18  ;;  %v11590_v25 = vld [vmem:[#allocation13 + $0x2a4] sm:$0xf]  ;;  %v9019_v18 = vld [vmem:[#allocation13 + $0x3f8] sm:$0xf0] }
 0x306   : > { %v11632_v17 = vld [vmem:[#allocation13 + $0x3f4] sm:$0xf] }
 0x307   : > { %2950 = vmatmul.bf16.vlgmr.msrb.gmra.mxu2 %v13026_v34  ;;  %2971 = vmatpush.bf16.msrb.mxu0 %v9058_v39  ;;  %v1894_v50 = vpop.f32.mrf.mxu2  ;;  %v1913_v59 = vpop.f32.mrf.mxu3  ;;  %v8827_v39 = vld [vmem:[#allocation13 + $0x278] sm:$0xf0] }
 0x308   : > { %2998 = vmatpush.bf16.msra.mxu2 %v8606_v37  ;;  %2984 = vmatpush.bf16.msrb.mxu1 %v8550_v42  ;;  %v13031_v55 = vpack.c.bf16 %v1894_v50, %v1894_v50  ;;  %v13033_v63 = vpack.c.bf16 %v1913_v59, %v1913_v59  ;;  %v8763_v37 = vld [vmem:[#allocation13 + $0x1f8] sm:$0xf0]  ;;  %v8518_v42 = vor.u32 %v11506_v31, %v8515_v32  ;;  %v11566_v50 = vld [vmem:[#allocation13 + $0x1e4] sm:$0xf]  ;;  %v8643_v31 = vld [vmem:[#allocation13 + $0x108] sm:$0xf0] }
 0x309   : > { %v8766_v46 = vor.u32 %v11568_v36, %v8763_v37  ;;  %v8830_v47 = vor.u32 %v11584_v38, %v8827_v39  ;;  %v11560_v32 = vld [vmem:[#allocation13 + $0x1b4] sm:$0xf]  ;;  %v8795_v36 = vld [vmem:[#allocation13 + $0x238] sm:$0xf0]  ;;  %v8854_v37 = vor.u32 %v11590_v25, %v8851_v26  ;;  %v11630_v26 = vld [vmem:[#allocation13 + $0x3e4] sm:$0xf] }
 0x30a   : > { %2911 = vmatmul.bf16.vlgmr.msra.gmra.mxu3 %v13031_v55  ;;  %2937 = vmatmul.bf16.vlgmr.msra.gmra.mxu1 %v13029_v51  ;;  %v11616_v38 = vld [vmem:[#allocation13 + $0x374] sm:$0xf]  ;;  %v8955_v39 = vld [vmem:[#allocation13 + $0x378] sm:$0xf0] }
 0x30b   : > { %2972 = vmatpush.bf16.msrb.mxu0 %v9050_v52  ;;  %3007 = vmatpush.bf16.msra.mxu3 %v8702_v58  ;;  %v8755_v52 = vld [vmem:[#allocation13 + $0x1e8] sm:$0xf0]  ;;  %v8878_v58 = vor.u32 %v11596_v44, %v8875_v45  ;;  %v8798_v44 = vor.u32 %v11576_v35, %v8795_v36  ;;  %v11558_v45 = vld [vmem:[#allocation13 + $0x1a4] sm:$0xf]  ;;  %v8923_v25 = vld [vmem:[#allocation13 + $0x338] sm:$0xf0] }
 0x30c   : > { %2999 = vmatpush.bf16.msra.mxu2 %v8598_v49  ;;  %v1934_v5 = vpop.f32.mrf.mxu0  ;;  %2985 = vmatpush.bf16.msrb.mxu1 %v8542_v56  ;;  %v8667_v49 = vld [vmem:[#allocation13 + $0x138] sm:$0xf0]  ;;  %v8758_v0 = vor.u32 %v11566_v50, %v8755_v52  ;;  %v11614_v52 = vld [vmem:[#allocation13 + $0x364] sm:$0xf]  ;;  %v8915_v35 = vld [vmem:[#allocation13 + $0x328] sm:$0xf0] }
 0x30d   : > { %2924 = vmatmul.bf16.vlgmr.msra.gmra.mxu0 %v13033_v63  ;;  %v8670_v60 = vor.u32 %v11544_v48, %v8667_v49  ;;  %v11574_v48 = vld [vmem:[#allocation13 + $0x224] sm:$0xf]  ;;  %v8787_v49 = vld [vmem:[#allocation13 + $0x228] sm:$0xf0]  ;;  %v8950_v62 = vor.u32 %v11614_v52, %v8947_v53  ;;  %v9003_v36 = vld [vmem:[#allocation13 + $0x3d8] sm:$0xf0] }
 0x30e   : > { %v11624_v52 = vld [vmem:[#allocation13 + $0x3b4] sm:$0xf]  ;;  %v8987_v53 = vld [vmem:[#allocation13 + $0x3b8] sm:$0xf0] }
 0x30f   : > { %2973 = vmatpush.bf16.msrb.mxu0 %v9042_v7  ;;  %v1896_v21 = vpop.f32.mrf.mxu2  ;;  %3008 = vmatpush.bf16.msra.mxu3 %v8694_v13  ;;  %v1915_v29 = vpop.f32.mrf.mxu3  ;;  %v8747_v7 = vld [vmem:[#allocation13 + $0x1d8] sm:$0xf0]  ;;  %v11592_v13 = vld [vmem:[#allocation13 + $0x2b4] sm:$0xf] }
 0x310   : > { %3000 = vmatpush.bf16.msra.mxu2 %v8590_v3  ;;  %2986 = vmatpush.bf16.msrb.mxu1 %v8534_v12  ;;  %v8659_v3 = vld [vmem:[#allocation13 + $0x128] sm:$0xf0]  ;;  %v8750_v15 = vor.u32 %v11564_v4, %v8747_v7  ;;  %v11578_v21 = vld [vmem:[#allocation13 + $0x244] sm:$0xf]  ;;  %v8939_v4 = vld [vmem:[#allocation13 + $0x358] sm:$0xf0] }
 0x311   : > { %v8662_v12 = vor.u32 %v11542_v2, %v8659_v3  ;;  %v11612_v3 = vld [vmem:[#allocation13 + $0x354] sm:$0xf] }
 0x313   : > { %2974 = vmatpush.bf16.msrb.mxu0 %v9034_v23  ;;  %3009 = vmatpush.bf16.msra.mxu3 %v8686_v28  ;;  %v8862_v23 = vor.u32 %v11592_v13, %v8859_v14  ;;  %v11570_v13 = vld [vmem:[#allocation13 + $0x204] sm:$0xf]  ;;  %v8771_v14 = vld [vmem:[#allocation13 + $0x208] sm:$0xf0] }
 0x314   : > { %3001 = vmatpush.bf16.msra.mxu2 %v8582_v20  ;;  %2987 = vmatpush.bf16.msrb.mxu1 %v8526_v27  ;;  %v8739_v20 = vld [vmem:[#allocation13 + $0x1c8] sm:$0xf0] }
 0x315   : > { %v8742_v28 = vor.u32 %v11562_v19, %v8739_v20  ;;  %v11648_v19 = vld [vmem:[#allocation13 + $0x474] sm:$0xf] }
 0x317   : > { %3002 = vmatmul.bf16.vlgmr.msra.gmra.mxu2 %v13022_v11  ;;  %2975 = vmatpush.bf16.msrb.mxu0 %v9026_v41  ;;  %v1970_v56 = vpop.f32.mrf.mxu2  ;;  %v1989_v11 = vpop.f32.mrf.mxu3  ;;  %v11588_v41 = vld [vmem:[#allocation13 + $0x294] sm:$0xf] }
 0x318   : > { %3046 = vmatpush.bf16.msrb.mxu2 %v8894_v22  ;;  %2988 = vmatpush.bf16.msrb.mxu1 %v8518_v42  ;;  %v13039_v59 = vpack.c.bf16 %v1970_v56, %v1970_v56  ;;  %v13042_v5 = vpack.c.bf16 %v1989_v11, %v1989_v11  ;;  %v8803_v22 = vld [vmem:[#allocation13 + $0x248] sm:$0xf0]  ;;  %v8843_v42 = vld [vmem:[#allocation13 + $0x298] sm:$0xf0] }
 0x319   : > { %3010 = vmatpush.bf16.msra.mxu3 %v8678_v43  ;;  %v8806_v29 = vor.u32 %v11578_v21, %v8803_v22  ;;  %v8734_v43 = vor.u32 %v11560_v32, %v8731_v33  ;;  %v8846_v50 = vor.u32 %v11588_v41, %v8843_v42  ;;  %v8835_v56 = vld [vmem:[#allocation13 + $0x288] sm:$0xf0]  ;;  %v8715_v11 = vld [vmem:[#allocation13 + $0x198] sm:$0xf0]  ;;  %v8774_v21 = vor.u32 %v11570_v13, %v8771_v14  ;;  %v11606_v32 = vld [vmem:[#allocation13 + $0x324] sm:$0xf] }
 0x31a   : > { %2963 = vmatmul.bf16.vlgmr.msrb.gmra.mxu3 %v13039_v59  ;;  %v8838_v2 = vor.u32 %v11586_v54, %v8835_v56  ;;  %v8718_v7 = vor.u32 %v11556_v61, %v8715_v11  ;;  %v11604_v41 = vld [vmem:[#allocation13 + $0x314] sm:$0xf]  ;;  %v9051_v56 = vld [vmem:[#allocation13 + $0x438] sm:$0xf0]  ;;  %v8979_v11 = vld [vmem:[#allocation13 + $0x3a8] sm:$0xf0] }
 0x31b   : > { %3020 = vmatpush.bf16.msra.mxu0 %v8766_v46  ;;  %2989 = vmatmul.bf16.vlgmr.msrb.gmra.mxu1 %v13020_v6  ;;  %v8958_v46 = vor.u32 %v11616_v38, %v8955_v39  ;;  %v9067_v38 = vld [vmem:[#allocation13 + $0x458] sm:$0xf0]  ;;  %v8918_v39 = vor.u32 %v11606_v32, %v8915_v35  ;;  %v11640_v54 = vld [vmem:[#allocation13 + $0x434] sm:$0xf]  ;;  %v11618_v13 = vld [vmem:[#allocation13 + $0x384] sm:$0xf] }
 0x31c   : > { %3047 = vmatpush.bf16.msrb.mxu2 %v8886_v40  ;;  %3033 = vmatpush.bf16.msra.mxu1 %v8830_v47  ;;  %v8646_v40 = vor.u32 %v11538_v30, %v8643_v31  ;;  %v8723_v47 = vld [vmem:[#allocation13 + $0x1a8] sm:$0xf0]  ;;  %v9054_v61 = vor.u32 %v11640_v54, %v9051_v56 }
 0x31d   : > { %3011 = vmatpush.bf16.msra.mxu3 %v8670_v60  ;;  %2976 = vmatmul.bf16.vlgmr.msrb.gmra.mxu0 %v13042_v5  ;;  %v8790_v60 = vor.u32 %v11574_v48, %v8787_v49  ;;  %v11602_v49 = vld [vmem:[#allocation13 + $0x304] sm:$0xf]  ;;  %v8963_v14 = vld [vmem:[#allocation13 + $0x388] sm:$0xf0] }
 0x31f   : > { %3021 = vmatpush.bf16.msra.mxu0 %v8758_v0  ;;  %v1972_v6 = vpop.f32.mrf.mxu2  ;;  %v1991_v27 = vpop.f32.mrf.mxu3  ;;  %v11572_v0 = vld [vmem:[#allocation13 + $0x214] sm:$0xf] }
 0x320   : > { %3048 = vmatpush.bf16.msrb.mxu2 %v8878_v58  ;;  %3034 = vmatpush.bf16.msra.mxu1 %v8822_v1  ;;  %v8726_v58 = vor.u32 %v11558_v45, %v8723_v47  ;;  %v8779_v1 = vld [vmem:[#allocation13 + $0x218] sm:$0xf0]  ;;  %v11608_v6 = vld [vmem:[#allocation13 + $0x334] sm:$0xf]  ;;  %v9011_v27 = vld [vmem:[#allocation13 + $0x3e8] sm:$0xf0] }
 0x321   : > { %3012 = vmatpush.bf16.msra.mxu3 %v8662_v12  ;;  %v8782_v8 = vor.u32 %v11572_v0, %v8779_v1  ;;  %v8942_v12 = vor.u32 %v11612_v3, %v8939_v4  ;;  %v8926_v30 = vor.u32 %v11608_v6, %v8923_v25  ;;  %v9014_v31 = vor.u32 %v11630_v26, %v9011_v27  ;;  %v8995_v45 = vld [vmem:[#allocation13 + $0x3c8] sm:$0xf0]  ;;  %v11638_v0 = vld [vmem:[#allocation13 + $0x424] sm:$0xf]  ;;  %v11620_v4 = vld [vmem:[#allocation13 + $0x394] sm:$0xf] }
 0x322   : > { %v9059_v47 = vld [vmem:[#allocation13 + $0x448] sm:$0xf0] }
 0x323   : > { %3022 = vmatpush.bf16.msra.mxu0 %v8750_v15  ;;  %v11610_v15 = vld [vmem:[#allocation13 + $0x344] sm:$0xf]  ;;  %v9043_v1 = vld [vmem:[#allocation13 + $0x428] sm:$0xf0] }
 0x324   : > { %3049 = vmatpush.bf16.msrb.mxu2 %v8870_v10  ;;  %3035 = vmatpush.bf16.msra.mxu1 %v8814_v16  ;;  %v8707_v10 = vld [vmem:[#allocation13 + $0x188] sm:$0xf0]  ;;  %v9046_v3 = vor.u32 %v11638_v0, %v9043_v1 }
 0x325   : > { %3013 = vmatpush.bf16.msra.mxu3 %v8654_v24  ;;  %v8931_v16 = vld [vmem:[#allocation13 + $0x348] sm:$0xf0]  ;;  %v8710_v20 = vor.u32 %v11554_v9, %v8707_v10  ;;  %v9035_v9 = vld [vmem:[#allocation13 + $0x418] sm:$0xf0] }
 0x326   : > { %v8934_v22 = vor.u32 %v11610_v15, %v8931_v16  ;;  %v11634_v15 = vld [vmem:[#allocation13 + $0x404] sm:$0xf]  ;;  %v9027_v16 = vld [vmem:[#allocation13 + $0x408] sm:$0xf0] }
 0x327   : > { %3023 = vmatpush.bf16.msra.mxu0 %v8742_v28  ;;  %v11646_v28 = vld [vmem:[#allocation13 + $0x464] sm:$0xf] }
 0x328   : > { %3050 = vmatpush.bf16.msrb.mxu2 %v8862_v23  ;;  %3036 = vmatpush.bf16.msra.mxu1 %v8806_v29  ;;  %v9022_v23 = vor.u32 %v11632_v17, %v9019_v18  ;;  %v9075_v29 = vld [vmem:[#allocation13 + $0x468] sm:$0xf0]  ;;  %v8966_v17 = vor.u32 %v11618_v13, %v8963_v14  ;;  %v9030_v18 = vor.u32 %v11634_v15, %v9027_v16 }
 0x329   : > { %3014 = vmatpush.bf16.msra.mxu3 %v8646_v40  ;;  %v9078_v33 = vor.u32 %v11646_v28, %v9075_v29 }
 0x32b   : > { %3024 = vmatpush.bf16.msra.mxu0 %v8734_v43  ;;  %v8907_v43 = vld [vmem:[#allocation13 + $0x318] sm:$0xf0] }
 0x32c   : > { %3051 = vmatpush.bf16.msrb.mxu2 %v8854_v37  ;;  %3037 = vmatpush.bf16.msra.mxu1 %v8798_v44  ;;  %v11644_v37 = vld [vmem:[#allocation13 + $0x454] sm:$0xf]  ;;  %v11626_v44 = vld [vmem:[#allocation13 + $0x3c4] sm:$0xf]  ;;  %v8910_v48 = vor.u32 %v11604_v41, %v8907_v43 }
 0x32d   : > { %3059 = vmatpush.bf16.msrb.mxu3 %v8958_v46  ;;  %v9070_v42 = vor.u32 %v11644_v37, %v9067_v38  ;;  %v11642_v46 = vld [vmem:[#allocation13 + $0x444] sm:$0xf] }
 0x32e   : > { %3015 = vmatmul.bf16.vlgmr.msra.gmra.mxu3 %v13017_v57  ;;  %v9083_v57 = vld [vmem:[#allocation13 + $0x478] sm:$0xf0] }
 0x32f   : > { %3025 = vmatpush.bf16.msra.mxu0 %v8726_v58  ;;  %v9086_v24 = vor.u32 %v11648_v19, %v9083_v57 }
 0x330   : > { %3052 = vmatpush.bf16.msrb.mxu2 %v8846_v50  ;;  %3038 = vmatpush.bf16.msra.mxu1 %v8790_v60  ;;  %v8899_v50 = vld [vmem:[#allocation13 + $0x308] sm:$0xf0]  ;;  %v8990_v60 = vor.u32 %v11624_v52, %v8987_v53 }
 0x331   : > { %3060 = vmatpush.bf16.msrb.mxu3 %v8950_v62  ;;  %v8902_v58 = vor.u32 %v11602_v49, %v8899_v50  ;;  %v11622_v62 = vld [vmem:[#allocation13 + $0x3a4] sm:$0xf]  ;;  %v3178_v50 = vld [vmem:[#allocation16 + $0x8] sm:$0xf] }
 0x333   : > { %3026 = vmatpush.bf16.msra.mxu0 %v8718_v7  ;;  %v8971_v7 = vld [vmem:[#allocation13 + $0x398] sm:$0xf0] }
 0x334   : > { %3053 = vmatpush.bf16.msrb.mxu2 %v8838_v2  ;;  %3039 = vmatpush.bf16.msra.mxu1 %v8782_v8  ;;  %v8982_v2 = vor.u32 %v11622_v62, %v8979_v11  ;;  %v11636_v8 = vld [vmem:[#allocation13 + $0x414] sm:$0xf]  ;;  %v8974_v10 = vor.u32 %v11620_v4, %v8971_v7 }
 0x335   : > { %3061 = vmatpush.bf16.msrb.mxu3 %v8942_v12  ;;  %v9038_v12 = vor.u32 %v11636_v8, %v9035_v9  ;;  %v3210_v8 = vld [vmem:[#allocation16 + $0xc] sm:$0xf] }
 0x337   : > { %3054 = vmatmul.bf16.vlgmr.msrb.gmra.mxu2 %v13029_v51  ;;  %3027 = vmatpush.bf16.msra.mxu0 %v8710_v20  ;;  %v11628_v51 = vld [vmem:[#allocation13 + $0x3d4] sm:$0xf]  ;;  %v13053_v20 = vld [vmem:[#allocation14] sm:$0x3] }
 0x338   : > { %3040 = vmatpush.bf16.msra.mxu1 %v8774_v21  ;;  %v9006_v40 = vor.u32 %v11628_v51, %v9003_v36  ;;  %v2140_v6 = vperm.slane %v13053_v20, 0  ;;  %v2141_v62 = vperm.slane %v13053_v20, 1 }
 0x339   : > { %3062 = vmatpush.bf16.msrb.mxu3 %v8934_v22 }
 0x33a   : > { %3028 = vmatmul.bf16.vlgmr.msra.gmra.mxu0 %v13031_v55  ;;  %v8998_v55 = vor.u32 %v11626_v44, %v8995_v45 }
 0x33b   : > { %3072 = vmatpush.bf16.msrb.mxu0 %v9022_v23  ;;  %3041 = vmatmul.bf16.vlgmr.msra.gmra.mxu1 %v13033_v63  ;;  %v9062_v63 = vor.u32 %v11642_v46, %v9059_v47 }
 0x33c   : > { %3085 = vmatpush.bf16.msrb.mxu1 %v9086_v24 }
 0x33d   : > { %3063 = vmatpush.bf16.msrb.mxu3 %v8926_v30 }
 0x33f   : > { %3073 = vmatpush.bf16.msrb.mxu0 %v9014_v31 }
 0x340   : > { %3086 = vmatpush.bf16.msrb.mxu1 %v9078_v33 }
 0x341   : > { %3064 = vmatpush.bf16.msrb.mxu3 %v8918_v39 }
 0x343   : > { %3074 = vmatpush.bf16.msrb.mxu0 %v9006_v40 }
 0x344   : > { %3087 = vmatpush.bf16.msrb.mxu1 %v9070_v42 }
 0x345   : > { %3065 = vmatpush.bf16.msrb.mxu3 %v8910_v48 }
 0x347   : > { %3075 = vmatpush.bf16.msrb.mxu0 %v8998_v55 }
 0x348   : > { %3088 = vmatpush.bf16.msrb.mxu1 %v9062_v63  ;;  %v3106_v63 = vld [vmem:[#allocation16] sm:$0xf] }
 0x349   : > { %3066 = vmatpush.bf16.msrb.mxu3 %v8902_v58 }
 0x34b   : > { %3076 = vmatpush.bf16.msrb.mxu0 %v8990_v60  ;;  %v3146_v60 = vld [vmem:[#allocation16 + $0x4] sm:$0xf] }
 0x34c   : > { %3089 = vmatpush.bf16.msrb.mxu1 %v9054_v61  ;;  %3067 = vmatmul.bf16.vlgmr.msrb.gmra.mxu3 %v13026_v34  ;;  %v3242_v61 = vld [vmem:[#allocation16 + $0x10] sm:$0xf] }
 0x34f   : > { %3077 = vmatpush.bf16.msrb.mxu0 %v8982_v2 }
 0x350   : > { %3090 = vmatpush.bf16.msrb.mxu1 %v9046_v3 }
 0x353   : > { %3078 = vmatpush.bf16.msrb.mxu0 %v8974_v10 }
 0x354   : > { %3091 = vmatpush.bf16.msrb.mxu1 %v9038_v12 }
 0x357   : > { %3079 = vmatpush.bf16.msrb.mxu0 %v8966_v17 }
 0x358   : > { %3092 = vmatpush.bf16.msrb.mxu1 %v9030_v18 }
 0x35a   : > { %3080 = vmatmul.bf16.vlgmr.msrb.gmra.mxu0 %v13039_v59 }
 0x35b   : > { %3093 = vmatmul.bf16.vlgmr.msrb.gmra.mxu1 %v13042_v5 }
 0x377   : > { %v2873_v19 = vpop.f32.mrf.mxu0  ;;  %v2886_v34 = vpop.f32.mrf.mxu1 }
 0x378   : > { %v2874_v24 = vadd.f32 %v2873_v19, %v2140_v6  ;;  %v3306_v6 = vld [vmem:[#allocation16 + $0x18] sm:$0xf] }
 0x37a   : > { %v2899_v57 = vpop.f32.mrf.mxu2  ;;  %v2887_v27 = vadd.f32 %v2886_v34, %v2874_v24  ;;  %v13072_v24 = vld [vmem:[#allocation16 + $0x1c] sm:$0xf] }
 0x37c   : > { %v2900_v30 = vadd.f32 %v2899_v57, %v2887_v27 }
 0x37f   : > { %v2875_v21 = vpop.f32.mrf.mxu0  ;;  %v2888_v22 = vpop.f32.mrf.mxu1 }
 0x382   : > { %v2901_v23 = vpop.f32.mrf.mxu2 }
 0x383   : > { %v13066_v23 = vld [vmem:[#allocation16 + $0x14] sm:$0xf] }
 0x387   : > { %v2938_v25 = vpop.f32.mrf.mxu1 }
 0x38a   : > { %v2951_v26 = vpop.f32.mrf.mxu2  ;;  %v2925_v28 = vpop.f32.mrf.mxu0 }
 0x38d   : > { %v2912_v29 = vpop.f32.mrf.mxu3 }
 0x38e   : > { %v2913_v59 = vadd.f32 %v2912_v29, %v2900_v30  ;;  %v11676_v29 = vld [vmem:[#allocation17 + $0xcc] sm:$0xf0] }
 0x38f   : > { %v2940_v31 = vpop.f32.mrf.mxu1 }
 0x390   : > { %v2926_v33 = vadd.f32 %v2925_v28, %v2913_v59  ;;  %v9203_v28 = vld [vmem:[#allocation17 + $0xc0] sm:$0xf]  ;;  %v11672_v31 = vld [vmem:[#allocation17 + $0xac] sm:$0xf0] }
 0x391   : > { %v9204_v30 = vor.u32 %v11676_v29, %v9203_v28  ;;  %v9187_v59 = vld [vmem:[#allocation17 + $0xa0] sm:$0xf]  ;;  %v11652_v28 = vld [vmem:[#allocation17 + $0xc] sm:$0xf0] }
 0x392   : > { %v2953_v5 = vpop.f32.mrf.mxu2  ;;  %v2927_v32 = vpop.f32.mrf.mxu0  ;;  %v2939_v37 = vadd.f32 %v2938_v25, %v2926_v33  ;;  %v9219_v25 = vld [vmem:[#allocation17 + $0xe0] sm:$0xf] }
 0x393   : > { %v3370_v5 = vld [vmem:[#allocation16 + $0x20] sm:$0xf]  ;;  %v9188_v32 = vor.u32 %v11672_v31, %v9187_v59  ;;  %v9475_v33 = vld [vmem:[#allocation17 + $0x2e0] sm:$0xf] }
 0x394   : > { %v2952_v39 = vadd.f32 %v2951_v26, %v2939_v37  ;;  %v11680_v26 = vld [vmem:[#allocation17 + $0xec] sm:$0xf0]  ;;  %v9523_v29 = vld [vmem:[#allocation17 + $0x340] sm:$0xf] }
 0x395   : > { %v2914_v35 = vpop.f32.mrf.mxu3  ;;  %v9220_v27 = vor.u32 %v11680_v26, %v9219_v25  ;;  %v11668_v37 = vld [vmem:[#allocation17 + $0x8c] sm:$0xf0]  ;;  %v9395_v26 = vld [vmem:[#allocation17 + $0x240] sm:$0xf] }
 0x396   : > { %v11744_v35 = vld [vmem:[#allocation17 + $0x2ec] sm:$0xf0]  ;;  %v9731_v31 = vld [vmem:[#allocation17 + $0x4e0] sm:$0xf] }
 0x398   : > { %v2990_v51 = vpop.f32.mrf.mxu1 }
 0x399   : > { %v2991_v2 = vadd.f32 %v2990_v51, %v2141_v62  ;;  %v9603_v51 = vld [vmem:[#allocation17 + $0x3e0] sm:$0xf] }
 0x39a   : > { %v3003_v36 = vpop.f32.mrf.mxu2  ;;  %v2977_v38 = vpop.f32.mrf.mxu0 }
 0x39b   : > { %v3004_v3 = vadd.f32 %v3003_v36, %v2991_v2  ;;  %v9171_v36 = vld [vmem:[#allocation17 + $0x80] sm:$0xf]  ;;  %v11732_v2 = vld [vmem:[#allocation17 + $0x28c] sm:$0xf0] }
 0x39d   : > { %v2964_v40 = vpop.f32.mrf.mxu3 }
 0x39e   : > { %v2965_v41 = vadd.f32 %v2964_v40, %v2952_v39  ;;  %v11776_v39 = vld [vmem:[#allocation17 + $0x3ec] sm:$0xf0]  ;;  %v9347_v40 = vld [vmem:[#allocation17 + $0x1e0] sm:$0xf] }
 0x3a0   : > { %v2978_v42 = vadd.f32 %v2977_v38, %v2965_v41  ;;  %v2992_v43 = vpop.f32.mrf.mxu1  ;;  %v9476_v38 = vor.u32 %v11744_v35, %v9475_v33  ;;  %v11712_v41 = vld [vmem:[#allocation17 + $0x1ec] sm:$0xf0] }
 0x3a1   : > { %v9459_v43 = vld [vmem:[#allocation17 + $0x2c0] sm:$0xf]  ;;  %v11696_v33 = vld [vmem:[#allocation17 + $0x16c] sm:$0xf0] }
 0x3a2   : > { %v3005_v44 = vpop.f32.mrf.mxu2  ;;  %vm3098_vm12 = vcmp.ge.f32.partialorder %v2978_v42, 0.0  ;;  %v3100_v45 = vmul.f32 0.2, %v2978_v42  ;;  %v2979_v46 = vpop.f32.mrf.mxu0 }
 0x3a3   : > { %v11740_v44 = vld [vmem:[#allocation17 + $0x2cc] sm:$0xf0] }
 0x3a4   : > { %v3102_v47 = vsel %vm3098_vm12, %v2978_v42, %v3100_v45  ;;  %v9604_v42 = vor.u32 %v11776_v39, %v9603_v51  ;;  %v9587_v45 = vld [vmem:[#allocation17 + $0x3c0] sm:$0xf]  ;;  %v11772_v46 = vld [vmem:[#allocation17 + $0x3cc] sm:$0xf0] }
 0x3a5   : > { %v3104_v48 = vpack.c.bf16 %v3102_v47, %v3102_v47  ;;  %v2966_v55 = vpop.f32.mrf.mxu3  ;;  %v9172_v47 = vor.u32 %v11668_v37, %v9171_v36  ;;  %v9379_v37 = vld [vmem:[#allocation17 + $0x220] sm:$0xf] }
 0x3a6   : > { %v9460_v55 = vor.u32 %v11740_v44, %v9459_v43  ;;  %v9715_v43 = vld [vmem:[#allocation17 + $0x4c0] sm:$0xf]  ;;  %v11804_v44 = vld [vmem:[#allocation17 + $0x4cc] sm:$0xf0] }
 0x3a7   : > { %v3113_v49 = vsel %vm3111_vm13, %v3104_v48, 0  ;;  %v9155_v48 = vld [vmem:[#allocation17 + $0x60] sm:$0xf] }
 0x3a8   : > { %3125 = vmatpush.bf16.msra.mxu2 %v3113_v49  ;;  %3189 = vmatpush.bf16.msra.mxu0 %v3113_v49 }
 0x3ab   : > { %9087 = vmatmul.msk.bf16.vlgmr.msra.gmra.mxu2 %vm3107_vm14, %v3106_v63  ;;  %9091 = vmatmul.msk.bf16.vlgmr.msra.gmra.mxu0 %vm3107_vm14, %v3178_v50 }
 0x3ac   : > { %3157 = vmatpush.bf16.msrb.mxu2 %v3113_v49  ;;  %3253 = vmatpush.bf16.msrb.mxu0 %v3113_v49 }
 0x3b0   : > { %3221 = vmatpush.bf16.msra.mxu2 %v3113_v49  ;;  %3317 = vmatpush.bf16.msra.mxu0 %v3113_v49 }
 0x3b1   : > { %v3016_v52 = vpop.f32.mrf.mxu3 }
 0x3b2   : > { %v3017_v4 = vadd.f32 %v3016_v52, %v3004_v3  ;;  %v11736_v52 = vld [vmem:[#allocation17 + $0x2ac] sm:$0xf0] }
 0x3b3   : > { %v11660_v3 = vld [vmem:[#allocation17 + $0x4c] sm:$0xf0] }
 0x3b7   : > { %v3029_v53 = vpop.f32.mrf.mxu0 }
 0x3b8   : > { %v3042_v54 = vpop.f32.mrf.mxu1  ;;  %v3030_v7 = vadd.f32 %v3029_v53, %v3017_v4  ;;  %v9348_v53 = vor.u32 %v11712_v41, %v9347_v40  ;;  %v9555_v4 = vld [vmem:[#allocation17 + $0x380] sm:$0xf]  ;;  %v11752_v41 = vld [vmem:[#allocation17 + $0x32c] sm:$0xf0] }
 0x3b9   : > { %v3018_v58 = vpop.f32.mrf.mxu3  ;;  %v9507_v40 = vld [vmem:[#allocation17 + $0x320] sm:$0xf] }
 0x3ba   : > { %v3055_v56 = vpop.f32.mrf.mxu2  ;;  %v3043_v9 = vadd.f32 %v3042_v54, %v3030_v7  ;;  %v9571_v54 = vld [vmem:[#allocation17 + $0x3a0] sm:$0xf]  ;;  %v11764_v7 = vld [vmem:[#allocation17 + $0x38c] sm:$0xf0] }
 0x3bb   : > { %9089 = vmatmul.msk.bf16.vlgmr.msrb.gmra.mxu2 %vm3107_vm14, %v3146_v60  ;;  %9095 = vmatmul.msk.bf16.vlgmr.msrb.gmra.mxu0 %vm3107_vm14, %v3242_v61  ;;  %v9331_v58 = vld [vmem:[#allocation17 + $0x1c0] sm:$0xf] }
 0x3bc   : > { %3285 = vmatpush.bf16.msrb.mxu2 %v3113_v49  ;;  %3381 = vmatpush.bf16.msrb.mxu0 %v3113_v49  ;;  %v3056_v12 = vadd.f32 %v3055_v56, %v3043_v9  ;;  %v11768_v56 = vld [vmem:[#allocation17 + $0x3ac] sm:$0xf0]  ;;  %v9315_v9 = vld [vmem:[#allocation17 + $0x1a0] sm:$0xf] }
 0x3bf   : > { %v3031_v11 = vpop.f32.mrf.mxu0 }
 0x3c0   : > { %v3044_v0 = vpop.f32.mrf.mxu1  ;;  %v9139_v11 = vld [vmem:[#allocation17 + $0x40] sm:$0xf] }
 0x3c1   : > { %v9572_v0 = vor.u32 %v11768_v56, %v9571_v54  ;;  %v9987_v54 = vld [vmem:[#allocation17 + $0x6e0] sm:$0xf]  ;;  %v11872_v56 = vld [vmem:[#allocation17 + $0x6ec] sm:$0xf0] }
 0x3c2   : > { %v3057_v1 = vpop.f32.mrf.mxu2 }
 0x3c3   : > { %v9427_v1 = vld [vmem:[#allocation17 + $0x280] sm:$0xf] }
 0x3cb   : > { %9093 = vmatmul.msk.bf16.vlgmr.msra.gmra.mxu2 %vm3107_vm14, %v3210_v8  ;;  %9099 = vmatmul.msk.bf16.vlgmr.msra.gmra.mxu0 %vm3107_vm14, %v3306_v6 }
 0x3cc   : > { %3349 = vmatpush.bf16.msra.mxu2 %v3113_v49  ;;  %6956 = vmatpush.bf16.msra.mxu0 %v9476_v38  ;;  %v9588_v49 = vor.u32 %v11772_v46, %v9587_v45  ;;  %v11720_v38 = vld [vmem:[#allocation17 + $0x22c] sm:$0xf0]  ;;  %v9267_v45 = vld [vmem:[#allocation17 + $0x140] sm:$0xf] }
 0x3cd   : > { %v11692_v46 = vld [vmem:[#allocation17 + $0x14c] sm:$0xf0] }
 0x3cf   : > { %v3068_v10 = vpop.f32.mrf.mxu3 }
 0x3d0   : > { %v3069_v13 = vadd.f32 %v3068_v10, %v3056_v12  ;;  %6957 = vmatpush.bf16.msra.mxu0 %v9460_v55  ;;  %v11704_v10 = vld [vmem:[#allocation17 + $0x1ac] sm:$0xf0]  ;;  %v9428_v12 = vor.u32 %v11732_v2, %v9427_v1  ;;  %v9508_v55 = vor.u32 %v11752_v41, %v9507_v40  ;;  %v9779_v40 = vld [vmem:[#allocation17 + $0x540] sm:$0xf] }
 0x3d1   : > { %v11820_v41 = vld [vmem:[#allocation17 + $0x54c] sm:$0xf0] }
 0x3d7   : > { %v3081_v14 = vpop.f32.mrf.mxu0  ;;  %v3070_v17 = vpop.f32.mrf.mxu3 }
 0x3d8   : > { %v3082_v15 = vadd.f32 %v3081_v14, %v3069_v13  ;;  %v3094_v16 = vpop.f32.mrf.mxu1  ;;  %v9140_v13 = vor.u32 %v11660_v3, %v9139_v11  ;;  %v9123_v14 = vld [vmem:[#allocation17 + $0x20] sm:$0xf]  ;;  %v11728_v17 = vld [vmem:[#allocation17 + $0x26c] sm:$0xf0]  ;;  %v9988_v3 = vor.u32 %v11872_v56, %v9987_v54 }
 0x3d9   : > { %v9251_v11 = vld [vmem:[#allocation17 + $0x120] sm:$0xf]  ;;  %v11780_v56 = vld [vmem:[#allocation17 + $0x40c] sm:$0xf0] }
 0x3da   : > { %v3095_v18 = vadd.f32 %v3094_v16, %v3082_v15  ;;  %v9556_v15 = vor.u32 %v11764_v7, %v9555_v4  ;;  %v9411_v16 = vld [vmem:[#allocation17 + $0x260] sm:$0xf] }
 0x3db   : > { %9097 = vmatmul.msk.bf16.vlgmr.msrb.gmra.mxu2 %vm3107_vm14, %v13066_v23  ;;  %9103 = vmatmul.msk.bf16.vlgmr.msrb.gmra.mxu0 %vm3107_vm14, %v3370_v5  ;;  %v9619_v54 = vld [vmem:[#allocation17 + $0x400] sm:$0xf] }
 0x3dc   : > { %vm3099_vm15 = vcmp.ge.f32.partialorder %v3095_v18, 0.0  ;;  %v3101_v19 = vmul.f32 0.2, %v3095_v18  ;;  %6930 = vmatpush.bf16.msrb.mxu2 %v9220_v27  ;;  %v11724_v27 = vld [vmem:[#allocation17 + $0x24c] sm:$0xf0] }
 0x3dd   : > { %v9396_v35 = vor.u32 %v11724_v27, %v9395_v26  ;;  %v9651_v27 = vld [vmem:[#allocation17 + $0x440] sm:$0xf] }
 0x3de   : > { %v3103_v34 = vsel %vm3099_vm15, %v3095_v18, %v3101_v19  ;;  %v11656_v18 = vld [vmem:[#allocation17 + $0x2c] sm:$0xf0]  ;;  %v9539_v19 = vld [vmem:[#allocation17 + $0x360] sm:$0xf] }
 0x3df   : > { %v3105_v57 = vpack.c.bf16 %v3103_v34, %v3103_v34  ;;  %v3083_v20 = vpop.f32.mrf.mxu0  ;;  %v11760_v34 = vld [vmem:[#allocation17 + $0x36c] sm:$0xf0] }
 0x3e0   : > { %v3096_v21 = vpop.f32.mrf.mxu1  ;;  %6931 = vmatpush.bf16.msrb.mxu2 %v9204_v30  ;;  %v9299_v20 = vld [vmem:[#allocation17 + $0x180] sm:$0xf]  ;;  %v9540_v25 = vor.u32 %v11760_v34, %v9539_v19  ;;  %v11756_v30 = vld [vmem:[#allocation17 + $0x34c] sm:$0xf0] }
 0x3e1   : > { %v3116_v22 = vsel %vm3111_vm13, %v3105_v57, 0  ;;  %v9316_v57 = vor.u32 %v11704_v10, %v9315_v9  ;;  %v11700_v21 = vld [vmem:[#allocation17 + $0x18c] sm:$0xf0]  ;;  %v9524_v36 = vor.u32 %v11756_v30, %v9523_v29 }
 0x3e2   : > { %3138 = vmatpush.bf16.msra.mxu3 %v3116_v22  ;;  %3202 = vmatpush.bf16.msra.mxu1 %v3116_v22  ;;  %v9300_v59 = vor.u32 %v11700_v21, %v9299_v20  ;;  %v11868_v9 = vld [vmem:[#allocation17 + $0x6cc] sm:$0xf0]  ;;  %v9667_v21 = vld [vmem:[#allocation17 + $0x460] sm:$0xf] }
 0x3e4   : > { %6932 = vmatpush.bf16.msrb.mxu2 %v9188_v32  ;;  %v9283_v32 = vld [vmem:[#allocation17 + $0x160] sm:$0xf] }
 0x3e5   : > { %9088 = vmatmul.msk.bf16.vlgmr.msra.gmra.mxu3 %vm3107_vm14, %v3106_v63  ;;  %9092 = vmatmul.msk.bf16.vlgmr.msra.gmra.mxu1 %vm3107_vm14, %v3178_v50  ;;  %v11664_v63 = vld [vmem:[#allocation17 + $0x6c] sm:$0xf0]  ;;  %v9443_v50 = vld [vmem:[#allocation17 + $0x2a0] sm:$0xf] }
 0x3e6   : > { %3170 = vmatpush.bf16.msrb.mxu3 %v3116_v22  ;;  %3266 = vmatpush.bf16.msrb.mxu1 %v3116_v22  ;;  %v9156_v62 = vor.u32 %v11664_v63, %v9155_v48  ;;  %v9699_v48 = vld [vmem:[#allocation17 + $0x4a0] sm:$0xf]  ;;  %v11716_v63 = vld [vmem:[#allocation17 + $0x20c] sm:$0xf0] }
 0x3e8   : > { %6933 = vmatpush.bf16.msrb.mxu2 %v9172_v47  ;;  %v9380_v47 = vor.u32 %v11720_v38, %v9379_v37  ;;  %v9795_v37 = vld [vmem:[#allocation17 + $0x560] sm:$0xf]  ;;  %v11824_v38 = vld [vmem:[#allocation17 + $0x56c] sm:$0xf0] }
 0x3ea   : > { %3234 = vmatpush.bf16.msra.mxu3 %v3116_v22  ;;  %3330 = vmatpush.bf16.msra.mxu1 %v3116_v22 }
 0x3eb   : > { %9101 = vmatmul.msk.bf16.vlgmr.msra.gmra.mxu2 %vm3107_vm14, %v13072_v24 }
 0x3ec   : > { %6934 = vmatpush.bf16.msrb.mxu2 %v9156_v62  ;;  %v11904_v62 = vld [vmem:[#allocation17 + $0x7ec] sm:$0xf0] }
 0x3f0   : > { %6935 = vmatpush.bf16.msrb.mxu2 %v9140_v13  ;;  %v10099_v13 = vld [vmem:[#allocation17 + $0x7c0] sm:$0xf] }
 0x3f5   : > { %9090 = vmatmul.msk.bf16.vlgmr.msrb.gmra.mxu3 %vm3107_vm14, %v3146_v60  ;;  %9096 = vmatmul.msk.bf16.vlgmr.msrb.gmra.mxu1 %vm3107_vm14, %v3242_v61  ;;  %v11708_v60 = vld [vmem:[#allocation17 + $0x1cc] sm:$0xf0]  ;;  %v9444_v61 = vor.u32 %v11736_v52, %v9443_v50  ;;  %v9491_v50 = vld [vmem:[#allocation17 + $0x300] sm:$0xf]  ;;  %v9716_v52 = vor.u32 %v11804_v44, %v9715_v43 }
 0x3f6   : > { %3298 = vmatpush.bf16.msrb.mxu3 %v3116_v22  ;;  %3394 = vmatpush.bf16.msrb.mxu1 %v3116_v22  ;;  %v9635_v43 = vld [vmem:[#allocation17 + $0x420] sm:$0xf]  ;;  %v11784_v44 = vld [vmem:[#allocation17 + $0x42c] sm:$0xf0] }
 0x3f7   : > { %6958 = vmatpush.bf16.msra.mxu0 %v9444_v61  ;;  %v10115_v61 = vld [vmem:[#allocation17 + $0x7e0] sm:$0xf] }
 0x3f8   : > { %v10116_v7 = vor.u32 %v11904_v62, %v10115_v61  ;;  %v11812_v61 = vld [vmem:[#allocation17 + $0x50c] sm:$0xf0]  ;;  %v9939_v62 = vld [vmem:[#allocation17 + $0x680] sm:$0xf] }
 0x3fb   : > { %6959 = vmatpush.bf16.msra.mxu0 %v9428_v12  ;;  %v11796_v12 = vld [vmem:[#allocation17 + $0x48c] sm:$0xf0] }
 0x405   : > { %9094 = vmatmul.msk.bf16.vlgmr.msra.gmra.mxu3 %vm3107_vm14, %v3210_v8  ;;  %9100 = vmatmul.msk.bf16.vlgmr.msra.gmra.mxu1 %vm3107_vm14, %v3306_v6  ;;  %v9332_v8 = vor.u32 %v11708_v60, %v9331_v58  ;;  %v9107_v6 = vld [vmem:[#allocation17] sm:$0xf]  ;;  %v9268_v58 = vor.u32 %v11692_v46, %v9267_v45  ;;  %v11800_v60 = vld [vmem:[#allocation17 + $0x4ac] sm:$0xf0]  ;;  %v9636_v46 = vor.u32 %v11784_v44, %v9635_v43 }
 0x406   : > { %3362 = vmatpush.bf16.msra.mxu3 %v3116_v22  ;;  %6969 = vmatpush.bf16.msra.mxu1 %v9604_v42  ;;  %v9412_v22 = vor.u32 %v11728_v17, %v9411_v16  ;;  %v9108_v51 = vor.u32 %v11652_v28, %v9107_v6  ;;  %v9284_v42 = vor.u32 %v11696_v33, %v9283_v32  ;;  %v11684_v16 = vld [vmem:[#allocation17 + $0x10c] sm:$0xf0]  ;;  %v9859_v17 = vld [vmem:[#allocation17 + $0x5e0] sm:$0xf] }
 0x407   : > { %v9700_v4 = vor.u32 %v11800_v60, %v9699_v48  ;;  %v9843_v6 = vld [vmem:[#allocation17 + $0x5c0] sm:$0xf]  ;;  %v11788_v28 = vld [vmem:[#allocation17 + $0x44c] sm:$0xf0]  ;;  %v9620_v60 = vor.u32 %v11780_v56, %v9619_v54 }
 0x408   : > { %6960 = vmatpush.bf16.msra.mxu0 %v9412_v22  ;;  %v11792_v22 = vld [vmem:[#allocation17 + $0x46c] sm:$0xf0]  ;;  %v9811_v33 = vld [vmem:[#allocation17 + $0x580] sm:$0xf] }
 0x409   : > { %v9668_v26 = vor.u32 %v11792_v22, %v9667_v21  ;;  %v9763_v45 = vld [vmem:[#allocation17 + $0x520] sm:$0xf]  ;;  %v11928_v54 = vld [vmem:[#allocation17 + $0x8ac] sm:$0xf0] }
 0x40a   : > { %6970 = vmatpush.bf16.msra.mxu1 %v9588_v49  ;;  %v9363_v49 = vld [vmem:[#allocation17 + $0x200] sm:$0xf] }
 0x40b   : > { %v9364_v1 = vor.u32 %v11716_v63, %v9363_v49  ;;  %v9955_v48 = vld [vmem:[#allocation17 + $0x6a0] sm:$0xf] }
 0x40c   : > { %6961 = vmatpush.bf16.msra.mxu0 %v9396_v35  ;;  %v11828_v35 = vld [vmem:[#allocation17 + $0x58c] sm:$0xf0]  ;;  %v10019_v21 = vld [vmem:[#allocation17 + $0x720] sm:$0xf] }
 0x40d   : > { %v10339_v56 = vld [vmem:[#allocation17 + $0x9a0] sm:$0xf] }
 0x40e   : > { %6971 = vmatpush.bf16.msra.mxu1 %v9572_v0  ;;  %v11688_v0 = vld [vmem:[#allocation17 + $0x12c] sm:$0xf0] }
 0x40f   : > { %v9252_v10 = vor.u32 %v11688_v0, %v9251_v11  ;;  %v11860_v11 = vld [vmem:[#allocation17 + $0x68c] sm:$0xf0] }
 0x410   : > { %6962 = vmatpush.bf16.msra.mxu0 %v9380_v47  ;;  %v11816_v47 = vld [vmem:[#allocation17 + $0x52c] sm:$0xf0] }
 0x411   : > { %v9764_v49 = vor.u32 %v11816_v47, %v9763_v45 }
 0x412   : > { %6972 = vmatpush.bf16.msra.mxu1 %v9556_v15  ;;  %v9235_v15 = vld [vmem:[#allocation17 + $0x100] sm:$0xf] }
 0x413   : > { %v9236_v20 = vor.u32 %v11684_v16, %v9235_v15  ;;  %v11852_v15 = vld [vmem:[#allocation17 + $0x64c] sm:$0xf0]  ;;  %v10035_v16 = vld [vmem:[#allocation17 + $0x740] sm:$0xf] }
 0x414   : > { %6963 = vmatpush.bf16.msra.mxu0 %v9364_v1  ;;  %v9940_v1 = vor.u32 %v11860_v11, %v9939_v62 }
 0x415   : > { %9098 = vmatmul.msk.bf16.vlgmr.msrb.gmra.mxu3 %vm3107_vm14, %v13066_v23  ;;  %9104 = vmatmul.msk.bf16.vlgmr.msrb.gmra.mxu1 %vm3107_vm14, %v3370_v5  ;;  %v9124_v23 = vor.u32 %v11656_v18, %v9123_v14  ;;  %v11808_v5 = vld [vmem:[#allocation17 + $0x4ec] sm:$0xf0] }
 0x416   : > { %6943 = vmatpush.bf16.msrb.mxu3 %v9348_v53  ;;  %6973 = vmatpush.bf16.msra.mxu1 %v9540_v25  ;;  %v9732_v39 = vor.u32 %v11808_v5, %v9731_v31  ;;  %v11748_v53 = vld [vmem:[#allocation17 + $0x30c] sm:$0xf0]  ;;  %v9652_v5 = vor.u32 %v11788_v28, %v9651_v27  ;;  %v10003_v28 = vld [vmem:[#allocation17 + $0x700] sm:$0xf] }
 0x417   : > { %6936 = vmatpush.bf16.msrb.mxu2 %v9124_v23  ;;  %v9492_v2 = vor.u32 %v11748_v53, %v9491_v50  ;;  %v11900_v14 = vld [vmem:[#allocation17 + $0x7cc] sm:$0xf0]  ;;  %v10083_v50 = vld [vmem:[#allocation17 + $0x7a0] sm:$0xf] }
 0x418   : > { %v11840_v18 = vld [vmem:[#allocation17 + $0x5ec] sm:$0xf0]  ;;  %7008 = vmatpush.bf16.msrb.mxu0 %v9988_v3 }
 0x419   : > { %v9860_v23 = vor.u32 %v11840_v18, %v9859_v17  ;;  %v11836_v25 = vld [vmem:[#allocation17 + $0x5cc] sm:$0xf0] }
 0x41a   : > { %6944 = vmatpush.bf16.msrb.mxu3 %v9332_v8  ;;  %6974 = vmatpush.bf16.msra.mxu1 %v9524_v36  ;;  %v9971_v8 = vld [vmem:[#allocation17 + $0x6c0] sm:$0xf]  ;;  %v9844_v29 = vor.u32 %v11836_v25, %v9843_v6  ;;  %v11832_v31 = vld [vmem:[#allocation17 + $0x5ac] sm:$0xf0] }
 0x41b   : > { %6937 = vmatpush.bf16.msrb.mxu2 %v9108_v51  ;;  %v9972_v19 = vor.u32 %v11868_v9, %v9971_v8  ;;  %v9812_v51 = vor.u32 %v11828_v35, %v9811_v33  ;;  %v11892_v3 = vld [vmem:[#allocation17 + $0x78c] sm:$0xf0]  ;;  %v10051_v9 = vld [vmem:[#allocation17 + $0x760] sm:$0xf] }
 0x41c   : > { %v11856_v8 = vld [vmem:[#allocation17 + $0x66c] sm:$0xf0]  ;;  %v10243_v35 = vld [vmem:[#allocation17 + $0x8e0] sm:$0xf] }
 0x41d   : > { %7009 = vmatpush.bf16.msrb.mxu0 %v9972_v19  ;;  %v11884_v18 = vld [vmem:[#allocation17 + $0x74c] sm:$0xf0] }
 0x41e   : > { %6945 = vmatpush.bf16.msrb.mxu3 %v9316_v57  ;;  %6975 = vmatpush.bf16.msra.mxu1 %v9508_v55  ;;  %v10100_v57 = vor.u32 %v11900_v14, %v10099_v13  ;;  %v11864_v55 = vld [vmem:[#allocation17 + $0x6ac] sm:$0xf0]  ;;  %v9907_v14 = vld [vmem:[#allocation17 + $0x640] sm:$0xf]  ;;  %v10036_v19 = vor.u32 %v11884_v18, %v10035_v16 }
 0x41f   : > { %6982 = vmatpush.bf16.msra.mxu2 %v9732_v39  ;;  %v9796_v39 = vor.u32 %v11824_v38, %v9795_v37  ;;  %v9956_v63 = vor.u32 %v11864_v55, %v9955_v48  ;;  %v9908_v17 = vor.u32 %v11852_v15, %v9907_v14  ;;  %v11880_v6 = vld [vmem:[#allocation17 + $0x72c] sm:$0xf0]  ;;  %v10371_v37 = vld [vmem:[#allocation17 + $0x9e0] sm:$0xf] }
 0x420   : > { %v10020_v25 = vor.u32 %v11880_v6, %v10019_v21  ;;  %v11844_v27 = vld [vmem:[#allocation17 + $0x60c] sm:$0xf0]  ;;  %v10179_v14 = vld [vmem:[#allocation17 + $0x860] sm:$0xf] }
 0x421   : > { %7010 = vmatpush.bf16.msrb.mxu0 %v9956_v63  ;;  %v11968_v38 = vld [vmem:[#allocation17 + $0x9ec] sm:$0xf0]  ;;  %v10307_v15 = vld [vmem:[#allocation17 + $0x960] sm:$0xf] }
 0x422   : > { %6946 = vmatpush.bf16.msrb.mxu3 %v9300_v59  ;;  %6976 = vmatpush.bf16.msra.mxu1 %v9492_v2  ;;  %v9827_v59 = vld [vmem:[#allocation17 + $0x5a0] sm:$0xf]  ;;  %v10372_v45 = vor.u32 %v11968_v38, %v10371_v37  ;;  %v11932_v55 = vld [vmem:[#allocation17 + $0x8cc] sm:$0xf0] }
 0x423   : > { %6983 = vmatpush.bf16.msra.mxu2 %v9716_v52  ;;  %v9828_v32 = vor.u32 %v11832_v31, %v9827_v59  ;;  %v11896_v52 = vld [vmem:[#allocation17 + $0x7ac] sm:$0xf0]  ;;  %v10067_v2 = vld [vmem:[#allocation17 + $0x780] sm:$0xf] }
 0x424   : > { %v10084_v53 = vor.u32 %v11896_v52, %v10083_v50  ;;  %v11876_v59 = vld [vmem:[#allocation17 + $0x70c] sm:$0xf0]  ;;  %v10611_v37 = vld [vmem:[#allocation17 + $0xbc0] sm:$0xf] }
 0x425   : > { %9102 = vmatmul.msk.bf16.vlgmr.msra.gmra.mxu3 %vm3107_vm14, %v13072_v24  ;;  %v9683_v24 = vld [vmem:[#allocation17 + $0x480] sm:$0xf]  ;;  %7011 = vmatpush.bf16.msrb.mxu0 %v9940_v1  ;;  %v10004_v31 = vor.u32 %v11876_v59, %v10003_v28  ;;  %v11952_v16 = vld [vmem:[#allocation17 + $0x96c] sm:$0xf0] }
 0x426   : > { %6947 = vmatpush.bf16.msrb.mxu3 %v9284_v42  ;;  %v9684_v34 = vor.u32 %v11796_v12, %v9683_v24  ;;  %7021 = vmatpush.bf16.msrb.mxu1 %v10116_v7  ;;  %v9780_v42 = vor.u32 %v11820_v41, %v9779_v40  ;;  %v9923_v7 = vld [vmem:[#allocation17 + $0x660] sm:$0xf]  ;;  %v11888_v12 = vld [vmem:[#allocation17 + $0x76c] sm:$0xf0] }
 0x427   : > { %6984 = vmatpush.bf16.msra.mxu2 %v9700_v4  ;;  %v10068_v4 = vor.u32 %v11892_v3, %v10067_v2  ;;  %v10052_v13 = vor.u32 %v11888_v12, %v10051_v9  ;;  %v10195_v2 = vld [vmem:[#allocation17 + $0x880] sm:$0xf]  ;;  %v11924_v3 = vld [vmem:[#allocation17 + $0x88c] sm:$0xf0] }
 0x428   : > { %v3191_v22 = vpop.f32.mrf.mxu0  ;;  %v11920_v18 = vld [vmem:[#allocation17 + $0x86c] sm:$0xf0]  ;;  %v10163_v59 = vld [vmem:[#allocation17 + $0x840] sm:$0xf] }
 0x429   : > { %v12032_v6 = vld [vmem:[#allocation17 + $0xbec] sm:$0xf0]  ;;  %v10180_v28 = vor.u32 %v11920_v18, %v10179_v14 }
 0x42a   : > { %6948 = vmatpush.bf16.msrb.mxu3 %v9268_v58  ;;  %7022 = vmatpush.bf16.msrb.mxu1 %v10100_v57  ;;  %v9747_v58 = vld [vmem:[#allocation17 + $0x500] sm:$0xf]  ;;  %v12028_v38 = vld [vmem:[#allocation17 + $0xbcc] sm:$0xf0] }
 0x42b   : > { %6985 = vmatpush.bf16.msra.mxu2 %v9684_v34  ;;  %v9748_v0 = vor.u32 %v11812_v61, %v9747_v58  ;;  %v9891_v57 = vld [vmem:[#allocation17 + $0x620] sm:$0xf]  ;;  %v11960_v58 = vld [vmem:[#allocation17 + $0x9ac] sm:$0xf0] }
 0x42e   : > { %6949 = vmatpush.bf16.msrb.mxu3 %v9252_v10  ;;  %v13085_v30 = vpop.f32.mrf.mxu2  ;;  %7023 = vmatpush.bf16.msrb.mxu1 %v10084_v53  ;;  %v9924_v10 = vor.u32 %v11856_v8, %v9923_v7  ;;  %v10211_v53 = vld [vmem:[#allocation17 + $0x8a0] sm:$0xf]  ;;  %v11956_v7 = vld [vmem:[#allocation17 + $0x98c] sm:$0xf0] }
 0x42f   : > { %6986 = vmatpush.bf16.msra.mxu2 %v9668_v26  ;;  %v9875_v26 = vld [vmem:[#allocation17 + $0x600] sm:$0xf]  ;;  %v10212_v11 = vor.u32 %v11928_v54, %v10211_v53  ;;  %v12024_v54 = vld [vmem:[#allocation17 + $0xbac] sm:$0xf0] }
 0x430   : > { %7012 = vmatpush.bf16.msrb.mxu0 %v9924_v10  ;;  %v10196_v10 = vor.u32 %v11924_v3, %v10195_v2  ;;  %v10595_v53 = vld [vmem:[#allocation17 + $0xba0] sm:$0xf]  ;;  %v11908_v2 = vld [vmem:[#allocation17 + $0x80c] sm:$0xf0] }
 0x431   : > { %v10259_v3 = vld [vmem:[#allocation17 + $0x900] sm:$0xf] }
 0x432   : > { %6950 = vmatpush.bf16.msrb.mxu3 %v9236_v20  ;;  %7024 = vmatpush.bf16.msrb.mxu1 %v10068_v4  ;;  %v11848_v20 = vld [vmem:[#allocation17 + $0x62c] sm:$0xf0]  ;;  %v10323_v4 = vld [vmem:[#allocation17 + $0x980] sm:$0xf] }
 0x433   : > { %6987 = vmatpush.bf16.msra.mxu2 %v9652_v5  ;;  %v3193_v5 = vpop.f32.mrf.mxu0  ;;  %v10324_v12 = vor.u32 %v11956_v7, %v10323_v4  ;;  %v11940_v4 = vld [vmem:[#allocation17 + $0x90c] sm:$0xf0]  ;;  %v10596_v7 = vor.u32 %v12024_v54, %v10595_v53  ;;  %v10851_v54 = vld [vmem:[#allocation17 + $0xda0] sm:$0xf] }
 0x434   : > { %7013 = vmatpush.bf16.msrb.mxu0 %v9908_v17  ;;  %v11948_v5 = vld [vmem:[#allocation17 + $0x94c] sm:$0xf0] }
 0x436   : > { %6995 = vmatpush.bf16.msra.mxu3 %v9860_v23  ;;  %v3129_v36 = vpop.f32.mrf.mxu2  ;;  %7025 = vmatpush.bf16.msrb.mxu1 %v10052_v13  ;;  %v9892_v23 = vor.u32 %v11848_v20, %v9891_v57 }
 0x437   : > { %6988 = vmatpush.bf16.msra.mxu2 %v9636_v46  ;;  %v11936_v36 = vld [vmem:[#allocation17 + $0x8ec] sm:$0xf0]  ;;  %v10227_v46 = vld [vmem:[#allocation17 + $0x8c0] sm:$0xf] }
 0x438   : > { %7014 = vmatpush.bf16.msrb.mxu0 %v9892_v23  ;;  %v10244_v44 = vor.u32 %v11936_v36, %v10243_v35  ;;  %v10228_v50 = vor.u32 %v11932_v55, %v10227_v46  ;;  %v10627_v23 = vld [vmem:[#allocation17 + $0xbe0] sm:$0xf]  ;;  %v11916_v35 = vld [vmem:[#allocation17 + $0x84c] sm:$0xf0] }
 0x439   : > { %v11996_v36 = vld [vmem:[#allocation17 + $0xacc] sm:$0xf0]  ;;  %v10275_v46 = vld [vmem:[#allocation17 + $0x920] sm:$0xf] }
 0x43a   : > { %6996 = vmatpush.bf16.msra.mxu3 %v9844_v29  ;;  %7026 = vmatpush.bf16.msrb.mxu1 %v10036_v19  ;;  %v9876_v29 = vor.u32 %v11844_v27, %v9875_v26  ;;  %v10499_v19 = vld [vmem:[#allocation17 + $0xae0] sm:$0xf]  ;;  %v10308_v26 = vor.u32 %v11952_v16, %v10307_v15  ;;  %v11944_v55 = vld [vmem:[#allocation17 + $0x92c] sm:$0xf0]  ;;  %v10260_v15 = vor.u32 %v11940_v4, %v10259_v3 }
 0x43b   : > { %6989 = vmatpush.bf16.msra.mxu2 %v9620_v60  ;;  %v13092_v43 = vpop.f32.mrf.mxu0  ;;  %v10883_v16 = vld [vmem:[#allocation17 + $0xde0] sm:$0xf] }
 0x43c   : > { %7015 = vmatpush.bf16.msrb.mxu0 %v9876_v29  ;;  %v10531_v3 = vld [vmem:[#allocation17 + $0xb20] sm:$0xf] }
 0x43e   : > { %6997 = vmatpush.bf16.msra.mxu3 %v9828_v32  ;;  %v13087_v24 = vpop.f32.mrf.mxu2  ;;  %7027 = vmatpush.bf16.msrb.mxu1 %v10020_v25 }
 0x442   : > { %6998 = vmatpush.bf16.msra.mxu3 %v9812_v51  ;;  %7028 = vmatpush.bf16.msrb.mxu1 %v10004_v31  ;;  %v10291_v31 = vld [vmem:[#allocation17 + $0x940] sm:$0xf] }
 0x443   : > { %v3257_v62 = vpop.f32.mrf.mxu0 }
 0x446   : > { %6999 = vmatpush.bf16.msra.mxu3 %v9796_v39  ;;  %v3161_v34 = vpop.f32.mrf.mxu2 }
 0x447   : > { %v12000_v34 = vld [vmem:[#allocation17 + $0xaec] sm:$0xf0] }
 0x448   : > { %v10500_v29 = vor.u32 %v12000_v34, %v10499_v19 }
 0x44a   : > { %7000 = vmatpush.bf16.msra.mxu3 %v9780_v42 }
 0x44b   : > { %v13121_v62 = vpop.f32.mrf.mxu0 }
 0x44e   : > { %7001 = vmatpush.bf16.msra.mxu3 %v9764_v49  ;;  %v13090_v40 = vpop.f32.mrf.mxu2  ;;  %v10355_v49 = vld [vmem:[#allocation17 + $0x9c0] sm:$0xf] }
 0x452   : > { %7002 = vmatpush.bf16.msra.mxu3 %v9748_v0  ;;  %v10340_v0 = vor.u32 %v11960_v58, %v10339_v56  ;;  %v10276_v56 = vor.u32 %v11944_v55, %v10275_v46  ;;  %v11980_v46 = vld [vmem:[#allocation17 + $0xa4c] sm:$0xf0]  ;;  %v10547_v55 = vld [vmem:[#allocation17 + $0xb40] sm:$0xf] }
 0x456   : > { %v3225_v61 = vpop.f32.mrf.mxu2 }
 0x457   : > { %v10131_v61 = vld [vmem:[#allocation17 + $0x800] sm:$0xf] }
 0x458   : > { %v10132_v19 = vor.u32 %v11908_v2, %v10131_v61  ;;  %v11976_v2 = vld [vmem:[#allocation17 + $0xa2c] sm:$0xf0] }
 0x45e   : > { %v13103_v57 = vpop.f32.mrf.mxu2 }
 0x462   : > { %v3204_v32 = vpop.f32.mrf.mxu1 }
 0x463   : > { %v3208_v1 = vpack.c.bf16 %v3204_v32, %v3191_v22 }
 0x465   : > { %v3416_v9 = vunpack.c.l.b16 %v3208_v1  ;;  %v3417_v17 = vunpack.c.h.b16 %v3208_v1 }
 0x467   : > { %v13105_v25 = vpack.c.b16 %v3416_v9, %v3416_v9  ;;  %v13111_v32 = vpack.c.b16 %v3417_v17, %v3417_v17  ;;  %v11988_v9 = vld [vmem:[#allocation17 + $0xa8c] sm:$0xf0] }
 0x468   : > { %v3140_v33 = vpop.f32.mrf.mxu3  ;;  %v12096_v17 = vld [vmem:[#allocation17 + $0xdec] sm:$0xf0] }
 0x469   : > { %v3144_v51 = vpack.c.bf16 %v3140_v33, %v13085_v30  ;;  %v11964_v30 = vld [vmem:[#allocation17 + $0x9cc] sm:$0xf0]  ;;  %v10628_v33 = vor.u32 %v12032_v6, %v10627_v23  ;;  %v10563_v6 = vld [vmem:[#allocation17 + $0xb60] sm:$0xf] }
 0x46a   : > { %v3206_v39 = vpop.f32.mrf.mxu1  ;;  %v10356_v52 = vor.u32 %v11964_v30, %v10355_v49  ;;  %v10612_v49 = vor.u32 %v12028_v38, %v10611_v37  ;;  %v11912_v30 = vld [vmem:[#allocation17 + $0x82c] sm:$0xf0] }
 0x46b   : > { %v3402_v41 = vunpack.c.l.b16 %v3144_v51  ;;  %v3403_v42 = vunpack.c.h.b16 %v3144_v51  ;;  %v10483_v51 = vld [vmem:[#allocation17 + $0xac0] sm:$0xf]  ;;  %v11984_v23 = vld [vmem:[#allocation17 + $0xa6c] sm:$0xf0] }
 0x46d   : > { %v13094_v47 = vpack.c.b16 %v3402_v41, %v3402_v41  ;;  %v13096_v48 = vpack.c.b16 %v3403_v42, %v3403_v42  ;;  %v10292_v41 = vor.u32 %v11948_v5, %v10291_v31  ;;  %v10164_v42 = vor.u32 %v11916_v35, %v10163_v59  ;;  %v12016_v59 = vld [vmem:[#allocation17 + $0xb6c] sm:$0xf0]  ;;  %v10739_v31 = vld [vmem:[#allocation17 + $0xcc0] sm:$0xf] }
 0x46e   : > { %v12060_v5 = vld [vmem:[#allocation17 + $0xccc] sm:$0xf0] }
 0x46f   : > { %6938 = vmatmul.bf16.vlgmr.msrb.gmra.mxu2 %v13094_v47  ;;  %6951 = vmatmul.bf16.vlgmr.msrb.gmra.mxu3 %v13096_v48 }
 0x470   : > { %7034 = vmatpush.bf16.msrb.mxu2 %v10244_v44  ;;  %7047 = vmatpush.bf16.msrb.mxu3 %v10372_v45  ;;  %v3142_v63 = vpop.f32.mrf.mxu3  ;;  %v10484_v44 = vor.u32 %v11996_v36, %v10483_v51  ;;  %v10147_v45 = vld [vmem:[#allocation17 + $0x820] sm:$0xf]  ;;  %v12092_v51 = vld [vmem:[#allocation17 + $0xdcc] sm:$0xf0]  ;;  %v3321_v36 = vpop.f32.mrf.mxu0 }
 0x471   : > { %v10467_v63 = vld [vmem:[#allocation17 + $0xaa0] sm:$0xf] }
 0x472   : > { %v13100_v60 = vpop.f32.mrf.mxu1 }
 0x473   : > { %v13119_v58 = vpack.c.bf16 %v13100_v60, %v13092_v43  ;;  %v10755_v43 = vld [vmem:[#allocation17 + $0xce0] sm:$0xf]  ;;  %v12064_v60 = vld [vmem:[#allocation17 + $0xcec] sm:$0xf0] }
 0x474   : > { %7035 = vmatpush.bf16.msrb.mxu2 %v10228_v50  ;;  %7048 = vmatpush.bf16.msrb.mxu3 %v10356_v52  ;;  %v11992_v50 = vld [vmem:[#allocation17 + $0xaac] sm:$0xf0]  ;;  %v3289_v52 = vpop.f32.mrf.mxu2 }
 0x475   : > { %v10468_v1 = vor.u32 %v11992_v50, %v10467_v63  ;;  %v3430_v14 = vunpack.c.l.b16 %v13119_v58  ;;  %v10723_v63 = vld [vmem:[#allocation17 + $0xca0] sm:$0xf]  ;;  %v12056_v50 = vld [vmem:[#allocation17 + $0xcac] sm:$0xf0] }
 0x477   : > { %v13128_v35 = vpack.c.b16 %v3430_v14, %v3430_v14 }
 0x478   : > { %7036 = vmatpush.bf16.msrb.mxu2 %v10212_v11  ;;  %7049 = vmatpush.bf16.msrb.mxu3 %v10340_v0  ;;  %v3172_v8 = vpop.f32.mrf.mxu3  ;;  %v10148_v0 = vor.u32 %v11912_v30, %v10147_v45  ;;  %v10419_v45 = vld [vmem:[#allocation17 + $0xa40] sm:$0xf]  ;;  %v12012_v30 = vld [vmem:[#allocation17 + $0xb4c] sm:$0xf0] }
 0x479   : > { %v3176_v13 = vpack.c.bf16 %v3172_v8, %v13087_v24  ;;  %v10451_v8 = vld [vmem:[#allocation17 + $0xa80] sm:$0xf]  ;;  %v10548_v61 = vor.u32 %v12012_v30, %v10547_v55 }
 0x47a   : > { %v3270_v20 = vpop.f32.mrf.mxu1  ;;  %v10452_v34 = vor.u32 %v11988_v9, %v10451_v8  ;;  %v10707_v8 = vld [vmem:[#allocation17 + $0xc80] sm:$0xf]  ;;  %v12052_v9 = vld [vmem:[#allocation17 + $0xc8c] sm:$0xf0] }
 0x47b   : > { %v3409_v21 = vunpack.c.l.b16 %v3176_v13  ;;  %v3410_v22 = vunpack.c.h.b16 %v3176_v13  ;;  %v10995_v55 = vld [vmem:[#allocation17 + $0xec0] sm:$0xf] }
 0x47c   : > { %7037 = vmatpush.bf16.msrb.mxu2 %v10196_v10  ;;  %7050 = vmatpush.bf16.msrb.mxu3 %v10324_v12  ;;  %v10579_v10 = vld [vmem:[#allocation17 + $0xb80] sm:$0xf]  ;;  %v12020_v12 = vld [vmem:[#allocation17 + $0xb8c] sm:$0xf0] }
 0x47d   : > { %v13107_v24 = vpack.c.b16 %v3409_v21, %v3409_v21  ;;  %v13109_v27 = vpack.c.b16 %v3410_v22, %v3410_v22  ;;  %v10580_v20 = vor.u32 %v12020_v12, %v10579_v10  ;;  %v10756_v21 = vor.u32 %v12064_v60, %v10755_v43  ;;  %v10435_v22 = vld [vmem:[#allocation17 + $0xa60] sm:$0xf]  ;;  %v12084_v12 = vld [vmem:[#allocation17 + $0xd8c] sm:$0xf0] }
 0x47e   : > { %v10835_v10 = vld [vmem:[#allocation17 + $0xd80] sm:$0xf] }
 0x47f   : > { %6964 = vmatmul.bf16.vlgmr.msra.gmra.mxu0 %v13107_v24  ;;  %6977 = vmatmul.bf16.vlgmr.msra.gmra.mxu1 %v13109_v27  ;;  %v10387_v60 = vld [vmem:[#allocation17 + $0xa00] sm:$0xf] }
 0x480   : > { %6990 = vmatmul.bf16.vlgmr.msra.gmra.mxu2 %v13105_v25  ;;  %7051 = vmatpush.bf16.msrb.mxu3 %v10308_v26  ;;  %v3174_v39 = vpop.f32.mrf.mxu3 }
 0x481   : > { %7038 = vmatpush.bf16.msrb.mxu2 %v10180_v28  ;;  %7060 = vmatpush.bf16.msra.mxu0 %v10500_v29  ;;  %v10884_v29 = vor.u32 %v12096_v17, %v10883_v16  ;;  %v11972_v16 = vld [vmem:[#allocation17 + $0xa0c] sm:$0xf0]  ;;  %v10515_v17 = vld [vmem:[#allocation17 + $0xb00] sm:$0xf] }
 0x482   : > { %7073 = vmatpush.bf16.msra.mxu1 %v10628_v33  ;;  %7003 = vmatmul.bf16.vlgmr.msra.gmra.mxu3 %v13111_v32  ;;  %v13123_v11 = vpop.f32.mrf.mxu1  ;;  %v3431_v33 = vunpack.c.h.b16 %v13119_v58  ;;  %v10420_v58 = vor.u32 %v11980_v46, %v10419_v45  ;;  %v12076_v46 = vld [vmem:[#allocation17 + $0xd4c] sm:$0xf0] }
 0x484   : > { %7052 = vmatpush.bf16.msrb.mxu3 %v10292_v41  ;;  %v10436_v41 = vor.u32 %v11984_v23, %v10435_v22  ;;  %v13135_v52 = vpack.c.b16 %v3431_v33, %v3431_v33  ;;  %v12080_v23 = vld [vmem:[#allocation17 + $0xd6c] sm:$0xf0] }
 0x485   : > { %7039 = vmatpush.bf16.msrb.mxu2 %v10164_v42  ;;  %7061 = vmatpush.bf16.msra.mxu0 %v10484_v44  ;;  %v10564_v42 = vor.u32 %v12016_v59, %v10563_v6  ;;  %v10740_v44 = vor.u32 %v12060_v5, %v10739_v31  ;;  %v11011_v6 = vld [vmem:[#allocation17 + $0xee0] sm:$0xf]  ;;  %v12160_v31 = vld [vmem:[#allocation17 + $0xfec] sm:$0xf0] }
 0x486   : > { %7074 = vmatpush.bf16.msra.mxu1 %v10612_v49  ;;  %v11139_v59 = vld [vmem:[#allocation17 + $0xfe0] sm:$0xf] }
 0x487   : > { %v11140_v45 = vor.u32 %v12160_v31, %v11139_v59  ;;  %v11395_v59 = vld [vmem:[#allocation17 + $0x11e0] sm:$0xf]  ;;  %v12224_v31 = vld [vmem:[#allocation17 + $0x11ec] sm:$0xf0] }
 0x488   : > { %7053 = vmatpush.bf16.msrb.mxu3 %v10276_v56  ;;  %v3236_v13 = vpop.f32.mrf.mxu3  ;;  %v12088_v56 = vld [vmem:[#allocation17 + $0xdac] sm:$0xf0] }
 0x489   : > { %7040 = vmatpush.bf16.msrb.mxu2 %v10148_v0  ;;  %7062 = vmatpush.bf16.msra.mxu0 %v10468_v1  ;;  %v3240_v18 = vpack.c.bf16 %v3236_v13, %v13090_v40  ;;  %v10867_v40 = vld [vmem:[#allocation17 + $0xdc0] sm:$0xf]  ;;  %v10724_v0 = vor.u32 %v12056_v50, %v10723_v63  ;;  %v10852_v4 = vor.u32 %v12088_v56, %v10851_v54  ;;  %v13140_v13 = vpop.f32.mrf.mxu2  ;;  %v12156_v50 = vld [vmem:[#allocation17 + $0xfcc] sm:$0xf0] }
 0x48a   : > { %7075 = vmatpush.bf16.msra.mxu1 %v10596_v7  ;;  %v3334_v37 = vpop.f32.mrf.mxu1  ;;  %v10868_v49 = vor.u32 %v12092_v51, %v10867_v40  ;;  %v10403_v1 = vld [vmem:[#allocation17 + $0xa20] sm:$0xf]  ;;  %v12008_v7 = vld [vmem:[#allocation17 + $0xb2c] sm:$0xf0] }
 0x48b   : > { %v3423_v26 = vunpack.c.l.b16 %v3240_v18  ;;  %v3424_v28 = vunpack.c.h.b16 %v3240_v18  ;;  %v10404_v43 = vor.u32 %v11976_v2, %v10403_v1  ;;  %v10532_v14 = vor.u32 %v12008_v7, %v10531_v3  ;;  %v12004_v18 = vld [vmem:[#allocation17 + $0xb0c] sm:$0xf0]  ;;  %v11123_v63 = vld [vmem:[#allocation17 + $0xfc0] sm:$0xf] }
 0x48c   : > { %7054 = vmatpush.bf16.msrb.mxu3 %v10260_v15  ;;  %v10708_v15 = vor.u32 %v12052_v9, %v10707_v8  ;;  %v10516_v5 = vor.u32 %v12004_v18, %v10515_v17  ;;  %v10787_v1 = vld [vmem:[#allocation17 + $0xd20] sm:$0xf]  ;;  %v11124_v2 = vor.u32 %v12156_v50, %v11123_v63  ;;  %v12072_v3 = vld [vmem:[#allocation17 + $0xd2c] sm:$0xf0]  ;;  %v3336_v9 = vpack.c.bf16 %v13123_v11, %v13121_v62 }
 0x48d   : > { %v13130_v38 = vpack.c.b16 %v3423_v26, %v3423_v26  ;;  %v13132_v39 = vpack.c.b16 %v3424_v28, %v3424_v28  ;;  %7041 = vmatpush.bf16.msrb.mxu2 %v10132_v19  ;;  %7063 = vmatpush.bf16.msra.mxu0 %v10452_v34  ;;  %v10836_v19 = vor.u32 %v12084_v12, %v10835_v10  ;;  %v10691_v34 = vld [vmem:[#allocation17 + $0xc60] sm:$0xf]  ;;  %v12128_v26 = vld [vmem:[#allocation17 + $0xeec] sm:$0xf0] }
 0x48e   : > { %7076 = vmatpush.bf16.msra.mxu1 %v10580_v20  ;;  %v12048_v20 = vld [vmem:[#allocation17 + $0xc6c] sm:$0xf0]  ;;  %v11012_v37 = vor.u32 %v12128_v26, %v11011_v6  ;;  %v11107_v10 = vld [vmem:[#allocation17 + $0xfa0] sm:$0xf] }
 0x48f   : > { %7016 = vmatmul.bf16.vlgmr.msrb.gmra.mxu0 %v13130_v38  ;;  %7029 = vmatmul.bf16.vlgmr.msrb.gmra.mxu1 %v13132_v39  ;;  %v10692_v33 = vor.u32 %v12048_v20, %v10691_v34  ;;  %v12120_v7 = vld [vmem:[#allocation17 + $0xeac] sm:$0xf0]  ;;  %v11091_v11 = vld [vmem:[#allocation17 + $0xf80] sm:$0xf] }
 0x490   : > { %7099 = vmatpush.bf16.msra.mxu3 %v10884_v29  ;;  %7042 = vmatmul.bf16.vlgmr.msrb.gmra.mxu2 %v13128_v35  ;;  %v3238_v53 = vpop.f32.mrf.mxu3  ;;  %v10388_v29 = vor.u32 %v11972_v16, %v10387_v60  ;;  %v12152_v12 = vld [vmem:[#allocation17 + $0xfac] sm:$0xf0]  ;;  %v10643_v60 = vld [vmem:[#allocation17 + $0xc00] sm:$0xf]  ;;  %v10788_v16 = vor.u32 %v12072_v3, %v10787_v1 }
 0x491   : > { %7086 = vmatpush.bf16.msra.mxu2 %v10756_v21  ;;  %7064 = vmatpush.bf16.msra.mxu0 %v10436_v41  ;;  %v10819_v21 = vld [vmem:[#allocation17 + $0xd60] sm:$0xf]  ;;  %v3353_v53 = vpop.f32.mrf.mxu2  ;;  %v12036_v18 = vld [vmem:[#allocation17 + $0xc0c] sm:$0xf0]  ;;  %v11108_v20 = vor.u32 %v12152_v12, %v11107_v10 }
 0x492   : > { %7077 = vmatpush.bf16.msra.mxu1 %v10564_v42  ;;  %7055 = vmatmul.bf16.vlgmr.msrb.gmra.mxu3 %v13135_v52  ;;  %v10820_v36 = vor.u32 %v12080_v23, %v10819_v21  ;;  %v10675_v41 = vld [vmem:[#allocation17 + $0xc40] sm:$0xf]  ;;  %v12044_v42 = vld [vmem:[#allocation17 + $0xc4c] sm:$0xf0] }
 0x493   : > { %v10676_v54 = vor.u32 %v12044_v42, %v10675_v41  ;;  %v12068_v34 = vld [vmem:[#allocation17 + $0xd0c] sm:$0xf0]  ;;  %v10963_v21 = vld [vmem:[#allocation17 + $0xe80] sm:$0xf] }
 0x494   : > { %7100 = vmatpush.bf16.msra.mxu3 %v10868_v49  ;;  %v12124_v49 = vld [vmem:[#allocation17 + $0xecc] sm:$0xf0]  ;;  %v11267_v6 = vld [vmem:[#allocation17 + $0x10e0] sm:$0xf] }
 0x495   : > { %7087 = vmatpush.bf16.msra.mxu2 %v10740_v44  ;;  %7065 = vmatpush.bf16.msra.mxu0 %v10420_v58  ;;  %v10803_v44 = vld [vmem:[#allocation17 + $0xd40] sm:$0xf]  ;;  %v10996_v58 = vor.u32 %v12124_v49, %v10995_v55  ;;  %v12116_v62 = vld [vmem:[#allocation17 + $0xe8c] sm:$0xf0] }
 0x496   : > { %7078 = vmatpush.bf16.msra.mxu1 %v10548_v61  ;;  %v10804_v56 = vor.u32 %v12076_v46, %v10803_v44  ;;  %v10659_v61 = vld [vmem:[#allocation17 + $0xc20] sm:$0xf]  ;;  %v12148_v23 = vld [vmem:[#allocation17 + $0xf8c] sm:$0xf0] }
 0x497   : > { %v12192_v26 = vld [vmem:[#allocation17 + $0x10ec] sm:$0xf0]  ;;  %v11075_v41 = vld [vmem:[#allocation17 + $0xf60] sm:$0xf] }
 0x498   : > { %7101 = vmatpush.bf16.msra.mxu3 %v10852_v4  ;;  %v3300_v22 = vpop.f32.mrf.mxu3  ;;  %v10979_v4 = vld [vmem:[#allocation17 + $0xea0] sm:$0xf]  ;;  %v12144_v46 = vld [vmem:[#allocation17 + $0xf6c] sm:$0xf0] }
 0x499   : > { %7088 = vmatpush.bf16.msra.mxu2 %v10724_v0  ;;  %7066 = vmatpush.bf16.msra.mxu0 %v10404_v43  ;;  %v3304_v28 = vpack.c.bf16 %v3300_v22, %v13103_v57  ;;  %v12040_v0 = vld [vmem:[#allocation17 + $0xc2c] sm:$0xf0]  ;;  %v10980_v17 = vor.u32 %v12120_v7, %v10979_v4  ;;  %v3444_v22 = vunpack.c.l.b16 %v3336_v9  ;;  %v11251_v55 = vld [vmem:[#allocation17 + $0x10c0] sm:$0xf] }
 0x49a   : > { %7079 = vmatpush.bf16.msra.mxu1 %v10532_v14  ;;  %v10660_v43 = vor.u32 %v12040_v0, %v10659_v61  ;;  %v13151_v14 = vpop.f32.mrf.mxu0  ;;  %v12188_v49 = vld [vmem:[#allocation17 + $0x10cc] sm:$0xf0]  ;;  %v11379_v50 = vld [vmem:[#allocation17 + $0x11c0] sm:$0xf]  ;;  %v11076_v61 = vor.u32 %v12144_v46, %v11075_v41 }
 0x49b   : > { %v3437_v40 = vunpack.c.l.b16 %v3304_v28  ;;  %v3438_v51 = vunpack.c.h.b16 %v3304_v28  ;;  %v3445_v28 = vunpack.c.h.b16 %v3336_v9  ;;  %v13155_v44 = vpack.c.b16 %v3444_v22, %v3444_v22  ;;  %v12220_v53 = vld [vmem:[#allocation17 + $0x11cc] sm:$0xf0]  ;;  %v10931_v1 = vld [vmem:[#allocation17 + $0xe40] sm:$0xf] }
 0x49c   : > { %7102 = vmatpush.bf16.msra.mxu3 %v10836_v19  ;;  %v10771_v19 = vld [vmem:[#allocation17 + $0xd00] sm:$0xf]  ;;  %v11252_v0 = vor.u32 %v12188_v49, %v11251_v55  ;;  %v11380_v4 = vor.u32 %v12220_v53, %v11379_v50  ;;  %v12140_v7 = vld [vmem:[#allocation17 + $0xf4c] sm:$0xf0]  ;;  %v11710_v49 = vld [vmem:[#allocation17 + $0x1e4] sm:$0xf] }
 0x49d   : > { %7089 = vmatpush.bf16.msra.mxu2 %v10708_v15  ;;  %v13143_v57 = vpack.c.b16 %v3437_v40, %v3437_v40  ;;  %v13145_v30 = vpack.c.b16 %v3438_v51, %v3438_v51  ;;  %7067 = vmatpush.bf16.msra.mxu0 %v10388_v29  ;;  %v13153_v15 = vpop.f32.mrf.mxu1  ;;  %v10644_v29 = vor.u32 %v12036_v18, %v10643_v60  ;;  %v11059_v3 = vld [vmem:[#allocation17 + $0xf40] sm:$0xf]  ;;  %v12184_v9 = vld [vmem:[#allocation17 + $0x10ac] sm:$0xf0]  ;;  %v9349_v50 = vld [vmem:[#allocation17 + $0x1f0] sm:$0xf0] }
 0x49e   : > { %7080 = vmatpush.bf16.msra.mxu1 %v10516_v5  ;;  %v10772_v5 = vor.u32 %v12068_v34, %v10771_v19  ;;  %v11092_v40 = vor.u32 %v12148_v23, %v11091_v11  ;;  %v11268_v51 = vor.u32 %v12192_v26, %v11267_v6  ;;  %v13157_v63 = vpack.c.b16 %v3445_v28, %v3445_v28  ;;  %v11363_v10 = vld [vmem:[#allocation17 + $0x11a0] sm:$0xf]  ;;  %v12216_v12 = vld [vmem:[#allocation17 + $0x11ac] sm:$0xf0] }
 0x49f   : > { %v11060_v60 = vor.u32 %v12140_v7, %v11059_v3  ;;  %v12104_v18 = vld [vmem:[#allocation17 + $0xe2c] sm:$0xf0]  ;;  %v11043_v19 = vld [vmem:[#allocation17 + $0xf20] sm:$0xf]  ;;  %v9352_v3 = vor.u32 %v11710_v49, %v9349_v50  ;;  %v11674_v7 = vld [vmem:[#allocation17 + $0xc4] sm:$0xf] }
 0x4a0   : > { %7103 = vmatpush.bf16.msra.mxu3 %v10820_v36  ;;  %7068 = vmatmul.bf16.vlgmr.msra.gmra.mxu0 %v13143_v57  ;;  %v3302_v8 = vpop.f32.mrf.mxu3  ;;  %v10947_v36 = vld [vmem:[#allocation17 + $0xe60] sm:$0xf]  ;;  %v12180_v11 = vld [vmem:[#allocation17 + $0x108c] sm:$0xf0] }
 0x4a1   : > { %7090 = vmatpush.bf16.msra.mxu2 %v10692_v33  ;;  %7112 = vmatpush.bf16.msrb.mxu0 %v11012_v37  ;;  %v10964_v33 = vor.u32 %v12116_v62, %v10963_v21  ;;  %v12112_v37 = vld [vmem:[#allocation17 + $0xe6c] sm:$0xf0]  ;;  %v11235_v8 = vld [vmem:[#allocation17 + $0x10a0] sm:$0xf] }
 0x4a2   : > { %7125 = vmatpush.bf16.msrb.mxu1 %v11140_v45  ;;  %v11396_v45 = vor.u32 %v12224_v31, %v11395_v59  ;;  %v12136_v21 = vld [vmem:[#allocation17 + $0xf2c] sm:$0xf0]  ;;  %v11219_v62 = vld [vmem:[#allocation17 + $0x1080] sm:$0xf] }
 0x4a3   : > { %7081 = vmatmul.bf16.vlgmr.msra.gmra.mxu1 %v13145_v30  ;;  %v11347_v23 = vld [vmem:[#allocation17 + $0x1180] sm:$0xf]  ;;  %v12212_v6 = vld [vmem:[#allocation17 + $0x118c] sm:$0xf0]  ;;  %v11220_v59 = vor.u32 %v12180_v11, %v11219_v62  ;;  %v9189_v62 = vld [vmem:[#allocation17 + $0xb0] sm:$0xf0]  ;;  %v3400_v11 = vpack.c.bf16 %v13153_v15, %v13151_v14 }
 0x4a4   : > { %7104 = vmatpush.bf16.msra.mxu3 %v10804_v56  ;;  %v10899_v28 = vld [vmem:[#allocation17 + $0xe00] sm:$0xf]  ;;  %v12100_v31 = vld [vmem:[#allocation17 + $0xe0c] sm:$0xf0]  ;;  %v11742_v14 = vld [vmem:[#allocation17 + $0x2e4] sm:$0xf] }
 0x4a5   : > { %7091 = vmatpush.bf16.msra.mxu2 %v10676_v54  ;;  %7113 = vmatpush.bf16.msrb.mxu0 %v10996_v58  ;;  %v3385_v54 = vpop.f32.mrf.mxu0  ;;  %v3398_v56 = vpop.f32.mrf.mxu1  ;;  %v10948_v58 = vor.u32 %v12112_v37, %v10947_v36  ;;  %v12176_v36 = vld [vmem:[#allocation17 + $0x106c] sm:$0xf0]  ;;  %v11331_v37 = vld [vmem:[#allocation17 + $0x1160] sm:$0xf]  ;;  %v10900_v55 = vor.u32 %v12100_v31, %v10899_v28  ;;  %v9477_v15 = vld [vmem:[#allocation17 + $0x2f0] sm:$0xf0] }
 0x4a6   : > { %7126 = vmatpush.bf16.msrb.mxu1 %v11124_v2  ;;  %v12108_v2 = vld [vmem:[#allocation17 + $0xe4c] sm:$0xf0]  ;;  %v11283_v31 = vld [vmem:[#allocation17 + $0x1100] sm:$0xf] }
 0x4a8   : > { %7105 = vmatpush.bf16.msra.mxu3 %v10788_v16  ;;  %v3364_v42 = vpop.f32.mrf.mxu3  ;;  %v11236_v16 = vor.u32 %v12184_v9, %v11235_v8  ;;  %v9205_v8 = vld [vmem:[#allocation17 + $0xd0] sm:$0xf0] }
 0x4a9   : > { %7092 = vmatpush.bf16.msra.mxu2 %v10660_v43  ;;  %7114 = vmatpush.bf16.msrb.mxu0 %v10980_v17  ;;  %v10932_v43 = vor.u32 %v12108_v2, %v10931_v1  ;;  %v10915_v17 = vld [vmem:[#allocation17 + $0xe20] sm:$0xf]  ;;  %v3368_v22 = vpack.c.bf16 %v3364_v42, %v13140_v13  ;;  %v11678_v13 = vld [vmem:[#allocation17 + $0xe4] sm:$0xf]  ;;  %v9221_v42 = vld [vmem:[#allocation17 + $0xf0] sm:$0xf0] }
 0x4aa   : > { %7127 = vmatpush.bf16.msrb.mxu1 %v11108_v20  ;;  %v11364_v20 = vor.u32 %v12216_v12, %v11363_v10  ;;  %v10916_v26 = vor.u32 %v12104_v18, %v10915_v17  ;;  %v11315_v1 = vld [vmem:[#allocation17 + $0x1140] sm:$0xf]  ;;  %v11706_v10 = vld [vmem:[#allocation17 + $0x1c4] sm:$0xf]  ;;  %v9333_v12 = vld [vmem:[#allocation17 + $0x1d0] sm:$0xf0] }
 0x4ab   : > { %v3451_v41 = vunpack.c.l.b16 %v3368_v22  ;;  %v3452_v46 = vunpack.c.h.b16 %v3368_v22  ;;  %v11171_v17 = vld [vmem:[#allocation17 + $0x1020] sm:$0xf]  ;;  %v12168_v18 = vld [vmem:[#allocation17 + $0x102c] sm:$0xf0]  ;;  %v11702_v22 = vld [vmem:[#allocation17 + $0x1a4] sm:$0xf] }
 0x4ac   : > { %7106 = vmatpush.bf16.msra.mxu3 %v10772_v5  ;;  %v11027_v5 = vld [vmem:[#allocation17 + $0xf00] sm:$0xf] }
 0x4ad   : > { %7093 = vmatpush.bf16.msra.mxu2 %v10644_v29  ;;  %7115 = vmatpush.bf16.msrb.mxu0 %v10964_v33  ;;  %v11044_v29 = vor.u32 %v12136_v21, %v11043_v19  ;;  %v12132_v33 = vld [vmem:[#allocation17 + $0xf0c] sm:$0xf0]  ;;  %v13162_v2 = vpack.c.b16 %v3451_v41, %v3451_v41  ;;  %v13164_v9 = vpack.c.b16 %v3452_v46, %v3452_v46  ;;  %v11299_v19 = vld [vmem:[#allocation17 + $0x1120] sm:$0xf]  ;;  %v11670_v21 = vld [vmem:[#allocation17 + $0xa4] sm:$0xf] }
 0x4ae   : > { %7128 = vmatpush.bf16.msrb.mxu1 %v11092_v40  ;;  %v11348_v40 = vor.u32 %v12212_v6, %v11347_v23  ;;  %v11028_v53 = vor.u32 %v12132_v33, %v11027_v5  ;;  %v9317_v23 = vld [vmem:[#allocation17 + $0x1b0] sm:$0xf0]  ;;  %v11172_v6 = vor.u32 %v12168_v18, %v11171_v17  ;;  %v12196_v5 = vld [vmem:[#allocation17 + $0x110c] sm:$0xf0]  ;;  %v11690_v18 = vld [vmem:[#allocation17 + $0x144] sm:$0xf] }
 0x4af   : > { %7107 = vmatmul.bf16.vlgmr.msra.gmra.mxu3 %v13157_v63  ;;  %v9320_v33 = vor.u32 %v11702_v22, %v9317_v23  ;;  %v9301_v41 = vld [vmem:[#allocation17 + $0x190] sm:$0xf0] }
 0x4b0   : > { %7151 = vmatpush.bf16.msrb.mxu3 %v11396_v45  ;;  %7094 = vmatmul.bf16.vlgmr.msra.gmra.mxu2 %v13155_v44  ;;  %v3366_v34 = vpop.f32.mrf.mxu3  ;;  %v12208_v45 = vld [vmem:[#allocation17 + $0x116c] sm:$0xf0]  ;;  %v9605_v46 = vld [vmem:[#allocation17 + $0x3f0] sm:$0xf0] }
 0x4b1   : > { %7138 = vmatpush.bf16.msrb.mxu2 %v11268_v51  ;;  %7116 = vmatpush.bf16.msrb.mxu0 %v10948_v58  ;;  %v11203_v51 = vld [vmem:[#allocation17 + $0x1060] sm:$0xf]  ;;  %v11332_v56 = vor.u32 %v12208_v45, %v11331_v37  ;;  %v9224_v58 = vor.u32 %v11678_v13, %v9221_v42  ;;  %v9336_v34 = vor.u32 %v11706_v10, %v9333_v12  ;;  %v3458_v37 = vunpack.c.l.b16 %v3400_v11  ;;  %v11774_v42 = vld [vmem:[#allocation17 + $0x3e4] sm:$0xf]  ;;  %v9589_v10 = vld [vmem:[#allocation17 + $0x3d0] sm:$0xf0] }
 0x4b2   : > { %7129 = vmatpush.bf16.msrb.mxu1 %v11076_v61  ;;  %v11204_v54 = vor.u32 %v12176_v36, %v11203_v51  ;;  %v11187_v61 = vld [vmem:[#allocation17 + $0x1040] sm:$0xf]  ;;  %v9173_v51 = vld [vmem:[#allocation17 + $0x90] sm:$0xf0]  ;;  %v11698_v36 = vld [vmem:[#allocation17 + $0x184] sm:$0xf]  ;;  %v3459_v45 = vunpack.c.h.b16 %v3400_v11 }
 0x4b3   : > { %v9304_v50 = vor.u32 %v11698_v36, %v9301_v41  ;;  %v9141_v17 = vld [vmem:[#allocation17 + $0x50] sm:$0xf0] }
 0x4b4   : > { %7152 = vmatpush.bf16.msrb.mxu3 %v11380_v4  ;;  %v12204_v4 = vld [vmem:[#allocation17 + $0x114c] sm:$0xf0]  ;;  %v9573_v11 = vld [vmem:[#allocation17 + $0x3b0] sm:$0xf0] }
 0x4b5   : > { %7139 = vmatpush.bf16.msrb.mxu2 %v11252_v0  ;;  %7117 = vmatpush.bf16.msrb.mxu0 %v10932_v43  ;;  %v12172_v0 = vld [vmem:[#allocation17 + $0x104c] sm:$0xf0] }
 0x4b6   : > { %7130 = vmatpush.bf16.msrb.mxu1 %v11060_v60  ;;  %v11188_v43 = vor.u32 %v12172_v0, %v11187_v61  ;;  %v11316_v60 = vor.u32 %v12204_v4, %v11315_v1  ;;  %v13170_v61 = vpack.c.b16 %v3458_v37, %v3458_v37  ;;  %v9608_v0 = vor.u32 %v11774_v42, %v9605_v46  ;;  %v9285_v1 = vld [vmem:[#allocation17 + $0x170] sm:$0xf0]  ;;  %v11650_v37 = vld [vmem:[#allocation17 + $0x4] sm:$0xf] }
 0x4b7   : > { %v9461_v4 = vld [vmem:[#allocation17 + $0x2d0] sm:$0xf0]  ;;  %v11726_v46 = vld [vmem:[#allocation17 + $0x264] sm:$0xf] }
 0x4b8   : > { %7153 = vmatpush.bf16.msrb.mxu3 %v11364_v20  ;;  %v12200_v20 = vld [vmem:[#allocation17 + $0x112c] sm:$0xf0] }
 0x4b9   : > { %7140 = vmatpush.bf16.msrb.mxu2 %v11236_v16  ;;  %7118 = vmatpush.bf16.msrb.mxu0 %v10916_v26  ;;  %v9208_v16 = vor.u32 %v11674_v7, %v9205_v8  ;;  %v11155_v26 = vld [vmem:[#allocation17 + $0x1000] sm:$0xf]  ;;  %v11300_v28 = vor.u32 %v12200_v20, %v11299_v19  ;;  %v13172_v7 = vpack.c.b16 %v3459_v45, %v3459_v45  ;;  %v11770_v8 = vld [vmem:[#allocation17 + $0x3c4] sm:$0xf] }
 0x4ba   : > { %7131 = vmatpush.bf16.msrb.mxu1 %v11044_v29  ;;  %v9192_v29 = vor.u32 %v11670_v21, %v9189_v62  ;;  %v9592_v19 = vor.u32 %v11770_v8, %v9589_v10  ;;  %v11734_v20 = vld [vmem:[#allocation17 + $0x2a4] sm:$0xf]  ;;  %v9445_v21 = vld [vmem:[#allocation17 + $0x2b0] sm:$0xf0] }
 0x4bb   : > { %v11766_v62 = vld [vmem:[#allocation17 + $0x3a4] sm:$0xf] }
 0x4bc   : > { %7154 = vmatpush.bf16.msrb.mxu3 %v11348_v40  ;;  %v11666_v40 = vld [vmem:[#allocation17 + $0x84] sm:$0xf] }
 0x4bd   : > { %7141 = vmatpush.bf16.msrb.mxu2 %v11220_v59  ;;  %7119 = vmatpush.bf16.msrb.mxu0 %v10900_v55  ;;  %v12164_v59 = vld [vmem:[#allocation17 + $0x100c] sm:$0xf0]  ;;  %v11284_v55 = vor.u32 %v12196_v5, %v11283_v31  ;;  %v9176_v49 = vor.u32 %v11666_v40, %v9173_v51  ;;  %v9253_v31 = vld [vmem:[#allocation17 + $0x130] sm:$0xf0]  ;;  %v11730_v5 = vld [vmem:[#allocation17 + $0x284] sm:$0xf] }
 0x4be   : > { %7132 = vmatpush.bf16.msrb.mxu1 %v11028_v53  ;;  %v11156_v13 = vor.u32 %v12164_v59, %v11155_v26  ;;  %v9480_v53 = vor.u32 %v11742_v14, %v9477_v15  ;;  %v11654_v26 = vld [vmem:[#allocation17 + $0x24] sm:$0xf]  ;;  %v9576_v59 = vor.u32 %v11766_v62, %v9573_v11  ;;  %v9557_v51 = vld [vmem:[#allocation17 + $0x390] sm:$0xf0] }
 0x4bf   : > { %v11762_v40 = vld [vmem:[#allocation17 + $0x384] sm:$0xf]  ;;  %v9109_v15 = vld [vmem:[#allocation17 + $0x10] sm:$0xf0] }
 0x4c0   : > { %7155 = vmatpush.bf16.msrb.mxu3 %v11332_v56  ;;  %7120 = vmatmul.bf16.vlgmr.msrb.gmra.mxu0 %v13162_v2  ;;  %v9157_v56 = vld [vmem:[#allocation17 + $0x70] sm:$0xf0]  ;;  %v11682_v45 = vld [vmem:[#allocation17 + $0x104] sm:$0xf]  ;;  %v9560_v42 = vor.u32 %v11762_v40, %v9557_v51 }
 0x4c1   : > { %7142 = vmatpush.bf16.msrb.mxu2 %v11204_v54  ;;  %7164 = vmatpush.bf16.msra.mxu0 %v9224_v58  ;;  %v11662_v54 = vld [vmem:[#allocation17 + $0x64] sm:$0xf] }
 0x4c2   : > { %7177 = vmatpush.bf16.msra.mxu1 %v9352_v3  ;;  %v11694_v58 = vld [vmem:[#allocation17 + $0x164] sm:$0xf]  ;;  %v9160_v12 = vor.u32 %v11662_v54, %v9157_v56  ;;  %v9733_v54 = vld [vmem:[#allocation17 + $0x4f0] sm:$0xf0]  ;;  %v9112_v56 = vor.u32 %v11650_v37, %v9109_v15 }
 0x4c3   : > { %7133 = vmatmul.bf16.vlgmr.msrb.gmra.mxu1 %v13164_v9  ;;  %v11738_v3 = vld [vmem:[#allocation17 + $0x2c4] sm:$0xf] }
 0x4c4   : > { %7156 = vmatpush.bf16.msrb.mxu3 %v11316_v60  ;;  %v9464_v60 = vor.u32 %v11738_v3, %v9461_v4  ;;  %v11722_v10 = vld [vmem:[#allocation17 + $0x244] sm:$0xf] }
 0x4c5   : > { %7143 = vmatpush.bf16.msrb.mxu2 %v11188_v43  ;;  %7165 = vmatpush.bf16.msra.mxu0 %v9208_v16  ;;  %v9288_v43 = vor.u32 %v11694_v58, %v9285_v1  ;;  %v11658_v16 = vld [vmem:[#allocation17 + $0x44] sm:$0xf] }
 0x4c6   : > { %7178 = vmatpush.bf16.msra.mxu1 %v9336_v34  ;;  %v9269_v34 = vld [vmem:[#allocation17 + $0x150] sm:$0xf0]  ;;  %v9144_v22 = vor.u32 %v11658_v16, %v9141_v17  ;;  %v11838_v58 = vld [vmem:[#allocation17 + $0x5e4] sm:$0xf] }
 0x4c7   : > { %v9272_v23 = vor.u32 %v11690_v18, %v9269_v34  ;;  %v9525_v16 = vld [vmem:[#allocation17 + $0x350] sm:$0xf0]  ;;  %v11802_v17 = vld [vmem:[#allocation17 + $0x4c4] sm:$0xf] }
 0x4c8   : > { %7157 = vmatpush.bf16.msrb.mxu3 %v11300_v28  ;;  %v9125_v28 = vld [vmem:[#allocation17 + $0x30] sm:$0xf0]  ;;  %v11718_v11 = vld [vmem:[#allocation17 + $0x224] sm:$0xf] }
 0x4c9   : > { %7144 = vmatpush.bf16.msrb.mxu2 %v11172_v6  ;;  %7166 = vmatpush.bf16.msra.mxu0 %v9192_v29  ;;  %v9448_v6 = vor.u32 %v11734_v20, %v9445_v21  ;;  %v11686_v29 = vld [vmem:[#allocation17 + $0x124] sm:$0xf]  ;;  %v9128_v36 = vor.u32 %v11654_v26, %v9125_v28  ;;  %v9717_v18 = vld [vmem:[#allocation17 + $0x4d0] sm:$0xf0] }
 0x4ca   : > { %7179 = vmatpush.bf16.msra.mxu1 %v9320_v33  ;;  %v9429_v33 = vld [vmem:[#allocation17 + $0x290] sm:$0xf0]  ;;  %v9256_v41 = vor.u32 %v11686_v29, %v9253_v31  ;;  %v9720_v62 = vor.u32 %v11802_v17, %v9717_v18  ;;  %v11798_v28 = vld [vmem:[#allocation17 + $0x4a4] sm:$0xf] }
 0x4cb   : > { %v9432_v14 = vor.u32 %v11730_v5, %v9429_v33  ;;  %v9845_v34 = vld [vmem:[#allocation17 + $0x5d0] sm:$0xf0]  ;;  %v11714_v33 = vld [vmem:[#allocation17 + $0x204] sm:$0xf] }
 0x4cc   : > { %7158 = vmatpush.bf16.msrb.mxu3 %v11284_v55  ;;  %v9413_v55 = vld [vmem:[#allocation17 + $0x270] sm:$0xf0]  ;;  %v11746_v37 = vld [vmem:[#allocation17 + $0x304] sm:$0xf] }
 0x4cd   : > { %7145 = vmatpush.bf16.msrb.mxu2 %v11156_v13  ;;  %7167 = vmatpush.bf16.msra.mxu0 %v9176_v49  ;;  %v9237_v13 = vld [vmem:[#allocation17 + $0x110] sm:$0xf0]  ;;  %v11758_v49 = vld [vmem:[#allocation17 + $0x364] sm:$0xf]  ;;  %v9416_v3 = vor.u32 %v11726_v46, %v9413_v55 }
 0x4ce   : > { %7180 = vmatpush.bf16.msra.mxu1 %v9304_v50  ;;  %v9541_v50 = vld [vmem:[#allocation17 + $0x370] sm:$0xf0]  ;;  %v9240_v1 = vor.u32 %v11682_v45, %v9237_v13  ;;  %v11794_v15 = vld [vmem:[#allocation17 + $0x484] sm:$0xf] }
 0x4cf   : > { %7159 = vmatmul.bf16.vlgmr.msrb.gmra.mxu3 %v13172_v7  ;;  %v9544_v4 = vor.u32 %v11758_v49, %v9541_v50  ;;  %v9509_v26 = vld [vmem:[#allocation17 + $0x330] sm:$0xf0]  ;;  %v11826_v13 = vld [vmem:[#allocation17 + $0x584] sm:$0xf] }
 0x4d0   : > { %7203 = vmatpush.bf16.msra.mxu3 %v9608_v0  ;;  %7146 = vmatmul.bf16.vlgmr.msrb.gmra.mxu2 %v13170_v61  ;;  %v9861_v0 = vld [vmem:[#allocation17 + $0x5f0] sm:$0xf0]  ;;  %v11870_v46 = vld [vmem:[#allocation17 + $0x6e4] sm:$0xf] }
 0x4d1   : > { %7190 = vmatpush.bf16.msra.mxu2 %v9480_v53  ;;  %7168 = vmatpush.bf16.msra.mxu0 %v9160_v12  ;;  %v11806_v53 = vld [vmem:[#allocation17 + $0x4e4] sm:$0xf]  ;;  %v9397_v12 = vld [vmem:[#allocation17 + $0x250] sm:$0xf0] }
 0x4d2   : > { %7181 = vmatpush.bf16.msra.mxu1 %v9288_v43  ;;  %v9736_v8 = vor.u32 %v11806_v53, %v9733_v54  ;;  %v11754_v43 = vld [vmem:[#allocation17 + $0x344] sm:$0xf]  ;;  %v9400_v20 = vor.u32 %v11722_v10, %v9397_v12  ;;  %v9701_v29 = vld [vmem:[#allocation17 + $0x4b0] sm:$0xf0] }
 0x4d3   : > { %v9528_v21 = vor.u32 %v11754_v43, %v9525_v16  ;;  %v9829_v31 = vld [vmem:[#allocation17 + $0x5b0] sm:$0xf0]  ;;  %v9704_v51 = vor.u32 %v11798_v28, %v9701_v29  ;;  %v11902_v50 = vld [vmem:[#allocation17 + $0x7e4] sm:$0xf] }
 0x4d4   : > { %7204 = vmatpush.bf16.msra.mxu3 %v9592_v19  ;;  %v11834_v19 = vld [vmem:[#allocation17 + $0x5c4] sm:$0xf]  ;;  %v9685_v45 = vld [vmem:[#allocation17 + $0x490] sm:$0xf0] }
 0x4d5   : > { %7191 = vmatpush.bf16.msra.mxu2 %v9464_v60  ;;  %7169 = vmatpush.bf16.msra.mxu0 %v9144_v22  ;;  %v9864_v60 = vor.u32 %v11838_v58, %v9861_v0  ;;  %v9381_v22 = vld [vmem:[#allocation17 + $0x230] sm:$0xf0]  ;;  %v11866_v12 = vld [vmem:[#allocation17 + $0x6c4] sm:$0xf] }
 0x4d6   : > { %7182 = vmatpush.bf16.msra.mxu1 %v9272_v23  ;;  %v11750_v23 = vld [vmem:[#allocation17 + $0x324] sm:$0xf]  ;;  %v9384_v5 = vor.u32 %v11718_v11, %v9381_v22  ;;  %v9989_v55 = vld [vmem:[#allocation17 + $0x6f0] sm:$0xf0] }
 0x4d7   : > { %v9512_v40 = vor.u32 %v11750_v23, %v9509_v26  ;;  %v10117_v53 = vld [vmem:[#allocation17 + $0x7f0] sm:$0xf0]  ;;  %v9992_v0 = vor.u32 %v11870_v46, %v9989_v55  ;;  %v11862_v22 = vld [vmem:[#allocation17 + $0x6a4] sm:$0xf] }
 0x4d8   : > { %7205 = vmatpush.bf16.msra.mxu3 %v9576_v59  ;;  %v11830_v59 = vld [vmem:[#allocation17 + $0x5a4] sm:$0xf]  ;;  %v9797_v10 = vld [vmem:[#allocation17 + $0x570] sm:$0xf0] }
 0x4d9   : > { %7192 = vmatpush.bf16.msra.mxu2 %v9448_v6  ;;  %7170 = vmatpush.bf16.msra.mxu0 %v9128_v36  ;;  %v9848_v6 = vor.u32 %v11834_v19, %v9845_v34  ;;  %v9365_v36 = vld [vmem:[#allocation17 + $0x210] sm:$0xf0]  ;;  %v11786_v34 = vld [vmem:[#allocation17 + $0x444] sm:$0xf] }
 0x4da   : > { %7183 = vmatpush.bf16.msra.mxu1 %v9256_v41  ;;  %v9493_v41 = vld [vmem:[#allocation17 + $0x310] sm:$0xf0]  ;;  %v9368_v49 = vor.u32 %v11714_v33, %v9365_v36  ;;  %v11782_v29 = vld [vmem:[#allocation17 + $0x424] sm:$0xf] }
 0x4db   : > { %v9496_v54 = vor.u32 %v11746_v37, %v9493_v41  ;;  %v9973_v43 = vld [vmem:[#allocation17 + $0x6d0] sm:$0xf0]  ;;  %v11814_v33 = vld [vmem:[#allocation17 + $0x524] sm:$0xf] }
 0x4dc   : > { %7206 = vmatpush.bf16.msra.mxu3 %v9560_v42  ;;  %v9813_v42 = vld [vmem:[#allocation17 + $0x590] sm:$0xf0]  ;;  %v9976_v19 = vor.u32 %v11866_v12, %v9973_v43  ;;  %v11858_v37 = vld [vmem:[#allocation17 + $0x684] sm:$0xf] }
 0x4dd   : > { %7193 = vmatpush.bf16.msra.mxu2 %v9432_v14  ;;  %7171 = vmatpush.bf16.msra.mxu0 %v9112_v56  ;;  %v9832_v14 = vor.u32 %v11830_v59, %v9829_v31  ;;  %v9688_v56 = vor.u32 %v11794_v15, %v9685_v45  ;;  %v9816_v58 = vor.u32 %v11826_v13, %v9813_v42  ;;  %v10101_v16 = vld [vmem:[#allocation17 + $0x7d0] sm:$0xf0]  ;;  %v11778_v42 = vld [vmem:[#allocation17 + $0x404] sm:$0xf] }
 0x4de   : > { %7184 = vmatpush.bf16.msra.mxu1 %v9240_v1  ;;  %v11790_v1 = vld [vmem:[#allocation17 + $0x464] sm:$0xf]  ;;  %v9781_v11 = vld [vmem:[#allocation17 + $0x550] sm:$0xf0] }
 0x4df   : > { %v9957_v23 = vld [vmem:[#allocation17 + $0x6b0] sm:$0xf0] }
 0x4e0   : > { %7207 = vmatpush.bf16.msra.mxu3 %v9544_v4  ;;  %7172 = vmatmul.bf16.vlgmr.msra.gmra.mxu0 %v13094_v47  ;;  %v11822_v4 = vld [vmem:[#allocation17 + $0x564] sm:$0xf]  ;;  %v10085_v26 = vld [vmem:[#allocation17 + $0x7b0] sm:$0xf0]  ;;  %v9960_v31 = vor.u32 %v11862_v22, %v9957_v23 }
 0x4e1   : > { %7194 = vmatpush.bf16.msra.mxu2 %v9416_v3  ;;  %7216 = vmatpush.bf16.msrb.mxu0 %v9736_v8  ;;  %v9669_v3 = vld [vmem:[#allocation17 + $0x470] sm:$0xf0]  ;;  %v10120_v8 = vor.u32 %v11902_v50, %v10117_v53  ;;  %v9800_v18 = vor.u32 %v11822_v4, %v9797_v10  ;;  %v11810_v50 = vld [vmem:[#allocation17 + $0x504] sm:$0xf] }
 0x4e2   : > { %7229 = vmatpush.bf16.msrb.mxu1 %v9864_v60  ;;  %v11898_v60 = vld [vmem:[#allocation17 + $0x7c4] sm:$0xf]  ;;  %v9672_v17 = vor.u32 %v11790_v1, %v9669_v3  ;;  %v9765_v36 = vld [vmem:[#allocation17 + $0x530] sm:$0xf0] }
 0x4e3   : > { %7185 = vmatmul.bf16.vlgmr.msra.gmra.mxu1 %v13096_v48  ;;  %v9941_v41 = vld [vmem:[#allocation17 + $0x690] sm:$0xf0]  ;;  %v9768_v46 = vor.u32 %v11814_v33, %v9765_v36  ;;  %v11846_v33 = vld [vmem:[#allocation17 + $0x624] sm:$0xf] }
 0x4e4   : > { %7208 = vmatpush.bf16.msra.mxu3 %v9528_v21  ;;  %v11818_v21 = vld [vmem:[#allocation17 + $0x544] sm:$0xf]  ;;  %v10069_v15 = vld [vmem:[#allocation17 + $0x790] sm:$0xf0]  ;;  %v9944_v55 = vor.u32 %v11858_v37, %v9941_v41 }
 0x4e5   : > { %7195 = vmatpush.bf16.msra.mxu2 %v9400_v20  ;;  %7217 = vmatpush.bf16.msrb.mxu0 %v9720_v62  ;;  %v9653_v20 = vld [vmem:[#allocation17 + $0x450] sm:$0xf0]  ;;  %v10104_v62 = vor.u32 %v11898_v60, %v10101_v16  ;;  %v9784_v59 = vor.u32 %v11818_v21, %v9781_v11  ;;  %v11966_v60 = vld [vmem:[#allocation17 + $0x9e4] sm:$0xf] }
 0x4e6   : > { %7230 = vmatpush.bf16.msrb.mxu1 %v9848_v6  ;;  %v11894_v6 = vld [vmem:[#allocation17 + $0x7a4] sm:$0xf]  ;;  %v9656_v28 = vor.u32 %v11786_v34, %v9653_v20  ;;  %v9749_v53 = vld [vmem:[#allocation17 + $0x510] sm:$0xf0] }
 0x4e7   : > { %v10053_v4 = vld [vmem:[#allocation17 + $0x770] sm:$0xf0]  ;;  %v11850_v21 = vld [vmem:[#allocation17 + $0x644] sm:$0xf] }
 0x4e8   : > { %7209 = vmatpush.bf16.msra.mxu3 %v9512_v40  ;;  %v4040_v40 = vld [vmem:[#allocation19] sm:$0xf]  ;;  %v10245_v10 = vld [vmem:[#allocation17 + $0x8f0] sm:$0xf0]  ;;  %v11882_v11 = vld [vmem:[#allocation17 + $0x744] sm:$0xf] }
 0x4e9   : > { %7196 = vmatpush.bf16.msra.mxu2 %v9384_v5  ;;  %7218 = vmatpush.bf16.msrb.mxu0 %v9704_v51  ;;  %v9637_v5 = vld [vmem:[#allocation17 + $0x430] sm:$0xf0]  ;;  %v10088_v51 = vor.u32 %v11894_v6, %v10085_v26  ;;  %v4042_v13 = vperm.slane %v4040_v40, 0  ;;  %v11930_v6 = vld [vmem:[#allocation17 + $0x8c4] sm:$0xf] }
 0x4ea   : > { %7231 = vmatpush.bf16.msrb.mxu1 %v9832_v14  ;;  %v11890_v14 = vld [vmem:[#allocation17 + $0x784] sm:$0xf]  ;;  %v9640_v45 = vor.u32 %v11782_v29, %v9637_v5  ;;  %v10373_v16 = vld [vmem:[#allocation17 + $0x9f0] sm:$0xf0] }
 0x4eb   : > { %v10376_v22 = vor.u32 %v11966_v60, %v10373_v16  ;;  %v10037_v23 = vld [vmem:[#allocation17 + $0x750] sm:$0xf0]  ;;  %v11998_v60 = vld [vmem:[#allocation17 + $0xae4] sm:$0xf] }
 0x4ec   : > { %7210 = vmatpush.bf16.msra.mxu3 %v9496_v54  ;;  %v10072_v54 = vor.u32 %v11890_v14, %v10069_v15  ;;  %v10229_v26 = vld [vmem:[#allocation17 + $0x8d0] sm:$0xf0]  ;;  %v11926_v15 = vld [vmem:[#allocation17 + $0x8a4] sm:$0xf] }
 0x4ed   : > { %7197 = vmatpush.bf16.msra.mxu2 %v9368_v49  ;;  %7219 = vmatpush.bf16.msrb.mxu0 %v9688_v56  ;;  %v9621_v49 = vld [vmem:[#allocation17 + $0x410] sm:$0xf0]  ;;  %v11854_v56 = vld [vmem:[#allocation17 + $0x664] sm:$0xf]  ;;  %v10232_v5 = vor.u32 %v11930_v6, %v10229_v26 }
 0x4ee   : > { %7232 = vmatpush.bf16.msrb.mxu1 %v9816_v58  ;;  %v9925_v58 = vld [vmem:[#allocation17 + $0x670] sm:$0xf0]  ;;  %v9624_v43 = vor.u32 %v11778_v42, %v9621_v49 }
 0x4ef   : > { %7211 = vmatmul.bf16.vlgmr.msra.gmra.mxu3 %v13109_v27  ;;  %v10357_v29 = vld [vmem:[#allocation17 + $0x9d0] sm:$0xf0] }
 0x4f0   : > { %7255 = vmatpush.bf16.msrb.mxu3 %v10120_v8  ;;  %7198 = vmatmul.bf16.vlgmr.msra.gmra.mxu2 %v13107_v24  ;;  %v11934_v8 = vld [vmem:[#allocation17 + $0x8e4] sm:$0xf]  ;;  %v9893_v40 = vld [vmem:[#allocation17 + $0x630] sm:$0xf0] }
 0x4f1   : > { %7242 = vmatpush.bf16.msrb.mxu2 %v9992_v0  ;;  %7220 = vmatpush.bf16.msrb.mxu0 %v9672_v17  ;;  %v11886_v0 = vld [vmem:[#allocation17 + $0x764] sm:$0xf]  ;;  %v9752_v17 = vor.u32 %v11810_v50, %v9749_v53  ;;  %v10248_v20 = vor.u32 %v11934_v8, %v10245_v10  ;;  %v10021_v14 = vld [vmem:[#allocation17 + $0x730] sm:$0xf0] }
 0x4f2   : > { %7233 = vmatpush.bf16.msrb.mxu1 %v9800_v18  ;;  %v6939_v1 = vpop.f32.mrf.mxu2  ;;  %v6952_v3 = vpop.f32.mrf.mxu3  ;;  %v9928_v18 = vor.u32 %v11854_v56, %v9925_v58  ;;  %v10056_v34 = vor.u32 %v11886_v0, %v10053_v4  ;;  %v10341_v42 = vld [vmem:[#allocation17 + $0x9b0] sm:$0xf0]  ;;  %v11842_v50 = vld [vmem:[#allocation17 + $0x604] sm:$0xf] }
 0x4f3   : > { %v6940_v12 = vadd.f32 %v6939_v1, %v4042_v13  ;;  %v11958_v13 = vld [vmem:[#allocation17 + $0x9a4] sm:$0xf]  ;;  %v9877_v58 = vld [vmem:[#allocation17 + $0x610] sm:$0xf0] }
 0x4f4   : > { %7256 = vmatpush.bf16.msrb.mxu3 %v10104_v62  ;;  %v9909_v62 = vld [vmem:[#allocation17 + $0x650] sm:$0xf0]  ;;  %v11874_v0 = vld [vmem:[#allocation17 + $0x704] sm:$0xf] }
 0x4f5   : > { %7243 = vmatpush.bf16.msrb.mxu2 %v9976_v19  ;;  %7221 = vmatpush.bf16.msrb.mxu0 %v9656_v28  ;;  %v6953_v19 = vadd.f32 %v6952_v3, %v6940_v12  ;;  %v11962_v28 = vld [vmem:[#allocation17 + $0x9c4] sm:$0xf]  ;;  %v10005_v1 = vld [vmem:[#allocation17 + $0x710] sm:$0xf0]  ;;  %v10344_v3 = vor.u32 %v11958_v13, %v10341_v42 }
 0x4f6   : > { %7234 = vmatpush.bf16.msrb.mxu1 %v9784_v59  ;;  %v9912_v59 = vor.u32 %v11850_v21, %v9909_v62  ;;  %v10360_v36 = vor.u32 %v11962_v28, %v10357_v29  ;;  %v11922_v4 = vld [vmem:[#allocation17 + $0x884] sm:$0xf]  ;;  %v10197_v8 = vld [vmem:[#allocation17 + $0x890] sm:$0xf0] }
 0x4f7   : > { %v11954_v10 = vld [vmem:[#allocation17 + $0x984] sm:$0xf]  ;;  %v10501_v16 = vld [vmem:[#allocation17 + $0xaf0] sm:$0xf0] }
 0x4f8   : > { %7257 = vmatpush.bf16.msrb.mxu3 %v10088_v51  ;;  %v11878_v51 = vld [vmem:[#allocation17 + $0x724] sm:$0xf]  ;;  %v10504_v62 = vor.u32 %v11998_v60, %v10501_v16  ;;  %v10309_v28 = vld [vmem:[#allocation17 + $0x970] sm:$0xf0] }
 0x4f9   : > { %7244 = vmatpush.bf16.msrb.mxu2 %v9960_v31  ;;  %7222 = vmatpush.bf16.msrb.mxu0 %v9640_v45  ;;  %v10040_v31 = vor.u32 %v11882_v11, %v10037_v23  ;;  %v10213_v45 = vld [vmem:[#allocation17 + $0x8b0] sm:$0xf0]  ;;  %v10024_v53 = vor.u32 %v11878_v51, %v10021_v14  ;;  %v11918_v11 = vld [vmem:[#allocation17 + $0x864] sm:$0xf] }
 0x4fa   : > { %7235 = vmatpush.bf16.msrb.mxu1 %v9768_v46  ;;  %v6941_v37 = vpop.f32.mrf.mxu2  ;;  %v6954_v41 = vpop.f32.mrf.mxu3  ;;  %v9896_v46 = vor.u32 %v11846_v33, %v9893_v40  ;;  %v11950_v23 = vld [vmem:[#allocation17 + $0x964] sm:$0xf]  ;;  %v10613_v51 = vld [vmem:[#allocation17 + $0xbd0] sm:$0xf0] }
 0x4fb   : > { %v11994_v29 = vld [vmem:[#allocation17 + $0xac4] sm:$0xf]  ;;  %v10312_v41 = vor.u32 %v11950_v23, %v10309_v28  ;;  %v10165_v13 = vld [vmem:[#allocation17 + $0x850] sm:$0xf0] }
 0x4fc   : > { %7258 = vmatpush.bf16.msrb.mxu3 %v10072_v54  ;;  %v6978_v49 = vpop.f32.mrf.mxu1  ;;  %v10216_v54 = vor.u32 %v11926_v15, %v10213_v45  ;;  %v12026_v40 = vld [vmem:[#allocation17 + $0xbc4] sm:$0xf]  ;;  %v10453_v60 = vld [vmem:[#allocation17 + $0xa90] sm:$0xf0] }
 0x4fd   : > { %7245 = vmatpush.bf16.msrb.mxu2 %v9944_v55  ;;  %7223 = vmatpush.bf16.msrb.mxu0 %v9624_v43  ;;  %v6965_v55 = vpop.f32.mrf.mxu0  ;;  %v10325_v43 = vld [vmem:[#allocation17 + $0x990] sm:$0xf0]  ;;  %v11914_v45 = vld [vmem:[#allocation17 + $0x844] sm:$0xf] }
 0x4fe   : > { %7236 = vmatpush.bf16.msrb.mxu1 %v9752_v17  ;;  %v6966_v56 = vadd.f32 %v6965_v55, %v6953_v19  ;;  %v9880_v17 = vor.u32 %v11842_v50, %v9877_v58  ;;  %v10200_v19 = vor.u32 %v11922_v4, %v10197_v8  ;;  %v10328_v21 = vor.u32 %v11954_v10, %v10325_v43  ;;  %v11946_v42 = vld [vmem:[#allocation17 + $0x944] sm:$0xf]  ;;  %v10293_v55 = vld [vmem:[#allocation17 + $0x950] sm:$0xf0] }
 0x4ff   : > { %v10469_v50 = vld [vmem:[#allocation17 + $0xab0] sm:$0xf0]  ;;  %v10296_v58 = vor.u32 %v11946_v42, %v10293_v55  ;;  %v11942_v4 = vld [vmem:[#allocation17 + $0x924] sm:$0xf] }
 0x500   : > { %7259 = vmatpush.bf16.msrb.mxu3 %v10056_v34  ;;  %7224 = vmatmul.bf16.vlgmr.msrb.gmra.mxu0 %v13105_v25  ;;  %v6979_v12 = vadd.f32 %v6978_v49, %v6966_v56  ;;  %v10629_v34 = vld [vmem:[#allocation17 + $0xbf0] sm:$0xf0]  ;;  %v11990_v49 = vld [vmem:[#allocation17 + $0xaa4] sm:$0xf]  ;;  %v10168_v56 = vor.u32 %v11914_v45, %v10165_v13 }
 0x501   : > { %7246 = vmatpush.bf16.msrb.mxu2 %v9928_v18  ;;  %7268 = vmatpush.bf16.msra.mxu0 %v10248_v20  ;;  %v12030_v18 = vld [vmem:[#allocation17 + $0xbe4] sm:$0xf]  ;;  %v10008_v20 = vor.u32 %v11874_v0, %v10005_v1  ;;  %v10472_v0 = vor.u32 %v11990_v49, %v10469_v50  ;;  %v10133_v23 = vld [vmem:[#allocation17 + $0x810] sm:$0xf0] }
 0x502   : > { %7281 = vmatpush.bf16.msra.mxu1 %v10376_v22  ;;  %v10181_v22 = vld [vmem:[#allocation17 + $0x870] sm:$0xf0]  ;;  %v10632_v6 = vor.u32 %v12030_v18, %v10629_v34  ;;  %v11910_v1 = vld [vmem:[#allocation17 + $0x824] sm:$0xf] }
 0x503   : > { %7237 = vmatmul.bf16.vlgmr.msrb.gmra.mxu1 %v13111_v32  ;;  %v6991_v26 = vpop.f32.mrf.mxu2  ;;  %v11986_v43 = vld [vmem:[#allocation17 + $0xa84] sm:$0xf]  ;;  %v10581_v18 = vld [vmem:[#allocation17 + $0xb90] sm:$0xf0] }
 0x504   : > { %7260 = vmatpush.bf16.msrb.mxu3 %v10040_v31  ;;  %v6992_v31 = vadd.f32 %v6991_v26, %v6979_v12  ;;  %v6980_v33 = vpop.f32.mrf.mxu1  ;;  %v10277_v12 = vld [vmem:[#allocation17 + $0x930] sm:$0xf0]  ;;  %v12010_v49 = vld [vmem:[#allocation17 + $0xb44] sm:$0xf] }
 0x505   : > { %7247 = vmatpush.bf16.msrb.mxu2 %v9912_v59  ;;  %7269 = vmatpush.bf16.msra.mxu0 %v10232_v5  ;;  %v10485_v59 = vld [vmem:[#allocation17 + $0xad0] sm:$0xf0]  ;;  %v6967_v5 = vpop.f32.mrf.mxu0  ;;  %v7004_v37 = vpop.f32.mrf.mxu3 }
 0x506   : > { %7282 = vmatpush.bf16.msra.mxu1 %v10360_v36  ;;  %v10184_v36 = vor.u32 %v11918_v11, %v10181_v22  ;;  %v7005_v14 = vadd.f32 %v7004_v37, %v6992_v31  ;;  %v10488_v15 = vor.u32 %v11994_v29, %v10485_v59  ;;  %v10280_v11 = vor.u32 %v11942_v4, %v10277_v12  ;;  %v10261_v26 = vld [vmem:[#allocation17 + $0x910] sm:$0xf0]  ;;  %v11982_v59 = vld [vmem:[#allocation17 + $0xa64] sm:$0xf] }
 0x507   : > { %v10456_v22 = vor.u32 %v11986_v43, %v10453_v60  ;;  %v10437_v31 = vld [vmem:[#allocation17 + $0xa70] sm:$0xf0]  ;;  %v12014_v5 = vld [vmem:[#allocation17 + $0xb64] sm:$0xf] }
 0x508   : > { %7261 = vmatpush.bf16.msrb.mxu3 %v10024_v53  ;;  %v12022_v53 = vld [vmem:[#allocation17 + $0xba4] sm:$0xf]  ;;  %v10565_v33 = vld [vmem:[#allocation17 + $0xb70] sm:$0xf0] }
 0x509   : > { %7248 = vmatpush.bf16.msrb.mxu2 %v9896_v46  ;;  %7270 = vmatpush.bf16.msra.mxu0 %v10216_v54  ;;  %v10616_v46 = vor.u32 %v12026_v40, %v10613_v51  ;;  %v10597_v54 = vld [vmem:[#allocation17 + $0xbb0] sm:$0xf0]  ;;  %v12062_v40 = vld [vmem:[#allocation17 + $0xce4] sm:$0xf]  ;;  %v10568_v45 = vor.u32 %v12014_v5, %v10565_v33 }
 0x50a   : > { %7283 = vmatpush.bf16.msra.mxu1 %v10344_v3  ;;  %v10149_v3 = vld [vmem:[#allocation17 + $0x830] sm:$0xf0]  ;;  %v10600_v8 = vor.u32 %v12022_v53, %v10597_v54  ;;  %v12094_v37 = vld [vmem:[#allocation17 + $0xde4] sm:$0xf] }
 0x50b   : > { %v6993_v10 = vpop.f32.mrf.mxu2  ;;  %v10152_v34 = vor.u32 %v11910_v1, %v10149_v3  ;;  %v10757_v51 = vld [vmem:[#allocation17 + $0xcf0] sm:$0xf0]  ;;  %v12090_v1 = vld [vmem:[#allocation17 + $0xdc4] sm:$0xf] }
 0x50c   : > { %7262 = vmatpush.bf16.msrb.mxu3 %v10008_v20  ;;  %v10760_v13 = vor.u32 %v12062_v40, %v10757_v51  ;;  %v10421_v55 = vld [vmem:[#allocation17 + $0xa50] sm:$0xf0]  ;;  %v11974_v60 = vld [vmem:[#allocation17 + $0xa24] sm:$0xf] }
 0x50d   : > { %7249 = vmatpush.bf16.msrb.mxu2 %v9880_v17  ;;  %7271 = vmatpush.bf16.msra.mxu0 %v10200_v19  ;;  %v7017_v16 = vpop.f32.mrf.mxu0  ;;  %v12018_v17 = vld [vmem:[#allocation17 + $0xb84] sm:$0xf]  ;;  %v7006_v20 = vpop.f32.mrf.mxu3  ;;  %v10869_v3 = vld [vmem:[#allocation17 + $0xdd0] sm:$0xf0] }
 0x50e   : > { %7284 = vmatpush.bf16.msra.mxu1 %v10328_v21  ;;  %v7018_v19 = vadd.f32 %v7017_v16, %v7005_v14  ;;  %v7030_v21 = vpop.f32.mrf.mxu1  ;;  %v10584_v28 = vor.u32 %v12018_v17, %v10581_v18  ;;  %v10405_v16 = vld [vmem:[#allocation17 + $0xa30] sm:$0xf0]  ;;  %v12006_v17 = vld [vmem:[#allocation17 + $0xb24] sm:$0xf] }
 0x50f   : > { %7263 = vmatmul.bf16.vlgmr.msrb.gmra.mxu3 %v13132_v39  ;;  %v10533_v20 = vld [vmem:[#allocation17 + $0xb30] sm:$0xf0]  ;;  %v12050_v33 = vld [vmem:[#allocation17 + $0xc84] sm:$0xf] }
 0x510   : > { %7307 = vmatpush.bf16.msra.mxu3 %v10632_v6  ;;  %7250 = vmatmul.bf16.vlgmr.msrb.gmra.mxu2 %v13130_v38  ;;  %v11938_v6 = vld [vmem:[#allocation17 + $0x904] sm:$0xf]  ;;  %v7031_v29 = vadd.f32 %v7030_v21, %v7018_v19  ;;  %v10725_v21 = vld [vmem:[#allocation17 + $0xcb0] sm:$0xf0] }
 0x511   : > { %7294 = vmatpush.bf16.msra.mxu2 %v10504_v62  ;;  %7272 = vmatpush.bf16.msra.mxu0 %v10184_v36  ;;  %v11906_v62 = vld [vmem:[#allocation17 + $0x804] sm:$0xf]  ;;  %v10264_v14 = vor.u32 %v11938_v6, %v10261_v26  ;;  %v10536_v6 = vor.u32 %v12006_v17, %v10533_v20  ;;  %v10709_v40 = vld [vmem:[#allocation17 + $0xc90] sm:$0xf0] }
 0x512   : > { %7285 = vmatpush.bf16.msra.mxu1 %v10312_v41  ;;  %v10136_v36 = vor.u32 %v11906_v62, %v10133_v23  ;;  %v10885_v41 = vld [vmem:[#allocation17 + $0xdf0] sm:$0xf0]  ;;  %v12054_v19 = vld [vmem:[#allocation17 + $0xca4] sm:$0xf] }
 0x513   : > { %v7043_v42 = vpop.f32.mrf.mxu2  ;;  %v10888_v50 = vor.u32 %v12094_v37, %v10885_v41  ;;  %v12086_v62 = vld [vmem:[#allocation17 + $0xda4] sm:$0xf]  ;;  %v10728_v26 = vor.u32 %v12054_v19, %v10725_v21  ;;  %v10837_v37 = vld [vmem:[#allocation17 + $0xd90] sm:$0xf0] }
 0x514   : > { %7308 = vmatpush.bf16.msra.mxu3 %v10616_v46  ;;  %v11978_v46 = vld [vmem:[#allocation17 + $0xa44] sm:$0xf]  ;;  %v7044_v53 = vadd.f32 %v7043_v42, %v7031_v29  ;;  %v11141_v42 = vld [vmem:[#allocation17 + $0xff0] sm:$0xf0] }
 0x515   : > { %7295 = vmatpush.bf16.msra.mxu2 %v10488_v15  ;;  %7273 = vmatpush.bf16.msra.mxu0 %v10168_v56  ;;  %v10440_v15 = vor.u32 %v11982_v59, %v10437_v31  ;;  %v7019_v54 = vpop.f32.mrf.mxu0  ;;  %v10549_v56 = vld [vmem:[#allocation17 + $0xb50] sm:$0xf0]  ;;  %v7056_v10 = vpop.f32.mrf.mxu3  ;;  %v11970_v23 = vld [vmem:[#allocation17 + $0xa04] sm:$0xf] }
 0x516   : > { %7286 = vmatpush.bf16.msra.mxu1 %v10296_v58  ;;  %v12058_v58 = vld [vmem:[#allocation17 + $0xcc4] sm:$0xf]  ;;  %v7032_v4 = vpop.f32.mrf.mxu1  ;;  %v10552_v12 = vor.u32 %v12010_v49, %v10549_v56  ;;  %v7057_v18 = vadd.f32 %v7056_v10, %v7044_v53  ;;  %v10517_v59 = vld [vmem:[#allocation17 + $0xb10] sm:$0xf0]  ;;  %v10712_v49 = vor.u32 %v12050_v33, %v10709_v40 }
 0x517   : > { %v12002_v29 = vld [vmem:[#allocation17 + $0xb04] sm:$0xf]  ;;  %v10821_v4 = vld [vmem:[#allocation17 + $0xd70] sm:$0xf0] }
 0x518   : > { %7309 = vmatpush.bf16.msra.mxu3 %v10600_v8  ;;  %v10424_v8 = vor.u32 %v11978_v46, %v10421_v55  ;;  %v12082_v51 = vld [vmem:[#allocation17 + $0xd84] sm:$0xf]  ;;  %v10520_v55 = vor.u32 %v12002_v29, %v10517_v59  ;;  %v10997_v10 = vld [vmem:[#allocation17 + $0xed0] sm:$0xf0] }
 0x519   : > { %7296 = vmatpush.bf16.msra.mxu2 %v10472_v0  ;;  %7274 = vmatpush.bf16.msra.mxu0 %v10152_v34  ;;  %v10741_v0 = vld [vmem:[#allocation17 + $0xcd0] sm:$0xf0]  ;;  %v10872_v34 = vor.u32 %v12090_v1, %v10869_v3  ;;  %v12126_v41 = vld [vmem:[#allocation17 + $0xee4] sm:$0xf]  ;;  %v10840_v53 = vor.u32 %v12082_v51, %v10837_v37 }
 0x51a   : > { %7287 = vmatpush.bf16.msra.mxu1 %v10280_v11  ;;  %v10744_v43 = vor.u32 %v12058_v58, %v10741_v0  ;;  %v10853_v11 = vld [vmem:[#allocation17 + $0xdb0] sm:$0xf0]  ;;  %v12046_v58 = vld [vmem:[#allocation17 + $0xc64] sm:$0xf] }
 0x51b   : > { %v7045_v31 = vpop.f32.mrf.mxu2  ;;  %v10856_v5 = vor.u32 %v12086_v62, %v10853_v11  ;;  %v10693_v0 = vld [vmem:[#allocation17 + $0xc70] sm:$0xf0]  ;;  %v12078_v1 = vld [vmem:[#allocation17 + $0xd64] sm:$0xf] }
 0x51c   : > { %7310 = vmatpush.bf16.msra.mxu3 %v10584_v28  ;;  %v10389_v28 = vld [vmem:[#allocation17 + $0xa10] sm:$0xf0]  ;;  %v12074_v20 = vld [vmem:[#allocation17 + $0xd44] sm:$0xf] }
 0x51d   : > { %7297 = vmatpush.bf16.msra.mxu2 %v10456_v22  ;;  %7275 = vmatpush.bf16.msra.mxu0 %v10136_v36  ;;  %v10408_v22 = vor.u32 %v11974_v60, %v10405_v16  ;;  %v7069_v36 = vpop.f32.mrf.mxu0  ;;  %v10696_v60 = vor.u32 %v12046_v58, %v10693_v0  ;;  %v10824_v16 = vor.u32 %v12078_v1, %v10821_v4  ;;  %v10805_v21 = vld [vmem:[#allocation17 + $0xd50] sm:$0xf0]  ;;  %v12118_v62 = vld [vmem:[#allocation17 + $0xea4] sm:$0xf] }
 0x51e   : > { %7288 = vmatpush.bf16.msra.mxu1 %v10264_v14  ;;  %v11013_v14 = vld [vmem:[#allocation17 + $0xef0] sm:$0xf0]  ;;  %v10808_v29 = vor.u32 %v12074_v20, %v10805_v21  ;;  %v12038_v31 = vld [vmem:[#allocation17 + $0xc24] sm:$0xf] }
 0x51f   : > { %v11016_v54 = vor.u32 %v12126_v41, %v11013_v14  ;;  %v10981_v11 = vld [vmem:[#allocation17 + $0xeb0] sm:$0xf0]  ;;  %v12070_v33 = vld [vmem:[#allocation17 + $0xd24] sm:$0xf] }
 0x520   : > { %7311 = vmatpush.bf16.msra.mxu3 %v10568_v45  ;;  %7276 = vmatmul.bf16.vlgmr.msra.gmra.mxu0 %v13128_v35  ;;  %v10392_v45 = vor.u32 %v11970_v23, %v10389_v28  ;;  %v7082_v46 = vpop.f32.mrf.mxu1  ;;  %v12150_v23 = vld [vmem:[#allocation17 + $0xfa4] sm:$0xf]  ;;  %v10984_v59 = vor.u32 %v12118_v62, %v10981_v11  ;;  %v10789_v51 = vld [vmem:[#allocation17 + $0xd30] sm:$0xf0] }
 0x521   : > { %7298 = vmatpush.bf16.msra.mxu2 %v10440_v15  ;;  %7320 = vmatpush.bf16.msrb.mxu0 %v10760_v13  ;;  %v7070_v15 = vadd.f32 %v7069_v36, %v7057_v18  ;;  %v12158_v13 = vld [vmem:[#allocation17 + $0xfe4] sm:$0xf]  ;;  %v10965_v37 = vld [vmem:[#allocation17 + $0xe90] sm:$0xf0] }
 0x522   : > { %7333 = vmatpush.bf16.msrb.mxu1 %v10888_v50  ;;  %v7058_v50 = vpop.f32.mrf.mxu3  ;;  %v11144_v3 = vor.u32 %v12158_v13, %v11141_v42  ;;  %v12042_v18 = vld [vmem:[#allocation17 + $0xc44] sm:$0xf]  ;;  %v11093_v14 = vld [vmem:[#allocation17 + $0xf90] sm:$0xf0]  ;;  %v10792_v13 = vor.u32 %v12070_v33, %v10789_v51 }
 0x523   : > { %7289 = vmatmul.bf16.vlgmr.msra.gmra.mxu1 %v13135_v52  ;;  %v13186_v56 = vadd.f32 %v7082_v46, %v7070_v15  ;;  %v12114_v36 = vld [vmem:[#allocation17 + $0xe84] sm:$0xf]  ;;  %v10645_v46 = vld [vmem:[#allocation17 + $0xc10] sm:$0xf0] }
 0x524   : > { %7312 = vmatpush.bf16.msra.mxu3 %v10552_v12  ;;  %v12154_v12 = vld [vmem:[#allocation17 + $0xfc4] sm:$0xf]  ;;  %v10968_v42 = vor.u32 %v12114_v36, %v10965_v37  ;;  %v11077_v0 = vld [vmem:[#allocation17 + $0xf70] sm:$0xf0] }
 0x525   : > { %7299 = vmatpush.bf16.msra.mxu2 %v10424_v8  ;;  %7321 = vmatpush.bf16.msrb.mxu0 %v10744_v43  ;;  %v12122_v8 = vld [vmem:[#allocation17 + $0xec4] sm:$0xf]  ;;  %v11125_v43 = vld [vmem:[#allocation17 + $0xfd0] sm:$0xf0] }
 0x526   : > { %7334 = vmatpush.bf16.msrb.mxu1 %v10872_v34  ;;  %v11000_v17 = vor.u32 %v12122_v8, %v10997_v10  ;;  %v10677_v34 = vld [vmem:[#allocation17 + $0xc50] sm:$0xf0]  ;;  %v11128_v19 = vor.u32 %v12154_v12, %v11125_v43  ;;  %v12146_v41 = vld [vmem:[#allocation17 + $0xf84] sm:$0xf] }
 0x527   : > { %v10680_v28 = vor.u32 %v12042_v18, %v10677_v34  ;;  %v11096_v50 = vor.u32 %v12146_v41, %v11093_v14  ;;  %v12142_v58 = vld [vmem:[#allocation17 + $0xf64] sm:$0xf]  ;;  %v11397_v10 = vld [vmem:[#allocation17 + $0x11f0] sm:$0xf0] }
 0x528   : > { %7313 = vmatpush.bf16.msra.mxu3 %v10536_v6  ;;  %v11109_v6 = vld [vmem:[#allocation17 + $0xfb0] sm:$0xf0]  ;;  %v12190_v1 = vld [vmem:[#allocation17 + $0x10e4] sm:$0xf] }
 0x529   : > { %7300 = vmatpush.bf16.msra.mxu2 %v10408_v22  ;;  %7322 = vmatpush.bf16.msrb.mxu0 %v10728_v26  ;;  %v7071_v22 = vpop.f32.mrf.mxu0  ;;  %v7084_v26 = vpop.f32.mrf.mxu1  ;;  %v11112_v40 = vor.u32 %v12150_v23, %v11109_v6  ;;  %v12222_v8 = vld [vmem:[#allocation17 + $0x11e4] sm:$0xf]  ;;  %v11061_v11 = vld [vmem:[#allocation17 + $0xf50] sm:$0xf0] }
 0x52a   : > { %7335 = vmatpush.bf16.msrb.mxu1 %v10856_v5  ;;  %v10661_v5 = vld [vmem:[#allocation17 + $0xc30] sm:$0xf0]  ;;  %v12106_v20 = vld [vmem:[#allocation17 + $0xe44] sm:$0xf]  ;;  %v11400_v62 = vor.u32 %v12222_v8, %v11397_v10  ;;  %v9227_v8 = vld [vmem:[#allocation17 + $0xe8] sm:$0xf] }
 0x52b   : > { %v10664_v15 = vor.u32 %v12038_v31, %v10661_v5  ;;  %v12138_v21 = vld [vmem:[#allocation17 + $0xf44] sm:$0xf]  ;;  %v11253_v23 = vld [vmem:[#allocation17 + $0x10d0] sm:$0xf0]  ;;  %v11681_v10 = vld [vmem:[#allocation17 + $0xf4] sm:$0xf0] }
 0x52c   : > { %7314 = vmatpush.bf16.msra.mxu3 %v10520_v55  ;;  %v12066_v55 = vld [vmem:[#allocation17 + $0xd04] sm:$0xf]  ;;  %v10917_v5 = vld [vmem:[#allocation17 + $0xe30] sm:$0xf0] }
 0x52d   : > { %7301 = vmatpush.bf16.msra.mxu2 %v10392_v45  ;;  %7323 = vmatpush.bf16.msrb.mxu0 %v10712_v49  ;;  %v12034_v45 = vld [vmem:[#allocation17 + $0xc04] sm:$0xf]  ;;  %v10773_v49 = vld [vmem:[#allocation17 + $0xd10] sm:$0xf0] }
 0x52e   : > { %7336 = vmatpush.bf16.msrb.mxu1 %v10840_v53  ;;  %v12110_v53 = vld [vmem:[#allocation17 + $0xe64] sm:$0xf]  ;;  %v10648_v4 = vor.u32 %v12034_v45, %v10645_v46  ;;  %v10776_v12 = vor.u32 %v12066_v55, %v10773_v49  ;;  %v11045_v51 = vld [vmem:[#allocation17 + $0xf30] sm:$0xf0] }
 0x52f   : > { %7315 = vmatmul.bf16.vlgmr.msra.gmra.mxu3 %v13145_v30  ;;  %v12186_v22 = vld [vmem:[#allocation17 + $0x10c4] sm:$0xf]  ;;  %v11237_v37 = vld [vmem:[#allocation17 + $0x10b0] sm:$0xf0] }
 0x530   : > { %7359 = vmatpush.bf16.msrb.mxu3 %v11144_v3  ;;  %7302 = vmatmul.bf16.vlgmr.msra.gmra.mxu2 %v13143_v57  ;;  %v11269_v3 = vld [vmem:[#allocation17 + $0x10f0] sm:$0xf0]  ;;  %v12218_v26 = vld [vmem:[#allocation17 + $0x11c4] sm:$0xf]  ;;  %v11256_v31 = vor.u32 %v12186_v22, %v11253_v23 }
 0x531   : > { %7346 = vmatpush.bf16.msrb.mxu2 %v11016_v54  ;;  %7324 = vmatpush.bf16.msrb.mxu0 %v10696_v60  ;;  %v10949_v54 = vld [vmem:[#allocation17 + $0xe70] sm:$0xf0]  ;;  %v12134_v33 = vld [vmem:[#allocation17 + $0xf24] sm:$0xf] }
 0x532   : > { %7337 = vmatpush.bf16.msrb.mxu1 %v10824_v16  ;;  %v10952_v43 = vor.u32 %v12110_v53, %v10949_v54  ;;  %v11080_v16 = vor.u32 %v12142_v58, %v11077_v0  ;;  %v7108_v34 = vpop.f32.mrf.mxu3  ;;  %v12182_v36 = vld [vmem:[#allocation17 + $0x10a4] sm:$0xf]  ;;  %v11365_v14 = vld [vmem:[#allocation17 + $0x11b0] sm:$0xf0] }
 0x533   : > { %v7095_v60 = vpop.f32.mrf.mxu2  ;;  %v12214_v41 = vld [vmem:[#allocation17 + $0x11a4] sm:$0xf]  ;;  %v11240_v46 = vor.u32 %v12182_v36, %v11237_v37  ;;  %v10901_v55 = vld [vmem:[#allocation17 + $0xe10] sm:$0xf0] }
 0x534   : > { %7360 = vmatpush.bf16.msrb.mxu3 %v11128_v19  ;;  %v7096_v18 = vadd.f32 %v7095_v60, %v13186_v56  ;;  %v10933_v19 = vld [vmem:[#allocation17 + $0xe50] sm:$0xf0]  ;;  %v12102_v56 = vld [vmem:[#allocation17 + $0xe24] sm:$0xf]  ;;  %v11368_v54 = vor.u32 %v12214_v41, %v11365_v14  ;;  %v9195_v41 = vld [vmem:[#allocation17 + $0xa8] sm:$0xf] }
 0x535   : > { %7347 = vmatpush.bf16.msrb.mxu2 %v11000_v17  ;;  %7325 = vmatpush.bf16.msrb.mxu0 %v10680_v28  ;;  %v11272_v17 = vor.u32 %v12190_v1, %v11269_v3  ;;  %v11381_v28 = vld [vmem:[#allocation17 + $0x11d0] sm:$0xf0]  ;;  %v12098_v45 = vld [vmem:[#allocation17 + $0xe04] sm:$0xf]  ;;  %v11673_v14 = vld [vmem:[#allocation17 + $0xb4] sm:$0xf0] }
 0x536   : > { %7338 = vmatpush.bf16.msrb.mxu1 %v10808_v29  ;;  %v7109_v6 = vadd.f32 %v7108_v34, %v7096_v18  ;;  %v10936_v29 = vor.u32 %v12106_v20, %v10933_v19  ;;  %v12130_v49 = vld [vmem:[#allocation17 + $0xf04] sm:$0xf]  ;;  %v11221_v0 = vld [vmem:[#allocation17 + $0x1090] sm:$0xf0] }
 0x537   : > { %v12178_v58 = vld [vmem:[#allocation17 + $0x1084] sm:$0xf]  ;;  %v11317_v37 = vld [vmem:[#allocation17 + $0x1150] sm:$0xf0] }
 0x538   : > { %7361 = vmatpush.bf16.msrb.mxu3 %v11112_v40  ;;  %v11384_v40 = vor.u32 %v12218_v26, %v11381_v28  ;;  %v12210_v1 = vld [vmem:[#allocation17 + $0x1184] sm:$0xf]  ;;  %v11224_v34 = vor.u32 %v12178_v58, %v11221_v0  ;;  %v11333_v26 = vld [vmem:[#allocation17 + $0x1170] sm:$0xf0]  ;;  %v9211_v28 = vld [vmem:[#allocation17 + $0xc8] sm:$0xf] }
 0x539   : > { %7348 = vmatpush.bf16.msrb.mxu2 %v10984_v59  ;;  %7326 = vmatpush.bf16.msrb.mxu0 %v10664_v15  ;;  %v11064_v59 = vor.u32 %v12138_v21, %v11061_v11  ;;  %v10920_v15 = vor.u32 %v12102_v56, %v10917_v5  ;;  %v9228_v21 = vor.u32 %v11681_v10, %v9227_v8  ;;  %v11205_v11 = vld [vmem:[#allocation17 + $0x1070] sm:$0xf0]  ;;  %v12206_v22 = vld [vmem:[#allocation17 + $0x1164] sm:$0xf]  ;;  %v11701_v8 = vld [vmem:[#allocation17 + $0x194] sm:$0xf0] }
 0x53a   : > { %7339 = vmatpush.bf16.msrb.mxu1 %v10792_v13  ;;  %v7110_v53 = vpop.f32.mrf.mxu3  ;;  %v11336_v56 = vor.u32 %v12206_v22, %v11333_v26  ;;  %v11301_v0 = vld [vmem:[#allocation17 + $0x1130] sm:$0xf0]  ;;  %v9483_v22 = vld [vmem:[#allocation17 + $0x2e8] sm:$0xf] }
 0x53b   : > { %v7097_v13 = vpop.f32.mrf.mxu2  ;;  %v11173_v53 = vld [vmem:[#allocation17 + $0x1030] sm:$0xf0] }
 0x53c   : > { %7362 = vmatpush.bf16.msrb.mxu3 %v11096_v50  ;;  %v11029_v50 = vld [vmem:[#allocation17 + $0xf10] sm:$0xf0]  ;;  %v11705_v13 = vld [vmem:[#allocation17 + $0x1b4] sm:$0xf0] }
 0x53d   : > { %7349 = vmatpush.bf16.msrb.mxu2 %v10968_v42  ;;  %7327 = vmatpush.bf16.msrb.mxu0 %v10648_v4  ;;  %v11048_v42 = vor.u32 %v12134_v33, %v11045_v51  ;;  %v7121_v3 = vpop.f32.mrf.mxu0  ;;  %v11349_v4 = vld [vmem:[#allocation17 + $0x1190] sm:$0xf0]  ;;  %v11032_v18 = vor.u32 %v12130_v49, %v11029_v50  ;;  %v12170_v33 = vld [vmem:[#allocation17 + $0x1044] sm:$0xf]  ;;  %v9196_v49 = vor.u32 %v11673_v14, %v9195_v41  ;;  %v11693_v14 = vld [vmem:[#allocation17 + $0x154] sm:$0xf0] }
 0x53e   : > { %7340 = vmatpush.bf16.msrb.mxu1 %v10776_v12  ;;  %v7122_v12 = vadd.f32 %v7121_v3, %v7109_v6  ;;  %v11352_v20 = vor.u32 %v12210_v1, %v11349_v4  ;;  %v11677_v6 = vld [vmem:[#allocation17 + $0xd4] sm:$0xf0]  ;;  %v12202_v51 = vld [vmem:[#allocation17 + $0x1144] sm:$0xf]  ;;  %v9179_v1 = vld [vmem:[#allocation17 + $0x88] sm:$0xf] }
 0x53f   : > { %v9212_v5 = vor.u32 %v11677_v6, %v9211_v28  ;;  %v12166_v50 = vld [vmem:[#allocation17 + $0x1024] sm:$0xf]  ;;  %v11669_v3 = vld [vmem:[#allocation17 + $0x94] sm:$0xf0]  ;;  %v9307_v4 = vld [vmem:[#allocation17 + $0x188] sm:$0xf] }
 0x540   : > { %7363 = vmatpush.bf16.msrb.mxu3 %v11080_v16  ;;  %7328 = vmatmul.bf16.vlgmr.msrb.gmra.mxu0 %v13155_v44  ;;  %v7134_v60 = vpop.f32.mrf.mxu1  ;;  %v9355_v16 = vld [vmem:[#allocation17 + $0x1e8] sm:$0xf]  ;;  %v11176_v10 = vor.u32 %v12166_v50, %v11173_v53  ;;  %v11777_v6 = vld [vmem:[#allocation17 + $0x3f4] sm:$0xf0] }
 0x541   : > { %7350 = vmatpush.bf16.msrb.mxu2 %v10952_v43  ;;  %7372 = vmatpush.bf16.msra.mxu0 %v11272_v17  ;;  %v10904_v43 = vor.u32 %v12098_v45, %v10901_v55  ;;  %v11713_v17 = vld [vmem:[#allocation17 + $0x1f4] sm:$0xf0]  ;;  %v13193_v19 = vadd.f32 %v7134_v60, %v7122_v12  ;;  %v9323_v45 = vld [vmem:[#allocation17 + $0x1a8] sm:$0xf]  ;;  %v11320_v55 = vor.u32 %v12202_v51, %v11317_v37  ;;  %v12162_v12 = vld [vmem:[#allocation17 + $0x1004] sm:$0xf] }
 0x542   : > { %7385 = vmatpush.bf16.msra.mxu1 %v11400_v62  ;;  %v12174_v62 = vld [vmem:[#allocation17 + $0x1064] sm:$0xf]  ;;  %v9356_v23 = vor.u32 %v11713_v17, %v9355_v16  ;;  %v9324_v58 = vor.u32 %v11705_v13, %v9323_v45  ;;  %v9180_v60 = vor.u32 %v11669_v3, %v9179_v1  ;;  %v11157_v16 = vld [vmem:[#allocation17 + $0x1010] sm:$0xf0]  ;;  %v9611_v28 = vld [vmem:[#allocation17 + $0x3e8] sm:$0xf] }
 0x543   : > { %7341 = vmatmul.bf16.vlgmr.msrb.gmra.mxu1 %v13157_v63  ;;  %v12194_v17 = vld [vmem:[#allocation17 + $0x1104] sm:$0xf]  ;;  %v11160_v26 = vor.u32 %v12162_v12, %v11157_v16  ;;  %v9147_v51 = vld [vmem:[#allocation17 + $0x48] sm:$0xf]  ;;  %v9612_v41 = vor.u32 %v11777_v6, %v9611_v28  ;;  %v11741_v45 = vld [vmem:[#allocation17 + $0x2d4] sm:$0xf0] }
 0x544   : > { %7364 = vmatpush.bf16.msrb.mxu3 %v11064_v59  ;;  %v11709_v59 = vld [vmem:[#allocation17 + $0x1d4] sm:$0xf0]  ;;  %v9275_v37 = vld [vmem:[#allocation17 + $0x148] sm:$0xf]  ;;  %v12367_v12 = vld [vmem:[#allocation19] sm:$0xf] }
 0x545   : > { %7351 = vmatpush.bf16.msrb.mxu2 %v10936_v29  ;;  %7373 = vmatpush.bf16.msra.mxu0 %v11256_v31  ;;  %v9339_v29 = vld [vmem:[#allocation17 + $0x1c8] sm:$0xf]  ;;  %v11208_v31 = vor.u32 %v12174_v62, %v11205_v11  ;;  %v11697_v11 = vld [vmem:[#allocation17 + $0x174] sm:$0xf0] }
 0x546   : > { %7386 = vmatpush.bf16.msra.mxu1 %v11384_v40  ;;  %v11189_v40 = vld [vmem:[#allocation17 + $0x1050] sm:$0xf0]  ;;  %v9340_v36 = vor.u32 %v11709_v59, %v9339_v29  ;;  %v9291_v62 = vld [vmem:[#allocation17 + $0x168] sm:$0xf]  ;;  %v11657_v53 = vld [vmem:[#allocation17 + $0x34] sm:$0xf0] }
 0x547   : > { %v9131_v50 = vld [vmem:[#allocation17 + $0x28] sm:$0xf]  ;;  %v11737_v3 = vld [vmem:[#allocation17 + $0x2b4] sm:$0xf0] }
 0x548   : > { %7365 = vmatpush.bf16.msrb.mxu3 %v11048_v42  ;;  %v7136_v42 = vpop.f32.mrf.mxu1  ;;  %v9451_v1 = vld [vmem:[#allocation17 + $0x2a8] sm:$0xf]  ;;  %v11765_v6 = vld [vmem:[#allocation17 + $0x394] sm:$0xf0] }
 0x549   : > { %7352 = vmatpush.bf16.msrb.mxu2 %v10920_v15  ;;  %7374 = vmatpush.bf16.msra.mxu0 %v11240_v46  ;;  %v7123_v15 = vpop.f32.mrf.mxu0  ;;  %v11192_v46 = vor.u32 %v12170_v33, %v11189_v40  ;;  %v9595_v42 = vld [vmem:[#allocation17 + $0x3c8] sm:$0xf] }
 0x54a   : > { %7387 = vmatpush.bf16.msra.mxu1 %v11368_v54  ;;  %v12198_v54 = vld [vmem:[#allocation17 + $0x1124] sm:$0xf]  ;;  %v9467_v15 = vld [vmem:[#allocation17 + $0x2c8] sm:$0xf] }
 0x54c   : > { %7366 = vmatpush.bf16.msrb.mxu3 %v11032_v18  ;;  %v11285_v18 = vld [vmem:[#allocation17 + $0x1110] sm:$0xf0] }
 0x54d   : > { %7353 = vmatpush.bf16.msrb.mxu2 %v10904_v43  ;;  %7375 = vmatpush.bf16.msra.mxu0 %v11224_v34  ;;  %v11304_v43 = vor.u32 %v12198_v54, %v11301_v0  ;;  %v9308_v34 = vor.u32 %v11701_v8, %v9307_v4  ;;  %v11288_v29 = vor.u32 %v12194_v17, %v11285_v18  ;;  %v9259_v54 = vld [vmem:[#allocation17 + $0x128] sm:$0xf]  ;;  %v11689_v0 = vld [vmem:[#allocation17 + $0x134] sm:$0xf0] }
 0x54e   : > { %7388 = vmatpush.bf16.msra.mxu1 %v11352_v20  ;;  %v9163_v20 = vld [vmem:[#allocation17 + $0x68] sm:$0xf]  ;;  %v11769_v8 = vld [vmem:[#allocation17 + $0x3b4] sm:$0xf0]  ;;  %v9260_v17 = vor.u32 %v11689_v0, %v9259_v54  ;;  %v9452_v18 = vor.u32 %v11737_v3, %v9451_v1 }
 0x54f   : > { %7367 = vmatmul.bf16.vlgmr.msrb.gmra.mxu3 %v13164_v9  ;;  %v9579_v4 = vld [vmem:[#allocation17 + $0x3a8] sm:$0xf]  ;;  %v11725_v3 = vld [vmem:[#allocation17 + $0x254] sm:$0xf0] }
 0x550   : > { %7411 = vmatpush.bf16.msra.mxu3 %v9356_v23  ;;  %7354 = vmatmul.bf16.vlgmr.msrb.gmra.mxu2 %v13162_v2  ;;  %v11745_v23 = vld [vmem:[#allocation17 + $0x2f4] sm:$0xf0]  ;;  %v9403_v1 = vld [vmem:[#allocation17 + $0x248] sm:$0xf] }
 0x551   : > { %7398 = vmatpush.bf16.msra.mxu2 %v9228_v21  ;;  %7376 = vmatpush.bf16.msra.mxu0 %v11208_v31  ;;  %v11665_v21 = vld [vmem:[#allocation17 + $0x74] sm:$0xf0] }
 0x552   : > { %7389 = vmatpush.bf16.msra.mxu1 %v11336_v56  ;;  %v9164_v59 = vor.u32 %v11665_v21, %v9163_v20  ;;  %v9292_v56 = vor.u32 %v11697_v11, %v9291_v62  ;;  %v7160_v40 = vpop.f32.mrf.mxu3  ;;  %v9243_v20 = vld [vmem:[#allocation17 + $0x108] sm:$0xf]  ;;  %v11685_v21 = vld [vmem:[#allocation17 + $0x114] sm:$0xf0]  ;;  %v9580_v11 = vor.u32 %v11769_v8, %v9579_v4 }
 0x553   : > { %v7147_v31 = vpop.f32.mrf.mxu2  ;;  %v9531_v4 = vld [vmem:[#allocation17 + $0x348] sm:$0xf] }
 0x554   : > { %7412 = vmatpush.bf16.msra.mxu3 %v9340_v36  ;;  %v7148_v33 = vadd.f32 %v7147_v31, %v13193_v19  ;;  %v11661_v36 = vld [vmem:[#allocation17 + $0x54] sm:$0xf0]  ;;  %v9468_v19 = vor.u32 %v11741_v45, %v9467_v15  ;;  %v9419_v15 = vld [vmem:[#allocation17 + $0x268] sm:$0xf] }
 0x555   : > { %7399 = vmatpush.bf16.msra.mxu2 %v9212_v5  ;;  %7377 = vmatpush.bf16.msra.mxu0 %v11192_v46  ;;  %v9484_v5 = vor.u32 %v11745_v23, %v9483_v22  ;;  %v11773_v46 = vld [vmem:[#allocation17 + $0x3d4] sm:$0xf0]  ;;  %v9435_v22 = vld [vmem:[#allocation17 + $0x288] sm:$0xf] }
 0x556   : > { %7390 = vmatpush.bf16.msra.mxu1 %v11320_v55  ;;  %v13198_v13 = vadd.f32 %v7160_v40, %v7148_v33  ;;  %v9148_v55 = vor.u32 %v11661_v36, %v9147_v51  ;;  %v11733_v23 = vld [vmem:[#allocation17 + $0x294] sm:$0xf0]  ;;  %v9867_v33 = vld [vmem:[#allocation17 + $0x5e8] sm:$0xf]  ;;  %v9244_v51 = vor.u32 %v11685_v21, %v9243_v20 }
 0x557   : > { %v11841_v40 = vld [vmem:[#allocation17 + $0x5f4] sm:$0xf0]  ;;  %v9436_v36 = vor.u32 %v11733_v23, %v9435_v22  ;;  %v9515_v22 = vld [vmem:[#allocation17 + $0x328] sm:$0xf] }
 0x558   : > { %7413 = vmatpush.bf16.msra.mxu3 %v9324_v58  ;;  %v9596_v58 = vor.u32 %v11773_v46, %v9595_v42  ;;  %v11729_v45 = vld [vmem:[#allocation17 + $0x274] sm:$0xf0]  ;;  %v9547_v42 = vld [vmem:[#allocation17 + $0x368] sm:$0xf]  ;;  %v9868_v46 = vor.u32 %v11841_v40, %v9867_v33  ;;  %vm7866_vm0 = vcmp.ge.f32.partialorder %v13198_v13, 0.0 }
 0x559   : > { %7400 = vmatpush.bf16.msra.mxu2 %v9196_v49  ;;  %7378 = vmatpush.bf16.msra.mxu0 %v11176_v10  ;;  %v9276_v49 = vor.u32 %v11693_v14, %v9275_v37  ;;  %v9132_v10 = vor.u32 %v11657_v53, %v9131_v50  ;;  %v9851_v50 = vld [vmem:[#allocation17 + $0x5c8] sm:$0xf]  ;;  %v11837_v53 = vld [vmem:[#allocation17 + $0x5d4] sm:$0xf0]  ;;  %v9420_v54 = vor.u32 %v11729_v45, %v9419_v15 }
 0x55a   : > { %7391 = vmatpush.bf16.msra.mxu1 %v11304_v43  ;;  %v4043_v43 = vperm.slane %v12367_v12, 1  ;;  %v7162_v62 = vpop.f32.mrf.mxu3  ;;  %v9852_v8 = vor.u32 %v11837_v53, %v9851_v50  ;;  %v11757_v12 = vld [vmem:[#allocation17 + $0x354] sm:$0xf0]  ;;  %v9803_v45 = vld [vmem:[#allocation17 + $0x568] sm:$0xf] }
 0x55b   : > { %v7149_v16 = vpop.f32.mrf.mxu2  ;;  %v9532_v20 = vor.u32 %v11757_v12, %v9531_v4  ;;  %v9387_v62 = vld [vmem:[#allocation17 + $0x228] sm:$0xf]  ;;  %v11717_v40 = vld [vmem:[#allocation17 + $0x214] sm:$0xf0] }
 0x55c   : > { %7414 = vmatpush.bf16.msra.mxu3 %v9308_v34  ;;  %v11653_v34 = vld [vmem:[#allocation17 + $0x14] sm:$0xf0]  ;;  %v9787_v12 = vld [vmem:[#allocation17 + $0x548] sm:$0xf] }
 0x55d   : > { %7401 = vmatpush.bf16.msra.mxu2 %v9180_v60  ;;  %7379 = vmatpush.bf16.msra.mxu0 %v11160_v26  ;;  %v9115_v60 = vld [vmem:[#allocation17 + $0x8] sm:$0xf]  ;;  %v7173_v28 = vpop.f32.mrf.mxu0  ;;  %v11793_v15 = vld [vmem:[#allocation17 + $0x474] sm:$0xf0] }
 0x55e   : > { %7392 = vmatpush.bf16.msra.mxu1 %v11288_v29  ;;  %v9563_v26 = vld [vmem:[#allocation17 + $0x388] sm:$0xf]  ;;  %v7174_v31 = vadd.f32 %v7173_v28, %v4043_v43  ;;  %v11905_v50 = vld [vmem:[#allocation17 + $0x7f4] sm:$0xf0] }
 0x55f   : > { %v9739_v29 = vld [vmem:[#allocation17 + $0x4e8] sm:$0xf] }
 0x560   : > { %7415 = vmatpush.bf16.msra.mxu3 %v9292_v56  ;;  %7380 = vmatmul.bf16.vlgmr.msra.gmra.mxu0 %v13170_v61  ;;  %v7186_v56 = vpop.f32.mrf.mxu1  ;;  %v9707_v43 = vld [vmem:[#allocation17 + $0x4a8] sm:$0xf] }
 0x561   : > { %7402 = vmatpush.bf16.msra.mxu2 %v9164_v59  ;;  %7424 = vmatpush.bf16.msrb.mxu0 %v9484_v5  ;;  %v11809_v59 = vld [vmem:[#allocation17 + $0x4f4] sm:$0xf0]  ;;  %v9116_v5 = vor.u32 %v11653_v34, %v9115_v60  ;;  %v13202_v37 = vadd.f32 %v7186_v56, %v7174_v31  ;;  %v9404_v34 = vor.u32 %v11725_v3, %v9403_v1  ;;  %v9691_v28 = vld [vmem:[#allocation17 + $0x488] sm:$0xf] }
 0x562   : > { %7437 = vmatpush.bf16.msrb.mxu1 %v9612_v41  ;;  %v9564_v41 = vor.u32 %v11765_v6, %v9563_v26  ;;  %v9740_v14 = vor.u32 %v11809_v59, %v9739_v29  ;;  %v11801_v60 = vld [vmem:[#allocation17 + $0x4b4] sm:$0xf0]  ;;  %v9819_v29 = vld [vmem:[#allocation17 + $0x588] sm:$0xf] }
 0x563   : > { %7393 = vmatmul.bf16.vlgmr.msra.gmra.mxu1 %v13172_v7  ;;  %v9708_v21 = vor.u32 %v11801_v60, %v9707_v43  ;;  %v11753_v26 = vld [vmem:[#allocation17 + $0x334] sm:$0xf0]  ;;  %v9371_v56 = vld [vmem:[#allocation17 + $0x208] sm:$0xf] }
 0x564   : > { %7416 = vmatpush.bf16.msra.mxu3 %v9276_v49  ;;  %v9723_v49 = vld [vmem:[#allocation17 + $0x4c8] sm:$0xf]  ;;  %v11797_v6 = vld [vmem:[#allocation17 + $0x494] sm:$0xf0] }
 0x565   : > { %7403 = vmatpush.bf16.msra.mxu2 %v9148_v55  ;;  %7425 = vmatpush.bf16.msrb.mxu0 %v9468_v19  ;;  %v11761_v55 = vld [vmem:[#allocation17 + $0x374] sm:$0xf0]  ;;  %v9692_v33 = vor.u32 %v11797_v6, %v9691_v28  ;;  %v9963_v6 = vld [vmem:[#allocation17 + $0x6a8] sm:$0xf] }
 0x566   : > { %7438 = vmatpush.bf16.msrb.mxu1 %v9596_v58  ;;  %v11805_v19 = vld [vmem:[#allocation17 + $0x4d4] sm:$0xf0]  ;;  %v9548_v58 = vor.u32 %v11761_v55, %v9547_v42 }
 0x567   : > { %v9724_v0 = vor.u32 %v11805_v19, %v9723_v49  ;;  %v11829_v59 = vld [vmem:[#allocation17 + $0x594] sm:$0xf0]  ;;  %v9372_v49 = vor.u32 %v11717_v40, %v9371_v56  ;;  %v10123_v19 = vld [vmem:[#allocation17 + $0x7e8] sm:$0xf] }
 0x568   : > { %7417 = vmatpush.bf16.msra.mxu3 %v9260_v17  ;;  %v7188_v16 = vpop.f32.mrf.mxu1  ;;  %v9835_v17 = vld [vmem:[#allocation17 + $0x5a8] sm:$0xf]  ;;  %v11825_v42 = vld [vmem:[#allocation17 + $0x574] sm:$0xf0]  ;;  %v10124_v43 = vor.u32 %v11905_v50, %v10123_v19 }
 0x569   : > { %7404 = vmatpush.bf16.msra.mxu2 %v9132_v10  ;;  %7426 = vmatpush.bf16.msrb.mxu0 %v9452_v18  ;;  %v7175_v10 = vpop.f32.mrf.mxu0  ;;  %v11833_v18 = vld [vmem:[#allocation17 + $0x5b4] sm:$0xf0]  ;;  %v9979_v16 = vld [vmem:[#allocation17 + $0x6c8] sm:$0xf] }
 0x56a   : > { %7439 = vmatpush.bf16.msrb.mxu1 %v9580_v11  ;;  %v11721_v11 = vld [vmem:[#allocation17 + $0x234] sm:$0xf0]  ;;  %v9836_v23 = vor.u32 %v11833_v18, %v9835_v17  ;;  %v10251_v50 = vld [vmem:[#allocation17 + $0x8e8] sm:$0xf] }
 0x56b   : > { %v9388_v31 = vor.u32 %v11721_v11, %v9387_v62  ;;  %v11873_v55 = vld [vmem:[#allocation17 + $0x6f4] sm:$0xf0] }
 0x56c   : > { %7418 = vmatpush.bf16.msra.mxu3 %v9244_v51  ;;  %v9499_v51 = vld [vmem:[#allocation17 + $0x308] sm:$0xf]  ;;  %v11789_v10 = vld [vmem:[#allocation17 + $0x454] sm:$0xf0] }
 0x56d   : > { %7405 = vmatpush.bf16.msra.mxu2 %v9116_v5  ;;  %7427 = vmatpush.bf16.msrb.mxu0 %v9436_v36  ;;  %v9516_v5 = vor.u32 %v11753_v26, %v9515_v22  ;;  %v11749_v36 = vld [vmem:[#allocation17 + $0x314] sm:$0xf0] }
 0x56e   : > { %7440 = vmatpush.bf16.msrb.mxu1 %v9564_v41  ;;  %v9820_v41 = vor.u32 %v11829_v59, %v9819_v29  ;;  %v9500_v53 = vor.u32 %v11749_v36, %v9499_v51  ;;  %v11821_v60 = vld [vmem:[#allocation17 + $0x554] sm:$0xf0]  ;;  %v10091_v59 = vld [vmem:[#allocation17 + $0x7a8] sm:$0xf] }
 0x56f   : > { %7419 = vmatmul.bf16.vlgmr.msra.gmra.mxu3 %v13096_v48  ;;  %v11869_v17 = vld [vmem:[#allocation17 + $0x6d4] sm:$0xf0]  ;;  %v9788_v62 = vor.u32 %v11821_v60, %v9787_v12  ;;  %v9931_v60 = vld [vmem:[#allocation17 + $0x668] sm:$0xf] }
 0x570   : > { %7463 = vmatpush.bf16.msrb.mxu3 %v9868_v46  ;;  %7406 = vmatmul.bf16.vlgmr.msra.gmra.mxu2 %v13094_v47  ;;  %v9995_v46 = vld [vmem:[#allocation17 + $0x6e8] sm:$0xf]  ;;  %v9980_v11 = vor.u32 %v11869_v17, %v9979_v16  ;;  %v11785_v22 = vld [vmem:[#allocation17 + $0x434] sm:$0xf0] }
 0x571   : > { %7450 = vmatpush.bf16.msrb.mxu2 %v9740_v14  ;;  %7428 = vmatpush.bf16.msrb.mxu0 %v9420_v54  ;;  %v9675_v14 = vld [vmem:[#allocation17 + $0x468] sm:$0xf]  ;;  %v9996_v1 = vor.u32 %v11873_v55, %v9995_v46  ;;  %v11817_v28 = vld [vmem:[#allocation17 + $0x534] sm:$0xf0] }
 0x572   : > { %7441 = vmatpush.bf16.msrb.mxu1 %v9548_v58  ;;  %v9676_v54 = vor.u32 %v11793_v15, %v9675_v14  ;;  %v7212_v4 = vpop.f32.mrf.mxu3  ;;  %v11865_v29 = vld [vmem:[#allocation17 + $0x6b4] sm:$0xf0]  ;;  %v9755_v14 = vld [vmem:[#allocation17 + $0x508] sm:$0xf] }
 0x573   : > { %v7199_v58 = vpop.f32.mrf.mxu2  ;;  %v9964_v51 = vor.u32 %v11865_v29, %v9963_v6  ;;  %v11813_v15 = vld [vmem:[#allocation17 + $0x514] sm:$0xf0]  ;;  %v10075_v55 = vld [vmem:[#allocation17 + $0x788] sm:$0xf] }
 0x574   : > { %7464 = vmatpush.bf16.msrb.mxu3 %v9852_v8  ;;  %v7200_v3 = vadd.f32 %v7199_v58, %v13202_v37  ;;  %v9659_v8 = vld [vmem:[#allocation17 + $0x448] sm:$0xf]  ;;  %v11861_v46 = vld [vmem:[#allocation17 + $0x694] sm:$0xf0] }
 0x575   : > { %7451 = vmatpush.bf16.msrb.mxu2 %v9724_v0  ;;  %7429 = vmatpush.bf16.msrb.mxu0 %v9404_v34  ;;  %v9804_v0 = vor.u32 %v11825_v42, %v9803_v45  ;;  %v10107_v34 = vld [vmem:[#allocation17 + $0x7c8] sm:$0xf]  ;;  %v11893_v19 = vld [vmem:[#allocation17 + $0x794] sm:$0xf0] }
 0x576   : > { %7442 = vmatpush.bf16.msrb.mxu1 %v9532_v20  ;;  %v7213_v18 = vadd.f32 %v7212_v4, %v7200_v3  ;;  %v11901_v20 = vld [vmem:[#allocation17 + $0x7d4] sm:$0xf0]  ;;  %v9643_v37 = vld [vmem:[#allocation17 + $0x428] sm:$0xf]  ;;  %v9756_v4 = vor.u32 %v11813_v15, %v9755_v14  ;;  %v10076_v12 = vor.u32 %v11893_v19, %v10075_v55 }
 0x577   : > { %v10108_v26 = vor.u32 %v11901_v20, %v10107_v34  ;;  %v9644_v56 = vor.u32 %v11785_v22, %v9643_v37  ;;  %v9947_v42 = vld [vmem:[#allocation17 + $0x688] sm:$0xf]  ;;  %v11969_v3 = vld [vmem:[#allocation17 + $0x9f4] sm:$0xf0] }
 0x578   : > { %7465 = vmatpush.bf16.msrb.mxu3 %v9836_v23  ;;  %v9771_v23 = vld [vmem:[#allocation17 + $0x528] sm:$0xf]  ;;  %v11857_v16 = vld [vmem:[#allocation17 + $0x674] sm:$0xf0] }
 0x579   : > { %7452 = vmatpush.bf16.msrb.mxu2 %v9708_v21  ;;  %7430 = vmatpush.bf16.msrb.mxu0 %v9388_v31  ;;  %v9660_v21 = vor.u32 %v11789_v10, %v9659_v8  ;;  %v11897_v31 = vld [vmem:[#allocation17 + $0x7b4] sm:$0xf0]  ;;  %v9772_v40 = vor.u32 %v11817_v28, %v9771_v23  ;;  %v9948_v8 = vor.u32 %v11861_v46, %v9947_v42  ;;  %v10059_v17 = vld [vmem:[#allocation17 + $0x768] sm:$0xf] }
 0x57a   : > { %7443 = vmatpush.bf16.msrb.mxu1 %v9516_v5  ;;  %v7214_v36 = vpop.f32.mrf.mxu3  ;;  %v10092_v45 = vor.u32 %v11897_v31, %v10091_v59  ;;  %v11889_v20 = vld [vmem:[#allocation17 + $0x774] sm:$0xf0]  ;;  %v9932_v37 = vor.u32 %v11857_v16, %v9931_v60  ;;  %v10043_v6 = vld [vmem:[#allocation17 + $0x748] sm:$0xf] }
 0x57b   : > { %v7201_v5 = vpop.f32.mrf.mxu2  ;;  %v10060_v22 = vor.u32 %v11889_v20, %v10059_v17  ;;  %v11853_v28 = vld [vmem:[#allocation17 + $0x654] sm:$0xf0]  ;;  %v9899_v15 = vld [vmem:[#allocation17 + $0x628] sm:$0xf] }
 0x57c   : > { %7466 = vmatpush.bf16.msrb.mxu3 %v9820_v41  ;;  %v11781_v41 = vld [vmem:[#allocation17 + $0x414] sm:$0xf0]  ;;  %v10027_v42 = vld [vmem:[#allocation17 + $0x728] sm:$0xf] }
 0x57d   : > { %7453 = vmatpush.bf16.msrb.mxu2 %v9692_v33  ;;  %7431 = vmatpush.bf16.msrb.mxu0 %v9372_v49  ;;  %v9627_v33 = vld [vmem:[#allocation17 + $0x408] sm:$0xf]  ;;  %v7225_v49 = vpop.f32.mrf.mxu0  ;;  %v11885_v31 = vld [vmem:[#allocation17 + $0x754] sm:$0xf0] }
 0x57e   : > { %7444 = vmatpush.bf16.msrb.mxu1 %v9500_v53  ;;  %v11937_v53 = vld [vmem:[#allocation17 + $0x8f4] sm:$0xf0]  ;;  %v10315_v16 = vld [vmem:[#allocation17 + $0x968] sm:$0xf] }
 0x57f   : > { %v11929_v5 = vld [vmem:[#allocation17 + $0x8b4] sm:$0xf0] }
 0x580   : > { %7467 = vmatpush.bf16.msrb.mxu3 %v9804_v0  ;;  %7432 = vmatmul.bf16.vlgmr.msrb.gmra.mxu0 %v13107_v24  ;;  %v7238_v58 = vpop.f32.mrf.mxu1  ;;  %v9628_v0 = vor.u32 %v11781_v41, %v9627_v33  ;;  %v10044_v41 = vor.u32 %v11885_v31, %v10043_v6  ;;  %v11881_v55 = vld [vmem:[#allocation17 + $0x734] sm:$0xf0]  ;;  %v10299_v31 = vld [vmem:[#allocation17 + $0x948] sm:$0xf] }
 0x581   : > { %7454 = vmatpush.bf16.msrb.mxu2 %v9676_v54  ;;  %7476 = vmatpush.bf16.msra.mxu0 %v9996_v1  ;;  %v7226_v54 = vadd.f32 %v7225_v49, %v7213_v18  ;;  %v10379_v1 = vld [vmem:[#allocation17 + $0x9e8] sm:$0xf]  ;;  %v11933_v18 = vld [vmem:[#allocation17 + $0x8d4] sm:$0xf0] }
 0x582   : > { %7489 = vmatpush.bf16.msra.mxu1 %v10124_v43  ;;  %v10252_v43 = vor.u32 %v11937_v53, %v10251_v50  ;;  %v10380_v34 = vor.u32 %v11969_v3, %v10379_v1  ;;  %v10203_v49 = vld [vmem:[#allocation17 + $0x888] sm:$0xf]  ;;  %v11925_v19 = vld [vmem:[#allocation17 + $0x894] sm:$0xf0] }
 0x583   : > { %7445 = vmatmul.bf16.vlgmr.msrb.gmra.mxu1 %v13109_v27  ;;  %v13209_v10 = vadd.f32 %v7238_v58, %v7226_v54  ;;  %v10331_v50 = vld [vmem:[#allocation17 + $0x988] sm:$0xf]  ;;  %v11957_v53 = vld [vmem:[#allocation17 + $0x994] sm:$0xf0]  ;;  %v10204_v1 = vor.u32 %v11925_v19, %v10203_v49 }
 0x584   : > { %7468 = vmatpush.bf16.msrb.mxu3 %v9788_v62  ;;  %v10363_v62 = vld [vmem:[#allocation17 + $0x9c8] sm:$0xf]  ;;  %v11845_v3 = vld [vmem:[#allocation17 + $0x614] sm:$0xf0] }
 0x585   : > { %7455 = vmatpush.bf16.msrb.mxu2 %v9660_v21  ;;  %7477 = vmatpush.bf16.msra.mxu0 %v9980_v11  ;;  %v10235_v21 = vld [vmem:[#allocation17 + $0x8c8] sm:$0xf]  ;;  %v11965_v11 = vld [vmem:[#allocation17 + $0x9d4] sm:$0xf0]  ;;  %v7227_v59 = vpop.f32.mrf.mxu0 }
 0x586   : > { %7490 = vmatpush.bf16.msra.mxu1 %v10108_v26  ;;  %v10236_v23 = vor.u32 %v11933_v18, %v10235_v21  ;;  %v9915_v26 = vld [vmem:[#allocation17 + $0x648] sm:$0xf]  ;;  %v10364_v29 = vor.u32 %v11965_v11, %v10363_v62  ;;  %v11921_v60 = vld [vmem:[#allocation17 + $0x874] sm:$0xf0] }
 0x587   : > { %v9916_v36 = vor.u32 %v11853_v28, %v9915_v26  ;;  %v9883_v58 = vld [vmem:[#allocation17 + $0x608] sm:$0xf]  ;;  %v11953_v17 = vld [vmem:[#allocation17 + $0x974] sm:$0xf0] }
 0x588   : > { %7469 = vmatpush.bf16.msrb.mxu3 %v9772_v40  ;;  %v7240_v33 = vpop.f32.mrf.mxu1  ;;  %v10347_v40 = vld [vmem:[#allocation17 + $0x9a8] sm:$0xf]  ;;  %v12001_v20 = vld [vmem:[#allocation17 + $0xaf4] sm:$0xf0]  ;;  %v9884_v21 = vor.u32 %v11845_v3, %v9883_v58 }
 0x589   : > { %7456 = vmatpush.bf16.msrb.mxu2 %v9644_v56  ;;  %7478 = vmatpush.bf16.msra.mxu0 %v9964_v51  ;;  %v10219_v56 = vld [vmem:[#allocation17 + $0x8a8] sm:$0xf]  ;;  %v11961_v51 = vld [vmem:[#allocation17 + $0x9b4] sm:$0xf0] }
 0x58a   : > { %7491 = vmatpush.bf16.msra.mxu1 %v10092_v45  ;;  %v10220_v14 = vor.u32 %v11929_v5, %v10219_v56  ;;  %v11849_v45 = vld [vmem:[#allocation17 + $0x634] sm:$0xf0]  ;;  %v10348_v46 = vor.u32 %v11961_v51, %v10347_v40  ;;  %v10635_v18 = vld [vmem:[#allocation17 + $0xbe8] sm:$0xf] }
 0x58b   : > { %v9900_v54 = vor.u32 %v11849_v45, %v9899_v15  ;;  %v12033_v62 = vld [vmem:[#allocation17 + $0xbf4] sm:$0xf0]  ;;  %v10491_v33 = vld [vmem:[#allocation17 + $0xac8] sm:$0xf] }
 0x58c   : > { %7470 = vmatpush.bf16.msrb.mxu3 %v9756_v4  ;;  %v10011_v4 = vld [vmem:[#allocation17 + $0x708] sm:$0xf]  ;;  %v11917_v59 = vld [vmem:[#allocation17 + $0x854] sm:$0xf0]  ;;  %v10636_v56 = vor.u32 %v12033_v62, %v10635_v18 }
 0x58d   : > { %7457 = vmatpush.bf16.msrb.mxu2 %v9628_v0  ;;  %7479 = vmatpush.bf16.msra.mxu0 %v9948_v8  ;;  %v10028_v0 = vor.u32 %v11881_v55, %v10027_v42  ;;  %v11877_v8 = vld [vmem:[#allocation17 + $0x714] sm:$0xf0]  ;;  %v10475_v19 = vld [vmem:[#allocation17 + $0xaa8] sm:$0xf] }
 0x58e   : > { %7492 = vmatpush.bf16.msra.mxu1 %v10076_v12  ;;  %v10332_v12 = vor.u32 %v11957_v53, %v10331_v50  ;;  %v10012_v11 = vor.u32 %v11877_v8, %v10011_v4  ;;  %v11949_v5 = vld [vmem:[#allocation17 + $0x954] sm:$0xf0]  ;;  %v10603_v53 = vld [vmem:[#allocation17 + $0xba8] sm:$0xf] }
 0x58f   : > { %7471 = vmatmul.bf16.vlgmr.msrb.gmra.mxu3 %v13111_v32  ;;  %v11997_v40 = vld [vmem:[#allocation17 + $0xad4] sm:$0xf0]  ;;  %v10300_v15 = vor.u32 %v11949_v5, %v10299_v31  ;;  %v10763_v62 = vld [vmem:[#allocation17 + $0xce8] sm:$0xf] }
 0x590   : > { %7515 = vmatpush.bf16.msra.mxu3 %v10380_v34  ;;  %7458 = vmatmul.bf16.vlgmr.msrb.gmra.mxu2 %v13105_v25  ;;  %v10507_v34 = vld [vmem:[#allocation17 + $0xae8] sm:$0xf]  ;;  %v10492_v45 = vor.u32 %v11997_v40, %v10491_v33  ;;  %v11913_v42 = vld [vmem:[#allocation17 + $0x834] sm:$0xf0] }
 0x591   : > { %7502 = vmatpush.bf16.msra.mxu2 %v10252_v43  ;;  %7480 = vmatpush.bf16.msra.mxu0 %v9932_v37  ;;  %v10187_v43 = vld [vmem:[#allocation17 + $0x868] sm:$0xf]  ;;  %v10508_v26 = vor.u32 %v12001_v20, %v10507_v34  ;;  %v11945_v49 = vld [vmem:[#allocation17 + $0x934] sm:$0xf0] }
 0x592   : > { %7493 = vmatpush.bf16.msra.mxu1 %v10060_v22  ;;  %v10188_v37 = vor.u32 %v11921_v60, %v10187_v43  ;;  %v7264_v6 = vpop.f32.mrf.mxu3  ;;  %v11993_v50 = vld [vmem:[#allocation17 + $0xab4] sm:$0xf0]  ;;  %v10267_v43 = vld [vmem:[#allocation17 + $0x908] sm:$0xf] }
 0x593   : > { %v7251_v22 = vpop.f32.mrf.mxu2  ;;  %v10476_v4 = vor.u32 %v11993_v50, %v10475_v19  ;;  %v11941_v60 = vld [vmem:[#allocation17 + $0x914] sm:$0xf0]  ;;  %v10587_v20 = vld [vmem:[#allocation17 + $0xb88] sm:$0xf] }
 0x594   : > { %7516 = vmatpush.bf16.msra.mxu3 %v10364_v29  ;;  %v7252_v28 = vadd.f32 %v7251_v22, %v13209_v10  ;;  %v10171_v29 = vld [vmem:[#allocation17 + $0x848] sm:$0xf]  ;;  %v11989_v34 = vld [vmem:[#allocation17 + $0xa94] sm:$0xf0] }
 0x595   : > { %7503 = vmatpush.bf16.msra.mxu2 %v10236_v23  ;;  %7481 = vmatpush.bf16.msra.mxu0 %v9916_v36  ;;  %v10316_v23 = vor.u32 %v11953_v17, %v10315_v16  ;;  %v10619_v36 = vld [vmem:[#allocation17 + $0xbc8] sm:$0xf]  ;;  %v12021_v18 = vld [vmem:[#allocation17 + $0xb94] sm:$0xf0] }
 0x596   : > { %7494 = vmatpush.bf16.msra.mxu1 %v10044_v41  ;;  %v7265_v51 = vadd.f32 %v7264_v6, %v7252_v28  ;;  %v12029_v41 = vld [vmem:[#allocation17 + $0xbd4] sm:$0xf0]  ;;  %v10155_v10 = vld [vmem:[#allocation17 + $0x828] sm:$0xf]  ;;  %v10268_v6 = vor.u32 %v11941_v60, %v10267_v43  ;;  %v10588_v31 = vor.u32 %v12021_v18, %v10587_v20 }
 0x597   : > { %v10620_v55 = vor.u32 %v12029_v41, %v10619_v36  ;;  %v10156_v58 = vor.u32 %v11913_v42, %v10155_v10  ;;  %v10459_v17 = vld [vmem:[#allocation17 + $0xa88] sm:$0xf]  ;;  %v12097_v28 = vld [vmem:[#allocation17 + $0xdf4] sm:$0xf0] }
 0x598   : > { %7517 = vmatpush.bf16.msra.mxu3 %v10348_v46  ;;  %v10283_v46 = vld [vmem:[#allocation17 + $0x928] sm:$0xf]  ;;  %v11985_v33 = vld [vmem:[#allocation17 + $0xa74] sm:$0xf0] }
 0x599   : > { %7504 = vmatpush.bf16.msra.mxu2 %v10220_v14  ;;  %7482 = vmatpush.bf16.msra.mxu0 %v9900_v54  ;;  %v10172_v14 = vor.u32 %v11917_v59, %v10171_v29  ;;  %v12025_v54 = vld [vmem:[#allocation17 + $0xbb4] sm:$0xf0]  ;;  %v10284_v3 = vor.u32 %v11945_v49, %v10283_v46  ;;  %v10460_v29 = vor.u32 %v11989_v34, %v10459_v17  ;;  %v10443_v5 = vld [vmem:[#allocation17 + $0xa68] sm:$0xf] }
 0x59a   : > { %7495 = vmatpush.bf16.msra.mxu1 %v10028_v0  ;;  %v7266_v8 = vpop.f32.mrf.mxu3  ;;  %v10604_v16 = vor.u32 %v12025_v54, %v10603_v53  ;;  %v10571_v40 = vld [vmem:[#allocation17 + $0xb68] sm:$0xf]  ;;  %v12017_v41 = vld [vmem:[#allocation17 + $0xb74] sm:$0xf0]  ;;  %v10444_v10 = vor.u32 %v11985_v33, %v10443_v5 }
 0x59b   : > { %v7253_v0 = vpop.f32.mrf.mxu2  ;;  %v10572_v42 = vor.u32 %v12017_v41, %v10571_v40  ;;  %v11981_v49 = vld [vmem:[#allocation17 + $0xa54] sm:$0xf0]  ;;  %v10555_v19 = vld [vmem:[#allocation17 + $0xb48] sm:$0xf] }
 0x59c   : > { %7518 = vmatpush.bf16.msra.mxu3 %v10332_v12  ;;  %v11909_v12 = vld [vmem:[#allocation17 + $0x814] sm:$0xf0]  ;;  %v10411_v60 = vld [vmem:[#allocation17 + $0xa28] sm:$0xf] }
 0x59d   : > { %7505 = vmatpush.bf16.msra.mxu2 %v10204_v1  ;;  %7483 = vmatpush.bf16.msra.mxu0 %v9884_v21  ;;  %v10139_v1 = vld [vmem:[#allocation17 + $0x808] sm:$0xf]  ;;  %v7277_v21 = vpop.f32.mrf.mxu0  ;;  %v12013_v54 = vld [vmem:[#allocation17 + $0xb54] sm:$0xf0] }
 0x59e   : > { %7496 = vmatpush.bf16.msra.mxu1 %v10012_v11  ;;  %v12065_v11 = vld [vmem:[#allocation17 + $0xcf4] sm:$0xf0]  ;;  %v10539_v17 = vld [vmem:[#allocation17 + $0xb28] sm:$0xf] }
 0x59f   : > { %v12057_v0 = vld [vmem:[#allocation17 + $0xcb4] sm:$0xf0]  ;;  %v10827_v33 = vld [vmem:[#allocation17 + $0xd68] sm:$0xf] }
 0x5a0   : > { %7519 = vmatpush.bf16.msra.mxu3 %v10316_v23  ;;  %7484 = vmatmul.bf16.vlgmr.msra.gmra.mxu0 %v13130_v38  ;;  %v7290_v22 = vpop.f32.mrf.mxu1  ;;  %v10140_v23 = vor.u32 %v11909_v12, %v10139_v1  ;;  %v10556_v12 = vor.u32 %v12013_v54, %v10555_v19  ;;  %v12009_v20 = vld [vmem:[#allocation17 + $0xb34] sm:$0xf0]  ;;  %v10811_v54 = vld [vmem:[#allocation17 + $0xd48] sm:$0xf] }
 0x5a1   : > { %7506 = vmatpush.bf16.msra.mxu2 %v10188_v37  ;;  %7528 = vmatpush.bf16.msrb.mxu0 %v10508_v26  ;;  %v7278_v37 = vadd.f32 %v7277_v21, %v7265_v51  ;;  %v10891_v26 = vld [vmem:[#allocation17 + $0xde8] sm:$0xf]  ;;  %v12061_v51 = vld [vmem:[#allocation17 + $0xcd4] sm:$0xf0] }
 0x5a2   : > { %7541 = vmatpush.bf16.msrb.mxu1 %v10636_v56  ;;  %v10764_v56 = vor.u32 %v12065_v11, %v10763_v62  ;;  %v10892_v36 = vor.u32 %v12097_v28, %v10891_v26  ;;  %v10715_v21 = vld [vmem:[#allocation17 + $0xc88] sm:$0xf]  ;;  %v12053_v18 = vld [vmem:[#allocation17 + $0xc94] sm:$0xf0] }
 0x5a3   : > { %7497 = vmatmul.bf16.vlgmr.msra.gmra.mxu1 %v13132_v39  ;;  %v13216_v59 = vadd.f32 %v7290_v22, %v7278_v37  ;;  %v10843_v62 = vld [vmem:[#allocation17 + $0xd88] sm:$0xf]  ;;  %v12085_v11 = vld [vmem:[#allocation17 + $0xd94] sm:$0xf0]  ;;  %v10716_v26 = vor.u32 %v12053_v18, %v10715_v21 }
 0x5a4   : > { %7520 = vmatpush.bf16.msra.mxu3 %v10300_v15  ;;  %v10875_v15 = vld [vmem:[#allocation17 + $0xdc8] sm:$0xf]  ;;  %v11973_v28 = vld [vmem:[#allocation17 + $0xa14] sm:$0xf0] }
 0x5a5   : > { %7507 = vmatpush.bf16.msra.mxu2 %v10172_v14  ;;  %7529 = vmatpush.bf16.msrb.mxu0 %v10492_v45  ;;  %v10747_v14 = vld [vmem:[#allocation17 + $0xcc8] sm:$0xf]  ;;  %v12093_v45 = vld [vmem:[#allocation17 + $0xdd4] sm:$0xf0]  ;;  %v7279_v53 = vpop.f32.mrf.mxu0 }
 0x5a6   : > { %7542 = vmatpush.bf16.msrb.mxu1 %v10620_v55  ;;  %v10748_v46 = vor.u32 %v12061_v51, %v10747_v14  ;;  %v10427_v55 = vld [vmem:[#allocation17 + $0xa48] sm:$0xf]  ;;  %v10876_v50 = vor.u32 %v12093_v45, %v10875_v15  ;;  %v12049_v5 = vld [vmem:[#allocation17 + $0xc74] sm:$0xf0] }
 0x5a7   : > { %v10428_v8 = vor.u32 %v11981_v49, %v10427_v55  ;;  %v10395_v22 = vld [vmem:[#allocation17 + $0xa08] sm:$0xf]  ;;  %v12081_v40 = vld [vmem:[#allocation17 + $0xd74] sm:$0xf0] }
 0x5a8   : > { %7521 = vmatpush.bf16.msra.mxu3 %v10284_v3  ;;  %v7292_v1 = vpop.f32.mrf.mxu1  ;;  %v10859_v3 = vld [vmem:[#allocation17 + $0xda8] sm:$0xf]  ;;  %v12129_v41 = vld [vmem:[#allocation17 + $0xef4] sm:$0xf0]  ;;  %v10396_v14 = vor.u32 %v11973_v28, %v10395_v22 }
 0x5a9   : > { %7508 = vmatpush.bf16.msra.mxu2 %v10156_v58  ;;  %7530 = vmatpush.bf16.msrb.mxu0 %v10476_v4  ;;  %v10731_v58 = vld [vmem:[#allocation17 + $0xca8] sm:$0xf]  ;;  %v12089_v4 = vld [vmem:[#allocation17 + $0xdb4] sm:$0xf0] }
 0x5aa   : > { %7543 = vmatpush.bf16.msrb.mxu1 %v10604_v16  ;;  %v10732_v43 = vor.u32 %v12057_v0, %v10731_v58  ;;  %v11977_v16 = vld [vmem:[#allocation17 + $0xa34] sm:$0xf0]  ;;  %v10860_v34 = vor.u32 %v12089_v4, %v10859_v3  ;;  %v11147_v51 = vld [vmem:[#allocation17 + $0xfe8] sm:$0xf] }
 0x5ab   : > { %v10412_v37 = vor.u32 %v11977_v16, %v10411_v60  ;;  %v12161_v15 = vld [vmem:[#allocation17 + $0xff4] sm:$0xf0]  ;;  %v11003_v1 = vld [vmem:[#allocation17 + $0xec8] sm:$0xf] }
 0x5ac   : > { %7522 = vmatpush.bf16.msra.mxu3 %v10268_v6  ;;  %v10523_v6 = vld [vmem:[#allocation17 + $0xb08] sm:$0xf]  ;;  %v12045_v53 = vld [vmem:[#allocation17 + $0xc54] sm:$0xf0]  ;;  %v11148_v58 = vor.u32 %v12161_v15, %v11147_v51 }
 0x5ad   : > { %7509 = vmatpush.bf16.msra.mxu2 %v10140_v23  ;;  %7531 = vmatpush.bf16.msrb.mxu0 %v10460_v29  ;;  %v10540_v23 = vor.u32 %v12009_v20, %v10539_v17  ;;  %v12005_v29 = vld [vmem:[#allocation17 + $0xb14] sm:$0xf0]  ;;  %v10987_v18 = vld [vmem:[#allocation17 + $0xea8] sm:$0xf] }
 0x5ae   : > { %7544 = vmatpush.bf16.msrb.mxu1 %v10588_v31  ;;  %v10844_v31 = vor.u32 %v12085_v11, %v10843_v62  ;;  %v10524_v45 = vor.u32 %v12005_v29, %v10523_v6  ;;  %v12077_v0 = vld [vmem:[#allocation17 + $0xd54] sm:$0xf0]  ;;  %v11115_v11 = vld [vmem:[#allocation17 + $0xfa8] sm:$0xf] }
 0x5af   : > { %7523 = vmatmul.bf16.vlgmr.msra.gmra.mxu3 %v13135_v52  ;;  %v12125_v3 = vld [vmem:[#allocation17 + $0xed4] sm:$0xf0]  ;;  %v10812_v60 = vor.u32 %v12077_v0, %v10811_v54  ;;  %v11275_v15 = vld [vmem:[#allocation17 + $0x10e8] sm:$0xf] }
 0x5b0   : > { %7567 = vmatpush.bf16.msrb.mxu3 %v10892_v36  ;;  %7510 = vmatmul.bf16.vlgmr.msra.gmra.mxu2 %v13128_v35  ;;  %v11019_v36 = vld [vmem:[#allocation17 + $0xee8] sm:$0xf]  ;;  %v11004_v16 = vor.u32 %v12125_v3, %v11003_v1  ;;  %v12041_v17 = vld [vmem:[#allocation17 + $0xc34] sm:$0xf0] }
 0x5b1   : > { %7554 = vmatpush.bf16.msrb.mxu2 %v10764_v56  ;;  %7532 = vmatpush.bf16.msrb.mxu0 %v10444_v10  ;;  %v10699_v56 = vld [vmem:[#allocation17 + $0xc68] sm:$0xf]  ;;  %v11020_v55 = vor.u32 %v12129_v41, %v11019_v36  ;;  %v12073_v21 = vld [vmem:[#allocation17 + $0xd34] sm:$0xf0] }
 0x5b2   : > { %7545 = vmatpush.bf16.msrb.mxu1 %v10572_v42  ;;  %v10700_v10 = vor.u32 %v12049_v5, %v10699_v56  ;;  %v7316_v19 = vpop.f32.mrf.mxu3  ;;  %v12121_v62 = vld [vmem:[#allocation17 + $0xeb4] sm:$0xf0]  ;;  %v10779_v56 = vld [vmem:[#allocation17 + $0xd08] sm:$0xf] }
 0x5b3   : > { %v7303_v42 = vpop.f32.mrf.mxu2  ;;  %v10988_v6 = vor.u32 %v12121_v62, %v10987_v18  ;;  %v12069_v5 = vld [vmem:[#allocation17 + $0xd14] sm:$0xf0]  ;;  %v11099_v41 = vld [vmem:[#allocation17 + $0xf88] sm:$0xf] }
 0x5b4   : > { %7568 = vmatpush.bf16.msrb.mxu3 %v10876_v50  ;;  %v7304_v49 = vadd.f32 %v7303_v42, %v13216_v59  ;;  %v10683_v50 = vld [vmem:[#allocation17 + $0xc48] sm:$0xf]  ;;  %v12117_v36 = vld [vmem:[#allocation17 + $0xe94] sm:$0xf0] }
 0x5b5   : > { %7555 = vmatpush.bf16.msrb.mxu2 %v10748_v46  ;;  %7533 = vmatpush.bf16.msrb.mxu0 %v10428_v8  ;;  %v10828_v46 = vor.u32 %v12081_v40, %v10827_v33  ;;  %v11131_v8 = vld [vmem:[#allocation17 + $0xfc8] sm:$0xf]  ;;  %v12149_v51 = vld [vmem:[#allocation17 + $0xf94] sm:$0xf0] }
 0x5b6   : > { %7546 = vmatpush.bf16.msrb.mxu1 %v10556_v12  ;;  %v7317_v4 = vadd.f32 %v7316_v19, %v7304_v49  ;;  %v12157_v12 = vld [vmem:[#allocation17 + $0xfd4] sm:$0xf0]  ;;  %v10667_v59 = vld [vmem:[#allocation17 + $0xc28] sm:$0xf]  ;;  %v10780_v19 = vor.u32 %v12069_v5, %v10779_v56  ;;  %v11100_v54 = vor.u32 %v12149_v51, %v11099_v41 }
 0x5b7   : > { %v11132_v20 = vor.u32 %v12157_v12, %v11131_v8  ;;  %v10668_v22 = vor.u32 %v12041_v17, %v10667_v59  ;;  %v10971_v40 = vld [vmem:[#allocation17 + $0xe88] sm:$0xf]  ;;  %v12225_v49 = vld [vmem:[#allocation17 + $0x11f4] sm:$0xf0] }
 0x5b8   : > { %7569 = vmatpush.bf16.msrb.mxu3 %v10860_v34  ;;  %v10795_v34 = vld [vmem:[#allocation17 + $0xd28] sm:$0xf]  ;;  %v12113_v1 = vld [vmem:[#allocation17 + $0xe74] sm:$0xf0] }
 0x5b9   : > { %7556 = vmatpush.bf16.msrb.mxu2 %v10732_v43  ;;  %7534 = vmatpush.bf16.msrb.mxu0 %v10412_v37  ;;  %v10684_v43 = vor.u32 %v12045_v53, %v10683_v50  ;;  %v12153_v37 = vld [vmem:[#allocation17 + $0xfb4] sm:$0xf0]  ;;  %v10796_v28 = vor.u32 %v12073_v21, %v10795_v34  ;;  %v10972_v50 = vor.u32 %v12117_v36, %v10971_v40  ;;  %v10955_v0 = vld [vmem:[#allocation17 + $0xe68] sm:$0xf] }
 0x5ba   : > { %7547 = vmatpush.bf16.msrb.mxu1 %v10540_v23  ;;  %v7318_v29 = vpop.f32.mrf.mxu3  ;;  %v11116_v33 = vor.u32 %v12153_v37, %v11115_v11  ;;  %v11083_v3 = vld [vmem:[#allocation17 + $0xf68] sm:$0xf]  ;;  %v12145_v12 = vld [vmem:[#allocation17 + $0xf74] sm:$0xf0]  ;;  %v10956_v59 = vor.u32 %v12113_v1, %v10955_v0 }
 0x5bb   : > { %v7305_v23 = vpop.f32.mrf.mxu2  ;;  %v11084_v17 = vor.u32 %v12145_v12, %v11083_v3  ;;  %v12109_v21 = vld [vmem:[#allocation17 + $0xe54] sm:$0xf0]  ;;  %v11067_v18 = vld [vmem:[#allocation17 + $0xf48] sm:$0xf]  ;;  %v9229_v12 = vld [vmem:[#allocation17 + $0xf8] sm:$0xf0] }
 0x5bc   : > { %7570 = vmatpush.bf16.msrb.mxu3 %v10844_v31  ;;  %v12037_v31 = vld [vmem:[#allocation17 + $0xc14] sm:$0xf0]  ;;  %v10923_v5 = vld [vmem:[#allocation17 + $0xe28] sm:$0xf] }
 0x5bd   : > { %7557 = vmatpush.bf16.msrb.mxu2 %v10716_v26  ;;  %7535 = vmatpush.bf16.msrb.mxu0 %v10396_v14  ;;  %v10651_v26 = vld [vmem:[#allocation17 + $0xc08] sm:$0xf]  ;;  %v7329_v14 = vpop.f32.mrf.mxu0  ;;  %v12141_v37 = vld [vmem:[#allocation17 + $0xf54] sm:$0xf0] }
 0x5be   : > { %7548 = vmatpush.bf16.msrb.mxu1 %v10524_v45  ;;  %v12193_v45 = vld [vmem:[#allocation17 + $0x10f4] sm:$0xf0]  ;;  %v11051_v40 = vld [vmem:[#allocation17 + $0xf28] sm:$0xf] }
 0x5bf   : > { %v12185_v23 = vld [vmem:[#allocation17 + $0x10b4] sm:$0xf0]  ;;  %v11339_v1 = vld [vmem:[#allocation17 + $0x1168] sm:$0xf] }
 0x5c0   : > { %7571 = vmatpush.bf16.msrb.mxu3 %v10828_v46  ;;  %7536 = vmatmul.bf16.vlgmr.msrb.gmra.mxu0 %v13143_v57  ;;  %v7342_v42 = vpop.f32.mrf.mxu1  ;;  %v10652_v46 = vor.u32 %v12037_v31, %v10651_v26  ;;  %v11068_v31 = vor.u32 %v12141_v37, %v11067_v18  ;;  %v12137_v41 = vld [vmem:[#allocation17 + $0xf34] sm:$0xf0]  ;;  %v11323_v37 = vld [vmem:[#allocation17 + $0x1148] sm:$0xf] }
 0x5c1   : > { %7558 = vmatpush.bf16.msrb.mxu2 %v10700_v10  ;;  %7580 = vmatpush.bf16.msra.mxu0 %v11020_v55  ;;  %v7330_v10 = vadd.f32 %v7329_v14, %v7317_v4  ;;  %v11403_v55 = vld [vmem:[#allocation17 + $0x11e8] sm:$0xf]  ;;  %v12189_v4 = vld [vmem:[#allocation17 + $0x10d4] sm:$0xf0] }
 0x5c2   : > { %7593 = vmatpush.bf16.msra.mxu1 %v11148_v58  ;;  %v11276_v58 = vor.u32 %v12193_v45, %v11275_v15  ;;  %v11404_v8 = vor.u32 %v12225_v49, %v11403_v55  ;;  %v11227_v14 = vld [vmem:[#allocation17 + $0x1088] sm:$0xf]  ;;  %v12181_v51 = vld [vmem:[#allocation17 + $0x1094] sm:$0xf0] }
 0x5c3   : > { %7549 = vmatmul.bf16.vlgmr.msrb.gmra.mxu1 %v13145_v30  ;;  %v13223_v53 = vadd.f32 %v7342_v42, %v7330_v10  ;;  %v11355_v15 = vld [vmem:[#allocation17 + $0x1188] sm:$0xf]  ;;  %v12213_v45 = vld [vmem:[#allocation17 + $0x1194] sm:$0xf0]  ;;  %v11228_v55 = vor.u32 %v12181_v51, %v11227_v14 }
 0x5c4   : > { %7572 = vmatpush.bf16.msrb.mxu3 %v10812_v60  ;;  %v11387_v60 = vld [vmem:[#allocation17 + $0x11c8] sm:$0xf]  ;;  %v12101_v49 = vld [vmem:[#allocation17 + $0xe14] sm:$0xf0] }
 0x5c5   : > { %7559 = vmatpush.bf16.msrb.mxu2 %v10684_v43  ;;  %7581 = vmatpush.bf16.msra.mxu0 %v11004_v16  ;;  %v11259_v43 = vld [vmem:[#allocation17 + $0x10c8] sm:$0xf]  ;;  %v12221_v16 = vld [vmem:[#allocation17 + $0x11d4] sm:$0xf0]  ;;  %v7331_v11 = vpop.f32.mrf.mxu0 }
 0x5c6   : > { %7594 = vmatpush.bf16.msra.mxu1 %v11132_v20  ;;  %v11260_v34 = vor.u32 %v12189_v4, %v11259_v43  ;;  %v10939_v20 = vld [vmem:[#allocation17 + $0xe48] sm:$0xf]  ;;  %v11388_v62 = vor.u32 %v12221_v16, %v11387_v60  ;;  %v12177_v0 = vld [vmem:[#allocation17 + $0x1074] sm:$0xf0]  ;;  %v11711_v4 = vld [vmem:[#allocation17 + $0x1ec] sm:$0xf] }
 0x5c7   : > { %v10940_v29 = vor.u32 %v12109_v21, %v10939_v20  ;;  %v10907_v42 = vld [vmem:[#allocation17 + $0xe08] sm:$0xf]  ;;  %v12209_v3 = vld [vmem:[#allocation17 + $0x1174] sm:$0xf0]  ;;  %v9357_v60 = vld [vmem:[#allocation17 + $0x1f8] sm:$0xf0] }
 0x5c8   : > { %7573 = vmatpush.bf16.msrb.mxu3 %v10796_v28  ;;  %v7344_v26 = vpop.f32.mrf.mxu1  ;;  %v11371_v28 = vld [vmem:[#allocation17 + $0x11a8] sm:$0xf]  ;;  %v10908_v43 = vor.u32 %v12101_v49, %v10907_v42  ;;  %v12173_v11 = vld [vmem:[#allocation17 + $0x1054] sm:$0xf0]  ;;  %v9325_v42 = vld [vmem:[#allocation17 + $0x1b8] sm:$0xf0] }
 0x5c9   : > { %7560 = vmatpush.bf16.msrb.mxu2 %v10668_v22  ;;  %7582 = vmatpush.bf16.msra.mxu0 %v10988_v6  ;;  %v11243_v22 = vld [vmem:[#allocation17 + $0x10a8] sm:$0xf]  ;;  %v12217_v6 = vld [vmem:[#allocation17 + $0x11b4] sm:$0xf0]  ;;  %v11675_v26 = vld [vmem:[#allocation17 + $0xcc] sm:$0xf] }
 0x5ca   : > { %7595 = vmatpush.bf16.msra.mxu1 %v11116_v33  ;;  %v11244_v56 = vor.u32 %v12185_v23, %v11243_v22  ;;  %v12105_v33 = vld [vmem:[#allocation17 + $0xe34] sm:$0xf0]  ;;  %v11372_v36 = vor.u32 %v12217_v6, %v11371_v28  ;;  %v9360_v22 = vor.u32 %v11711_v4, %v9357_v60  ;;  %v9213_v28 = vld [vmem:[#allocation17 + $0xd8] sm:$0xf0]  ;;  %v11699_v4 = vld [vmem:[#allocation17 + $0x18c] sm:$0xf] }
 0x5cb   : > { %v10924_v10 = vor.u32 %v12105_v33, %v10923_v5  ;;  %v12205_v23 = vld [vmem:[#allocation17 + $0x1154] sm:$0xf0]  ;;  %v9216_v33 = vor.u32 %v11675_v26, %v9213_v28  ;;  %v11663_v26 = vld [vmem:[#allocation17 + $0x6c] sm:$0xf] }
 0x5cc   : > { %7574 = vmatpush.bf16.msrb.mxu3 %v10780_v19  ;;  %v11035_v19 = vld [vmem:[#allocation17 + $0xf08] sm:$0xf]  ;;  %v12201_v51 = vld [vmem:[#allocation17 + $0x1134] sm:$0xf0] }
 0x5cd   : > { %7561 = vmatpush.bf16.msrb.mxu2 %v10652_v46  ;;  %7583 = vmatpush.bf16.msra.mxu0 %v10972_v50  ;;  %v11052_v46 = vor.u32 %v12137_v41, %v11051_v40  ;;  %v12133_v50 = vld [vmem:[#allocation17 + $0xf14] sm:$0xf0]  ;;  %v11179_v40 = vld [vmem:[#allocation17 + $0x1028] sm:$0xf] }
 0x5ce   : > { %7596 = vmatpush.bf16.msra.mxu1 %v11100_v54  ;;  %v11356_v54 = vor.u32 %v12213_v45, %v11355_v15  ;;  %v11036_v16 = vor.u32 %v12133_v50, %v11035_v19  ;;  %v11307_v41 = vld [vmem:[#allocation17 + $0x1128] sm:$0xf]  ;;  %v11671_v15 = vld [vmem:[#allocation17 + $0xac] sm:$0xf]  ;;  %v9197_v45 = vld [vmem:[#allocation17 + $0xb8] sm:$0xf0] }
 0x5cf   : > { %7575 = vmatmul.bf16.vlgmr.msrb.gmra.mxu3 %v13157_v63  ;;  %v11163_v19 = vld [vmem:[#allocation17 + $0x1008] sm:$0xf]  ;;  %v11308_v50 = vor.u32 %v12201_v51, %v11307_v41  ;;  %v11771_v41 = vld [vmem:[#allocation17 + $0x3cc] sm:$0xf] }
 0x5d0   : > { %7619 = vmatpush.bf16.msra.mxu3 %v11404_v8  ;;  %7562 = vmatmul.bf16.vlgmr.msrb.gmra.mxu2 %v13155_v44  ;;  %v11679_v8 = vld [vmem:[#allocation17 + $0xec] sm:$0xf] }
 0x5d1   : > { %7606 = vmatpush.bf16.msra.mxu2 %v11276_v58  ;;  %7584 = vmatpush.bf16.msra.mxu0 %v10956_v59  ;;  %v11211_v58 = vld [vmem:[#allocation17 + $0x1068] sm:$0xf]  ;;  %v9232_v20 = vor.u32 %v11679_v8, %v9229_v12  ;;  %v11667_v12 = vld [vmem:[#allocation17 + $0x8c] sm:$0xf] }
 0x5d2   : > { %7597 = vmatpush.bf16.msra.mxu1 %v11084_v17  ;;  %v11212_v59 = vor.u32 %v12177_v0, %v11211_v58  ;;  %v7368_v18 = vpop.f32.mrf.mxu3  ;;  %v12165_v0 = vld [vmem:[#allocation17 + $0x1014] sm:$0xf0] }
 0x5d3   : > { %v7355_v17 = vpop.f32.mrf.mxu2 }
 0x5d4   : > { %7620 = vmatpush.bf16.msra.mxu3 %v11388_v62  ;;  %v7356_v21 = vadd.f32 %v7355_v17, %v13223_v53  ;;  %v11195_v62 = vld [vmem:[#allocation17 + $0x1048] sm:$0xf]  ;;  %v11324_v53 = vor.u32 %v12205_v23, %v11323_v37  ;;  %v9485_v17 = vld [vmem:[#allocation17 + $0x2f8] sm:$0xf0] }
 0x5d5   : > { %7607 = vmatpush.bf16.msra.mxu2 %v11260_v34  ;;  %7585 = vmatpush.bf16.msra.mxu0 %v10940_v29  ;;  %v11340_v34 = vor.u32 %v12209_v3, %v11339_v1  ;;  %v11707_v29 = vld [vmem:[#allocation17 + $0x1cc] sm:$0xf]  ;;  %v11196_v5 = vor.u32 %v12173_v11, %v11195_v62  ;;  %v11291_v1 = vld [vmem:[#allocation17 + $0x1108] sm:$0xf]  ;;  %v12197_v3 = vld [vmem:[#allocation17 + $0x1114] sm:$0xf0] }
 0x5d6   : > { %7598 = vmatpush.bf16.msra.mxu1 %v11068_v31  ;;  %v7369_v6 = vadd.f32 %v7368_v18, %v7356_v21  ;;  %v9341_v31 = vld [vmem:[#allocation17 + $0x1d8] sm:$0xf0]  ;;  %v11164_v18 = vor.u32 %v12165_v0, %v11163_v19  ;;  %v11775_v62 = vld [vmem:[#allocation17 + $0x3ec] sm:$0xf] }
 0x5d7   : > { %v9344_v14 = vor.u32 %v11707_v29, %v9341_v31  ;;  %v9613_v11 = vld [vmem:[#allocation17 + $0x3f8] sm:$0xf0] }
 0x5d8   : > { %7621 = vmatpush.bf16.msra.mxu3 %v11372_v36  ;;  %v12169_v36 = vld [vmem:[#allocation17 + $0x1034] sm:$0xf0]  ;;  %v9149_v19 = vld [vmem:[#allocation17 + $0x58] sm:$0xf0] }
 0x5d9   : > { %7608 = vmatpush.bf16.msra.mxu2 %v11244_v56  ;;  %7586 = vmatpush.bf16.msra.mxu0 %v10924_v10  ;;  %v13228_v56 = vld [vmem:[#allocation20] sm:$0xf]  ;;  %v11703_v10 = vld [vmem:[#allocation17 + $0x1ac] sm:$0xf] }
 0x5da   : > { %7599 = vmatpush.bf16.msra.mxu1 %v11052_v46  ;;  %v7880_v46 = vperm.slane %v13228_v56, 0  ;;  %v7370_v58 = vpop.f32.mrf.mxu3  ;;  %v9328_v8 = vor.u32 %v11703_v10, %v9325_v42  ;;  %v7881_v37 = vperm.slane %v13228_v56, 1 }
 0x5db   : > { %v7357_v49 = vpop.f32.mrf.mxu2 }
 0x5dc   : > { %7622 = vmatpush.bf16.msra.mxu3 %v11356_v54  ;;  %v9200_v54 = vor.u32 %v11671_v15, %v9197_v45  ;;  %v9597_v15 = vld [vmem:[#allocation17 + $0x3d8] sm:$0xf0]  ;;  %v11659_v49 = vld [vmem:[#allocation17 + $0x4c] sm:$0xf] }
 0x5dd   : > { %7609 = vmatpush.bf16.msra.mxu2 %v11228_v55  ;;  %7587 = vmatpush.bf16.msra.mxu0 %v10908_v43  ;;  %v11180_v55 = vor.u32 %v12169_v36, %v11179_v40  ;;  %v9181_v43 = vld [vmem:[#allocation17 + $0x98] sm:$0xf0]  ;;  %v7381_v60 = vpop.f32.mrf.mxu0  ;;  %v11739_v40 = vld [vmem:[#allocation17 + $0x2cc] sm:$0xf] }
 0x5de   : > { %7600 = vmatpush.bf16.msra.mxu1 %v11036_v16  ;;  %v9309_v16 = vld [vmem:[#allocation17 + $0x198] sm:$0xf0]  ;;  %v9184_v23 = vor.u32 %v11667_v12, %v9181_v43  ;;  %v11767_v43 = vld [vmem:[#allocation17 + $0x3ac] sm:$0xf] }
 0x5df   : > { %v9312_v29 = vor.u32 %v11699_v4, %v9309_v16  ;;  %v9469_v36 = vld [vmem:[#allocation17 + $0x2d8] sm:$0xf0]  ;;  %v11655_v16 = vld [vmem:[#allocation17 + $0x2c] sm:$0xf] }
 0x5e0   : > { %7623 = vmatpush.bf16.msra.mxu3 %v11340_v34  ;;  %7588 = vmatmul.bf16.vlgmr.msra.gmra.mxu0 %v13162_v2  ;;  %v7870_v34 = vmul.f32 0.2, %v13198_v13  ;;  %v7394_v21 = vpop.f32.mrf.mxu1  ;;  %v9581_v4 = vld [vmem:[#allocation17 + $0x3b8] sm:$0xf0] }
 0x5e1   : > { %7610 = vmatpush.bf16.msra.mxu2 %v11212_v59  ;;  %7632 = vmatpush.bf16.msrb.mxu0 %v9232_v20  ;;  %v11743_v59 = vld [vmem:[#allocation17 + $0x2ec] sm:$0xf]  ;;  %v7382_v20 = vadd.f32 %v7381_v60, %v7369_v6  ;;  %v9293_v6 = vld [vmem:[#allocation17 + $0x178] sm:$0xf0]  ;;  %v9152_v60 = vor.u32 %v11659_v49, %v9149_v19 }
 0x5e2   : > { %7645 = vmatpush.bf16.msrb.mxu1 %v9360_v22  ;;  %v11292_v22 = vor.u32 %v12197_v3, %v11291_v1  ;;  %v9488_v31 = vor.u32 %v11743_v59, %v9485_v17  ;;  %v9277_v1 = vld [vmem:[#allocation17 + $0x158] sm:$0xf0]  ;;  %v11735_v3 = vld [vmem:[#allocation17 + $0x2ac] sm:$0xf] }
 0x5e3   : > { %7601 = vmatmul.bf16.vlgmr.msra.gmra.mxu1 %v13164_v9  ;;  %v7395_v28 = vadd.f32 %v7394_v21, %v7382_v20  ;;  %v9133_v59 = vld [vmem:[#allocation17 + $0x38] sm:$0xf0]  ;;  %v11687_v17 = vld [vmem:[#allocation17 + $0x12c] sm:$0xf]  ;;  %v9584_v20 = vor.u32 %v11767_v43, %v9581_v4 }
 0x5e4   : > { %7624 = vmatpush.bf16.msra.mxu3 %v11324_v53  ;;  %v11695_v53 = vld [vmem:[#allocation17 + $0x16c] sm:$0xf]  ;;  %v9869_v49 = vld [vmem:[#allocation17 + $0x5f8] sm:$0xf0] }
 0x5e5   : > { %7611 = vmatpush.bf16.msra.mxu2 %v11196_v5  ;;  %7633 = vmatpush.bf16.msrb.mxu0 %v9216_v33  ;;  %v9165_v5 = vld [vmem:[#allocation17 + $0x78] sm:$0xf0]  ;;  %v9616_v33 = vor.u32 %v11775_v62, %v9613_v11  ;;  %vm7867_vm1 = vcmp.ge.f32.partialorder %v7395_v28, 0.0  ;;  %v7871_v51 = vmul.f32 0.2, %v7395_v28  ;;  %v9296_v42 = vor.u32 %v11695_v53, %v9293_v6  ;;  %v7383_v0 = vpop.f32.mrf.mxu0 }
 0x5e6   : > { %7646 = vmatpush.bf16.msrb.mxu1 %v9344_v14  ;;  %v7874_v14 = vsel %vm7866_vm0, %v13198_v13, %v7870_v34  ;;  %v9168_v45 = vor.u32 %v11663_v26, %v9165_v5  ;;  %v9600_v13 = vor.u32 %v11771_v41, %v9597_v15  ;;  %v9261_v34 = vld [vmem:[#allocation17 + $0x138] sm:$0xf0]  ;;  %v11731_v21 = vld [vmem:[#allocation17 + $0x28c] sm:$0xf]  ;;  %v9136_v26 = vor.u32 %v11655_v16, %v9133_v59 }
 0x5e7   : > { %v7875_v10 = vsel %vm7867_vm1, %v7395_v28, %v7871_v51  ;;  %v11651_v28 = vld [vmem:[#allocation17 + $0xc] sm:$0xf]  ;;  %v9245_v6 = vld [vmem:[#allocation17 + $0x118] sm:$0xf0] }
 0x5e8   : > { %7625 = vmatpush.bf16.msra.mxu3 %v11308_v50  ;;  %v11691_v50 = vld [vmem:[#allocation17 + $0x14c] sm:$0xf]  ;;  %v7889_v58 = vmul.f32 %v7881_v37, %v7875_v10  ;;  %v7396_v12 = vpop.f32.mrf.mxu1  ;;  %v9549_v15 = vld [vmem:[#allocation17 + $0x378] sm:$0xf0] }
 0x5e9   : > { %7612 = vmatpush.bf16.msra.mxu2 %v11180_v55  ;;  %7634 = vmatpush.bf16.msrb.mxu0 %v9200_v54  ;;  %v9472_v55 = vor.u32 %v11739_v40, %v9469_v36  ;;  %v7888_v54 = vmul.f32 %v7880_v46, %v7874_v14  ;;  %v9280_v56 = vor.u32 %v11691_v50, %v9277_v1  ;;  %v11763_v37 = vld [vmem:[#allocation17 + $0x38c] sm:$0xf]  ;;  %v9421_v36 = vld [vmem:[#allocation17 + $0x278] sm:$0xf0]  ;;  %v12368_v14 = vld [vmem:[#allocation19] sm:$0xf] }
 0x5ea   : > { %7647 = vmatpush.bf16.msrb.mxu1 %v9328_v8  ;;  %v9453_v8 = vld [vmem:[#allocation17 + $0x2b8] sm:$0xf0]  ;;  %v7894_v11 = vsel %vm7892_vm2, %v7889_v58, 0.0  ;;  %v11683_v53 = vld [vmem:[#allocation17 + $0x10c] sm:$0xf]  ;;  %v4044_v51 = vperm.slane %v12368_v14, 2 }
 0x5eb   : > { %v9456_v46 = vor.u32 %v11735_v3, %v9453_v8  ;;  %v7893_v62 = vsel %vm7892_vm2, %v7888_v54, 0.0  ;;  %v11759_v41 = vld [vmem:[#allocation17 + $0x36c] sm:$0xf]  ;;  %v9741_v10 = vld [vmem:[#allocation17 + $0x4f8] sm:$0xf0]  ;;  %v9248_v19 = vor.u32 %v11683_v53, %v9245_v6 }
 0x5ec   : > { %7626 = vmatpush.bf16.msra.mxu3 %v11292_v22  ;;  %v9565_v22 = vld [vmem:[#allocation17 + $0x398] sm:$0xf0]  ;;  %v9552_v58 = vor.u32 %v11759_v41, %v9549_v15  ;;  %v11723_v3 = vld [vmem:[#allocation17 + $0x24c] sm:$0xf] }
 0x5ed   : > { %7613 = vmatpush.bf16.msra.mxu2 %v11164_v18  ;;  %7635 = vmatpush.bf16.msrb.mxu0 %v9184_v23  ;;  %v9437_v18 = vld [vmem:[#allocation17 + $0x298] sm:$0xf0]  ;;  %v13245_v23 = vadd.f32 %v7894_v11, %v7893_v62  ;;  %v9568_v40 = vor.u32 %v11763_v37, %v9565_v22  ;;  %v11755_v12 = vld [vmem:[#allocation17 + $0x34c] sm:$0xf] }
 0x5ee   : > { %7648 = vmatpush.bf16.msrb.mxu1 %v9312_v29  ;;  %v9117_v29 = vld [vmem:[#allocation17 + $0x18] sm:$0xf0]  ;;  %v9440_v5 = vor.u32 %v11731_v21, %v9437_v18  ;;  %v11719_v21 = vld [vmem:[#allocation17 + $0x22c] sm:$0xf] }
 0x5ef   : > { %7627 = vmatmul.bf16.vlgmr.msra.gmra.mxu3 %v13172_v7  ;;  %v9405_v8 = vld [vmem:[#allocation17 + $0x258] sm:$0xf0]  ;;  %v11751_v62 = vld [vmem:[#allocation17 + $0x32c] sm:$0xf] }
 0x5f0   : > { %7671 = vmatpush.bf16.msrb.mxu3 %v9616_v33  ;;  %7614 = vmatmul.bf16.vlgmr.msra.gmra.mxu2 %v13170_v61  ;;  %v11727_v33 = vld [vmem:[#allocation17 + $0x26c] sm:$0xf]  ;;  %v9533_v4 = vld [vmem:[#allocation17 + $0x358] sm:$0xf0] }
 0x5f1   : > { %7658 = vmatpush.bf16.msrb.mxu2 %v9488_v31  ;;  %7636 = vmatpush.bf16.msrb.mxu0 %v9168_v45  ;;  %v9264_v31 = vor.u32 %v11687_v17, %v9261_v34  ;;  %v11807_v45 = vld [vmem:[#allocation17 + $0x4ec] sm:$0xf]  ;;  %v9424_v50 = vor.u32 %v11727_v33, %v9421_v36  ;;  %v9725_v16 = vld [vmem:[#allocation17 + $0x4d8] sm:$0xf0]  ;;  %v9408_v17 = vor.u32 %v11723_v3, %v9405_v8 }
 0x5f2   : > { %7649 = vmatpush.bf16.msrb.mxu1 %v9296_v42  ;;  %v9120_v42 = vor.u32 %v11651_v28, %v9117_v29  ;;  %v7420_v1 = vpop.f32.mrf.mxu3  ;;  %v9853_v59 = vld [vmem:[#allocation17 + $0x5d8] sm:$0xf0]  ;;  %v9536_v34 = vor.u32 %v11755_v12, %v9533_v4  ;;  %v11799_v22 = vld [vmem:[#allocation17 + $0x4ac] sm:$0xf] }
 0x5f3   : > { %v7407_v54 = vpop.f32.mrf.mxu2  ;;  %v9389_v18 = vld [vmem:[#allocation17 + $0x238] sm:$0xf0]  ;;  %v11831_v28 = vld [vmem:[#allocation17 + $0x5ac] sm:$0xf] }
 0x5f4   : > { %7672 = vmatpush.bf16.msrb.mxu3 %v9600_v13  ;;  %v9744_v13 = vor.u32 %v11807_v45, %v9741_v10  ;;  %v7408_v0 = vadd.f32 %v7407_v54, %v4044_v51  ;;  %v9517_v37 = vld [vmem:[#allocation17 + $0x338] sm:$0xf0]  ;;  %v11715_v53 = vld [vmem:[#allocation17 + $0x20c] sm:$0xf] }
 0x5f5   : > { %7659 = vmatpush.bf16.msrb.mxu2 %v9472_v55  ;;  %7637 = vmatpush.bf16.msrb.mxu0 %v9152_v60  ;;  %v11839_v55 = vld [vmem:[#allocation17 + $0x5ec] sm:$0xf]  ;;  %v9837_v29 = vld [vmem:[#allocation17 + $0x5b8] sm:$0xf0]  ;;  %v9520_v6 = vor.u32 %v11751_v62, %v9517_v37 }
 0x5f6   : > { %7650 = vmatpush.bf16.msrb.mxu1 %v9280_v56  ;;  %v9872_v43 = vor.u32 %v11839_v55, %v9869_v49  ;;  %v11803_v60 = vld [vmem:[#allocation17 + $0x4cc] sm:$0xf]  ;;  %v7421_v56 = vadd.f32 %v7420_v1, %v7408_v0  ;;  %v9373_v36 = vld [vmem:[#allocation17 + $0x218] sm:$0xf0]  ;;  %v9840_v14 = vor.u32 %v11831_v28, %v9837_v29 }
 0x5f7   : > { %v11747_v41 = vld [vmem:[#allocation17 + $0x30c] sm:$0xf]  ;;  %v9693_v15 = vld [vmem:[#allocation17 + $0x498] sm:$0xf0] }
 0x5f8   : > { %7673 = vmatpush.bf16.msrb.mxu3 %v9584_v20  ;;  %v9728_v20 = vor.u32 %v11803_v60, %v9725_v16  ;;  %v11795_v51 = vld [vmem:[#allocation17 + $0x48c] sm:$0xf]  ;;  %v9821_v10 = vld [vmem:[#allocation17 + $0x598] sm:$0xf0] }
 0x5f9   : > { %7660 = vmatpush.bf16.msrb.mxu2 %v9456_v46  ;;  %7638 = vmatpush.bf16.msrb.mxu0 %v9136_v26  ;;  %v11835_v46 = vld [vmem:[#allocation17 + $0x5cc] sm:$0xf]  ;;  %v9709_v26 = vld [vmem:[#allocation17 + $0x4b8] sm:$0xf0]  ;;  %v9696_v0 = vor.u32 %v11795_v51, %v9693_v15 }
 0x5fa   : > { %7651 = vmatpush.bf16.msrb.mxu1 %v9264_v31  ;;  %v9856_v11 = vor.u32 %v11835_v46, %v9853_v59  ;;  %v9392_v31 = vor.u32 %v11719_v21, %v9389_v18  ;;  %v9712_v33 = vor.u32 %v11799_v22, %v9709_v26  ;;  %v11827_v45 = vld [vmem:[#allocation17 + $0x58c] sm:$0xf]  ;;  %v9997_v55 = vld [vmem:[#allocation17 + $0x6f8] sm:$0xf0] }
 0x5fb   : > { %v11903_v54 = vld [vmem:[#allocation17 + $0x7ec] sm:$0xf]  ;;  %v9824_v3 = vor.u32 %v11827_v45, %v9821_v10  ;;  %v9805_v16 = vld [vmem:[#allocation17 + $0x578] sm:$0xf0] }
 0x5fc   : > { %7674 = vmatpush.bf16.msrb.mxu3 %v9568_v40  ;;  %v7422_v40 = vpop.f32.mrf.mxu3  ;;  %v11791_v12 = vld [vmem:[#allocation17 + $0x46c] sm:$0xf]  ;;  %v9661_v62 = vld [vmem:[#allocation17 + $0x458] sm:$0xf0] }
 0x5fd   : > { %7661 = vmatpush.bf16.msrb.mxu2 %v9440_v5  ;;  %7639 = vmatpush.bf16.msrb.mxu0 %v9120_v42  ;;  %v7409_v5 = vpop.f32.mrf.mxu2  ;;  %v11871_v42 = vld [vmem:[#allocation17 + $0x6ec] sm:$0xf]  ;;  %v9789_v26 = vld [vmem:[#allocation17 + $0x558] sm:$0xf0] }
 0x5fe   : > { %7652 = vmatpush.bf16.msrb.mxu1 %v9248_v19  ;;  %v10000_v8 = vor.u32 %v11871_v42, %v9997_v55  ;;  %v11823_v4 = vld [vmem:[#allocation17 + $0x56c] sm:$0xf]  ;;  %v9965_v29 = vld [vmem:[#allocation17 + $0x6b8] sm:$0xf0] }
 0x5ff   : > { %v11867_v46 = vld [vmem:[#allocation17 + $0x6cc] sm:$0xf]  ;;  %v9949_v15 = vld [vmem:[#allocation17 + $0x698] sm:$0xf0] }
 0x600   : > { %7675 = vmatpush.bf16.msrb.mxu3 %v9552_v58  ;;  %7640 = vmatmul.bf16.vlgmr.msrb.gmra.mxu0 %v13094_v47  ;;  %v9501_v47 = vld [vmem:[#allocation17 + $0x318] sm:$0xf0]  ;;  %v7446_v19 = vpop.f32.mrf.mxu1  ;;  %v11899_v59 = vld [vmem:[#allocation17 + $0x7cc] sm:$0xf] }
 0x601   : > { %7662 = vmatpush.bf16.msrb.mxu2 %v9424_v50  ;;  %7684 = vmatpush.bf16.msra.mxu0 %v9744_v13  ;;  %v9376_v50 = vor.u32 %v11715_v53, %v9373_v36  ;;  %v10125_v58 = vld [vmem:[#allocation17 + $0x7f8] sm:$0xf0]  ;;  %v9504_v13 = vor.u32 %v11747_v41, %v9501_v47  ;;  %v11787_v18 = vld [vmem:[#allocation17 + $0x44c] sm:$0xf] }
 0x602   : > { %7697 = vmatpush.bf16.msra.mxu1 %v9872_v43  ;;  %v9677_v43 = vld [vmem:[#allocation17 + $0x478] sm:$0xf0]  ;;  %v10128_v60 = vor.u32 %v11903_v54, %v10125_v58  ;;  %v11863_v28 = vld [vmem:[#allocation17 + $0x6ac] sm:$0xf] }
 0x603   : > { %7653 = vmatmul.bf16.vlgmr.msrb.gmra.mxu1 %v13096_v48  ;;  %v7433_v48 = vpop.f32.mrf.mxu0  ;;  %v11895_v5 = vld [vmem:[#allocation17 + $0x7ac] sm:$0xf]  ;;  %v10093_v53 = vld [vmem:[#allocation17 + $0x7b8] sm:$0xf0]  ;;  %v9968_v40 = vor.u32 %v11863_v28, %v9965_v29 }
 0x604   : > { %7676 = vmatpush.bf16.msrb.mxu3 %v9536_v34  ;;  %v7434_v49 = vadd.f32 %v7433_v48, %v7421_v56  ;;  %v9981_v56 = vld [vmem:[#allocation17 + $0x6d8] sm:$0xf0]  ;;  %v9680_v34 = vor.u32 %v11791_v12, %v9677_v43  ;;  %v11783_v36 = vld [vmem:[#allocation17 + $0x42c] sm:$0xf] }
 0x605   : > { %7663 = vmatpush.bf16.msrb.mxu2 %v9408_v17  ;;  %7685 = vmatpush.bf16.msra.mxu0 %v9728_v20  ;;  %v10109_v17 = vld [vmem:[#allocation17 + $0x7d8] sm:$0xf0]  ;;  %v9808_v20 = vor.u32 %v11823_v4, %v9805_v16  ;;  %v9984_v21 = vor.u32 %v11867_v46, %v9981_v56  ;;  %v11815_v47 = vld [vmem:[#allocation17 + $0x52c] sm:$0xf] }
 0x606   : > { %7698 = vmatpush.bf16.msra.mxu1 %v9856_v11  ;;  %v13249_v1 = vadd.f32 %v7446_v19, %v7434_v49  ;;  %v11819_v11 = vld [vmem:[#allocation17 + $0x54c] sm:$0xf]  ;;  %v10112_v37 = vor.u32 %v11899_v59, %v10109_v17  ;;  %v9645_v41 = vld [vmem:[#allocation17 + $0x438] sm:$0xf0] }
 0x607   : > { %v11859_v51 = vld [vmem:[#allocation17 + $0x68c] sm:$0xf]  ;;  %v10077_v48 = vld [vmem:[#allocation17 + $0x798] sm:$0xf0] }
 0x608   : > { %7677 = vmatpush.bf16.msrb.mxu3 %v9520_v6  ;;  %v9664_v6 = vor.u32 %v11787_v18, %v9661_v62  ;;  %v11891_v45 = vld [vmem:[#allocation17 + $0x78c] sm:$0xf]  ;;  %v9952_v55 = vor.u32 %v11859_v51, %v9949_v15  ;;  %v9629_v49 = vld [vmem:[#allocation17 + $0x418] sm:$0xf0] }
 0x609   : > { %7664 = vmatpush.bf16.msrb.mxu2 %v9392_v31  ;;  %7686 = vmatpush.bf16.msra.mxu0 %v9712_v33  ;;  %v7448_v31 = vpop.f32.mrf.mxu1  ;;  %v9792_v33 = vor.u32 %v11819_v11, %v9789_v26  ;;  %v11779_v10 = vld [vmem:[#allocation17 + $0x40c] sm:$0xf]  ;;  %v10080_v54 = vor.u32 %v11891_v45, %v10077_v48  ;;  %v10253_v12 = vld [vmem:[#allocation17 + $0x8f8] sm:$0xf0] }
 0x60a   : > { %7699 = vmatpush.bf16.msra.mxu1 %v9840_v14  ;;  %v9773_v14 = vld [vmem:[#allocation17 + $0x538] sm:$0xf0]  ;;  %v11811_v19 = vld [vmem:[#allocation17 + $0x50c] sm:$0xf]  ;;  %v9632_v43 = vor.u32 %v11779_v10, %v9629_v49 }
 0x60b   : > { %v7435_v22 = vpop.f32.mrf.mxu0  ;;  %v9776_v42 = vor.u32 %v11815_v47, %v9773_v14  ;;  %v11855_v58 = vld [vmem:[#allocation17 + $0x66c] sm:$0xf]  ;;  %v9917_v18 = vld [vmem:[#allocation17 + $0x658] sm:$0xf0] }
 0x60c   : > { %7678 = vmatpush.bf16.msrb.mxu3 %v9504_v13  ;;  %v9933_v13 = vld [vmem:[#allocation17 + $0x678] sm:$0xf0]  ;;  %v11967_v4 = vld [vmem:[#allocation17 + $0x9ec] sm:$0xf] }
 0x60d   : > { %7665 = vmatpush.bf16.msrb.mxu2 %v9376_v50  ;;  %7687 = vmatpush.bf16.msra.mxu0 %v9696_v0  ;;  %v9757_v50 = vld [vmem:[#allocation17 + $0x518] sm:$0xf0]  ;;  %v11887_v0 = vld [vmem:[#allocation17 + $0x76c] sm:$0xf]  ;;  %v9936_v46 = vor.u32 %v11855_v58, %v9933_v13 }
 0x60e   : > { %7700 = vmatpush.bf16.msra.mxu1 %v9824_v3  ;;  %v10061_v3 = vld [vmem:[#allocation17 + $0x778] sm:$0xf0]  ;;  %v9760_v16 = vor.u32 %v11811_v19, %v9757_v50  ;;  %v11883_v62 = vld [vmem:[#allocation17 + $0x74c] sm:$0xf] }
 0x60f   : > { %7679 = vmatmul.bf16.vlgmr.msrb.gmra.mxu3 %v13109_v27  ;;  %v9648_v27 = vor.u32 %v11783_v36, %v9645_v41  ;;  %v10064_v59 = vor.u32 %v11887_v0, %v10061_v3  ;;  %v11931_v22 = vld [vmem:[#allocation17 + $0x8cc] sm:$0xf]  ;;  %v10237_v26 = vld [vmem:[#allocation17 + $0x8d8] sm:$0xf0] }
 0x610   : > { %7723 = vmatpush.bf16.msra.mxu3 %v10128_v60  ;;  %7666 = vmatmul.bf16.vlgmr.msrb.gmra.mxu2 %v13107_v24  ;;  %v10096_v24 = vor.u32 %v11895_v5, %v10093_v53  ;;  %v10381_v60 = vld [vmem:[#allocation17 + $0x9f8] sm:$0xf0]  ;;  %v11963_v29 = vld [vmem:[#allocation17 + $0x9cc] sm:$0xf] }
 0x611   : > { %7710 = vmatpush.bf16.msra.mxu2 %v10000_v8  ;;  %7688 = vmatpush.bf16.msra.mxu0 %v9680_v34  ;;  %v11935_v8 = vld [vmem:[#allocation17 + $0x8ec] sm:$0xf]  ;;  %v10384_v11 = vor.u32 %v11967_v4, %v10381_v60  ;;  %v10365_v31 = vld [vmem:[#allocation17 + $0x9d8] sm:$0xf0] }
 0x612   : > { %7701 = vmatpush.bf16.msra.mxu1 %v9808_v20  ;;  %v10256_v17 = vor.u32 %v11935_v8, %v10253_v12  ;;  %v7472_v20 = vpop.f32.mrf.mxu3  ;;  %v10368_v36 = vor.u32 %v11963_v29, %v10365_v31  ;;  %v10029_v41 = vld [vmem:[#allocation17 + $0x738] sm:$0xf0]  ;;  %v11927_v47 = vld [vmem:[#allocation17 + $0x8ac] sm:$0xf] }
 0x613   : > { %v7459_v56 = vpop.f32.mrf.mxu2  ;;  %v11959_v14 = vld [vmem:[#allocation17 + $0x9ac] sm:$0xf]  ;;  %v10349_v51 = vld [vmem:[#allocation17 + $0x9b8] sm:$0xf0] }
 0x614   : > { %7724 = vmatpush.bf16.msra.mxu3 %v10112_v37  ;;  %v7460_v34 = vadd.f32 %v7459_v56, %v13249_v1  ;;  %v10045_v37 = vld [vmem:[#allocation17 + $0x758] sm:$0xf0]  ;;  %v11847_v1 = vld [vmem:[#allocation17 + $0x62c] sm:$0xf]  ;;  %v10352_v19 = vor.u32 %v11959_v14, %v10349_v51 }
 0x615   : > { %7711 = vmatpush.bf16.msra.mxu2 %v9984_v21  ;;  %7689 = vmatpush.bf16.msra.mxu0 %v9664_v6  ;;  %v11851_v21 = vld [vmem:[#allocation17 + $0x64c] sm:$0xf]  ;;  %v10048_v53 = vor.u32 %v11883_v62, %v10045_v37  ;;  %v10240_v6 = vor.u32 %v11931_v22, %v10237_v26  ;;  %v10333_v13 = vld [vmem:[#allocation17 + $0x998] sm:$0xf0] }
 0x616   : > { %7702 = vmatpush.bf16.msra.mxu1 %v9792_v33  ;;  %v7473_v28 = vadd.f32 %v7472_v20, %v7460_v34  ;;  %v9920_v5 = vor.u32 %v11851_v21, %v9917_v18  ;;  %v9901_v33 = vld [vmem:[#allocation17 + $0x638] sm:$0xf0]  ;;  %v11843_v48 = vld [vmem:[#allocation17 + $0x60c] sm:$0xf] }
 0x617   : > { %v9904_v15 = vor.u32 %v11847_v1, %v9901_v33  ;;  %v11875_v49 = vld [vmem:[#allocation17 + $0x70c] sm:$0xf]  ;;  %v10509_v3 = vld [vmem:[#allocation17 + $0xaf8] sm:$0xf0] }
 0x618   : > { %7725 = vmatpush.bf16.msra.mxu3 %v10096_v24  ;;  %v10221_v24 = vld [vmem:[#allocation17 + $0x8b8] sm:$0xf0]  ;;  %v11923_v50 = vld [vmem:[#allocation17 + $0x88c] sm:$0xf] }
 0x619   : > { %7712 = vmatpush.bf16.msra.mxu2 %v9968_v40  ;;  %7690 = vmatpush.bf16.msra.mxu0 %v9648_v27  ;;  %v11879_v40 = vld [vmem:[#allocation17 + $0x72c] sm:$0xf]  ;;  %v10224_v10 = vor.u32 %v11927_v47, %v10221_v24  ;;  %v10637_v60 = vld [vmem:[#allocation17 + $0xbf8] sm:$0xf0] }
 0x61a   : > { %7703 = vmatpush.bf16.msra.mxu1 %v9776_v42  ;;  %v10032_v27 = vor.u32 %v11879_v40, %v10029_v41  ;;  %v7474_v42 = vpop.f32.mrf.mxu3  ;;  %v11955_v58 = vld [vmem:[#allocation17 + $0x98c] sm:$0xf]  ;;  %v10189_v20 = vld [vmem:[#allocation17 + $0x878] sm:$0xf0] }
 0x61b   : > { %v7461_v45 = vpop.f32.mrf.mxu2  ;;  %v11999_v0 = vld [vmem:[#allocation17 + $0xaec] sm:$0xf]  ;;  %v10317_v62 = vld [vmem:[#allocation17 + $0x978] sm:$0xf0] }
 0x61c   : > { %7726 = vmatpush.bf16.msra.mxu3 %v10080_v54  ;;  %v10205_v54 = vld [vmem:[#allocation17 + $0x898] sm:$0xf0]  ;;  %v12031_v4 = vld [vmem:[#allocation17 + $0xbec] sm:$0xf] }
 0x61d   : > { %7713 = vmatpush.bf16.msra.mxu2 %v9952_v55  ;;  %7691 = vmatpush.bf16.msra.mxu0 %v9632_v43  ;;  %v9885_v55 = vld [vmem:[#allocation17 + $0x618] sm:$0xf0]  ;;  %v11919_v34 = vld [vmem:[#allocation17 + $0x86c] sm:$0xf]  ;;  %v10640_v18 = vor.u32 %v12031_v4, %v10637_v60 }
 0x61e   : > { %7704 = vmatpush.bf16.msra.mxu1 %v9760_v16  ;;  %v9888_v43 = vor.u32 %v11843_v48, %v9885_v55  ;;  %v11951_v21 = vld [vmem:[#allocation17 + $0x96c] sm:$0xf]  ;;  %v10493_v37 = vld [vmem:[#allocation17 + $0xad8] sm:$0xf0] }
 0x61f   : > { %v12027_v22 = vld [vmem:[#allocation17 + $0xbcc] sm:$0xf]  ;;  %v10621_v26 = vld [vmem:[#allocation17 + $0xbd8] sm:$0xf0]  ;;  %v10320_v29 = vor.u32 %v11951_v21, %v10317_v62 }
 0x620   : > { %7727 = vmatpush.bf16.msra.mxu3 %v10064_v59  ;;  %7692 = vmatmul.bf16.vlgmr.msra.gmra.mxu0 %v13105_v25  ;;  %v10013_v25 = vld [vmem:[#allocation17 + $0x718] sm:$0xf0]  ;;  %v7498_v12 = vpop.f32.mrf.mxu1  ;;  %v10336_v59 = vor.u32 %v11955_v58, %v10333_v13  ;;  %v10624_v1 = vor.u32 %v12027_v22, %v10621_v26  ;;  %v12023_v24 = vld [vmem:[#allocation17 + $0xbac] sm:$0xf] }
 0x621   : > { %7714 = vmatpush.bf16.msra.mxu2 %v9936_v46  ;;  %7736 = vmatpush.bf16.msrb.mxu0 %v10256_v17  ;;  %v10016_v16 = vor.u32 %v11875_v49, %v10013_v25  ;;  %v10208_v46 = vor.u32 %v11923_v50, %v10205_v54  ;;  %v10512_v17 = vor.u32 %v11999_v0, %v10509_v3  ;;  %v10301_v40 = vld [vmem:[#allocation17 + $0x958] sm:$0xf0]  ;;  %v11911_v48 = vld [vmem:[#allocation17 + $0x82c] sm:$0xf] }
 0x622   : > { %7749 = vmatpush.bf16.msrb.mxu1 %v10384_v11  ;;  %v11995_v11 = vld [vmem:[#allocation17 + $0xacc] sm:$0xf]  ;;  %v10477_v41 = vld [vmem:[#allocation17 + $0xab8] sm:$0xf0] }
 0x623   : > { %7705 = vmatmul.bf16.vlgmr.msra.gmra.mxu1 %v13111_v32  ;;  %v7485_v32 = vpop.f32.mrf.mxu0  ;;  %v10496_v31 = vor.u32 %v11995_v11, %v10493_v37  ;;  %v10605_v14 = vld [vmem:[#allocation17 + $0xbb8] sm:$0xf0]  ;;  %v11987_v55 = vld [vmem:[#allocation17 + $0xa8c] sm:$0xf] }
 0x624   : > { %7728 = vmatpush.bf16.msra.mxu3 %v10048_v53  ;;  %v7486_v8 = vadd.f32 %v7485_v32, %v7473_v28  ;;  %v10192_v28 = vor.u32 %v11919_v34, %v10189_v20  ;;  %v10173_v53 = vld [vmem:[#allocation17 + $0x858] sm:$0xf0]  ;;  %v12019_v25 = vld [vmem:[#allocation17 + $0xb8c] sm:$0xf] }
 0x625   : > { %7715 = vmatpush.bf16.msra.mxu2 %v9920_v5  ;;  %7737 = vmatpush.bf16.msrb.mxu0 %v10240_v6  ;;  %v11915_v5 = vld [vmem:[#allocation17 + $0x84c] sm:$0xf]  ;;  %v10285_v42 = vld [vmem:[#allocation17 + $0x938] sm:$0xf0] }
 0x626   : > { %7750 = vmatpush.bf16.msrb.mxu1 %v10368_v36  ;;  %v13256_v56 = vadd.f32 %v7498_v12, %v7486_v8  ;;  %v11947_v6 = vld [vmem:[#allocation17 + $0x94c] sm:$0xf]  ;;  %v10176_v51 = vor.u32 %v11915_v5, %v10173_v53  ;;  %v10461_v49 = vld [vmem:[#allocation17 + $0xa98] sm:$0xf0] }
 0x627   : > { %v11991_v36 = vld [vmem:[#allocation17 + $0xaac] sm:$0xf]  ;;  %v10464_v58 = vor.u32 %v11987_v55, %v10461_v49  ;;  %v10141_v32 = vld [vmem:[#allocation17 + $0x818] sm:$0xf0] }
 0x628   : > { %7729 = vmatpush.bf16.msra.mxu3 %v10032_v27  ;;  %v7500_v47 = vpop.f32.mrf.mxu1  ;;  %v10480_v45 = vor.u32 %v11991_v36, %v10477_v41  ;;  %v10157_v27 = vld [vmem:[#allocation17 + $0x838] sm:$0xf0]  ;;  %v11907_v50 = vld [vmem:[#allocation17 + $0x80c] sm:$0xf] }
 0x629   : > { %7716 = vmatpush.bf16.msra.mxu2 %v9904_v15  ;;  %7738 = vmatpush.bf16.msrb.mxu0 %v10224_v10  ;;  %v10304_v15 = vor.u32 %v11947_v6, %v10301_v40  ;;  %v11943_v10 = vld [vmem:[#allocation17 + $0x92c] sm:$0xf]  ;;  %v10269_v0 = vld [vmem:[#allocation17 + $0x918] sm:$0xf0] }
 0x62a   : > { %7751 = vmatpush.bf16.msrb.mxu1 %v10352_v19  ;;  %v10589_v19 = vld [vmem:[#allocation17 + $0xb98] sm:$0xf0]  ;;  %v10288_v54 = vor.u32 %v11943_v10, %v10285_v42  ;;  %v11939_v13 = vld [vmem:[#allocation17 + $0x90c] sm:$0xf] }
 0x62b   : > { %v7487_v33 = vpop.f32.mrf.mxu0  ;;  %v10592_v3 = vor.u32 %v12019_v25, %v10589_v19  ;;  %v11983_v8 = vld [vmem:[#allocation17 + $0xa6c] sm:$0xf]  ;;  %v10445_v12 = vld [vmem:[#allocation17 + $0xa78] sm:$0xf0]  ;;  %v10272_v34 = vor.u32 %v11939_v13, %v10269_v0 }
 0x62c   : > { %7730 = vmatpush.bf16.msra.mxu3 %v10016_v16  ;;  %v10573_v4 = vld [vmem:[#allocation17 + $0xb78] sm:$0xf0]  ;;  %v12063_v60 = vld [vmem:[#allocation17 + $0xcec] sm:$0xf]  ;;  %v10448_v20 = vor.u32 %v11983_v8, %v10445_v12 }
 0x62d   : > { %7717 = vmatpush.bf16.msra.mxu2 %v9888_v43  ;;  %7739 = vmatpush.bf16.msrb.mxu0 %v10208_v46  ;;  %v12015_v43 = vld [vmem:[#allocation17 + $0xb6c] sm:$0xf]  ;;  %v10765_v16 = vld [vmem:[#allocation17 + $0xcf8] sm:$0xf0]  ;;  %v10144_v46 = vor.u32 %v11907_v50, %v10141_v32 }
 0x62e   : > { %7752 = vmatpush.bf16.msrb.mxu1 %v10336_v59  ;;  %v12095_v59 = vld [vmem:[#allocation17 + $0xdec] sm:$0xf]  ;;  %v10768_v62 = vor.u32 %v12063_v60, %v10765_v16  ;;  %v10429_v26 = vld [vmem:[#allocation17 + $0xa58] sm:$0xf0] }
 0x62f   : > { %7731 = vmatmul.bf16.vlgmr.msra.gmra.mxu3 %v13132_v39  ;;  %v10160_v39 = vor.u32 %v11911_v48, %v10157_v27  ;;  %v11979_v22 = vld [vmem:[#allocation17 + $0xa4c] sm:$0xf]  ;;  %v10749_v53 = vld [vmem:[#allocation17 + $0xcd8] sm:$0xf0] }
 0x630   : > { %7775 = vmatpush.bf16.msrb.mxu3 %v10640_v18  ;;  %7718 = vmatmul.bf16.vlgmr.msra.gmra.mxu2 %v13130_v38  ;;  %v10608_v38 = vor.u32 %v12023_v24, %v10605_v14  ;;  %v10576_v18 = vor.u32 %v12015_v43, %v10573_v4  ;;  %v12059_v5 = vld [vmem:[#allocation17 + $0xccc] sm:$0xf]  ;;  %v10877_v33 = vld [vmem:[#allocation17 + $0xdd8] sm:$0xf0]  ;;  %v10432_v40 = vor.u32 %v11979_v22, %v10429_v26 }
 0x631   : > { %7762 = vmatpush.bf16.msrb.mxu2 %v10512_v17  ;;  %7740 = vmatpush.bf16.msrb.mxu0 %v10192_v28  ;;  %v10893_v17 = vld [vmem:[#allocation17 + $0xdf8] sm:$0xf0]  ;;  %v12011_v28 = vld [vmem:[#allocation17 + $0xb4c] sm:$0xf]  ;;  %v10752_v41 = vor.u32 %v12059_v5, %v10749_v53 }
 0x632   : > { %7753 = vmatpush.bf16.msrb.mxu1 %v10320_v29  ;;  %v7524_v37 = vpop.f32.mrf.mxu3  ;;  %v10896_v29 = vor.u32 %v12095_v59, %v10893_v17  ;;  %v10413_v47 = vld [vmem:[#allocation17 + $0xa38] sm:$0xf0]  ;;  %v12007_v24 = vld [vmem:[#allocation17 + $0xb2c] sm:$0xf] }
 0x633   : > { %v7511_v21 = vpop.f32.mrf.mxu2  ;;  %v12087_v48 = vld [vmem:[#allocation17 + $0xdac] sm:$0xf]  ;;  %v10861_v27 = vld [vmem:[#allocation17 + $0xdb8] sm:$0xf0] }
 0x634   : > { %7776 = vmatpush.bf16.msrb.mxu3 %v10624_v1  ;;  %v7512_v11 = vadd.f32 %v7511_v21, %v13256_v56  ;;  %v12091_v1 = vld [vmem:[#allocation17 + $0xdcc] sm:$0xf]  ;;  %v10397_v19 = vld [vmem:[#allocation17 + $0xa18] sm:$0xf0]  ;;  %v10864_v50 = vor.u32 %v12087_v48, %v10861_v27 }
 0x635   : > { %7763 = vmatpush.bf16.msrb.mxu2 %v10496_v31  ;;  %7741 = vmatpush.bf16.msrb.mxu0 %v10176_v51  ;;  %v10557_v31 = vld [vmem:[#allocation17 + $0xb58] sm:$0xf0]  ;;  %v11975_v56 = vld [vmem:[#allocation17 + $0xa2c] sm:$0xf]  ;;  %v10880_v14 = vor.u32 %v12091_v1, %v10877_v33 }
 0x636   : > { %7754 = vmatpush.bf16.msrb.mxu1 %v10304_v15  ;;  %v7525_v6 = vadd.f32 %v7524_v37, %v7512_v11  ;;  %v10560_v36 = vor.u32 %v12011_v28, %v10557_v31  ;;  %v10541_v51 = vld [vmem:[#allocation17 + $0xb38] sm:$0xf0]  ;;  %v12055_v15 = vld [vmem:[#allocation17 + $0xcac] sm:$0xf]  ;;  %v10416_v10 = vor.u32 %v11975_v56, %v10413_v47 }
 0x637   : > { %v11971_v42 = vld [vmem:[#allocation17 + $0xa0c] sm:$0xf]  ;;  %v10544_v55 = vor.u32 %v12007_v24, %v10541_v51  ;;  %v10845_v13 = vld [vmem:[#allocation17 + $0xd98] sm:$0xf0] }
 0x638   : > { %7777 = vmatpush.bf16.msrb.mxu3 %v10608_v38  ;;  %v12083_v32 = vld [vmem:[#allocation17 + $0xd8c] sm:$0xf]  ;;  %v10400_v43 = vor.u32 %v11971_v42, %v10397_v19  ;;  %v11149_v60 = vld [vmem:[#allocation17 + $0xff8] sm:$0xf0] }
 0x639   : > { %7764 = vmatpush.bf16.msrb.mxu2 %v10480_v45  ;;  %7742 = vmatpush.bf16.msrb.mxu0 %v10160_v39  ;;  %v10733_v45 = vld [vmem:[#allocation17 + $0xcb8] sm:$0xf0]  ;;  %v12003_v39 = vld [vmem:[#allocation17 + $0xb0c] sm:$0xf]  ;;  %v10848_v17 = vor.u32 %v12083_v32, %v10845_v13 }
 0x63a   : > { %7755 = vmatpush.bf16.msrb.mxu1 %v10288_v54  ;;  %v10736_v49 = vor.u32 %v12055_v15, %v10733_v45  ;;  %v7526_v25 = vpop.f32.mrf.mxu3  ;;  %v12051_v54 = vld [vmem:[#allocation17 + $0xc8c] sm:$0xf]  ;;  %v10701_v21 = vld [vmem:[#allocation17 + $0xc78] sm:$0xf0] }
 0x63b   : > { %v7513_v38 = vpop.f32.mrf.mxu2  ;;  %v12127_v0 = vld [vmem:[#allocation17 + $0xeec] sm:$0xf]  ;;  %v10829_v11 = vld [vmem:[#allocation17 + $0xd78] sm:$0xf0] }
 0x63c   : > { %7778 = vmatpush.bf16.msrb.mxu3 %v10592_v3  ;;  %v11021_v3 = vld [vmem:[#allocation17 + $0xef8] sm:$0xf0]  ;;  %v12159_v4 = vld [vmem:[#allocation17 + $0xfec] sm:$0xf] }
 0x63d   : > { %7765 = vmatpush.bf16.msrb.mxu2 %v10464_v58  ;;  %7743 = vmatpush.bf16.msrb.mxu0 %v10144_v46  ;;  %v10717_v58 = vld [vmem:[#allocation17 + $0xc98] sm:$0xf0]  ;;  %v12123_v37 = vld [vmem:[#allocation17 + $0xecc] sm:$0xf] }
 0x63e   : > { %7756 = vmatpush.bf16.msrb.mxu1 %v10272_v34  ;;  %v10720_v46 = vor.u32 %v12051_v54, %v10717_v58  ;;  %v11024_v34 = vor.u32 %v12127_v0, %v11021_v3  ;;  %v11005_v22 = vld [vmem:[#allocation17 + $0xed8] sm:$0xf0]  ;;  %v12155_v26 = vld [vmem:[#allocation17 + $0xfcc] sm:$0xf] }
 0x63f   : > { %v11133_v28 = vld [vmem:[#allocation17 + $0xfd8] sm:$0xf0]  ;;  %v11008_v5 = vor.u32 %v12123_v37, %v11005_v22  ;;  %v12043_v53 = vld [vmem:[#allocation17 + $0xc4c] sm:$0xf] }
 0x640   : > { %7779 = vmatpush.bf16.msrb.mxu3 %v10576_v18  ;;  %7744 = vmatmul.bf16.vlgmr.msrb.gmra.mxu0 %v13128_v35  ;;  %v10525_v35 = vld [vmem:[#allocation17 + $0xb18] sm:$0xf0]  ;;  %v7550_v12 = vpop.f32.mrf.mxu1  ;;  %v12079_v18 = vld [vmem:[#allocation17 + $0xd6c] sm:$0xf]  ;;  %v11136_v33 = vor.u32 %v12155_v26, %v11133_v28 }
 0x641   : > { %7766 = vmatpush.bf16.msrb.mxu2 %v10448_v20  ;;  %7788 = vmatpush.bf16.msra.mxu0 %v10768_v62  ;;  %v10528_v16 = vor.u32 %v12003_v39, %v10525_v35  ;;  %v12047_v20 = vld [vmem:[#allocation17 + $0xc6c] sm:$0xf]  ;;  %v11152_v62 = vor.u32 %v12159_v4, %v11149_v60  ;;  %v10832_v31 = vor.u32 %v12079_v18, %v10829_v11  ;;  %v10989_v56 = vld [vmem:[#allocation17 + $0xeb8] sm:$0xf0] }
 0x642   : > { %7801 = vmatpush.bf16.msra.mxu1 %v10896_v29  ;;  %v10704_v29 = vor.u32 %v12047_v20, %v10701_v21  ;;  %v12075_v1 = vld [vmem:[#allocation17 + $0xd4c] sm:$0xf]  ;;  %v10669_v27 = vld [vmem:[#allocation17 + $0xc38] sm:$0xf0] }
 0x643   : > { %7757 = vmatmul.bf16.vlgmr.msrb.gmra.mxu1 %v13135_v52  ;;  %v7537_v52 = vpop.f32.mrf.mxu0  ;;  %v12151_v24 = vld [vmem:[#allocation17 + $0xfac] sm:$0xf]  ;;  %v10797_v38 = vld [vmem:[#allocation17 + $0xd38] sm:$0xf0] }
 0x644   : > { %7780 = vmatpush.bf16.msrb.mxu3 %v10560_v36  ;;  %v7538_v8 = vadd.f32 %v7537_v52, %v7525_v6  ;;  %v10685_v6 = vld [vmem:[#allocation17 + $0xc58] sm:$0xf0]  ;;  %v12039_v48 = vld [vmem:[#allocation17 + $0xc2c] sm:$0xf] }
 0x645   : > { %7767 = vmatpush.bf16.msrb.mxu2 %v10432_v40  ;;  %7789 = vmatpush.bf16.msra.mxu0 %v10752_v41  ;;  %v10813_v36 = vld [vmem:[#allocation17 + $0xd58] sm:$0xf0]  ;;  %v12119_v41 = vld [vmem:[#allocation17 + $0xeac] sm:$0xf]  ;;  %v10688_v51 = vor.u32 %v12043_v53, %v10685_v6 }
 0x646   : > { %7802 = vmatpush.bf16.msra.mxu1 %v10880_v14  ;;  %v13263_v59 = vadd.f32 %v7550_v12, %v7538_v8  ;;  %v11117_v14 = vld [vmem:[#allocation17 + $0xfb8] sm:$0xf0]  ;;  %v10816_v15 = vor.u32 %v12075_v1, %v10813_v36  ;;  %v10992_v45 = vor.u32 %v12119_v41, %v10989_v56  ;;  %v12115_v42 = vld [vmem:[#allocation17 + $0xe8c] sm:$0xf] }
 0x647   : > { %v11101_v25 = vld [vmem:[#allocation17 + $0xf98] sm:$0xf0]  ;;  %v12035_v19 = vld [vmem:[#allocation17 + $0xc0c] sm:$0xf] }
 0x648   : > { %7781 = vmatpush.bf16.msrb.mxu3 %v10544_v55  ;;  %v7552_v47 = vpop.f32.mrf.mxu1  ;;  %v10973_v55 = vld [vmem:[#allocation17 + $0xe98] sm:$0xf0]  ;;  %v12067_v54 = vld [vmem:[#allocation17 + $0xd0c] sm:$0xf] }
 0x649   : > { %7768 = vmatpush.bf16.msrb.mxu2 %v10416_v10  ;;  %7790 = vmatpush.bf16.msra.mxu0 %v10736_v49  ;;  %v12071_v10 = vld [vmem:[#allocation17 + $0xd2c] sm:$0xf]  ;;  %v10976_v35 = vor.u32 %v12115_v42, %v10973_v55  ;;  %v10781_v58 = vld [vmem:[#allocation17 + $0xd18] sm:$0xf0] }
 0x64a   : > { %7803 = vmatpush.bf16.msra.mxu1 %v10864_v50  ;;  %v12147_v49 = vld [vmem:[#allocation17 + $0xf8c] sm:$0xf]  ;;  %v10800_v39 = vor.u32 %v12071_v10, %v10797_v38  ;;  %v10653_v50 = vld [vmem:[#allocation17 + $0xc18] sm:$0xf0] }
 0x64b   : > { %v7539_v40 = vpop.f32.mrf.mxu0  ;;  %v11104_v32 = vor.u32 %v12147_v49, %v11101_v25  ;;  %v12111_v52 = vld [vmem:[#allocation17 + $0xe6c] sm:$0xf]  ;;  %v10957_v13 = vld [vmem:[#allocation17 + $0xe78] sm:$0xf0] }
 0x64c   : > { %7782 = vmatpush.bf16.msrb.mxu3 %v10528_v16  ;;  %v12143_v0 = vld [vmem:[#allocation17 + $0xf6c] sm:$0xf]  ;;  %v11085_v3 = vld [vmem:[#allocation17 + $0xf78] sm:$0xf0]  ;;  %v10784_v16 = vor.u32 %v12067_v54, %v10781_v58 }
 0x64d   : > { %7769 = vmatpush.bf16.msrb.mxu2 %v10400_v43  ;;  %7791 = vmatpush.bf16.msra.mxu0 %v10720_v46  ;;  %v12191_v8 = vld [vmem:[#allocation17 + $0x10ec] sm:$0xf]  ;;  %v11277_v12 = vld [vmem:[#allocation17 + $0x10f8] sm:$0xf0]  ;;  %v10656_v43 = vor.u32 %v12035_v19, %v10653_v50  ;;  %v10960_v46 = vor.u32 %v12111_v52, %v10957_v13 }
 0x64e   : > { %7804 = vmatpush.bf16.msra.mxu1 %v10848_v17  ;;  %v12223_v4 = vld [vmem:[#allocation17 + $0x11ec] sm:$0xf]  ;;  %v11405_v60 = vld [vmem:[#allocation17 + $0x11f8] sm:$0xf0]  ;;  %v11280_v20 = vor.u32 %v12191_v8, %v11277_v12 }
 0x64f   : > { %7783 = vmatmul.bf16.vlgmr.msrb.gmra.mxu3 %v13145_v30  ;;  %v10672_v30 = vor.u32 %v12039_v48, %v10669_v27  ;;  %v10941_v11 = vld [vmem:[#allocation17 + $0xe58] sm:$0xf0]  ;;  %v12139_v37 = vld [vmem:[#allocation17 + $0xf4c] sm:$0xf]  ;;  %v11408_v22 = vor.u32 %v12223_v4, %v11405_v60 }
 0x650   : > { %7827 = vmatpush.bf16.msra.mxu3 %v11152_v62  ;;  %7770 = vmatmul.bf16.vlgmr.msrb.gmra.mxu2 %v13143_v57  ;;  %v11120_v57 = vor.u32 %v12151_v24, %v11117_v14  ;;  %v12107_v62 = vld [vmem:[#allocation17 + $0xe4c] sm:$0xf]  ;;  %v11069_v26 = vld [vmem:[#allocation17 + $0xf58] sm:$0xf0] }
 0x651   : > { %7814 = vmatpush.bf16.msra.mxu2 %v11024_v34  ;;  %7792 = vmatpush.bf16.msra.mxu0 %v10704_v29  ;;  %v11088_v34 = vor.u32 %v12143_v0, %v11085_v3  ;;  %v12187_v28 = vld [vmem:[#allocation17 + $0x10cc] sm:$0xf]  ;;  %v11261_v29 = vld [vmem:[#allocation17 + $0x10d8] sm:$0xf0]  ;;  %v10944_v6 = vor.u32 %v12107_v62, %v10941_v11  ;;  %v11072_v1 = vor.u32 %v12139_v37, %v11069_v26 }
 0x652   : > { %7805 = vmatpush.bf16.msra.mxu1 %v10832_v31  ;;  %v7576_v18 = vpop.f32.mrf.mxu3  ;;  %v11389_v53 = vld [vmem:[#allocation17 + $0x11d8] sm:$0xf0]  ;;  %v12135_v36 = vld [vmem:[#allocation17 + $0xf2c] sm:$0xf] }
 0x653   : > { %v7563_v17 = vpop.f32.mrf.mxu2  ;;  %v10925_v40 = vld [vmem:[#allocation17 + $0xe38] sm:$0xf0]  ;;  %v12183_v47 = vld [vmem:[#allocation17 + $0x10ac] sm:$0xf] }
 0x654   : > { %7828 = vmatpush.bf16.msra.mxu3 %v11136_v33  ;;  %v7564_v21 = vadd.f32 %v7563_v17, %v13263_v59  ;;  %v11264_v33 = vor.u32 %v12187_v28, %v11261_v29  ;;  %v12103_v59 = vld [vmem:[#allocation17 + $0xe2c] sm:$0xf]  ;;  %v11053_v56 = vld [vmem:[#allocation17 + $0xf38] sm:$0xf0] }
 0x655   : > { %7815 = vmatpush.bf16.msra.mxu2 %v11008_v5  ;;  %7793 = vmatpush.bf16.msra.mxu0 %v10688_v51  ;;  %v12219_v5 = vld [vmem:[#allocation17 + $0x11cc] sm:$0xf]  ;;  %v11245_v24 = vld [vmem:[#allocation17 + $0x10b8] sm:$0xf0]  ;;  %v11056_v48 = vor.u32 %v12135_v36, %v11053_v56 }
 0x656   : > { %7806 = vmatpush.bf16.msra.mxu1 %v10816_v15  ;;  %v7577_v31 = vadd.f32 %v7576_v18, %v7564_v21  ;;  %v11392_v41 = vor.u32 %v12219_v5, %v11389_v53  ;;  %v12215_v14 = vld [vmem:[#allocation17 + $0x11ac] sm:$0xf]  ;;  %v11373_v51 = vld [vmem:[#allocation17 + $0x11b8] sm:$0xf0]  ;;  %v10928_v15 = vor.u32 %v12103_v59, %v10925_v40  ;;  %v11248_v27 = vor.u32 %v12183_v47, %v11245_v24  ;;  %v13272_v59 = vld [vmem:[#allocation20] sm:$0xf] }
 0x657   : > { %v10909_v38 = vld [vmem:[#allocation17 + $0xe18] sm:$0xf0]  ;;  %v12131_v42 = vld [vmem:[#allocation17 + $0xf0c] sm:$0xf]  ;;  %v7882_v40 = vperm.slane %v13272_v59, 2 }
 0x658   : > { %7829 = vmatpush.bf16.msra.mxu3 %v11120_v57  ;;  %v12099_v57 = vld [vmem:[#allocation17 + $0xe0c] sm:$0xf]  ;;  %v11037_v55 = vld [vmem:[#allocation17 + $0xf18] sm:$0xf0]  ;;  %v12370_v47 = vld [vmem:[#allocation19] sm:$0xf] }
 0x659   : > { %7816 = vmatpush.bf16.msra.mxu2 %v10992_v45  ;;  %7794 = vmatpush.bf16.msra.mxu0 %v10672_v30  ;;  %v12179_v49 = vld [vmem:[#allocation17 + $0x108c] sm:$0xf]  ;;  %v11229_v25 = vld [vmem:[#allocation17 + $0x1098] sm:$0xf0]  ;;  %v10912_v50 = vor.u32 %v12099_v57, %v10909_v38  ;;  %v11040_v54 = vor.u32 %v12131_v42, %v11037_v55  ;;  %v4045_v24 = vperm.slane %v12370_v47, 3 }
 0x65a   : > { %7807 = vmatpush.bf16.msra.mxu1 %v10800_v39  ;;  %v7578_v10 = vpop.f32.mrf.mxu3  ;;  %v11357_v19 = vld [vmem:[#allocation17 + $0x1198] sm:$0xf0]  ;;  %v11232_v58 = vor.u32 %v12179_v49, %v11229_v25  ;;  %v12175_v13 = vld [vmem:[#allocation17 + $0x106c] sm:$0xf] }
 0x65b   : > { %v7565_v45 = vpop.f32.mrf.mxu2  ;;  %v11213_v0 = vld [vmem:[#allocation17 + $0x1078] sm:$0xf0]  ;;  %v12207_v3 = vld [vmem:[#allocation17 + $0x116c] sm:$0xf] }
 0x65c   : > { %7830 = vmatpush.bf16.msra.mxu3 %v11104_v32  ;;  %v11341_v8 = vld [vmem:[#allocation17 + $0x1178] sm:$0xf0]  ;;  %v11216_v12 = vor.u32 %v12175_v13, %v11213_v0  ;;  %v12171_v4 = vld [vmem:[#allocation17 + $0x104c] sm:$0xf] }
 0x65d   : > { %7817 = vmatpush.bf16.msra.mxu2 %v10976_v35  ;;  %7795 = vmatpush.bf16.msra.mxu0 %v10656_v43  ;;  %v7589_v30 = vpop.f32.mrf.mxu0  ;;  %v11344_v43 = vor.u32 %v12207_v3, %v11341_v8  ;;  %v11197_v60 = vld [vmem:[#allocation17 + $0x1058] sm:$0xf0]  ;;  %v12167_v18 = vld [vmem:[#allocation17 + $0x102c] sm:$0xf] }
 0x65e   : > { %7808 = vmatpush.bf16.msra.mxu1 %v10784_v16  ;;  %v7590_v39 = vadd.f32 %v7589_v30, %v7577_v31  ;;  %v11325_v17 = vld [vmem:[#allocation17 + $0x1158] sm:$0xf0]  ;;  %v12199_v11 = vld [vmem:[#allocation17 + $0x112c] sm:$0xf] }
 0x65f   : > { %v11181_v62 = vld [vmem:[#allocation17 + $0x1038] sm:$0xf0]  ;;  %v12163_v28 = vld [vmem:[#allocation17 + $0x100c] sm:$0xf] }
 0x660   : > { %7831 = vmatpush.bf16.msra.mxu3 %v11088_v34  ;;  %7796 = vmatmul.bf16.vlgmr.msra.gmra.mxu0 %v13155_v44  ;;  %v11376_v44 = vor.u32 %v12215_v14, %v11373_v51  ;;  %v7602_v35 = vpop.f32.mrf.mxu1  ;;  %v11309_v37 = vld [vmem:[#allocation17 + $0x1138] sm:$0xf0]  ;;  %v12195_v29 = vld [vmem:[#allocation17 + $0x110c] sm:$0xf] }
 0x661   : > { %7818 = vmatpush.bf16.msra.mxu2 %v10960_v46  ;;  %7840 = vmatpush.bf16.msrb.mxu0 %v11280_v20  ;;  %v7603_v32 = vadd.f32 %v7602_v35, %v7590_v39  ;;  %v12203_v46 = vld [vmem:[#allocation17 + $0x114c] sm:$0xf]  ;;  %v11200_v20 = vor.u32 %v12171_v4, %v11197_v60  ;;  %v11312_v26 = vor.u32 %v12199_v11, %v11309_v37  ;;  %v11293_v31 = vld [vmem:[#allocation17 + $0x1118] sm:$0xf0] }
 0x662   : > { %7853 = vmatpush.bf16.msrb.mxu1 %v11408_v22  ;;  %v11328_v21 = vor.u32 %v12203_v46, %v11325_v17  ;;  %v11184_v22 = vor.u32 %v12167_v18, %v11181_v62 }
 0x663   : > { %7809 = vmatmul.bf16.vlgmr.msra.gmra.mxu1 %v13157_v63  ;;  %v12211_v63 = vld [vmem:[#allocation17 + $0x118c] sm:$0xf] }
 0x664   : > { %7832 = vmatpush.bf16.msra.mxu3 %v11072_v1  ;;  %v11360_v52 = vor.u32 %v12211_v63, %v11357_v19 }
 0x665   : > { %7819 = vmatpush.bf16.msra.mxu2 %v10944_v6  ;;  %7841 = vmatpush.bf16.msrb.mxu0 %v11264_v33  ;;  %v7591_v16 = vpop.f32.mrf.mxu0 }
 0x666   : > { %7854 = vmatpush.bf16.msrb.mxu1 %v11392_v41 }
 0x668   : > { %7833 = vmatpush.bf16.msra.mxu3 %v11056_v48  ;;  %v7604_v34 = vpop.f32.mrf.mxu1 }
 0x669   : > { %7820 = vmatpush.bf16.msra.mxu2 %v10928_v15  ;;  %7842 = vmatpush.bf16.msrb.mxu0 %v11248_v27 }
 0x66a   : > { %7855 = vmatpush.bf16.msrb.mxu1 %v11376_v44 }
 0x66c   : > { %7834 = vmatpush.bf16.msra.mxu3 %v11040_v54 }
 0x66d   : > { %7821 = vmatpush.bf16.msra.mxu2 %v10912_v50  ;;  %7843 = vmatpush.bf16.msrb.mxu0 %v11232_v58 }
 0x66e   : > { %7856 = vmatpush.bf16.msrb.mxu1 %v11360_v52 }
 0x66f   : > { %7835 = vmatmul.bf16.vlgmr.msra.gmra.mxu3 %v13164_v9  ;;  %v11296_v9 = vor.u32 %v12195_v29, %v11293_v31 }
 0x670   : > { %7822 = vmatmul.bf16.vlgmr.msra.gmra.mxu2 %v13162_v2  ;;  %v11165_v2 = vld [vmem:[#allocation17 + $0x1018] sm:$0xf0] }
 0x671   : > { %7844 = vmatpush.bf16.msrb.mxu0 %v11216_v12  ;;  %v11168_v5 = vor.u32 %v12163_v28, %v11165_v2 }
 0x672   : > { %7857 = vmatpush.bf16.msrb.mxu1 %v11344_v43  ;;  %v7628_v1 = vpop.f32.mrf.mxu3 }
 0x673   : > { %v7615_v53 = vpop.f32.mrf.mxu2 }
 0x674   : > { %v7616_v6 = vadd.f32 %v7615_v53, %v7603_v32 }
 0x675   : > { %7845 = vmatpush.bf16.msrb.mxu0 %v11200_v20 }
 0x676   : > { %7858 = vmatpush.bf16.msrb.mxu1 %v11328_v21  ;;  %v7629_v33 = vadd.f32 %v7628_v1, %v7616_v6 }
 0x678   : > { %vm7868_vm3 = vcmp.ge.f32.partialorder %v7629_v33, 0.0  ;;  %v7872_v36 = vmul.f32 0.2, %v7629_v33 }
 0x679   : > { %7846 = vmatpush.bf16.msrb.mxu0 %v11184_v22 }
 0x67a   : > { %7859 = vmatpush.bf16.msrb.mxu1 %v11312_v26  ;;  %v7876_v41 = vsel %vm7868_vm3, %v7629_v33, %v7872_v36  ;;  %v7630_v51 = vpop.f32.mrf.mxu3  ;;  %v7883_v33 = vperm.slane %v13272_v59, 3 }
 0x67b   : > { %v7617_v56 = vpop.f32.mrf.mxu2  ;;  %v7890_v14 = vmul.f32 %v7882_v40, %v7876_v41  ;;  %v7903_v51 = vld [vmem:[#allocation2] sm:$0x1] }
 0x67d   : > { %7847 = vmatpush.bf16.msrb.mxu0 %v11168_v5  ;;  %v7896_v15 = vsel %vm7892_vm2, %v7890_v14, 0.0  ;;  %v7641_v45 = vpop.f32.mrf.mxu0 }
 0x67e   : > { %7860 = vmatpush.bf16.msrb.mxu1 %v11296_v9  ;;  %v7897_v48 = vadd.f32 %v7896_v15, %v13245_v23  ;;  %v7642_v27 = vadd.f32 %v7641_v45, %v4045_v24 }
 0x680   : > { %7848 = vmatmul.bf16.vlgmr.msrb.gmra.mxu0 %v13170_v61  ;;  %v7654_v10 = vpop.f32.mrf.mxu1 }
 0x681   : > { %7861 = vmatmul.bf16.vlgmr.msrb.gmra.mxu1 %v13172_v7  ;;  %v7655_v57 = vadd.f32 %v7654_v10, %v7642_v27 }
 0x685   : > { %v7643_v38 = vpop.f32.mrf.mxu0 }
 0x688   : > { %v7656_v42 = vpop.f32.mrf.mxu1 }
 0x692   : > { %v7680_v55 = vpop.f32.mrf.mxu3 }
 0x693   : > { %v7667_v44 = vpop.f32.mrf.mxu2 }
 0x694   : > { %v7668_v61 = vadd.f32 %v7667_v44, %v7655_v57 }
 0x696   : > { %v7681_v49 = vadd.f32 %v7680_v55, %v7668_v61 }
 0x69a   : > { %v7682_v25 = vpop.f32.mrf.mxu3 }
 0x69b   : > { %v7669_v7 = vpop.f32.mrf.mxu2 }
 0x69d   : > { %v7693_v30 = vpop.f32.mrf.mxu0 }
 0x69e   : > { %v7694_v63 = vadd.f32 %v7693_v30, %v7681_v49 }
 0x6a0   : > { %v7706_v19 = vpop.f32.mrf.mxu1 }
 0x6a1   : > { %v7707_v39 = vadd.f32 %v7706_v19, %v7694_v63 }
 0x6a5   : > { %v7695_v35 = vpop.f32.mrf.mxu0 }
 0x6a8   : > { %v7708_v50 = vpop.f32.mrf.mxu1 }
 0x6b2   : > { %v7732_v58 = vpop.f32.mrf.mxu3 }
 0x6b3   : > { %v7719_v54 = vpop.f32.mrf.mxu2 }
 0x6b4   : > { %v7720_v16 = vadd.f32 %v7719_v54, %v7707_v39 }
 0x6b6   : > { %v7733_v17 = vadd.f32 %v7732_v58, %v7720_v16 }
 0x6ba   : > { %v7734_v32 = vpop.f32.mrf.mxu3 }
 0x6bb   : > { %v7721_v23 = vpop.f32.mrf.mxu2 }
 0x6bd   : > { %v7745_v52 = vpop.f32.mrf.mxu0 }
 0x6be   : > { %v7746_v34 = vadd.f32 %v7745_v52, %v7733_v17 }
 0x6c0   : > { %v7758_v13 = vpop.f32.mrf.mxu1 }
 0x6c1   : > { %v7759_v18 = vadd.f32 %v7758_v13, %v7746_v34 }
 0x6c5   : > { %v7747_v0 = vpop.f32.mrf.mxu0 }
 0x6c8   : > { %v7760_v3 = vpop.f32.mrf.mxu1 }
 0x6d2   : > { %v7784_v12 = vpop.f32.mrf.mxu3 }
 0x6d3   : > { %v7771_v8 = vpop.f32.mrf.mxu2 }
 0x6d4   : > { %v7772_v62 = vadd.f32 %v7771_v8, %v7759_v18 }
 0x6d6   : > { %v7785_v11 = vadd.f32 %v7784_v12, %v7772_v62 }
 0x6da   : > { %v7786_v4 = vpop.f32.mrf.mxu3 }
 0x6db   : > { %v7773_v43 = vpop.f32.mrf.mxu2 }
 0x6dd   : > { %v7797_v60 = vpop.f32.mrf.mxu0 }
 0x6de   : > { %v7798_v37 = vadd.f32 %v7797_v60, %v7785_v11 }
 0x6e0   : > { %v7810_v46 = vpop.f32.mrf.mxu1 }
 0x6e1   : > { %v7811_v28 = vadd.f32 %v7810_v46, %v7798_v37 }
 0x6e5   : > { %v7799_v20 = vpop.f32.mrf.mxu0 }
 0x6e8   : > { %v7812_v21 = vpop.f32.mrf.mxu1 }
 0x6f2   : > { %v7836_v26 = vpop.f32.mrf.mxu3 }
 0x6f3   : > { %v7823_v22 = vpop.f32.mrf.mxu2 }
 0x6f4   : > { %v7824_v2 = vadd.f32 %v7823_v22, %v7811_v28 }
 0x6f6   : > { %v7837_v5 = vadd.f32 %v7836_v26, %v7824_v2 }
 0x6fa   : > { %v7838_v31 = vpop.f32.mrf.mxu3 }
 0x6fb   : > { %v7825_v29 = vpop.f32.mrf.mxu2 }
 0x6fd   : > { %v7849_v9 = vpop.f32.mrf.mxu0 }
 0x6fe   : > { %v7850_v53 = vadd.f32 %v7849_v9, %v7837_v5  ;;  %v7862_v6 = vpop.f32.mrf.mxu1 }
 0x700   : > { %v7863_v1 = vadd.f32 %v7862_v6, %v7850_v53 }
 0x702   : > { %vm7869_vm4 = vcmp.ge.f32.partialorder %v7863_v1, 0.0  ;;  %v7873_v40 = vmul.f32 0.2, %v7863_v1 }
 0x704   : > { %v7877_v36 = vsel %vm7869_vm4, %v7863_v1, %v7873_v40 }
 0x705   : > { %v7851_v41 = vpop.f32.mrf.mxu0  ;;  %v7891_v56 = vmul.f32 %v7883_v33, %v7877_v36 }
 0x706   : > { %v7864_v47 = vpop.f32.mrf.mxu1 }
 0x707   : > { %v7898_v24 = vsel %vm7892_vm2, %v7891_v56, 0.0 }
 0x708   : > { %v7899_v14 = vadd.f32 %v7898_v24, %v7897_v48 }
 0x70a   : > { %7900 = vadd.xlane.f32.xlu0 %v7899_v14 }
 0x77d   : > { %v7901_v15 = vpop.xlane.xlu0 %7900 }
 0x77e   : > { %v7904_v45 = vadd.f32 %v7903_v51, %v7901_v15 }
 0x780   : > { %v11409_v27 = vmul.f32 -1.442695, %v7904_v45 }
 0x782   : > { %12363 = vpow2.f32 %v11409_v27 }
 0x788   : > { %v12364_v10 = vpop.eup %12363 }
 0x789   : > { %v7908_v57 = vadd.f32 1.0, %v12364_v10 }
 0x78b   : > { %12365 = vrcp.f32 %v7908_v57  ;;  %v7920_v44 = vand.u32 2147483648, %v7908_v57  ;;  %v7918_v55 = vand.u32 2147483647, %v7908_v57  ;;  %vm7914_vm6 = vweird.f32 %v7908_v57 }
 0x78d   : > { %v7921_v48 = vor.u32 1.1754944e-38, %v7920_v44  ;;  %vm7919_vm9 = vcmp.eq.f32.partialorder %v7918_v55, 8.507059e+37 }
 0x791   : > { %v12366_v59 = vpop.eup %12365 }
 0x792   : > { %v7910_v38 = vmul.f32 %v12366_v59, %v7908_v57  ;;  %vm7915_vm5 = vweird.f32 %v12366_v59 }
 0x793   : > { %vm7916_vm7 = vmor %vm7914_vm6, %vm7915_vm5 }
 0x794   : > { %v7911_v42 = vsub.f32 1.0, %v7910_v38 }
 0x796   : > { %v7912_v61 = vmul.f32 %v12366_v59, %v7911_v42 }
 0x798   : > { %v7913_v49 = vadd.f32 %v12366_v59, %v7912_v61 }
 0x79a   : > { %v7917_v7 = vsel %vm7916_vm7, %v12366_v59, %v7913_v49 }
 0x79b   : > { %v7922_v25 = vsel %vm7919_vm9, %v7921_v48, %v7917_v7 }
 0x79c   : > { %7925 = vst.msk [vmem:[%s654_s29] sm:$0x1] %vm7924_vm8, %v7922_v25 }
 0x79d PF: > { %s33_s15 = sadd.s32 1, %s12765_s15  }
 0x79e   : > { %p30_p7 = scmp.ge.s32.totalorder %s33_s15, 4  }
 0x7a0   :  { %32 = sbr.rel (!%p30_p7) target bundleno = 11 (0xb), region = 179 }
 0x7a5   :  { %7943 = vsyncpa [#allocation4], 1 }
 0x7a6   :  { %7945 = vsyncpa [#allocation4 + $0x1], 1 }
 0x7a7   :  { %7946 = vsyncpa [#allocation6], 1 }
 0x7a8   :  { %7947 = vsyncpa [#allocation9], 1 }
 0x7a9   :  { %7948 = vsyncpa [#allocation12], 1 }
 0x7aa   :  { %7949 = vsyncpa [#allocation15], 1 }
 0x7ab   :  { %7950 = vsyncpa [#allocation18], 1 }
 0x7ac   :  { %7951 = vsyncpa [#allocation21], 1 }

</bundles_post_ra>
